<compile_context>
chip_gen: v7x
topology: tpu7x:2x2x1
jax: 0.10.0
libtpu: 0.0.40
codegen_flags: <defaults>
</compile_context>

<pallas_src>
import functools
import math

import jax
import jax.numpy as jnp
import numpy as np
from jax.experimental import pallas as pl
from jax.experimental.pallas import tpu as pltpu

LN_EPS = 1e-5       # torch nn.LayerNorm default eps
RMS_EPS = 1e-6      # QKNorm RMSNorm eps
MASK_VALUE = -1e30  # finite "minus infinity" for the causal mask


# ------------------------- shared fp32 elementwise math -------------------------
def _layernorm(x):
    mu = jnp.mean(x, axis=-1, keepdims=True)
    xc = x - mu
    var = jnp.mean(xc * xc, axis=-1, keepdims=True)
    return xc * jax.lax.rsqrt(var + LN_EPS)


def _rmsnorm(x, scale):
    ms = jnp.mean(x * x, axis=-1, keepdims=True)
    return x * jax.lax.rsqrt(ms + RMS_EPS) * scale


def _gelu(x):
    # TODO(synk): torch F.gelu defaults to the exact erf form; tanh approximation used here.
    return jax.nn.gelu(x, approximate=True)


# ---------------- capability probe: single-buffered weight BlockSpecs ----------------
def _probe_single_buffer():
    """Eagerly (at import) check whether pipeline_mode=pl.Buffered(1) lowers and runs."""
    def _copy(x_ref, o_ref):
        o_ref[...] = x_ref[...]
    try:
        spec = pl.BlockSpec((8, 128), lambda i: (0, 0), pipeline_mode=pl.Buffered(1))
        fn = pl.pallas_call(
            _copy,
            out_shape=jax.ShapeDtypeStruct((8, 128), jnp.float32),
            grid=(1,),
            in_specs=[spec],
            out_specs=pl.BlockSpec((8, 128), lambda i: (0, 0)),
        )
        jax.block_until_ready(fn(jnp.zeros((8, 128), jnp.float32)))
        return True
    except Exception:
        return False


_SINGLE_BUFFER_WEIGHTS = _probe_single_buffer()


def _const_spec(shape):
    """Grid-invariant (weight/bias) BlockSpec.

    Grid-invariant inputs are still double-buffered by default; Buffered(1) halves their
    resident VMEM (matters on v7x's 64 MiB physical VMEM at real model sizes).
    """
    idx = lambda *_: (0,) * len(shape)
    if _SINGLE_BUFFER_WEIGHTS:
        return pl.BlockSpec(shape, idx, pipeline_mode=pl.Buffered(1))
    return pl.BlockSpec(shape, idx)


def _vmem_limit_bytes():
    """~75% of physical VMEM, capped at 96 MiB: 96 MiB on v5e/v6e, 48 MiB on v7x."""
    try:
        cap = pltpu.get_tpu_info().vmem_capacity_bytes
    except Exception:
        cap = 64 * 1024 * 1024
    return int(min(96 * 1024 * 1024, max(32 * 1024 * 1024, (cap * 3) // 4)))


# ------------------------- kernel 1: LayerNorm + QKV projection -------------------------
def ln_qkv_kernel(x_ref, wqkv_ref, bqkv_ref, qkv_ref):
    x = x_ref[...].astype(jnp.float32)                        # (TM, D)
    h = _layernorm(x).astype(jnp.bfloat16)
    qkv = jnp.dot(h, wqkv_ref[...],                           # bf16 x bf16 -> f32 accum
                  preferred_element_type=jnp.float32) + bqkv_ref[...]
    qkv_ref[...] = qkv.astype(qkv_ref.dtype)                  # bf16 store: halves HBM traffic


# ---------------- kernel 2: QK RMSNorm + flash-style attention (one (b, h, q-tile)) ----------
def attn_kernel(q_ref, k_ref, v_ref, qs_ref, ks_ref, o_ref,
                m_sc, l_sc, acc_sc, *, causal, tq, tk):
    qi = pl.program_id(2)
    ki = pl.program_id(3)

    @pl.when(ki == 0)
    def _():
        m_sc[...] = jnp.full_like(m_sc, -jnp.inf)
        l_sc[...] = jnp.zeros_like(l_sc)
        acc_sc[...] = jnp.zeros_like(acc_sc)

    def block_body():
        # sm_scale is pre-folded into qs_ref on the host (no O(N^2) score multiply).
        q = _rmsnorm(q_ref[...].astype(jnp.float32), qs_ref[...]).astype(jnp.bfloat16)
        k = _rmsnorm(k_ref[...].astype(jnp.float32), ks_ref[...]).astype(jnp.bfloat16)
        s = jax.lax.dot_general(q, k, (((1,), (1,)), ((), ())),
                                preferred_element_type=jnp.float32)      # (TQ, TK)
        if causal:
            # TODO(synk): only build the iota mask on diagonal-straddling blocks.
            row = qi * tq + jax.lax.broadcasted_iota(jnp.int32, s.shape, 0)
            col = ki * tk + jax.lax.broadcasted_iota(jnp.int32, s.shape, 1)
            s = jnp.where(col <= row, s, MASK_VALUE)
            # NOTE: safe because the diagonal is always unmasked; fully-masked rows
            # (padding masks) would need extra handling.
        m_prev = m_sc[...]
        m_new = jnp.maximum(m_prev, jnp.max(s, axis=-1, keepdims=True))
        alpha = jnp.exp(m_prev - m_new)
        p = jnp.exp(s - m_new)
        l_sc[...] = alpha * l_sc[...] + jnp.sum(p, axis=-1, keepdims=True)
        acc_sc[...] = alpha * acc_sc[...] + jnp.dot(
            p.astype(jnp.bfloat16), v_ref[...], preferred_element_type=jnp.float32)
        m_sc[...] = m_new

    if causal:
        # Skip kv blocks entirely above the diagonal (cuts MXU work ~2x for causal).
        @pl.when(ki * tk <= qi * tq + (tq - 1))
        def _():
            block_body()
    else:
        block_body()

    @pl.when(ki == pl.num_programs(3) - 1)
    def _():
        inv_l = pl.reciprocal(l_sc[...], approx=True)          # EUP reciprocal, frees VALU
        o_ref[...] = (acc_sc[...] * inv_l).astype(o_ref.dtype)


# ------------------------- kernel 3: out-proj + res + LayerNorm + MLP + res -----------------
def out_mlp_kernel(x_ref, a_ref, wout_ref, bout_ref,
                   wfc1_ref, bfc1_ref, wfc2_ref, bfc2_ref, o_ref):
    x = x_ref[...].astype(jnp.float32)                         # (TM, D) residual stream
    a = a_ref[...].astype(jnp.bfloat16)                        # attention output (heads concat)
    attn = jnp.dot(a, wout_ref[...], preferred_element_type=jnp.float32) + bout_ref[...]
    x = x + attn

    h2 = _layernorm(x).astype(jnp.bfloat16)
    m = jnp.dot(h2, wfc1_ref[...], preferred_element_type=jnp.float32) + bfc1_ref[...]
    m = _gelu(m).astype(jnp.bfloat16)
    m = jnp.dot(m, wfc2_ref[...], preferred_element_type=jnp.float32) + bfc2_ref[...]
    o_ref[...] = (x + m).astype(o_ref.dtype)
    # TODO(synk): for real d_ff on v7x, stream w_fc1/w_fc2 over an 'arbitrary' d_ff grid axis
    # with a VMEM fp32 accumulator instead of keeping them fully resident.


# ------------------------- tiling helpers -------------------------
def _pick_row_tile(m_rows, max_tile=512):
    """Row tile for the (B*N)-row matmul kernels.

    Up to 512 rows per step (~85% vs ~63% of HBM roofline at 256); small inputs run in a
    single step. Non-divisible row counts are zero-padded by the wrapper, so no silent
    whole-array fallback.
    """
    if m_rows <= max_tile:
        return max(8, ((m_rows + 7) // 8) * 8)
    for t in (512, 384, 256, 128):
        if m_rows % t == 0:
            return t
    return max_tile        # wrapper pads rows up to a multiple of the tile


def _pick_seq_tile(n, max_tile=256):
    """q/kv tile for attention: fill the 256-wide MXU on v6e/v7x when N allows."""
    if n <= max_tile:
        return n
    for t in range(max_tile, 7, -8):
        if n % t == 0:
            return t
    return n  # TODO(synk): pad awkward sequence lengths instead of whole-N tiles.


# ------------------------- wrapper -------------------------
def transformer_forward(x, params, *, n_heads, causal=False):
    B, N, D = x.shape
    H = n_heads
    hd = D // H
    d_ff = params["w_fc1"].shape[1]
    M = B * N
    TM = _pick_row_tile(M)
    M_pad = ((M + TM - 1) // TM) * TM
    TQ = _pick_seq_tile(N)
    TK = _pick_seq_tile(N)

    vmem_limit = _vmem_limit_bytes()
    row_params = pltpu.CompilerParams(
        dimension_semantics=("parallel",), vmem_limit_bytes=vmem_limit)

    x2d = x.reshape(M, D)
    x2d_p = x2d if M_pad == M else jnp.pad(x2d, ((0, M_pad - M), (0, 0)))

    # ---- kernel 1: LayerNorm + fused QKV projection, row-tiled over B*N ----
    qkv2d = pl.pallas_call(
        ln_qkv_kernel,
        out_shape=jax.ShapeDtypeStruct((M_pad, 3 * D), jnp.bfloat16),   # bf16 intermediate
        grid=(M_pad // TM,),
        in_specs=[
            pl.BlockSpec((TM, D), lambda i: (i, 0)),
            _const_spec((D, 3 * D)),            # grid-invariant, single-buffered when possible
            _const_spec((1, 3 * D)),
        ],
        out_specs=pl.BlockSpec((TM, 3 * D), lambda i: (i, 0)),
        compiler_params=row_params,
    )(x2d_p, params["w_qkv"], params["b_qkv"])
    qkv = qkv2d[:M].reshape(B, N, 3 * D)

    # ---- kernel 2: flash-style attention, grid over (batch, head, q-tile, kv-tile) ----
    sm_scale = 1.0 / math.sqrt(hd)
    q_scale_eff = params["q_scale"] * sm_scale   # fold sm_scale into q RMSNorm scale (host)
    attn = pl.pallas_call(
        functools.partial(attn_kernel, causal=causal, tq=TQ, tk=TK),
        out_shape=jax.ShapeDtypeStruct((B, N, D), jnp.bfloat16),        # bf16 intermediate
        grid=(B, H, N // TQ, N // TK),
        in_specs=[
            pl.BlockSpec((None, TQ, hd), lambda b, h, qi, ki: (b, qi, h)),          # q head h
            pl.BlockSpec((None, TK, hd), lambda b, h, qi, ki: (b, ki, H + h)),      # k head h
            pl.BlockSpec((None, TK, hd), lambda b, h, qi, ki: (b, ki, 2 * H + h)),  # v head h
            pl.BlockSpec((1, hd), lambda b, h, qi, ki: (0, 0)),                     # q scale
            pl.BlockSpec((1, hd), lambda b, h, qi, ki: (0, 0)),                     # k scale
        ],
        # heads write adjacent lane slices -> 'b h n d -> b n (h d)' concat is free
        out_specs=pl.BlockSpec((None, TQ, hd), lambda b, h, qi, ki: (b, qi, h)),
        scratch_shapes=[
            pltpu.VMEM((TQ, 1), jnp.float32),    # running max m
            pltpu.VMEM((TQ, 1), jnp.float32),    # running denom l
            pltpu.VMEM((TQ, hd), jnp.float32),   # running acc
        ],
        compiler_params=pltpu.CompilerParams(
            dimension_semantics=("parallel", "parallel", "parallel", "arbitrary"),
            vmem_limit_bytes=vmem_limit),
    )(qkv, qkv, qkv, q_scale_eff, params["k_scale"])

    attn2d = attn.reshape(M, D)
    attn2d_p = attn2d if M_pad == M else jnp.pad(attn2d, ((0, M_pad - M), (0, 0)))

    # ---- kernel 3: out-proj + residual + LayerNorm + MLP + residual, row-tiled ----
    out2d = pl.pallas_call(
        out_mlp_kernel,
        out_shape=jax.ShapeDtypeStruct((M_pad, D), x.dtype),
        grid=(M_pad // TM,),
        in_specs=[
            pl.BlockSpec((TM, D), lambda i: (i, 0)),        # residual stream
            pl.BlockSpec((TM, D), lambda i: (i, 0)),        # attention output (bf16)
            _const_spec((D, D)),
            _const_spec((1, D)),
            _const_spec((D, d_ff)),
            _const_spec((1, d_ff)),
            _const_spec((d_ff, D)),
            _const_spec((1, D)),
        ],
        out_specs=pl.BlockSpec((TM, D), lambda i: (i, 0)),
        compiler_params=row_params,
    )(x2d_p, attn2d_p, params["w_out"], params["b_out"],
      params["w_fc1"], params["b_fc1"], params["w_fc2"], params["b_fc2"])

    return out2d[:M].reshape(B, N, D)


# ------------------------- plain-JAX reference (same math & precision policy) ----------------
def transformer_reference(x, params, *, n_heads, causal=False):
    B, N, D = x.shape
    hd = D // n_heads
    bf16, f32 = jnp.bfloat16, jnp.float32

    def mm(a, w):  # bf16 operands, fp32 accumulation — mirrors the kernel precision policy
        return jnp.dot(a.astype(bf16), w.astype(bf16), preferred_element_type=f32)

    h = _layernorm(x.astype(f32))
    qkv = (mm(h, params["w_qkv"]) + params["b_qkv"]).astype(bf16)   # mirror bf16 intermediate
    qkv = qkv.reshape(B, N, 3, n_heads, hd)
    q = jnp.transpose(qkv[:, :, 0], (0, 2, 1, 3)).astype(f32)      # (B, H, N, hd)
    k = jnp.transpose(qkv[:, :, 1], (0, 2, 1, 3)).astype(f32)
    v = jnp.transpose(qkv[:, :, 2], (0, 2, 1, 3))
    q = _rmsnorm(q, params["q_scale"][0])
    k = _rmsnorm(k, params["k_scale"][0])
    s = jnp.einsum("bhnd,bhmd->bhnm", q.astype(bf16), k.astype(bf16),
                   preferred_element_type=f32) / math.sqrt(hd)
    if causal:
        mask = jnp.tril(jnp.ones((N, N), bool))
        s = jnp.where(mask, s, MASK_VALUE)
    p = jax.nn.softmax(s, axis=-1)
    o = jnp.einsum("bhnm,bhmd->bhnd", p.astype(bf16), v.astype(bf16),
                   preferred_element_type=f32)
    o = jnp.transpose(o, (0, 2, 1, 3)).reshape(B, N, D).astype(bf16)  # mirror bf16 intermediate
    x1 = x + (mm(o, params["w_out"]) + params["b_out"])
    h2 = _layernorm(x1)
    m = _gelu(mm(h2, params["w_fc1"]) + params["b_fc1"])
    m = mm(m, params["w_fc2"]) + params["b_fc2"]
    return x1 + m


# ------------------------- params (torch nn.Linear-style init) -------------------------
def init_params(key, d_model, n_heads, d_ff):
    keys = jax.random.split(key, 4)

    def lin(k, fan_in, fan_out):
        k1, k2 = jax.random.split(k)
        bound = 1.0 / math.sqrt(fan_in)
        w = jax.random.uniform(k1, (fan_in, fan_out), jnp.float32, -bound, bound)
        b = jax.random.uniform(k2, (1, fan_out), jnp.float32, -bound, bound)
        return w.astype(jnp.bfloat16), b                      # weights stored bf16, bias f32

    w_qkv, b_qkv = lin(keys[0], d_model, 3 * d_model)
    w_out, b_out = lin(keys[1], d_model, d_model)
    w_fc1, b_fc1 = lin(keys[2], d_model, d_ff)
    w_fc2, b_fc2 = lin(keys[3], d_ff, d_model)
    hd = d_model // n_heads
    return dict(w_qkv=w_qkv, b_qkv=b_qkv, w_out=w_out, b_out=b_out,
                q_scale=jnp.ones((1, hd), jnp.float32),
                k_scale=jnp.ones((1, hd), jnp.float32),
                w_fc1=w_fc1, b_fc1=b_fc1, w_fc2=w_fc2, b_fc2=b_fc2)


if __name__ == "__main__":
    # Small but lane-dense shapes: d_model / head_dim / d_ff all multiples of 128.
    B, N, D = 2, 64, 256
    H = 2                      # head_dim = 128
    D_FF = 4 * D

    root = jax.random.PRNGKey(0)
    kx, kp = jax.random.split(root)
    x = jax.random.normal(kx, (B, N, D), jnp.float32)
    params = init_params(kp, D, H, D_FF)

    for causal in (False, True):
        fwd = jax.jit(functools.partial(transformer_forward, n_heads=H, causal=causal))
        out = jax.block_until_ready(fwd(x, params))
        ref = jax.block_until_ready(
            transformer_reference(x, params, n_heads=H, causal=causal))
        assert out.shape == (B, N, D) and out.dtype == jnp.float32
        np.testing.assert_allclose(np.asarray(out), np.asarray(ref), rtol=2e-2, atol=2e-2)

    print("KERNEL_OK")
</pallas_src>

<mosaic_0001>
module attributes {stable_mosaic.version = 11 : i64} {
  func.func @_copy(%arg0: i32, %arg1: memref<8x128xf32, #tpu.memory_space<vmem>>, %arg2: memref<8x128xf32, #tpu.memory_space<vmem>>) attributes {dimension_semantics = [#tpu.dimension_semantics<arbitrary>], iteration_bounds = array<i64: 1>, scalar_prefetch = 0 : i64, scratch_operands = 0 : i64, tpu.core_type = #tpu.core_type<tc>, window_params = [{pipeline_mode = #tpu.pipeline_mode<synchronous>, transform_indices = @transform_0, window_bounds = array<i64: 8, 128>}, {pipeline_mode = #tpu.pipeline_mode<synchronous>, transform_indices = @transform_1, window_bounds = array<i64: 8, 128>}]} {
    %c0 = arith.constant 0 : index
    %c0_0 = arith.constant 0 : index
    %0 = vector.load %arg1[%c0, %c0_0] : memref<8x128xf32, #tpu.memory_space<vmem>>, vector<8x128xf32>
    %c0_1 = arith.constant 0 : index
    %c0_2 = arith.constant 0 : index
    %1 = vector.load %arg2[%c0_1, %c0_2] : memref<8x128xf32, #tpu.memory_space<vmem>>, vector<8x128xf32>
    tpu.vector_store %arg2[%c0_1, %c0_2], %0 {strides = array<i32>} : memref<8x128xf32, #tpu.memory_space<vmem>>, vector<8x128xf32>,
    return
  }
  func.func @transform_0(%arg0: i32) -> (i32, i32) {
    %c0_i32 = arith.constant 0 : i32
    %c0_i32_0 = arith.constant 0 : i32
    %c0_i32_1 = arith.constant 0 : i32
    return %c0_i32, %c0_i32_0 : i32, i32
  }
  func.func @transform_1(%arg0: i32) -> (i32, i32) {
    %c0_i32 = arith.constant 0 : i32
    %c0_i32_0 = arith.constant 0 : i32
    %c0_i32_1 = arith.constant 0 : i32
    return %c0_i32, %c0_i32_0 : i32, i32
  }
}

module attributes {stable_mosaic.version = 11 : i64} {
  func.func @out_mlp_kernel(%arg0: i32, %arg1: memref<128x256xf32, #tpu.memory_space<vmem>>, %arg2: memref<128x256xbf16, #tpu.memory_space<vmem>>, %arg3: memref<256x256xbf16, #tpu.memory_space<vmem>>, %arg4: memref<1x256xf32, #tpu.memory_space<vmem>>, %arg5: memref<256x1024xbf16, #tpu.memory_space<vmem>>, %arg6: memref<1x1024xf32, #tpu.memory_space<vmem>>, %arg7: memref<1024x256xbf16, #tpu.memory_space<vmem>>, %arg8: memref<1x256xf32, #tpu.memory_space<vmem>>, %arg9: memref<128x256xf32, #tpu.memory_space<vmem>>) attributes {dimension_semantics = [#tpu.dimension_semantics<parallel>], iteration_bounds = array<i64: 1>, scalar_prefetch = 0 : i64, scratch_operands = 0 : i64, tpu.core_type = #tpu.core_type<tc>, window_params = [{transform_indices = @transform_0, window_bounds = array<i64: 128, 256>}, {transform_indices = @transform_1, window_bounds = array<i64: 128, 256>}, {pipeline_mode = #tpu.pipeline_mode<synchronous>, transform_indices = @transform_2, window_bounds = array<i64: 256, 256>}, {pipeline_mode = #tpu.pipeline_mode<synchronous>, transform_indices = @transform_3, window_bounds = array<i64: 1, 256>}, {pipeline_mode = #tpu.pipeline_mode<synchronous>, transform_indices = @transform_4, window_bounds = array<i64: 256, 1024>}, {pipeline_mode = #tpu.pipeline_mode<synchronous>, transform_indices = @transform_5, window_bounds = array<i64: 1, 1024>}, {pipeline_mode = #tpu.pipeline_mode<synchronous>, transform_indices = @transform_6, window_bounds = array<i64: 1024, 256>}, {pipeline_mode = #tpu.pipeline_mode<synchronous>, transform_indices = @transform_7, window_bounds = array<i64: 1, 256>}, {transform_indices = @transform_8, window_bounds = array<i64: 128, 256>}]} {
    %c0 = arith.constant 0 : index
    %c0_0 = arith.constant 0 : index
    %0 = vector.load %arg1[%c0, %c0_0] : memref<128x256xf32, #tpu.memory_space<vmem>>, vector<128x256xf32>
    %c0_1 = arith.constant 0 : index
    %c0_2 = arith.constant 0 : index
    %1 = vector.load %arg2[%c0_1, %c0_2] : memref<128x256xbf16, #tpu.memory_space<vmem>>, vector<128x256xbf16>
    %c0_3 = arith.constant 0 : index
    %c0_4 = arith.constant 0 : index
    %2 = vector.load %arg3[%c0_3, %c0_4] : memref<256x256xbf16, #tpu.memory_space<vmem>>, vector<256x256xbf16>
    %cst = arith.constant dense<0.000000e+00> : vector<128x256xf32>
    %3 = tpu.matmul %1, %2, %cst {dimension_numbers = #tpu.dot_dimension_numbers<[1], [0], [0], [1], [0, 0, 1, 1], [], []>} : vector<128x256xbf16>, vector<256x256xbf16>, vector<128x256xf32> -> vector<128x256xf32>
    %c0_5 = arith.constant 0 : index
    %c0_6 = arith.constant 0 : index
    %4 = vector.load %arg4[%c0_5, %c0_6] : memref<1x256xf32, #tpu.memory_space<vmem>>, vector<1x256xf32>
    %5 = vector.broadcast %4 : vector<1x256xf32> to vector<128x256xf32>
    %6 = arith.addf %3, %5 : vector<128x256xf32>
    %7 = arith.addf %0, %6 : vector<128x256xf32>
    %cst_7 = arith.constant dense<0.000000e+00> : vector<128xf32>
    %8 = vector.multi_reduction <add>, %7, %cst_7 [1] : vector<128x256xf32> to vector<128xf32>
    %9 = vector.shape_cast %8 : vector<128xf32> to vector<128x1xf32>
    %cst_8 = arith.constant 2.560000e+02 : f32
    %10 = vector.broadcast %cst_8 : f32 to vector<128x1xf32>
    %11 = arith.divf %9, %10 : vector<128x1xf32>
    %12 = vector.broadcast %11 : vector<128x1xf32> to vector<128x256xf32>
    %13 = arith.subf %7, %12 : vector<128x256xf32>
    %14 = arith.mulf %13, %13 : vector<128x256xf32>
    %cst_9 = arith.constant dense<0.000000e+00> : vector<128xf32>
    %15 = vector.multi_reduction <add>, %14, %cst_9 [1] : vector<128x256xf32> to vector<128xf32>
    %16 = vector.shape_cast %15 : vector<128xf32> to vector<128x1xf32>
    %cst_10 = arith.constant 2.560000e+02 : f32
    %17 = vector.broadcast %cst_10 : f32 to vector<128x1xf32>
    %18 = arith.divf %16, %17 : vector<128x1xf32>
    %cst_11 = arith.constant 9.99999974E-6 : f32
    %19 = vector.broadcast %cst_11 : f32 to vector<128x1xf32>
    %20 = arith.addf %18, %19 : vector<128x1xf32>
    %21 = math.rsqrt %20 : vector<128x1xf32>
    %22 = vector.broadcast %21 : vector<128x1xf32> to vector<128x256xf32>
    %23 = arith.mulf %13, %22 : vector<128x256xf32>
    %24 = arith.truncf %23 : vector<128x256xf32> to vector<128x256xbf16>
    %c0_12 = arith.constant 0 : index
    %c0_13 = arith.constant 0 : index
    %25 = vector.load %arg5[%c0_12, %c0_13] : memref<256x1024xbf16, #tpu.memory_space<vmem>>, vector<256x1024xbf16>
    %cst_14 = arith.constant dense<0.000000e+00> : vector<128x1024xf32>
    %26 = tpu.matmul %24, %25, %cst_14 {dimension_numbers = #tpu.dot_dimension_numbers<[1], [0], [0], [1], [0, 0, 1, 1], [], []>} : vector<128x256xbf16>, vector<256x1024xbf16>, vector<128x1024xf32> -> vector<128x1024xf32>
    %c0_15 = arith.constant 0 : index
    %c0_16 = arith.constant 0 : index
    %27 = vector.load %arg6[%c0_15, %c0_16] : memref<1x1024xf32, #tpu.memory_space<vmem>>, vector<1x1024xf32>
    %28 = vector.broadcast %27 : vector<1x1024xf32> to vector<128x1024xf32>
    %29 = arith.addf %26, %28 : vector<128x1024xf32>
    %30 = arith.mulf %29, %29 : vector<128x1024xf32>
    %31 = arith.mulf %29, %30 : vector<128x1024xf32>
    %cst_17 = arith.constant 4.471500e-02 : f32
    %32 = vector.broadcast %cst_17 : f32 to vector<128x1024xf32>
    %33 = arith.mulf %32, %31 : vector<128x1024xf32>
    %34 = arith.addf %29, %33 : vector<128x1024xf32>
    %cst_18 = arith.constant 0.797884583 : f32
    %35 = vector.broadcast %cst_18 : f32 to vector<128x1024xf32>
    %36 = arith.mulf %35, %34 : vector<128x1024xf32>
    %37 = math.tanh %36 : vector<128x1024xf32>
    %cst_19 = arith.constant 1.000000e+00 : f32
    %38 = vector.broadcast %cst_19 : f32 to vector<128x1024xf32>
    %39 = arith.addf %38, %37 : vector<128x1024xf32>
    %cst_20 = arith.constant 5.000000e-01 : f32
    %40 = vector.broadcast %cst_20 : f32 to vector<128x1024xf32>
    %41 = arith.mulf %40, %39 : vector<128x1024xf32>
    %42 = arith.mulf %29, %41 : vector<128x1024xf32>
    %43 = arith.truncf %42 : vector<128x1024xf32> to vector<128x1024xbf16>
    %c0_21 = arith.constant 0 : index
    %c0_22 = arith.constant 0 : index
    %44 = vector.load %arg7[%c0_21, %c0_22] : memref<1024x256xbf16, #tpu.memory_space<vmem>>, vector<1024x256xbf16>
    %cst_23 = arith.constant dense<0.000000e+00> : vector<128x256xf32>
    %45 = tpu.matmul %43, %44, %cst_23 {dimension_numbers = #tpu.dot_dimension_numbers<[1], [0], [0], [1], [0, 0, 1, 1], [], []>} : vector<128x1024xbf16>, vector<1024x256xbf16>, vector<128x256xf32> -> vector<128x256xf32>
    %c0_24 = arith.constant 0 : index
    %c0_25 = arith.constant 0 : index
    %46 = vector.load %arg8[%c0_24, %c0_25] : memref<1x256xf32, #tpu.memory_space<vmem>>, vector<1x256xf32>
    %47 = vector.broadcast %46 : vector<1x256xf32> to vector<128x256xf32>
    %48 = arith.addf %45, %47 : vector<128x256xf32>
    %49 = arith.addf %7, %48 : vector<128x256xf32>
    %c0_26 = arith.constant 0 : index
    %c0_27 = arith.constant 0 : index
    %50 = vector.load %arg9[%c0_26, %c0_27] : memref<128x256xf32, #tpu.memory_space<vmem>>, vector<128x256xf32>
    tpu.vector_store %arg9[%c0_26, %c0_27], %49 {strides = array<i32>} : memref<128x256xf32, #tpu.memory_space<vmem>>, vector<128x256xf32>,
    return
  }
  func.func @transform_0(%arg0: i32) -> (i32, i32) {
    %c0_i32 = arith.constant 0 : i32
    %c0_i32_0 = arith.constant 0 : i32
    return %arg0, %c0_i32 : i32, i32
  }
  func.func @transform_1(%arg0: i32) -> (i32, i32) {
    %c0_i32 = arith.constant 0 : i32
    %c0_i32_0 = arith.constant 0 : i32
    return %arg0, %c0_i32 : i32, i32
  }
  func.func @transform_2(%arg0: i32) -> (i32, i32) {
    %c0_i32 = arith.constant 0 : i32
    %c0_i32_0 = arith.constant 0 : i32
    %c0_i32_1 = arith.constant 0 : i32
    return %c0_i32, %c0_i32_0 : i32, i32
  }
  func.func @transform_3(%arg0: i32) -> (i32, i32) {
    %c0_i32 = arith.constant 0 : i32
    %c0_i32_0 = arith.constant 0 : i32
    %c0_i32_1 = arith.constant 0 : i32
    return %c0_i32, %c0_i32_0 : i32, i32
  }
  func.func @transform_4(%arg0: i32) -> (i32, i32) {
    %c0_i32 = arith.constant 0 : i32
    %c0_i32_0 = arith.constant 0 : i32
    %c0_i32_1 = arith.constant 0 : i32
    return %c0_i32, %c0_i32_0 : i32, i32
  }
  func.func @transform_5(%arg0: i32) -> (i32, i32) {
    %c0_i32 = arith.constant 0 : i32
    %c0_i32_0 = arith.constant 0 : i32
    %c0_i32_1 = arith.constant 0 : i32
    return %c0_i32, %c0_i32_0 : i32, i32
  }
  func.func @transform_6(%arg0: i32) -> (i32, i32) {
    %c0_i32 = arith.constant 0 : i32
    %c0_i32_0 = arith.constant 0 : i32
    %c0_i32_1 = arith.constant 0 : i32
    return %c0_i32, %c0_i32_0 : i32, i32
  }
  func.func @transform_7(%arg0: i32) -> (i32, i32) {
    %c0_i32 = arith.constant 0 : i32
    %c0_i32_0 = arith.constant 0 : i32
    %c0_i32_1 = arith.constant 0 : i32
    return %c0_i32, %c0_i32_0 : i32, i32
  }
  func.func @transform_8(%arg0: i32) -> (i32, i32) {
    %c0_i32 = arith.constant 0 : i32
    %c0_i32_0 = arith.constant 0 : i32
    return %arg0, %c0_i32 : i32, i32
  }
}

module attributes {stable_mosaic.version = 11 : i64} {
  func.func @ln_qkv_kernel(%arg0: i32, %arg1: memref<128x256xf32, #tpu.memory_space<vmem>>, %arg2: memref<256x768xbf16, #tpu.memory_space<vmem>>, %arg3: memref<1x768xf32, #tpu.memory_space<vmem>>, %arg4: memref<128x768xbf16, #tpu.memory_space<vmem>>) attributes {dimension_semantics = [#tpu.dimension_semantics<parallel>], iteration_bounds = array<i64: 1>, scalar_prefetch = 0 : i64, scratch_operands = 0 : i64, tpu.core_type = #tpu.core_type<tc>, window_params = [{transform_indices = @transform_0, window_bounds = array<i64: 128, 256>}, {pipeline_mode = #tpu.pipeline_mode<synchronous>, transform_indices = @transform_1, window_bounds = array<i64: 256, 768>}, {pipeline_mode = #tpu.pipeline_mode<synchronous>, transform_indices = @transform_2, window_bounds = array<i64: 1, 768>}, {transform_indices = @transform_3, window_bounds = array<i64: 128, 768>}]} {
    %c0 = arith.constant 0 : index
    %c0_0 = arith.constant 0 : index
    %0 = vector.load %arg1[%c0, %c0_0] : memref<128x256xf32, #tpu.memory_space<vmem>>, vector<128x256xf32>
    %cst = arith.constant dense<0.000000e+00> : vector<128xf32>
    %1 = vector.multi_reduction <add>, %0, %cst [1] : vector<128x256xf32> to vector<128xf32>
    %2 = vector.shape_cast %1 : vector<128xf32> to vector<128x1xf32>
    %cst_1 = arith.constant 2.560000e+02 : f32
    %3 = vector.broadcast %cst_1 : f32 to vector<128x1xf32>
    %4 = arith.divf %2, %3 : vector<128x1xf32>
    %5 = vector.broadcast %4 : vector<128x1xf32> to vector<128x256xf32>
    %6 = arith.subf %0, %5 : vector<128x256xf32>
    %7 = arith.mulf %6, %6 : vector<128x256xf32>
    %cst_2 = arith.constant dense<0.000000e+00> : vector<128xf32>
    %8 = vector.multi_reduction <add>, %7, %cst_2 [1] : vector<128x256xf32> to vector<128xf32>
    %9 = vector.shape_cast %8 : vector<128xf32> to vector<128x1xf32>
    %cst_3 = arith.constant 2.560000e+02 : f32
    %10 = vector.broadcast %cst_3 : f32 to vector<128x1xf32>
    %11 = arith.divf %9, %10 : vector<128x1xf32>
    %cst_4 = arith.constant 9.99999974E-6 : f32
    %12 = vector.broadcast %cst_4 : f32 to vector<128x1xf32>
    %13 = arith.addf %11, %12 : vector<128x1xf32>
    %14 = math.rsqrt %13 : vector<128x1xf32>
    %15 = vector.broadcast %14 : vector<128x1xf32> to vector<128x256xf32>
    %16 = arith.mulf %6, %15 : vector<128x256xf32>
    %17 = arith.truncf %16 : vector<128x256xf32> to vector<128x256xbf16>
    %c0_5 = arith.constant 0 : index
    %c0_6 = arith.constant 0 : index
    %18 = vector.load %arg2[%c0_5, %c0_6] : memref<256x768xbf16, #tpu.memory_space<vmem>>, vector<256x768xbf16>
    %cst_7 = arith.constant dense<0.000000e+00> : vector<128x768xf32>
    %19 = tpu.matmul %17, %18, %cst_7 {dimension_numbers = #tpu.dot_dimension_numbers<[1], [0], [0], [1], [0, 0, 1, 1], [], []>} : vector<128x256xbf16>, vector<256x768xbf16>, vector<128x768xf32> -> vector<128x768xf32>
    %c0_8 = arith.constant 0 : index
    %c0_9 = arith.constant 0 : index
    %20 = vector.load %arg3[%c0_8, %c0_9] : memref<1x768xf32, #tpu.memory_space<vmem>>, vector<1x768xf32>
    %21 = vector.broadcast %20 : vector<1x768xf32> to vector<128x768xf32>
    %22 = arith.addf %19, %21 : vector<128x768xf32>
    %23 = arith.truncf %22 : vector<128x768xf32> to vector<128x768xbf16>
    %c0_10 = arith.constant 0 : index
    %c0_11 = arith.constant 0 : index
    %24 = vector.load %arg4[%c0_10, %c0_11] : memref<128x768xbf16, #tpu.memory_space<vmem>>, vector<128x768xbf16>
    tpu.vector_store %arg4[%c0_10, %c0_11], %23 {strides = array<i32>} : memref<128x768xbf16, #tpu.memory_space<vmem>>, vector<128x768xbf16>,
    return
  }
  func.func @transform_0(%arg0: i32) -> (i32, i32) {
    %c0_i32 = arith.constant 0 : i32
    %c0_i32_0 = arith.constant 0 : i32
    return %arg0, %c0_i32 : i32, i32
  }
  func.func @transform_1(%arg0: i32) -> (i32, i32) {
    %c0_i32 = arith.constant 0 : i32
    %c0_i32_0 = arith.constant 0 : i32
    %c0_i32_1 = arith.constant 0 : i32
    return %c0_i32, %c0_i32_0 : i32, i32
  }
  func.func @transform_2(%arg0: i32) -> (i32, i32) {
    %c0_i32 = arith.constant 0 : i32
    %c0_i32_0 = arith.constant 0 : i32
    %c0_i32_1 = arith.constant 0 : i32
    return %c0_i32, %c0_i32_0 : i32, i32
  }
  func.func @transform_3(%arg0: i32) -> (i32, i32) {
    %c0_i32 = arith.constant 0 : i32
    %c0_i32_0 = arith.constant 0 : i32
    return %arg0, %c0_i32 : i32, i32
  }
}

module attributes {stable_mosaic.version = 11 : i64} {
  func.func @attn_kernel(%arg0: i32, %arg1: i32, %arg2: i32, %arg3: i32, %arg4: memref<1x64x128xbf16, #tpu.memory_space<vmem>>, %arg5: memref<1x64x128xbf16, #tpu.memory_space<vmem>>, %arg6: memref<1x64x128xbf16, #tpu.memory_space<vmem>>, %arg7: memref<1x128xf32, #tpu.memory_space<vmem>>, %arg8: memref<1x128xf32, #tpu.memory_space<vmem>>, %arg9: memref<1x64x128xbf16, #tpu.memory_space<vmem>>, %arg10: memref<64x1xf32, #tpu.memory_space<vmem>>, %arg11: memref<64x1xf32, #tpu.memory_space<vmem>>, %arg12: memref<64x128xf32, #tpu.memory_space<vmem>>) attributes {dimension_semantics = [#tpu.dimension_semantics<parallel>, #tpu.dimension_semantics<parallel>, #tpu.dimension_semantics<parallel>, #tpu.dimension_semantics<arbitrary>], iteration_bounds = array<i64: 2, 2, 1, 1>, scalar_prefetch = 0 : i64, scratch_operands = 3 : i64, tpu.core_type = #tpu.core_type<tc>, window_params = [{transform_indices = @transform_0, window_bounds = array<i64: 1, 64, 128>}, {transform_indices = @transform_1, window_bounds = array<i64: 1, 64, 128>}, {transform_indices = @transform_2, window_bounds = array<i64: 1, 64, 128>}, {pipeline_mode = #tpu.pipeline_mode<synchronous>, transform_indices = @transform_3, window_bounds = array<i64: 1, 128>}, {pipeline_mode = #tpu.pipeline_mode<synchronous>, transform_indices = @transform_4, window_bounds = array<i64: 1, 128>}, {transform_indices = @transform_5, window_bounds = array<i64: 1, 64, 128>}]} {
    %c0_i32 = arith.constant 0 : i32
    %0 = arith.cmpi eq, %arg3, %c0_i32 : i32
    %1 = arith.extui %0 : i1 to i32
    %c0_i32_0 = arith.constant 0 : i32
    %2 = arith.cmpi ne, %1, %c0_i32_0 : i32
    scf.if %2 {
      %cst_36 = arith.constant 0xFF800000 : f32
      %66 = vector.broadcast %cst_36 : f32 to vector<64x1xf32>
      %c0_37 = arith.constant 0 : index
      %c0_38 = arith.constant 0 : index
      %67 = vector.load %arg10[%c0_37, %c0_38] : memref<64x1xf32, #tpu.memory_space<vmem>>, vector<64x1xf32>
      tpu.vector_store %arg10[%c0_37, %c0_38], %66 {strides = array<i32>} : memref<64x1xf32, #tpu.memory_space<vmem>>, vector<64x1xf32>,
      %cst_39 = arith.constant 0.000000e+00 : f32
      %68 = vector.broadcast %cst_39 : f32 to vector<64x1xf32>
      %c0_40 = arith.constant 0 : index
      %c0_41 = arith.constant 0 : index
      %69 = vector.load %arg11[%c0_40, %c0_41] : memref<64x1xf32, #tpu.memory_space<vmem>>, vector<64x1xf32>
      tpu.vector_store %arg11[%c0_40, %c0_41], %68 {strides = array<i32>} : memref<64x1xf32, #tpu.memory_space<vmem>>, vector<64x1xf32>,
      %cst_42 = arith.constant 0.000000e+00 : f32
      %70 = vector.broadcast %cst_42 : f32 to vector<64x128xf32>
      %c0_43 = arith.constant 0 : index
      %c0_44 = arith.constant 0 : index
      %71 = vector.load %arg12[%c0_43, %c0_44] : memref<64x128xf32, #tpu.memory_space<vmem>>, vector<64x128xf32>
      tpu.vector_store %arg12[%c0_43, %c0_44], %70 {strides = array<i32>} : memref<64x128xf32, #tpu.memory_space<vmem>>, vector<64x128xf32>,
    } else {
    }
    %c0 = arith.constant 0 : index
    %c0_1 = arith.constant 0 : index
    %c0_2 = arith.constant 0 : index
    %3 = vector.load %arg4[%c0, %c0_1, %c0_2] : memref<1x64x128xbf16, #tpu.memory_space<vmem>>, vector<1x64x128xbf16>
    %4 = vector.shape_cast %3 : vector<1x64x128xbf16> to vector<64x128xbf16>
    %5 = arith.extf %4 : vector<64x128xbf16> to vector<64x128xf32>
    %c0_3 = arith.constant 0 : index
    %c0_4 = arith.constant 0 : index
    %6 = vector.load %arg7[%c0_3, %c0_4] : memref<1x128xf32, #tpu.memory_space<vmem>>, vector<1x128xf32>
    %7 = arith.mulf %5, %5 : vector<64x128xf32>
    %cst = arith.constant dense<0.000000e+00> : vector<64xf32>
    %8 = vector.multi_reduction <add>, %7, %cst [1] : vector<64x128xf32> to vector<64xf32>
    %9 = vector.shape_cast %8 : vector<64xf32> to vector<64x1xf32>
    %cst_5 = arith.constant 1.280000e+02 : f32
    %10 = vector.broadcast %cst_5 : f32 to vector<64x1xf32>
    %11 = arith.divf %9, %10 : vector<64x1xf32>
    %cst_6 = arith.constant 9.99999997E-7 : f32
    %12 = vector.broadcast %cst_6 : f32 to vector<64x1xf32>
    %13 = arith.addf %11, %12 : vector<64x1xf32>
    %14 = math.rsqrt %13 : vector<64x1xf32>
    %15 = vector.broadcast %14 : vector<64x1xf32> to vector<64x128xf32>
    %16 = arith.mulf %5, %15 : vector<64x128xf32>
    %17 = vector.broadcast %6 : vector<1x128xf32> to vector<64x128xf32>
    %18 = arith.mulf %16, %17 : vector<64x128xf32>
    %19 = arith.truncf %18 : vector<64x128xf32> to vector<64x128xbf16>
    %c0_7 = arith.constant 0 : index
    %c0_8 = arith.constant 0 : index
    %c0_9 = arith.constant 0 : index
    %20 = vector.load %arg5[%c0_7, %c0_8, %c0_9] : memref<1x64x128xbf16, #tpu.memory_space<vmem>>, vector<1x64x128xbf16>
    %21 = vector.shape_cast %20 : vector<1x64x128xbf16> to vector<64x128xbf16>
    %22 = arith.extf %21 : vector<64x128xbf16> to vector<64x128xf32>
    %c0_10 = arith.constant 0 : index
    %c0_11 = arith.constant 0 : index
    %23 = vector.load %arg8[%c0_10, %c0_11] : memref<1x128xf32, #tpu.memory_space<vmem>>, vector<1x128xf32>
    %24 = arith.mulf %22, %22 : vector<64x128xf32>
    %cst_12 = arith.constant dense<0.000000e+00> : vector<64xf32>
    %25 = vector.multi_reduction <add>, %24, %cst_12 [1] : vector<64x128xf32> to vector<64xf32>
    %26 = vector.shape_cast %25 : vector<64xf32> to vector<64x1xf32>
    %cst_13 = arith.constant 1.280000e+02 : f32
    %27 = vector.broadcast %cst_13 : f32 to vector<64x1xf32>
    %28 = arith.divf %26, %27 : vector<64x1xf32>
    %cst_14 = arith.constant 9.99999997E-7 : f32
    %29 = vector.broadcast %cst_14 : f32 to vector<64x1xf32>
    %30 = arith.addf %28, %29 : vector<64x1xf32>
    %31 = math.rsqrt %30 : vector<64x1xf32>
    %32 = vector.broadcast %31 : vector<64x1xf32> to vector<64x128xf32>
    %33 = arith.mulf %22, %32 : vector<64x128xf32>
    %34 = vector.broadcast %23 : vector<1x128xf32> to vector<64x128xf32>
    %35 = arith.mulf %33, %34 : vector<64x128xf32>
    %36 = arith.truncf %35 : vector<64x128xf32> to vector<64x128xbf16>
    %cst_15 = arith.constant dense<0.000000e+00> : vector<64x64xf32>
    %37 = tpu.matmul %19, %36, %cst_15 {dimension_numbers = #tpu.dot_dimension_numbers<[1], [1], [0], [0], [0, 0, 1, 0], [], []>} : vector<64x128xbf16>, vector<64x128xbf16>, vector<64x64xf32> -> vector<64x64xf32>
    %c0_16 = arith.constant 0 : index
    %c0_17 = arith.constant 0 : index
    %38 = vector.load %arg10[%c0_16, %c0_17] : memref<64x1xf32, #tpu.memory_space<vmem>>, vector<64x1xf32>
    %cst_18 = arith.constant dense<0xFF800000> : vector<64xf32>
    %39 = vector.multi_reduction <maximumf>, %37, %cst_18 [1] : vector<64x64xf32> to vector<64xf32>
    %40 = vector.shape_cast %39 : vector<64xf32> to vector<64x1xf32>
    %41 = arith.maximumf %38, %40 : vector<64x1xf32>
    %42 = arith.subf %38, %41 : vector<64x1xf32>
    %43 = math.exp %42 : vector<64x1xf32>
    %44 = vector.broadcast %41 : vector<64x1xf32> to vector<64x64xf32>
    %45 = arith.subf %37, %44 : vector<64x64xf32>
    %46 = math.exp %45 : vector<64x64xf32>
    %c0_19 = arith.constant 0 : index
    %c0_20 = arith.constant 0 : index
    %47 = vector.load %arg11[%c0_19, %c0_20] : memref<64x1xf32, #tpu.memory_space<vmem>>, vector<64x1xf32>
    %48 = arith.mulf %43, %47 : vector<64x1xf32>
    %cst_21 = arith.constant dense<0.000000e+00> : vector<64xf32>
    %49 = vector.multi_reduction <add>, %46, %cst_21 [1] : vector<64x64xf32> to vector<64xf32>
    %50 = vector.shape_cast %49 : vector<64xf32> to vector<64x1xf32>
    %51 = arith.addf %48, %50 : vector<64x1xf32>
    %c0_22 = arith.constant 0 : index
    %c0_23 = arith.constant 0 : index
    %52 = vector.load %arg11[%c0_22, %c0_23] : memref<64x1xf32, #tpu.memory_space<vmem>>, vector<64x1xf32>
    tpu.vector_store %arg11[%c0_22, %c0_23], %51 {strides = array<i32>} : memref<64x1xf32, #tpu.memory_space<vmem>>, vector<64x1xf32>,
    %c0_24 = arith.constant 0 : index
    %c0_25 = arith.constant 0 : index
    %53 = vector.load %arg12[%c0_24, %c0_25] : memref<64x128xf32, #tpu.memory_space<vmem>>, vector<64x128xf32>
    %54 = vector.broadcast %43 : vector<64x1xf32> to vector<64x128xf32>
    %55 = arith.mulf %54, %53 : vector<64x128xf32>
    %56 = arith.truncf %46 : vector<64x64xf32> to vector<64x64xbf16>
    %c0_26 = arith.constant 0 : index
    %c0_27 = arith.constant 0 : index
    %c0_28 = arith.constant 0 : index
    %57 = vector.load %arg6[%c0_26, %c0_27, %c0_28] : memref<1x64x128xbf16, #tpu.memory_space<vmem>>, vector<1x64x128xbf16>
    %58 = vector.shape_cast %57 : vector<1x64x128xbf16> to vector<64x128xbf16>
    %cst_29 = arith.constant dense<0.000000e+00> : vector<64x128xf32>
    %59 = tpu.matmul %56, %58, %cst_29 {dimension_numbers = #tpu.dot_dimension_numbers<[1], [0], [0], [1], [0, 0, 1, 1], [], []>} : vector<64x64xbf16>, vector<64x128xbf16>, vector<64x128xf32> -> vector<64x128xf32>
    %60 = arith.addf %55, %59 : vector<64x128xf32>
    %c0_30 = arith.constant 0 : index
    %c0_31 = arith.constant 0 : index
    %61 = vector.load %arg12[%c0_30, %c0_31] : memref<64x128xf32, #tpu.memory_space<vmem>>, vector<64x128xf32>
    tpu.vector_store %arg12[%c0_30, %c0_31], %60 {strides = array<i32>} : memref<64x128xf32, #tpu.memory_space<vmem>>, vector<64x128xf32>,
    %c0_32 = arith.constant 0 : index
    %c0_33 = arith.constant 0 : index
    %62 = vector.load %arg10[%c0_32, %c0_33] : memref<64x1xf32, #tpu.memory_space<vmem>>, vector<64x1xf32>
    tpu.vector_store %arg10[%c0_32, %c0_33], %41 {strides = array<i32>} : memref<64x1xf32, #tpu.memory_space<vmem>>, vector<64x1xf32>,
    %c0_i32_34 = arith.constant 0 : i32
    %63 = arith.cmpi eq, %arg3, %c0_i32_34 : i32
    %64 = arith.extui %63 : i1 to i32
    %c0_i32_35 = arith.constant 0 : i32
    %65 = arith.cmpi ne, %64, %c0_i32_35 : i32
    scf.if %65 {
      %c0_36 = arith.constant 0 : index
      %c0_37 = arith.constant 0 : index
      %66 = vector.load %arg11[%c0_36, %c0_37] : memref<64x1xf32, #tpu.memory_space<vmem>>, vector<64x1xf32>
      %67 = tpu.reciprocal %66 {approx = true} : vector<64x1xf32> -> vector<64x1xf32>
      %c0_38 = arith.constant 0 : index
      %c0_39 = arith.constant 0 : index
      %68 = vector.load %arg12[%c0_38, %c0_39] : memref<64x128xf32, #tpu.memory_space<vmem>>, vector<64x128xf32>
      %69 = vector.broadcast %67 : vector<64x1xf32> to vector<64x128xf32>
      %70 = arith.mulf %68, %69 : vector<64x128xf32>
      %71 = arith.truncf %70 : vector<64x128xf32> to vector<64x128xbf16>
      %c0_40 = arith.constant 0 : index
      %c0_41 = arith.constant 0 : index
      %c0_42 = arith.constant 0 : index
      %72 = vector.load %arg9[%c0_40, %c0_41, %c0_42] : memref<1x64x128xbf16, #tpu.memory_space<vmem>>, vector<1x64x128xbf16>
      %73 = vector.shape_cast %72 : vector<1x64x128xbf16> to vector<64x128xbf16>
      %74 = vector.shape_cast %71 : vector<64x128xbf16> to vector<1x64x128xbf16>
      tpu.vector_store %arg9[%c0_40, %c0_41, %c0_42], %74 {strides = array<i32>} : memref<1x64x128xbf16, #tpu.memory_space<vmem>>, vector<1x64x128xbf16>,
    } else {
    }
    return
  }
  func.func @transform_0(%arg0: i32, %arg1: i32, %arg2: i32, %arg3: i32) -> (i32, i32, i32) {
    %c0_i32 = arith.constant 0 : i32
    return %arg0, %arg2, %arg1 : i32, i32, i32
  }
  func.func @transform_1(%arg0: i32, %arg1: i32, %arg2: i32, %arg3: i32) -> (i32, i32, i32) {
    %c2_i32 = arith.constant 2 : i32
    %0 = arith.addi %c2_i32, %arg1 : i32
    %c0_i32 = arith.constant 0 : i32
    return %arg0, %arg3, %0 : i32, i32, i32
  }
  func.func @transform_2(%arg0: i32, %arg1: i32, %arg2: i32, %arg3: i32) -> (i32, i32, i32) {
    %c4_i32 = arith.constant 4 : i32
    %0 = arith.addi %c4_i32, %arg1 : i32
    %c0_i32 = arith.constant 0 : i32
    return %arg0, %arg3, %0 : i32, i32, i32
  }
  func.func @transform_3(%arg0: i32, %arg1: i32, %arg2: i32, %arg3: i32) -> (i32, i32) {
    %c0_i32 = arith.constant 0 : i32
    %c0_i32_0 = arith.constant 0 : i32
    %c0_i32_1 = arith.constant 0 : i32
    return %c0_i32, %c0_i32_0 : i32, i32
  }
  func.func @transform_4(%arg0: i32, %arg1: i32, %arg2: i32, %arg3: i32) -> (i32, i32) {
    %c0_i32 = arith.constant 0 : i32
    %c0_i32_0 = arith.constant 0 : i32
    %c0_i32_1 = arith.constant 0 : i32
    return %c0_i32, %c0_i32_0 : i32, i32
  }
  func.func @transform_5(%arg0: i32, %arg1: i32, %arg2: i32, %arg3: i32) -> (i32, i32, i32) {
    %c0_i32 = arith.constant 0 : i32
    return %arg0, %arg2, %arg1 : i32, i32, i32
  }
}

</mosaic_0001>

<bundles_post_ra>
// kernel: tpu_custom_call.1
= control target key start
LH: loop header
LB: loop body
LE: loop exit
PB: predicated region body
PF: predicated region fallthrough
CT: control target
= control target key end

     0   :  { %6 = vsyncpa [#allocation3], 0  ;;  %s124_s0 = inlined_call_operand.hbm [shape: f32[8,128], index: 0, kind: input, shape index: {}]   ;;  %s125_s1 = inlined_call_operand.hbm [shape: f32[8,128], index: 1, kind: output, shape index: {}]  }
   0x1   :  { %7 = vsyncpa [#allocation4], 0  ;;  %s88_s6 = smov [#allocation2]   ;;  %s40_s10 = scalar_lea.hbm %s124_s0, 128 }
   0x2   :  { %s14_s7 = sshll.u32 %s88_s6, 4  ;;  %p41_p0 = scmp.ne.s32.totalorder %s124_s0, %s40_s10  ;;  %s15_s7 = int_to_ptr.vmem [resolvable:$true] %s14_s7 }
   0x3   :  { %p44_p1 = scmp.lt.u32.totalorder %s40_s10, %s124_s0 }
   0x5   :  { %p46_p2 = pnand %p44_p1, %p41_p0 }
   0x7   :  { %49 = shalt.err (!%p46_p2)
}
   0x8   :  { %s50_s15 = scalar_lea.vmem %s15_s7, 128  ;;  %p55_p4 = scmp.lt.s32.totalorder %s15_s7, %s15_s7 }
   0x9   :  { %p51_p3 = scmp.ne.s32.totalorder %s15_s7, %s50_s15  ;;  %p56_p5 = scmp.lt.s32.totalorder %s50_s15, %s50_s15 }
   0xb   :  { %p57_p6 = por %p56_p5, %p55_p4 }
   0xd   :  { %p58_p7 = pnand %p57_p6, %p51_p3 }
   0xf   :  { %61 = shalt.err (!%p58_p7)
}
  0x10   :  { %17 = dma.hbm_to_vmem [thread:$0]  %s124_s0, 128, %s15_s7, [#allocation3]  }
  0x11   :  { %84 = dma.done.wait [#allocation3], 128  }
  0x12   :  { %85 = vsyncadd [#allocation3], 4294967168  ;;  %s89_s18 = smov [#allocation5]   ;;  %v21_v0 = vld [vmem:[#allocation2] sm:$0xff] }
  0x13   :  { %s29_s19 = sshll.u32 %s89_s18, 4  ;;  %22 = vst [vmem:[#allocation5] sm:$0xff] %v21_v0  ;;  %s30_s19 = int_to_ptr.vmem [resolvable:$true] %s29_s19 }
  0x14   :  { %s62_s20 = scalar_lea.vmem %s30_s19, 128  ;;  %p67_p9 = scmp.lt.s32.totalorder %s30_s19, %s30_s19 }
  0x15   :  { %p63_p8 = scmp.ne.s32.totalorder %s30_s19, %s62_s20  ;;  %p68_p10 = scmp.lt.s32.totalorder %s62_s20, %s62_s20 }
  0x17   :  { %p69_p11 = por %p68_p10, %p67_p9 }
  0x19   :  { %p70_p12 = pnand %p69_p11, %p63_p8 }
  0x1b   :  { %73 = shalt.err (!%p70_p12)
}
  0x1c   :  { %s74_s23 = scalar_lea.hbm %s125_s1, 128 }
  0x1d   :  { %p75_p13 = scmp.ne.s32.totalorder %s125_s1, %s74_s23  ;;  %p78_p0 = scmp.lt.u32.totalorder %s74_s23, %s125_s1 }
  0x1f   :  { %p80_p1 = pnand %p78_p0, %p75_p13 }
  0x21   :  { %83 = shalt.err (!%p80_p1)
}
  0x22   :  { %32 = dma.vmem_to_hbm [thread:$0]  %s30_s19, 128, %s125_s1, [#allocation4]  }
  0x23   :  { %86 = dma.done.wait [#allocation4], 128  }
  0x24   :  { %87 = vsyncadd [#allocation4], 4294967168 }
  0x25   :  { %36 = vsyncpa [#allocation3], 1 }
  0x26   :  { %37 = vsyncpa [#allocation4], 1 }

// kernel: transformer_forward.4
= control target key start
LH: loop header
LB: loop body
LE: loop exit
PB: predicated region body
PF: predicated region fallthrough
CT: control target
= control target key end

     0   :  { %s2460_s0 = inlined_call_operand.vmem [shape: bf16[2,64,768], index: 0, kind: input, shape index: {}, may-alias: {0,1,2}]   ;;  %s2461_s1 = inlined_call_operand.vmem [shape: bf16[2,64,768], index: 1, kind: input, shape index: {}, may-alias: {0,1,2}]   ;;  %s2462_s2 = inlined_call_operand.vmem [shape: bf16[2,64,768], index: 2, kind: input, shape index: {}, may-alias: {0,1,2}]   ;;  %s2463_s3 = inlined_call_operand.vmem [shape: f32[1,128], index: 3, kind: input, shape index: {}]   ;;  %s2464_s4 = inlined_call_operand.vmem [shape: f32[1,128], index: 4, kind: input, shape index: {}]   ;;  %s2465_s5 = inlined_call_operand.vmem [shape: bf16[2,64,256], index: 5, kind: output, shape index: {}]  }
   0x1   :  { %2467 = sst [smem:[#allocation12_spill]] %s2465_s5 }
   0x2   :  { %s1986_s18 = smov 0   ;;  %s1988_s19 = smov 0  }
   0x3   :  { %s1990_s20 = smov 0   ;;  %s1992_s21 = smov 0  }
   0x4   :  { %s1994_s22 = smov 0   ;;  %s1996_s23 = smov 0  }
   0x5   :  { %s1998_s24 = smov 0   ;;  %s2000_s25 = smov 0  }
   0x6   :  { %s2002_s26 = smov 0   ;;  %s2004_s27 = smov 0  }
   0x7   :  { %s2006_s28 = smov 0  }
   0x8 LB: > { %2468 = sst [smem:[#allocation9_spill]] %s1935_s24  ;;  %s37_s30 = sadd.s32 1, %s1943_s26  ;;  %s1951_s28 = sphi %s2006_s28, %s15_s28   ;;  %s1947_s27 = sphi %s2004_s27, %s2489_s27   ;;  %s1943_s26 = sphi %s2002_s26, %s2488_s26   ;;  %s1939_s25 = sphi %s2000_s25, %s2487_s25   ;;  %s1935_s24 = sphi %s1998_s24, %s2486_s24   ;;  %s1931_s23 = sphi %s1996_s23, %s2485_s23   ;;  %s1927_s22 = sphi %s1994_s22, %s2484_s22   ;;  %s1923_s21 = sphi %s1992_s21, %s2483_s21   ;;  %s1919_s20 = sphi %s1990_s20, %s2482_s20   ;;  %s1915_s19 = sphi %s1988_s19, %s2481_s19   ;;  %s1911_s18 = sphi %s1986_s18, %s2480_s18  }
   0x9   : > { %2469 = sst [smem:[#allocation10_spill]] %s1939_s25  ;;  %p39_p0 = scmp.ge.s32.totalorder %s37_s30, 2 }
   0xa   : > { %s41_s6 = sadd.s32 1, %s1947_s27  ;;  %s52_s7 = sadd.s32 1, %s1931_s23 }
   0xb   : > { %p59_p1 = scmp.ne.s32.totalorder %s1931_s23, %s1927_s22  ;;  %s2491_s30 = smov (%p39_p0, %s37_s30), 0 }
   0xc   : > { %s2493_s6 = smov (!%p39_p0, %s41_s6), %s1947_s27  ;;  %s48_s8 = ssub.s32 %s1943_s26, %s2491_s30 }
   0xd   : > { %p60_p2 = scmp.eq.s32.totalorder %s1951_s28, 0  ;;  %p43_p3 = scmp.ge.s32.totalorder %s2493_s6, 2 }
   0xe   : > { %s75_s9 = sadd.s32 2, %s1943_s26  ;;  %s76_s11 = sadd.s32 2, %s2491_s30 }
   0xf   : > { %p2059_p4 = por %p60_p2, %p59_p1  ;;  %s2495_s6 = smov (%p43_p3, %s2493_s6), 0 }
  0x10   : > { %2471 = sst [smem:[#allocation11_spill]] %s2495_s6  ;;  %s80_s12 = ssub.s32 %s75_s9, %s76_s11 }
  0x11   : > { %s84_s13 = sadd.s32 1, %s1923_s21  ;;  %s45_s14 = ssub.s32 %s1947_s27, %s2495_s6 }
  0x12   : > { %p91_p5 = scmp.ne.s32.totalorder %s1923_s21, %s1919_s20  ;;  %s49_s15 = sor.u32 %s48_s8, %s45_s14 }
  0x13   : > { %s81_s16 = sor.u32 %s80_s12, %s45_s14  ;;  %p50_p6 = scmp.eq.s32.totalorder %s49_s15, 0 }
  0x14   : > { %p82_p7 = scmp.eq.s32.totalorder %s81_s16, 0  ;;  %p2073_p8 = por %p91_p5, %p60_p2 }
  0x15   : > { %s107_s29 = sadd.s32 4, %s1943_s26  ;;  %s108_s11 = sadd.s32 4, %s2491_s30 }
  0x16   : > { %s2079_s5 = scalar_select %p50_p6, %s1931_s23, %s52_s7  }
  0x17   : > { %s2082_s9 = scalar_select %p82_p7, %s1923_s21, %s84_s13  }
  0x18   : > { %s116_s6 = sadd.s32 1, %s1915_s19  ;;  %s112_s24 = ssub.s32 %s107_s29, %s108_s11 }
  0x19   : > { %p123_p9 = scmp.ne.s32.totalorder %s1915_s19, %s1911_s18  ;;  %s113_s8 = sor.u32 %s112_s24, %s45_s14 }
  0x1a   : > { %s2473_s25 = sadd.s32 4294967295, %s1951_s28   ;;  %p114_p11 = scmp.eq.s32.totalorder %s113_s8, 0 }
  0x1b   : > { %p199_p10 = scmp.eq.s32.totalorder %s2473_s25, 3  ;;  %p2092_p12 = por %p123_p9, %p60_p2 }
  0x1c   : > { %s2104_s7 = scalar_select %p114_p11, %s1915_s19, %s116_s6  }
  0x1d   : > { %p2099_p13 = por %p199_p10, %p59_p1  ;;  %p1519_p0 = scmp.ge.s32.totalorder %s1951_s28, 4 }
  0x1f   : > { %227 = sbr.rel (%p1519_p0) target bundleno = 74 (0x4a), region = 24 }
  0x26   : > { %230 = sbr.rel (!%p2059_p4) target bundleno = 50 (0x32), region = 28  ;;  %s232_s24 = sand.u32 (%p2059_p4), 1, %s1931_s23  }
  0x27   : > { %s1687_s25 = smul.u32 (%p2059_p4), 48, %s1947_s27  ;;  %s1520_s29 = sshll.u32 (%p2059_p4), %s232_s24, 5 }
  0x28   : > { %s234_s6 = scalar_lea.vmem (%p2059_p4), [#allocation5], %s1520_s29 }
  0x29   : > { %s239_s13 = sadd.s32 (%p2059_p4), %s1943_s26, %s1687_s25 }
  0x2a   : > { %s1521_s14 = sshll.u32 (%p2059_p4), %s239_s13, 2 }
  0x2b   : > { %s241_s8 = scalar_lea.vmem (%p2059_p4), %s2460_s0, %s1521_s14 }
  0x2c   : > { %v257_v0 = vld [vmem:[%s241_s8] sm:$0xf] (%p2059_p4)  ;;  %v259_v1 = vld [vmem:[%s241_s8 + $0x18] sm:$0xf] (%p2059_p4)  ;;  %v261_v2 = vld [vmem:[%s241_s8 + $0x30] sm:$0xf] (%p2059_p4) }
  0x2d   : > { %258 = vst [vmem:[%s234_s6] sm:$0xf] %v257_v0  ;;  %260 = vst [vmem:[%s234_s6 + $0x4] sm:$0xf] %v259_v1  ;;  %v263_v3 = vld [vmem:[%s241_s8 + $0x48] sm:$0xf] }
  0x2e   : > { %262 = vst [vmem:[%s234_s6 + $0x8] sm:$0xf] %v261_v2  ;;  %v265_v4 = vld [vmem:[%s241_s8 + $0x60] sm:$0xf]  ;;  %v267_v5 = vld [vmem:[%s241_s8 + $0x78] sm:$0xf] }
  0x2f   : > { %264 = vst [vmem:[%s234_s6 + $0xc] sm:$0xf] %v263_v3  ;;  %266 = vst [vmem:[%s234_s6 + $0x10] sm:$0xf] %v265_v4  ;;  %v269_v6 = vld [vmem:[%s241_s8 + $0x90] sm:$0xf] }
  0x30   : > { %268 = vst [vmem:[%s234_s6 + $0x14] sm:$0xf] %v267_v5  ;;  %v271_v7 = vld [vmem:[%s241_s8 + $0xa8] sm:$0xf]  ;;  %270 = vst [vmem:[%s234_s6 + $0x18] sm:$0xf] %v269_v6 }
  0x31   : > { %272 = vst [vmem:[%s234_s6 + $0x1c] sm:$0xf] %v271_v7 }
  0x32 PF: > { %311 = sbr.rel (!%p2073_p8) target bundleno = 62 (0x3e), region = 69  ;;  %s313_s10 = sand.u32 (%p2073_p8), 1, %s1923_s21  }
  0x33   : > { %s1412_s24 = smul.u32 (%p2073_p8), 48, %s1947_s27  ;;  %s1522_s25 = sshll.u32 (%p2073_p8), %s313_s10, 5 }
  0x34   : > { %s315_s8 = scalar_lea.vmem (%p2073_p8), [#allocation6], %s1522_s25 }
  0x35   : > { %s1413_s29 = sadd.s32 (%p2073_p8), %s1943_s26, %s1412_s24 }
  0x36   : > { %s1523_s13 = sshll.u32 (%p2073_p8), %s1413_s29, 2 }
  0x37   : > { %s1415_s11 = scalar_lea.vmem (%p2073_p8), %s2461_s1, %s1523_s13 }
  0x38   : > { %v1524_v8 = vld [vmem:[%s1415_s11 + $0x8] sm:$0xf] (%p2073_p8)  ;;  %v1525_v9 = vld [vmem:[%s1415_s11 + $0x20] sm:$0xf] (%p2073_p8)  ;;  %v1526_v10 = vld [vmem:[%s1415_s11 + $0x38] sm:$0xf] (%p2073_p8) }
  0x39   : > { %340 = vst [vmem:[%s315_s8] sm:$0xf] %v1524_v8  ;;  %342 = vst [vmem:[%s315_s8 + $0x4] sm:$0xf] %v1525_v9  ;;  %v1527_v11 = vld [vmem:[%s1415_s11 + $0x50] sm:$0xf] }
  0x3a   : > { %344 = vst [vmem:[%s315_s8 + $0x8] sm:$0xf] %v1526_v10  ;;  %v1528_v12 = vld [vmem:[%s1415_s11 + $0x68] sm:$0xf]  ;;  %v1529_v13 = vld [vmem:[%s1415_s11 + $0x80] sm:$0xf] }
  0x3b   : > { %346 = vst [vmem:[%s315_s8 + $0xc] sm:$0xf] %v1527_v11  ;;  %348 = vst [vmem:[%s315_s8 + $0x10] sm:$0xf] %v1528_v12  ;;  %v1530_v14 = vld [vmem:[%s1415_s11 + $0x98] sm:$0xf] }
  0x3c   : > { %350 = vst [vmem:[%s315_s8 + $0x14] sm:$0xf] %v1529_v13  ;;  %v1531_v15 = vld [vmem:[%s1415_s11 + $0xb0] sm:$0xf]  ;;  %352 = vst [vmem:[%s315_s8 + $0x18] sm:$0xf] %v1530_v14 }
  0x3d   : > { %354 = vst [vmem:[%s315_s8 + $0x1c] sm:$0xf] %v1531_v15 }
  0x3e PF: > { %393 = sbr.rel (!%p2092_p12) target bundleno = 74 (0x4a), region = 110  ;;  %s395_s17 = sand.u32 (%p2092_p12), 1, %s1915_s19  }
  0x3f   : > { %s1421_s6 = smul.u32 (%p2092_p12), 48, %s1947_s27  ;;  %s1532_s10 = sshll.u32 (%p2092_p12), %s395_s17, 5 }
  0x40   : > { %s397_s16 = scalar_lea.vmem (%p2092_p12), [#allocation7], %s1532_s10 }
  0x41   : > { %s1422_s24 = sadd.s32 (%p2092_p12), %s1943_s26, %s1421_s6 }
  0x42   : > { %s1533_s25 = sshll.u32 (%p2092_p12), %s1422_s24, 2 }
  0x43   : > { %s1424_s14 = scalar_lea.vmem (%p2092_p12), %s2462_s2, %s1533_s25 }
  0x44   : > { %v1534_v16 = vld [vmem:[%s1424_s14 + $0x10] sm:$0xf] (%p2092_p12)  ;;  %v1535_v17 = vld [vmem:[%s1424_s14 + $0x28] sm:$0xf] (%p2092_p12)  ;;  %v1536_v18 = vld [vmem:[%s1424_s14 + $0x40] sm:$0xf] (%p2092_p12) }
  0x45   : > { %422 = vst [vmem:[%s397_s16] sm:$0xf] %v1534_v16  ;;  %424 = vst [vmem:[%s397_s16 + $0x4] sm:$0xf] %v1535_v17  ;;  %v1537_v19 = vld [vmem:[%s1424_s14 + $0x58] sm:$0xf] }
  0x46   : > { %426 = vst [vmem:[%s397_s16 + $0x8] sm:$0xf] %v1536_v18  ;;  %v1538_v20 = vld [vmem:[%s1424_s14 + $0x70] sm:$0xf]  ;;  %v1539_v21 = vld [vmem:[%s1424_s14 + $0x88] sm:$0xf] }
  0x47   : > { %428 = vst [vmem:[%s397_s16 + $0xc] sm:$0xf] %v1537_v19  ;;  %430 = vst [vmem:[%s397_s16 + $0x10] sm:$0xf] %v1538_v20  ;;  %v1540_v22 = vld [vmem:[%s1424_s14 + $0xa0] sm:$0xf] }
  0x48   : > { %432 = vst [vmem:[%s397_s16 + $0x14] sm:$0xf] %v1539_v21  ;;  %v1541_v23 = vld [vmem:[%s1424_s14 + $0xb8] sm:$0xf]  ;;  %434 = vst [vmem:[%s397_s16 + $0x18] sm:$0xf] %v1540_v22 }
  0x49   : > { %436 = vst [vmem:[%s397_s16 + $0x1c] sm:$0xf] %v1541_v23 }
  0x4a PF: > { %p1542_p1 = scmp.ge.s32.totalorder %s1951_s28, 1  ;;  %p474_p2 = scmp.lt.s32.totalorder %s1951_s28, 5 }
  0x4c   : > { %p475_p3 = pnand %p1542_p1, %p474_p2 }
  0x4d   : > { %s488_s12 = sand.u32 (!%p475_p3), 1, %s1919_s20   ;;  %s481_s17 = sand.u32 (!%p475_p3), 1, %s1927_s22   ;;  %vm540_vm0 = vcmask (!%p475_p3), 7168   ;;  %vm821_vm1 = vcmask (!%p475_p3), 523264  }
  0x4e   : > { %478 = sbr.rel (%p475_p3) target bundleno = 1118 (0x45e), region = 151  ;;  %s1544_s11 = sshll.u32 (!%p475_p3), %s488_s12, 5 }
  0x4f   : > { %s490_s8 = scalar_lea.vmem (!%p475_p3), [#allocation6], %s1544_s11  ;;  %s2147_s20 = sshll.u32 (!%p475_p3), %s481_s17, 5 }
  0x50   : > { %v1595_v24 = vld [vmem:[%s490_s8] sm:$0xff] (!%p475_p3)   ;;  %v1633_v25 = vld [vmem:[%s490_s8 + $0x8] sm:$0xff] (!%p475_p3)   ;;  %v1634_v30 = vld [vmem:[%s490_s8 + $0x10] sm:$0xff] (!%p475_p3)   ;;  %s483_s22 = scalar_lea.vmem (!%p475_p3), [#allocation5], %s2147_s20  ;;  %s495_s29 = sand.u32 (!%p475_p3), 1, %s1911_s18  }
  0x51   : > { %v2134_v26 = vunpack.c.l.bf16 (!%p475_p3), %v1595_v24  ;;  %v2136_v27 = vunpack.c.l.bf16 (!%p475_p3), %v1633_v25  ;;  %v2138_v28 = vunpack.c.h.bf16 (!%p475_p3), %v1595_v24  ;;  %v2140_v29 = vunpack.c.h.bf16 (!%p475_p3), %v1633_v25  ;;  %v1635_v37 = vld [vmem:[%s490_s8 + $0x18] sm:$0xff] (!%p475_p3)   ;;  %v1579_v42 = vld [vmem:[%s483_s22] sm:$0xff] (!%p475_p3)   ;;  %v1630_v47 = vld [vmem:[%s483_s22 + $0x8] sm:$0xff] (!%p475_p3)   ;;  %s1545_s13 = sshll.u32 (!%p475_p3), %s495_s29, 5  ;;  %s2406_s14 = scalar_lea.vmem (!%p475_p3), [#allocation8], %s2147_s20 }
  0x52   : > { %v2153_v35 = vunpack.c.h.bf16 (!%p475_p3), %v1634_v30  ;;  %v2155_v36 = vunpack.c.l.bf16 (!%p475_p3), %v1634_v30  ;;  %v2161_v40 = vunpack.c.h.bf16 (!%p475_p3), %v1635_v37  ;;  %v2163_v41 = vunpack.c.l.bf16 (!%p475_p3), %v1635_v37  ;;  %v1631_v52 = vld [vmem:[%s483_s22 + $0x10] sm:$0xff] (!%p475_p3)   ;;  %v1632_v57 = vld [vmem:[%s483_s22 + $0x18] sm:$0xff] (!%p475_p3)   ;;  %s497_s18 = scalar_lea.vmem (!%p475_p3), [#allocation7], %s1545_s13 }
  0x53   : > { %v674_v31 = vmul.f32 (!%p475_p3), %v2134_v26, %v2134_v26  ;;  %v676_v32 = vmul.f32 (!%p475_p3), %v2136_v27, %v2136_v27  ;;  %v675_v33 = vmul.f32 (!%p475_p3), %v2138_v28, %v2138_v28  ;;  %v677_v34 = vmul.f32 (!%p475_p3), %v2140_v29, %v2140_v29 }
  0x54   : > { %v679_v38 = vmul.f32 (!%p475_p3), %v2153_v35, %v2153_v35  ;;  %v678_v39 = vmul.f32 (!%p475_p3), %v2155_v36, %v2155_v36  ;;  %v681_v43 = vmul.f32 (!%p475_p3), %v2161_v40, %v2161_v40  ;;  %v680_v44 = vmul.f32 (!%p475_p3), %v2163_v41, %v2163_v41 }
  0x55   : > { %682 = vadd.xlane.f32.xlu0 %v674_v31  ;;  %686 = vadd.xlane.f32.xlu1 %v676_v32  ;;  %v2170_v45 = vunpack.c.h.bf16 %v1579_v42  ;;  %v2172_v46 = vunpack.c.l.bf16 %v1579_v42  ;;  %v2178_v50 = vunpack.c.h.bf16 %v1630_v47  ;;  %v2180_v51 = vunpack.c.l.bf16 %v1630_v47  ;;  %s2476_s16 = sld [smem:[#allocation10_spill]] (%p2099_p13)  ;;  %s2477_s12 = sld [smem:[#allocation9_spill]] (%p2099_p13) }
  0x56   : > { %v2186_v55 = vunpack.c.h.bf16 %v1631_v52  ;;  %v2188_v56 = vunpack.c.l.bf16 %v1631_v52  ;;  %v2194_v60 = vunpack.c.h.bf16 %v1632_v57  ;;  %v2196_v61 = vunpack.c.l.bf16 %v1632_v57  ;;  %s2478_s22 = sld [smem:[#allocation12_spill]] (%p2099_p13) }
  0x57   : > { %v583_v48 = vmul.f32 %v2170_v45, %v2170_v45  ;;  %v582_v49 = vmul.f32 %v2172_v46, %v2172_v46  ;;  %v585_v53 = vmul.f32 %v2178_v50, %v2178_v50  ;;  %v584_v54 = vmul.f32 %v2180_v51, %v2180_v51 }
  0x58   : > { %v587_v58 = vmul.f32 %v2186_v55, %v2186_v55  ;;  %v586_v59 = vmul.f32 %v2188_v56, %v2188_v56  ;;  %v589_v62 = vmul.f32 %v2194_v60, %v2194_v60  ;;  %v588_v63 = vmul.f32 %v2196_v61, %v2196_v61 }
  0x59   : > { %684 = vadd.xlane.f32.xlu0 %v675_v33  ;;  %688 = vadd.xlane.f32.xlu1 %v677_v34 }
  0x5b   : > { %s1566_s11 = sshll.u32 (%p2099_p13), %s2476_s16, 4 }
  0x5c   : > { %s1318_s8 = sadd.s32 (%p2099_p13), %s2477_s12, %s1566_s11 }
  0x5d   : > { %692 = vadd.xlane.f32.xlu1 %v679_v38  ;;  %690 = vadd.xlane.f32.xlu0 %v678_v39  ;;  %v1548_v39 = vld [vmem:[%s2464_s4] ss:$0 sm:$0xff]  ;;  %s1567_s17 = sshll.u32 (%p2099_p13), %s1318_s8, 2 }
  0x5e   : > { %s1320_s6 = scalar_lea.vmem (%p2099_p13), %s2478_s22, %s1567_s17 }
  0x61   : > { %696 = vadd.xlane.f32.xlu1 %v681_v43  ;;  %694 = vadd.xlane.f32.xlu0 %v680_v44 }
  0x65   : > { %592 = vadd.xlane.f32.xlu1 %v583_v48  ;;  %590 = vadd.xlane.f32.xlu0 %v582_v49 }
  0x69   : > { %596 = vadd.xlane.f32.xlu1 %v585_v53  ;;  %594 = vadd.xlane.f32.xlu0 %v584_v54 }
  0x6d   : > { %600 = vadd.xlane.f32.xlu1 %v587_v58  ;;  %598 = vadd.xlane.f32.xlu0 %v586_v59 }
  0x71   : > { %604 = vadd.xlane.f32.xlu1 %v589_v62  ;;  %602 = vadd.xlane.f32.xlu0 %v588_v63 }
  0xe2   : > { %v683_v0 = vpop.xlane.xlu0 %682  ;;  %v687_v1 = vpop.xlane.xlu1 %686 }
  0xe3   : > { %v698_v2 = vmul.f32 0.0078125, %v683_v0  ;;  %v700_v3 = vmul.f32 0.0078125, %v687_v1 }
  0xe5   : > { %v706_v4 = vadd.f32 1e-06, %v698_v2  ;;  %v708_v5 = vadd.f32 1e-06, %v700_v3 }
  0xe6   : > { %v685_v6 = vpop.xlane.xlu0 %684  ;;  %v689_v7 = vpop.xlane.xlu1 %688 }
  0xe7   : > { %1785 = vrsqrt.f32 %v706_v4  ;;  %v699_v8 = vmul.f32 0.0078125, %v685_v6  ;;  %v701_v9 = vmul.f32 0.0078125, %v689_v7 }
  0xe8   : > { %1787 = vrsqrt.f32 %v708_v5 }
  0xe9   : > { %v707_v10 = vadd.f32 1e-06, %v699_v8  ;;  %v709_v11 = vadd.f32 1e-06, %v701_v9 }
  0xea   : > { %v693_v12 = vpop.xlane.xlu1 %692  ;;  %v691_v13 = vpop.xlane.xlu0 %690 }
  0xeb   : > { %1789 = vrsqrt.f32 %v707_v10  ;;  %v703_v14 = vmul.f32 0.0078125, %v693_v12  ;;  %v702_v15 = vmul.f32 0.0078125, %v691_v13 }
  0xec   : > { %1791 = vrsqrt.f32 %v709_v11 }
  0xed   : > { %v711_v16 = vadd.f32 1e-06, %v703_v14  ;;  %v710_v17 = vadd.f32 1e-06, %v702_v15 }
  0xee   : > { %v697_v18 = vpop.xlane.xlu1 %696  ;;  %v695_v19 = vpop.xlane.xlu0 %694 }
  0xef   : > { %1793 = vrsqrt.f32 %v711_v16  ;;  %v705_v20 = vmul.f32 0.0078125, %v697_v18  ;;  %v704_v21 = vmul.f32 0.0078125, %v695_v19 }
  0xf0   : > { %1795 = vrsqrt.f32 %v710_v17 }
  0xf1   : > { %v1786_v22 = vpop.eup %1785  ;;  %v713_v23 = vadd.f32 1e-06, %v705_v20  ;;  %v712_v24 = vadd.f32 1e-06, %v704_v21 }
  0xf2   : > { %v1788_v25 = vpop.eup %1787  ;;  %v593_v30 = vpop.xlane.xlu1 %592  ;;  %v722_v37 = vmul.f32 %v1786_v22, %v2134_v26 }
  0xf3   : > { %v591_v31 = vpop.xlane.xlu0 %590  ;;  %v724_v32 = vmul.f32 %v1788_v25, %v2136_v27  ;;  %v608_v33 = vmul.f32 0.0078125, %v593_v30  ;;  %1797 = vrsqrt.f32 %v713_v23 }
  0xf4   : > { %v607_v34 = vmul.f32 0.0078125, %v591_v31  ;;  %1799 = vrsqrt.f32 %v712_v24  ;;  %v736_v53 = vmul.f32 %v1548_v39, %v722_v37 }
  0xf5   : > { %v1790_v38 = vpop.eup %1789  ;;  %v616_v42 = vadd.f32 1e-06, %v608_v33  ;;  %v738_v52 = vmul.f32 %v1548_v39, %v724_v32 }
  0xf6   : > { %v615_v43 = vadd.f32 1e-06, %v607_v34  ;;  %v1792_v44 = vpop.eup %1791  ;;  %v723_v47 = vmul.f32 %v1790_v38, %v2138_v28  ;;  %v597_v48 = vpop.xlane.xlu1 %596 }
  0xf7   : > { %v595_v49 = vpop.xlane.xlu0 %594  ;;  %v725_v27 = vmul.f32 %v1792_v44, %v2140_v29  ;;  %1801 = vrsqrt.f32 %v616_v42  ;;  %v610_v54 = vmul.f32 0.0078125, %v597_v48 }
  0xf8   : > { %v737_v26 = vmul.f32 %v1548_v39, %v723_v47  ;;  %1803 = vrsqrt.f32 %v615_v43  ;;  %v609_v59 = vmul.f32 0.0078125, %v595_v49 }
  0xf9   : > { %v1794_v57 = vpop.eup %1793  ;;  %v739_v58 = vmul.f32 %v1548_v39, %v725_v27  ;;  %v618_v4 = vadd.f32 1e-06, %v610_v54 }
  0xfa   : > { %v1796_v62 = vpop.eup %1795  ;;  %v744_v63 = vpack.c.bf16 %v737_v26, %v736_v53  ;;  %v601_v0 = vpop.xlane.xlu1 %600  ;;  %v727_v2 = vmul.f32 %v1794_v57, %v2153_v35  ;;  %v617_v6 = vadd.f32 1e-06, %v609_v59 }
  0xfb   : > { %v599_v1 = vpop.xlane.xlu0 %598  ;;  %v745_v28 = vpack.c.bf16 %v739_v58, %v738_v52  ;;  %v612_v3 = vmul.f32 0.0078125, %v601_v0  ;;  %v726_v5 = vmul.f32 %v1796_v62, %v2155_v36  ;;  %1805 = vrsqrt.f32 %v618_v4  ;;  %v1547_v36 = vld [vmem:[%s2463_s3] ss:$0 sm:$0xff] }
  0xfc   : > { %1655 = vmatprep.subr.bf16.mxu0 %v744_v63  ;;  %v611_v29 = vmul.f32 0.0078125, %v599_v1  ;;  %v741_v9 = vmul.f32 %v1548_v39, %v727_v2  ;;  %1807 = vrsqrt.f32 %v617_v6 }
  0xfd   : > { %1656 = vmatpush3.bf16.xpose.msra.mxu0 %v744_v63  ;;  %v1798_v7 = vpop.eup %1797  ;;  %v740_v8 = vmul.f32 %v1548_v39, %v726_v5  ;;  %v620_v11 = vadd.f32 1e-06, %v612_v3 }
  0xfe   : > { %1657 = vmatprep.subr.bf16.mxu0 %v745_v28  ;;  %v1800_v10 = vpop.eup %1799  ;;  %v605_v12 = vpop.xlane.xlu1 %604  ;;  %v619_v13 = vadd.f32 1e-06, %v611_v29  ;;  %v729_v15 = vmul.f32 %v1798_v7, %v2161_v40  ;;  %v1954_v7 = vmov 0  }
  0xff   : > { %v603_v14 = vpop.xlane.xlu0 %602  ;;  %v746_v17 = vpack.c.bf16 %v741_v9, %v740_v8  ;;  %v614_v18 = vmul.f32 0.0078125, %v605_v12  ;;  %v728_v19 = vmul.f32 %v1800_v10, %v2163_v41  ;;  %1809 = vrsqrt.f32 %v620_v11  ;;  %1779 = vset.pattern.permute.xlu0 %v1954_v7  ;;  %1780 = vset.pattern.permute.xlu1 %v1954_v7 }
 0x100   : > { %v613_v21 = vmul.f32 0.0078125, %v603_v14  ;;  %1811 = vrsqrt.f32 %v619_v13  ;;  %v743_v30 = vmul.f32 %v1548_v39, %v729_v15  ;;  %v1955_v8 = vmov 0.0  }
 0x101   : > { %v1802_v35 = vpop.eup %1801  ;;  %v622_v40 = vadd.f32 1e-06, %v614_v18  ;;  %v742_v25 = vmul.f32 %v1548_v39, %v728_v19  ;;  %549 = vst.msk [vmem:[#allocation3] sm:$0xff] %vm540_vm0, %v1955_v8  ;;  %550 = vst.msk [vmem:[#allocation3 + $0x8] sm:$0xff] %vm540_vm0, %v1955_v8 }
 0x102   : > { %v1804_v16 = vpop.eup %1803  ;;  %v632_v20 = vmul.f32 %v1802_v35, %v2170_v45  ;;  %v621_v31 = vadd.f32 1e-06, %v613_v21  ;;  %551 = vst.msk [vmem:[#allocation3 + $0x10] sm:$0xff] %vm540_vm0, %v1955_v8  ;;  %552 = vst.msk [vmem:[#allocation3 + $0x18] sm:$0xff] %vm540_vm0, %v1955_v8 }
 0x103   : > { %v631_v22 = vmul.f32 %v1804_v16, %v2172_v46  ;;  %1813 = vrsqrt.f32 %v622_v40  ;;  %v747_v41 = vpack.c.bf16 %v743_v30, %v742_v25  ;;  %553 = vst.msk [vmem:[#allocation3 + $0x20] sm:$0xff] %vm540_vm0, %v1955_v8  ;;  %554 = vst.msk [vmem:[#allocation3 + $0x28] sm:$0xff] %vm540_vm0, %v1955_v8 }
 0x104   : > { %v646_v23 = vmul.f32 %v1547_v36, %v632_v20  ;;  %1815 = vrsqrt.f32 %v621_v31  ;;  %555 = vst.msk [vmem:[#allocation3 + $0x30] sm:$0xff] %vm540_vm0, %v1955_v8  ;;  %556 = vst.msk [vmem:[#allocation3 + $0x38] sm:$0xff] %vm540_vm0, %v1955_v8 }
 0x105   : > { %1658 = vmatpush3.bf16.xpose.msra.mxu0 %v745_v28  ;;  %v645_v24 = vmul.f32 %v1547_v36, %v631_v22  ;;  %v1806_v33 = vpop.eup %1805 }
 0x106   : > { %1659 = vmatprep.subr.bf16.mxu0 %v746_v17  ;;  %v1808_v34 = vpop.eup %1807  ;;  %v634_v38 = vmul.f32 %v1806_v33, %v2178_v50 }
 0x107   : > { %v653_v32 = vpack.c.bf16 %v646_v23, %v645_v24  ;;  %v633_v46 = vmul.f32 %v1808_v34, %v2180_v51 }
 0x108   : > { %v648_v47 = vmul.f32 %v1547_v36, %v634_v38 }
 0x109   : > { %1663 = vmatprep.mubr.bf16.mxu0 %v653_v32  ;;  %v1810_v45 = vpop.eup %1809  ;;  %v647_v44 = vmul.f32 %v1547_v36, %v633_v46 }
 0x10a   : > { %v1812_v37 = vpop.eup %1811  ;;  %v636_v39 = vmul.f32 %v1810_v45, %v2186_v55  ;;  %v1953_v55 = vmov -inf  }
 0x10b   : > { %v635_v42 = vmul.f32 %v1812_v37, %v2188_v56  ;;  %v654_v52 = vpack.c.bf16 %v648_v47, %v647_v44  ;;  %541 = vst.msk [vmem:[#allocation2] sm:$0xff] %vm540_vm0, %v1953_v55  ;;  %542 = vst.msk [vmem:[#allocation2 + $0x8] sm:$0xff] %vm540_vm0, %v1953_v55  ;;  %v1782_v44 = vld [vmem:[%s497_s18 + $0x8] sm:$0xff]   ;;  %v1783_v47 = vld [vmem:[%s497_s18 + $0x10] sm:$0xff]  }
 0x10c   : > { %v650_v27 = vmul.f32 %v1547_v36, %v636_v39  ;;  %543 = vst.msk [vmem:[#allocation2 + $0x10] sm:$0xff] %vm540_vm0, %v1953_v55  ;;  %544 = vst.msk [vmem:[#allocation2 + $0x18] sm:$0xff] %vm540_vm0, %v1953_v55  ;;  %v1781_v39 = vld [vmem:[%s497_s18] sm:$0xff]  }
 0x10d   : > { %1660 = vmatpush3.bf16.xpose.msra.mxu0 %v746_v17  ;;  %v1814_v43 = vpop.eup %1813  ;;  %v649_v49 = vmul.f32 %v1547_v36, %v635_v42  ;;  %545 = vst.msk [vmem:[#allocation2 + $0x20] sm:$0xff] %vm540_vm0, %v1953_v55  ;;  %546 = vst.msk [vmem:[#allocation2 + $0x28] sm:$0xff] %vm540_vm0, %v1953_v55  ;;  %1671 = vmatprep.subr.bf16.mxu1 %v1781_v39 }
 0x10e   : > { %1661 = vmatprep.subr.bf16.mxu0 %v747_v41  ;;  %v1816_v48 = vpop.eup %1815  ;;  %v638_v26 = vmul.f32 %v1814_v43, %v2194_v60  ;;  %547 = vst.msk [vmem:[#allocation2 + $0x30] sm:$0xff] %vm540_vm0, %v1953_v55  ;;  %548 = vst.msk [vmem:[#allocation2 + $0x38] sm:$0xff] %vm540_vm0, %v1953_v55  ;;  %1672 = vmatpush3.bf16.msra.mxu1 %v1781_v39 }
 0x10f   : > { %v637_v53 = vmul.f32 %v1816_v48, %v2196_v61  ;;  %v655_v54 = vpack.c.bf16 %v650_v27, %v649_v49  ;;  %1673 = vmatprep.subr.bf16.mxu1 %v1782_v44  ;;  %v1784_v48 = vld [vmem:[%s497_s18 + $0x18] sm:$0xff]  }
 0x110   : > { %v652_v50 = vmul.f32 %v1547_v36, %v638_v26 }
 0x111   : > { %v651_v51 = vmul.f32 %v1547_v36, %v637_v53 }
 0x112   : > { %v2272_v9 = vld [vmem:[#allocation2] sm:$0xff]  ;;  %v2274_v11 = vld [vmem:[#allocation2 + $0x8] sm:$0xff]  ;;  %1674 = vmatpush3.bf16.msra.mxu1 %v1782_v44 }
 0x113   : > { %v656_v56 = vpack.c.bf16 %v652_v50, %v651_v51  ;;  %v2279_v14 = vld [vmem:[#allocation2 + $0x10] sm:$0xff]  ;;  %v2289_v16 = vld [vmem:[#allocation2 + $0x18] sm:$0xff]  ;;  %1675 = vmatprep.subr.bf16.mxu1 %v1783_v47 }
 0x114   : > { %v2298_v20 = vld [vmem:[#allocation2 + $0x20] sm:$0xff]  ;;  %v2308_v24 = vld [vmem:[#allocation2 + $0x28] sm:$0xff] }
 0x115   : > { %1662 = vmatpush3.bf16.xpose.msra.mxu0 %v747_v41  ;;  %v2317_v31 = vld [vmem:[#allocation2 + $0x30] sm:$0xff]  ;;  %v2327_v34 = vld [vmem:[#allocation2 + $0x38] sm:$0xff] }
 0x116   : > { %1676 = vmatpush3.bf16.msra.mxu1 %v1783_v47 }
 0x117   : > { %1677 = vmatprep.subr.bf16.mxu1 %v1784_v48 }
 0x11a   : > { %1678 = vmatpush3.bf16.msra.mxu1 %v1784_v48 }
 0x11c   : > { %1664 = vmatmul.mubr.bf16.vlgmr.msra.gmra.mrb[0].mxu0 %v654_v52 }
 0x11d   : > { %1667 = vmatprep.mubr.bf16.mxu0 %v655_v54 }
 0x124   : > { %1668 = vmatmul.mubr.bf16.gmra.mrb[4].mxu0 %v656_v56 }
 0x1ef   : > { %v2232_v60 = vpop.f32.mrb[0].mxu0 }
 0x1f0   : > { %v2234_v61 = vpop.f32.mrb[1].mxu0  ;;  %v828_v63 = vsel %vm821_vm1, %v2232_v60, -inf }
 0x1f1   : > { %v2236_v57 = vpop.f32.mrb[2].mxu0  ;;  %v822_v58 = vsel %vm821_vm1, %v2234_v61, -inf }
 0x1f2   : > { %823 = vmax.xlane.f32.xlu0 %v822_v58  ;;  %v2240_v59 = vpop.f32.mrb[3].mxu0  ;;  %v831_v1 = vsel %vm821_vm1, %v2236_v57, -inf }
 0x1f3   : > { %v825_v62 = vsel %vm821_vm1, %v2240_v59, -inf }
 0x1f4   : > { %826 = vmax.xlane.f32.xlu1 %v825_v62 }
 0x1f6   : > { %829 = vmax.xlane.f32.xlu0 %v828_v63 }
 0x1f7   : > { %v2246_v0 = vpop.f32.mrb[4].mxu0 }
 0x1f8   : > { %832 = vmax.xlane.f32.xlu1 %v831_v1  ;;  %v2250_v2 = vpop.f32.mrb[5].mxu0  ;;  %v840_v5 = vsel %vm821_vm1, %v2246_v0, -inf }
 0x1f9   : > { %v2252_v28 = vpop.f32.mrb[6].mxu0  ;;  %v834_v3 = vsel %vm821_vm1, %v2250_v2, -inf }
 0x1fa   : > { %835 = vmax.xlane.f32.xlu0 %v834_v3  ;;  %v2256_v4 = vpop.f32.mrb[7].mxu0  ;;  %v843_v6 = vsel %vm821_vm1, %v2252_v28, -inf }
 0x1fb   : > { %v837_v29 = vsel %vm821_vm1, %v2256_v4, -inf }
 0x1fc   : > { %838 = vmax.xlane.f32.xlu1 %v837_v29 }
 0x1fe   : > { %841 = vmax.xlane.f32.xlu0 %v840_v5 }
 0x200   : > { %844 = vmax.xlane.f32.xlu1 %v843_v6 }
 0x27f   : > { %v824_v10 = vpop.xlane.xlu0 %823 }
 0x280   : > { %v2277_v12 = vmax.f32 %v2272_v9, %v824_v10 }
 0x281   : > { %v827_v13 = vpop.xlane.xlu1 %826 }
 0x282   : > { %v854_v35 = vsub.f32 %v2272_v9, %v2277_v12  ;;  %1184 = vst.msk [vmem:[#allocation2] sm:$0xff] %vm540_vm0, %v2277_v12  ;;  %v2286_v15 = vmax.f32 %v2274_v11, %v827_v13  ;;  %880 = vperm.xlu0 %1779, %v2277_v12  }
 0x283   : > { %v830_v36 = vpop.xlane.xlu0 %829 }
 0x284   : > { %v855_v17 = vsub.f32 %v2274_v11, %v2286_v15  ;;  %1185 = vst.msk [vmem:[#allocation2 + $0x8] sm:$0xff] %vm540_vm0, %v2286_v15  ;;  %v2296_v18 = vmax.f32 %v2279_v14, %v830_v36 }
 0x285   : > { %v833_v19 = vpop.xlane.xlu1 %832 }
 0x286   : > { %v856_v21 = vsub.f32 %v2279_v14, %v2296_v18  ;;  %1186 = vst.msk [vmem:[#allocation2 + $0x10] sm:$0xff] %vm540_vm0, %v2296_v18  ;;  %v2305_v22 = vmax.f32 %v2289_v16, %v833_v19  ;;  %890 = vperm.xlu1 %1780, %v2296_v18  }
 0x287   : > { %v836_v23 = vpop.xlane.xlu0 %835 }
 0x288   : > { %v857_v40 = vsub.f32 %v2289_v16, %v2305_v22  ;;  %1187 = vst.msk [vmem:[#allocation2 + $0x18] sm:$0xff] %vm540_vm0, %v2305_v22  ;;  %v2315_v25 = vmax.f32 %v2298_v20, %v836_v23 }
 0x289   : > { %v839_v30 = vpop.xlane.xlu1 %838 }
 0x28a   : > { %v858_v32 = vsub.f32 %v2298_v20, %v2315_v25  ;;  %1188 = vst.msk [vmem:[#allocation2 + $0x20] sm:$0xff] %vm540_vm0, %v2315_v25  ;;  %v2324_v33 = vmax.f32 %v2308_v24, %v839_v30  ;;  %895 = vperm.xlu1 %1780, %v2305_v22  }
 0x28b   : > { %v842_v41 = vpop.xlane.xlu0 %841 }
 0x28c   : > { %v859_v45 = vsub.f32 %v2308_v24, %v2324_v33  ;;  %1189 = vst.msk [vmem:[#allocation2 + $0x28] sm:$0xff] %vm540_vm0, %v2324_v33  ;;  %v2335_v37 = vmax.f32 %v2317_v31, %v842_v41  ;;  %v870_v11 = vmul.f32 1.442695, %v858_v32  ;;  %v942_v24 = vld [vmem:[#allocation3] sm:$0xff] }
 0x28d   : > { %v845_v46 = vpop.xlane.xlu1 %844 }
 0x28e   : > { %v860_v38 = vsub.f32 %v2317_v31, %v2335_v37  ;;  %1190 = vst.msk [vmem:[#allocation2 + $0x30] sm:$0xff] %vm540_vm0, %v2335_v37  ;;  %v2342_v42 = vmax.f32 %v2327_v34, %v845_v46  ;;  %885 = vperm.xlu1 %1780, %v2286_v15   ;;  %v872_v9 = vmul.f32 1.442695, %v859_v45  ;;  %v944_v31 = vld [vmem:[#allocation3 + $0x10] sm:$0xff]  ;;  %v945_v45 = vld [vmem:[#allocation3 + $0x18] sm:$0xff] }
 0x290   : > { %v861_v43 = vsub.f32 %v2327_v34, %v2342_v42  ;;  %1191 = vst.msk [vmem:[#allocation2 + $0x38] sm:$0xff] %vm540_vm0, %v2342_v42  ;;  %v874_v12 = vmul.f32 1.442695, %v860_v38 }
 0x292   : > { %910 = vperm.xlu1 %1780, %v2335_v37   ;;  %v876_v14 = vmul.f32 1.442695, %v861_v43  ;;  %v943_v43 = vld [vmem:[#allocation3 + $0x8] sm:$0xff] }
 0x296   : > { %900 = vperm.xlu1 %1780, %v2315_v25  }
 0x29a   : > { %905 = vperm.xlu1 %1780, %v2324_v33  }
 0x29e   : > { %915 = vperm.xlu1 %1780, %v2342_v42  }
 0x301   : > { %v881_v49 = vpop.permute.xlu0 %880 }
 0x302   : > { %v918_v27 = vsub.f32 %v2234_v61, %v881_v49 }
 0x304   : > { %v926_v52 = vmul.f32 1.442695, %v918_v27 }
 0x305   : > { %v891_v53 = vpop.permute.xlu1 %890 }
 0x306   : > { %1817 = vpow2.f32 %v926_v52  ;;  %v920_v26 = vsub.f32 %v2232_v60, %v891_v53 }
 0x308   : > { %v930_v54 = vmul.f32 1.442695, %v920_v26  ;;  %v864_v26 = vmul.f32 1.442695, %v855_v17 }
 0x309   : > { %v896_v51 = vpop.permute.xlu1 %895 }
 0x30a   : > { %1819 = vpow2.f32 %v930_v54  ;;  %v921_v50 = vsub.f32 %v2236_v57, %v896_v51  ;;  %v862_v54 = vmul.f32 1.442695, %v854_v35  ;;  %v866_v51 = vmul.f32 1.442695, %v856_v21 }
 0x30c   : > { %v932_v56 = vmul.f32 1.442695, %v921_v50  ;;  %v868_v50 = vmul.f32 1.442695, %v857_v40 }
 0x30d   : > { %v886_v55 = vpop.permute.xlu1 %885 }
 0x30e   : > { %1821 = vpow2.f32 %v932_v56  ;;  %v919_v58 = vsub.f32 %v2240_v59, %v886_v55 }
 0x310   : > { %v1818_v62 = vpop.eup %1817  ;;  %v928_v63 = vmul.f32 1.442695, %v919_v58 }
 0x311   : > { %v911_v1 = vpop.permute.xlu1 %910  ;;  %v958_v61 = vsel %vm821_vm1, %v1818_v62, 0.0 }
 0x312   : > { %1823 = vpow2.f32 %v928_v63  ;;  %959 = vadd.xlane.f32.xlu1 %v958_v61  ;;  %v924_v60 = vsub.f32 %v2246_v0, %v911_v1  ;;  %v946_v61 = vld [vmem:[#allocation3 + $0x20] sm:$0xff] }
 0x314   : > { %v1820_v3 = vpop.eup %1819  ;;  %v938_v7 = vmul.f32 1.442695, %v924_v60 }
 0x315   : > { %v901_v29 = vpop.permute.xlu1 %900  ;;  %v964_v5 = vsel %vm821_vm1, %v1820_v3, 0.0 }
 0x316   : > { %v922_v57 = vsub.f32 %v2250_v2, %v901_v29  ;;  %965 = vadd.xlane.f32.xlu0 %v964_v5  ;;  %v947_v5 = vld [vmem:[#allocation3 + $0x28] sm:$0xff] }
 0x318   : > { %v1822_v6 = vpop.eup %1821  ;;  %v934_v8 = vmul.f32 1.442695, %v922_v57  ;;  %v948_v57 = vld [vmem:[#allocation3 + $0x30] sm:$0xff] }
 0x319   : > { %v906_v59 = vpop.permute.xlu1 %905  ;;  %v967_v10 = vsel %vm821_vm1, %v1822_v6, 0.0  ;;  %v1056_v13 = vpack.c.bf16 %v1822_v6, %v1820_v3 }
 0x31a   : > { %1825 = vpow2.f32 %v934_v8  ;;  %v923_v36 = vsub.f32 %v2256_v4, %v906_v59  ;;  %968 = vadd.xlane.f32.xlu1 %v967_v10 }
 0x31b   : > { %1827 = vpow2.f32 %v938_v7 }
 0x31c   : > { %v1824_v19 = vpop.eup %1823  ;;  %v936_v0 = vmul.f32 1.442695, %v923_v36  ;;  %v949_v36 = vld [vmem:[#allocation3 + $0x38] sm:$0xff] }
 0x31d   : > { %v916_v23 = vpop.permute.xlu1 %915  ;;  %v961_v30 = vsel %vm821_vm1, %v1824_v19, 0.0  ;;  %v1055_v41 = vpack.c.bf16 %v1824_v19, %v1818_v62 }
 0x31e   : > { %1829 = vpow2.f32 %v936_v0  ;;  %v925_v2 = vsub.f32 %v2252_v28, %v916_v23  ;;  %962 = vadd.xlane.f32.xlu0 %v961_v30 }
 0x31f   : > { %1679 = vmatprep.mubr.msk.bf16.mxu1 %vm821_vm1, %v1055_v41 }
 0x320   : > { %v940_v46 = vmul.f32 1.442695, %v925_v2  ;;  %1680 = vmatmul.mubr.msk.bf16.vlgmr.msra.gmra.mrb[0].mxu1 %vm821_vm1, %v1056_v13 }
 0x322   : > { %1831 = vpow2.f32 %v940_v46 }
 0x323   : > { %1833 = vpow2.f32 %v864_v26 }
 0x324   : > { %v1826_v39 = vpop.eup %1825  ;;  %1835 = vpow2.f32 %v862_v54 }
 0x325   : > { %v970_v4 = vsel %vm821_vm1, %v1826_v39, 0.0  ;;  %v1828_v44 = vpop.eup %1827  ;;  %1837 = vpow2.f32 %v866_v51 }
 0x326   : > { %971 = vadd.xlane.f32.xlu0 %v970_v4  ;;  %v976_v48 = vsel %vm821_vm1, %v1828_v44, 0.0  ;;  %1839 = vpow2.f32 %v868_v50 }
 0x327   : > { %1841 = vpow2.f32 %v870_v11 }
 0x328   : > { %v1830_v47 = vpop.eup %1829  ;;  %1843 = vpow2.f32 %v872_v9 }
 0x329   : > { %v973_v49 = vsel %vm821_vm1, %v1830_v47, 0.0  ;;  %v1057_v27 = vpack.c.bf16 %v1830_v47, %v1826_v39  ;;  %1845 = vpow2.f32 %v874_v12 }
 0x32a   : > { %977 = vadd.xlane.f32.xlu0 %v976_v48  ;;  %974 = vadd.xlane.f32.xlu1 %v973_v49  ;;  %1847 = vpow2.f32 %v876_v14 }
 0x32b   : > { %1683 = vmatprep.mubr.msk.bf16.mxu1 %vm821_vm1, %v1057_v27 }
 0x32c   : > { %v1832_v28 = vpop.eup %1831 }
 0x32d   : > { %v979_v52 = vsel %vm821_vm1, %v1832_v28, 0.0  ;;  %v1058_v53 = vpack.c.bf16 %v1832_v28, %v1828_v44  ;;  %v1834_v35 = vpop.eup %1833 }
 0x32e   : > { %980 = vadd.xlane.f32.xlu1 %v979_v52  ;;  %v1836_v15 = vpop.eup %1835  ;;  %v951_v55 = vmul.f32 %v1834_v35, %v943_v43 }
 0x32f   : > { %1684 = vmatmul.mubr.msk.bf16.gmra.mrb[4].mxu1 %vm821_vm1, %v1058_v53  ;;  %v1838_v16 = vpop.eup %1837  ;;  %v950_v40 = vmul.f32 %v1836_v15, %v942_v24 }
 0x330   : > { %v1840_v17 = vpop.eup %1839  ;;  %v952_v33 = vmul.f32 %v1838_v16, %v944_v31 }
 0x331   : > { %v1842_v18 = vpop.eup %1841  ;;  %v953_v38 = vmul.f32 %v1840_v17, %v945_v45 }
 0x332   : > { %v1844_v20 = vpop.eup %1843  ;;  %v954_v60 = vmul.f32 %v1842_v18, %v946_v61 }
 0x333   : > { %v1846_v21 = vpop.eup %1845  ;;  %v955_v8 = vmul.f32 %v1844_v20, %v947_v5 }
 0x334   : > { %v1848_v22 = vpop.eup %1847  ;;  %v956_v59 = vmul.f32 %v1846_v21, %v948_v57 }
 0x335   : > { %v957_v30 = vmul.f32 %v1848_v22, %v949_v36 }
 0x33f   : > { %1014 = vperm.xlu1 %1780, %v1834_v35  }
 0x340   : > { %1009 = vperm.xlu0 %1779, %v1836_v15  }
 0x343   : > { %1019 = vperm.xlu1 %1780, %v1838_v16  }
 0x344   : > { %1024 = vperm.xlu0 %1779, %v1840_v17  }
 0x347   : > { %1029 = vperm.xlu1 %1780, %v1842_v18  }
 0x348   : > { %1034 = vperm.xlu0 %1779, %v1844_v20  }
 0x34b   : > { %1039 = vperm.xlu1 %1780, %v1846_v21  }
 0x34c   : > { %1044 = vperm.xlu0 %1779, %v1848_v22  }
 0x39f   : > { %v960_v25 = vpop.xlane.xlu1 %959 }
 0x3a0   : > { %v982_v32 = vadd.f32 %v960_v25, %v950_v40 }
 0x3a2   : > { %991 = vst.msk [vmem:[#allocation3] sm:$0xff] %vm540_vm0, %v982_v32 }
 0x3a3   : > { %v966_v34 = vpop.xlane.xlu0 %965 }
 0x3a4   : > { %v984_v37 = vadd.f32 %v966_v34, %v952_v33 }
 0x3a6   : > { %993 = vst.msk [vmem:[#allocation3 + $0x10] sm:$0xff] %vm540_vm0, %v984_v37 }
 0x3a7   : > { %v969_v42 = vpop.xlane.xlu1 %968 }
 0x3a8   : > { %v985_v56 = vadd.f32 %v969_v42, %v953_v38 }
 0x3a9   : > { %v1195_v1 = vld [vmem:[#allocation3] sm:$0xff] }
 0x3aa   : > { %994 = vst.msk [vmem:[#allocation3 + $0x18] sm:$0xff] %vm540_vm0, %v985_v56 }
 0x3ab   : > { %v963_v58 = vpop.xlane.xlu0 %962 }
 0x3ac   : > { %v983_v62 = vadd.f32 %v963_v58, %v951_v55 }
 0x3ad   : > { %v1197_v63 = vld [vmem:[#allocation3 + $0x10] sm:$0xff] }
 0x3ae   : > { %992 = vst.msk [vmem:[#allocation3 + $0x8] sm:$0xff] %vm540_vm0, %v983_v62  ;;  %1849 = vrcp.f32 %v1197_v63 }
 0x3af   : > { %1851 = vrcp.f32 %v1195_v1 }
 0x3b1   : > { %v1198_v3 = vld [vmem:[#allocation3 + $0x18] sm:$0xff] }
 0x3b2   : > { %1853 = vrcp.f32 %v1198_v3 }
 0x3b3   : > { %v972_v29 = vpop.xlane.xlu0 %971 }
 0x3b4   : > { %v986_v6 = vadd.f32 %v972_v29, %v954_v60 }
 0x3b5   : > { %v1196_v7 = vld [vmem:[#allocation3 + $0x8] sm:$0xff] }
 0x3b6   : > { %995 = vst.msk [vmem:[#allocation3 + $0x20] sm:$0xff] %vm540_vm0, %v986_v6  ;;  %1855 = vrcp.f32 %v1196_v7 }
 0x3b7   : > { %v975_v10 = vpop.xlane.xlu1 %974  ;;  %v978_v13 = vpop.xlane.xlu0 %977 }
 0x3b8   : > { %v1850_v19 = vpop.eup %1849  ;;  %v987_v0 = vadd.f32 %v975_v10, %v955_v8  ;;  %v988_v23 = vadd.f32 %v978_v13, %v956_v59 }
 0x3b9   : > { %1231 = vperm.xlu1 %1780, %v1850_v19   ;;  %v1852_v41 = vpop.eup %1851 }
 0x3ba   : > { %996 = vst.msk [vmem:[#allocation3 + $0x28] sm:$0xff] %vm540_vm0, %v987_v0  ;;  %997 = vst.msk [vmem:[#allocation3 + $0x30] sm:$0xff] %vm540_vm0, %v988_v23 }
 0x3bb   : > { %v981_v2 = vpop.xlane.xlu1 %980 }
 0x3bc   : > { %v1854_v46 = vpop.eup %1853  ;;  %v989_v39 = vadd.f32 %v981_v2, %v957_v30 }
 0x3bd   : > { %1236 = vperm.xlu0 %1779, %v1854_v46   ;;  %1221 = vperm.xlu1 %1780, %v1852_v41   ;;  %v1199_v4 = vld [vmem:[#allocation3 + $0x20] sm:$0xff] }
 0x3be   : > { %998 = vst.msk [vmem:[#allocation3 + $0x38] sm:$0xff] %vm540_vm0, %v989_v39  ;;  %1857 = vrcp.f32 %v1199_v4 }
 0x3bf   : > { %v1015_v35 = vpop.permute.xlu1 %1014  ;;  %v1010_v15 = vpop.permute.xlu0 %1009 }
 0x3c0   : > { %v1856_v44 = vpop.eup %1855  ;;  %v1048_v34 = vmul.f32 0.0, %v1015_v35  ;;  %v1047_v45 = vmul.f32 0.0, %v1010_v15 }
 0x3c1   : > { %1226 = vperm.xlu0 %1779, %v1856_v44   ;;  %v1200_v47 = vld [vmem:[#allocation3 + $0x28] sm:$0xff]  ;;  %v1201_v48 = vld [vmem:[#allocation3 + $0x30] sm:$0xff] }
 0x3c2   : > { %1859 = vrcp.f32 %v1200_v47 }
 0x3c3   : > { %1861 = vrcp.f32 %v1201_v48  ;;  %v1020_v16 = vpop.permute.xlu1 %1019  ;;  %v1025_v17 = vpop.permute.xlu0 %1024 }
 0x3c4   : > { %v1049_v40 = vmul.f32 0.0, %v1020_v16  ;;  %v1050_v25 = vmul.f32 0.0, %v1025_v17 }
 0x3c5   : > { %v1202_v49 = vld [vmem:[#allocation3 + $0x38] sm:$0xff] }
 0x3c6   : > { %1863 = vrcp.f32 %v1202_v49 }
 0x3c7   : > { %v1030_v18 = vpop.permute.xlu1 %1029  ;;  %v1035_v20 = vpop.permute.xlu0 %1034 }
 0x3c8   : > { %v1858_v27 = vpop.eup %1857  ;;  %v1051_v3 = vmul.f32 0.0, %v1030_v18  ;;  %v1052_v60 = vmul.f32 0.0, %v1035_v20 }
 0x3c9   : > { %1241 = vperm.xlu1 %1780, %v1858_v27  }
 0x3cb   : > { %v1040_v21 = vpop.permute.xlu1 %1039  ;;  %v1045_v22 = vpop.permute.xlu0 %1044 }
 0x3cc   : > { %v1860_v28 = vpop.eup %1859  ;;  %v1053_v6 = vmul.f32 0.0, %v1040_v21  ;;  %v1054_v7 = vmul.f32 0.0, %v1045_v22 }
 0x3cd   : > { %v1862_v52 = vpop.eup %1861  ;;  %1246 = vperm.xlu0 %1779, %v1860_v28  }
 0x3ce   : > { %1251 = vperm.xlu1 %1780, %v1862_v52  }
 0x3d0   : > { %v1864_v53 = vpop.eup %1863 }
 0x3d1   : > { %1256 = vperm.xlu0 %1779, %v1864_v53  }
 0x3f3   : > { %v1681_v26 = vpop.f32.mrb[0].mxu1 }
 0x3f4   : > { %v1137_v54 = vpop.f32.mrb[1].mxu1  ;;  %v1170_v31 = vadd.f32 %v1681_v26, %v1049_v40 }
 0x3f5   : > { %v1682_v51 = vpop.f32.mrb[2].mxu1  ;;  %v1168_v43 = vadd.f32 %v1137_v54, %v1047_v45 }
 0x3f6   : > { %v1140_v50 = vpop.f32.mrb[3].mxu1  ;;  %v1171_v32 = vadd.f32 %v1682_v51, %v1050_v25 }
 0x3f7   : > { %v1169_v56 = vadd.f32 %v1140_v50, %v1048_v34 }
 0x402   : > { %v1685_v11 = vpop.f32.mrb[4].mxu1 }
 0x403   : > { %v1153_v9 = vpop.f32.mrb[5].mxu1  ;;  %v1174_v13 = vadd.f32 %v1685_v11, %v1053_v6 }
 0x404   : > { %v1686_v12 = vpop.f32.mrb[6].mxu1  ;;  %v1172_v29 = vadd.f32 %v1153_v9, %v1051_v3 }
 0x405   : > { %v1156_v14 = vpop.f32.mrb[7].mxu1  ;;  %v1175_v36 = vadd.f32 %v1686_v12, %v1054_v7 }
 0x406   : > { %v1173_v5 = vadd.f32 %v1156_v14, %v1052_v60 }
 0x438   : > { %v1232_v24 = vpop.permute.xlu1 %1231 }
 0x439   : > { %v1261_v37 = vmul.f32 %v1232_v24, %v1170_v31 }
 0x43c   : > { %v1237_v33 = vpop.permute.xlu0 %1236  ;;  %v1222_v42 = vpop.permute.xlu1 %1221 }
 0x43d   : > { %v1262_v38 = vmul.f32 %v1237_v33, %v1171_v32  ;;  %v1259_v62 = vmul.f32 %v1222_v42, %v1168_v43 }
 0x43f   : > { %v1618_v55 = vpack.c.bf16 %v1262_v38, %v1261_v37 }
 0x440   : > { %v1227_v58 = vpop.permute.xlu0 %1226 }
 0x441   : > { %1636 = vst [vmem:[%s2406_s14 + $0x8] sm:$0xff] %v1618_v55   ;;  %v1260_v63 = vmul.f32 %v1227_v58, %v1169_v56 }
 0x443   : > { %v1613_v1 = vpack.c.bf16 %v1260_v63, %v1259_v62 }
 0x445   : > { %1614 = vst [vmem:[%s2406_s14] sm:$0xff] %v1613_v1  }
 0x448   : > { %v1242_v61 = vpop.permute.xlu1 %1241  ;;  %v1340_v39 = vld [vmem:[%s2406_s14 + $0x8] sm:$0xf] (%p2099_p13)  ;;  %v1342_v4 = vld [vmem:[%s2406_s14 + $0xc] sm:$0xf] (%p2099_p13) }
 0x449   : > { %v1263_v8 = vmul.f32 %v1242_v61, %v1172_v29  ;;  %1341 = vst [vmem:[%s1320_s6 + $0x10] sm:$0xf] (%p2099_p13), %v1340_v39  ;;  %1343 = vst [vmem:[%s1320_s6 + $0x18] sm:$0xf] (%p2099_p13), %v1342_v4 }
 0x44c   : > { %v1247_v57 = vpop.permute.xlu0 %1246  ;;  %v1336_v2 = vld [vmem:[%s2406_s14] sm:$0xf] (%p2099_p13)  ;;  %v1338_v46 = vld [vmem:[%s2406_s14 + $0x4] sm:$0xf] (%p2099_p13) }
 0x44d   : > { %v1264_v59 = vmul.f32 %v1247_v57, %v1173_v5  ;;  %v1252_v10 = vpop.permute.xlu1 %1251  ;;  %1337 = vst [vmem:[%s1320_s6] sm:$0xf] (%p2099_p13), %v1336_v2  ;;  %1339 = vst [vmem:[%s1320_s6 + $0x8] sm:$0xf] (%p2099_p13), %v1338_v46 }
 0x44e   : > { %v1265_v23 = vmul.f32 %v1252_v10, %v1174_v13 }
 0x44f   : > { %v1623_v19 = vpack.c.bf16 %v1264_v59, %v1263_v8  ;;  %1313 = sbr.rel (!%p2099_p13) target bundleno = 1118 (0x45e), region = 175 }
 0x450   : > { %v1257_v0 = vpop.permute.xlu0 %1256 }
 0x451   : > { %1637 = vst [vmem:[%s2406_s14 + $0x10] sm:$0xff] %v1623_v19   ;;  %v1266_v30 = vmul.f32 %v1257_v0, %v1175_v36 }
 0x453   : > { %v1628_v41 = vpack.c.bf16 %v1266_v30, %v1265_v23 }
 0x455   : > { %1638 = vst [vmem:[%s2406_s14 + $0x18] sm:$0xff] %v1628_v41  }
 0x458   : > { %v1344_v44 = vld [vmem:[%s2406_s14 + $0x10] sm:$0xf]  ;;  %v1346_v47 = vld [vmem:[%s2406_s14 + $0x14] sm:$0xf] }
 0x459   : > { %1345 = vst [vmem:[%s1320_s6 + $0x20] sm:$0xf] %v1344_v44  ;;  %1347 = vst [vmem:[%s1320_s6 + $0x28] sm:$0xf] %v1346_v47 }
 0x45c   : > { %v1348_v48 = vld [vmem:[%s2406_s14 + $0x18] sm:$0xf]  ;;  %v1350_v49 = vld [vmem:[%s2406_s14 + $0x1c] sm:$0xf] }
 0x45d   : > { %1349 = vst [vmem:[%s1320_s6 + $0x30] sm:$0xf] %v1348_v48  ;;  %1351 = vst [vmem:[%s1320_s6 + $0x38] sm:$0xf] %v1350_v49 }
 0x45e PF: > { %s15_s28 = sadd.s32 1, %s1951_s28   ;;  %s2479_s10 = sld [smem:[#allocation11_spill]] }
 0x45f   : > { %p12_p4 = scmp.ge.s32.totalorder %s15_s28, 6   ;;  %s2480_s18 = smov %s1915_s19 }
 0x460   : > { %s2481_s19 = smov %s2104_s7  ;;  %s2482_s20 = smov %s1923_s21 }
 0x461   : > { %s2483_s21 = smov %s2082_s9  ;;  %s2484_s22 = smov %s1931_s23 }
 0x462   : > { %s2485_s23 = smov %s2079_s5  ;;  %s2486_s24 = smov %s1943_s26 }
 0x463   : > { %s2487_s25 = smov %s1947_s27  ;;  %s2488_s26 = smov %s2491_s30 }
 0x464   : > { %s2489_s27 = smov %s2479_s10  ;;  %14 = sbr.rel (!%p12_p4) target bundleno = 8 (0x8), region = 263 }

// kernel: transformer_forward.3
= control target key start
LH: loop header
LB: loop body
LE: loop exit
PB: predicated region body
PF: predicated region fallthrough
CT: control target
= control target key end

     0   :  { %8 = vsyncpa [#allocation3], 0  ;;  %s2738_s0 = inlined_call_operand.hbm [shape: f32[128,256], index: 0, kind: input, shape index: {}]   ;;  %s2739_s1 = inlined_call_operand.hbm [shape: bf16[256,768], index: 1, kind: input, shape index: {}]   ;;  %s2740_s2 = inlined_call_operand.vmem [shape: f32[1,768], index: 2, kind: input, shape index: {}]   ;;  %s2741_s3 = inlined_call_operand.vmem [shape: bf16[128,768], index: 3, kind: output, shape index: {}]  }
   0x1   :  { %9 = vsyncpa [#allocation5], 0  ;;  %s2090_s12 = smov [#allocation2]   ;;  %s2042_s16 = scalar_lea.hbm %s2738_s0, 4096 }
   0x2   :  { %s15_s13 = sshll.u32 %s2090_s12, 4  ;;  %p2043_p0 = scmp.ne.s32.totalorder %s2738_s0, %s2042_s16  ;;  %s16_s13 = int_to_ptr.vmem [resolvable:$true] %s15_s13 }
   0x3   :  { %p2046_p1 = scmp.lt.u32.totalorder %s2042_s16, %s2738_s0 }
   0x5   :  { %p2048_p2 = pnand %p2046_p1, %p2043_p0 }
   0x7   :  { %2051 = shalt.err (!%p2048_p2)
}
   0x8   :  { %s2052_s21 = scalar_lea.vmem %s16_s13, 4096  ;;  %p2057_p4 = scmp.lt.s32.totalorder %s16_s13, %s16_s13 }
   0x9   :  { %p2053_p3 = scmp.ne.s32.totalorder %s16_s13, %s2052_s21  ;;  %p2058_p5 = scmp.lt.s32.totalorder %s2052_s21, %s2052_s21 }
   0xb   :  { %p2059_p6 = por %p2058_p5, %p2057_p4 }
   0xd   :  { %p2060_p7 = pnand %p2059_p6, %p2053_p3 }
   0xf   :  { %2063 = shalt.err (!%p2060_p7)
}
  0x10   :  { %s2091_s22 = smov 256   ;;  %s2092_s23 = smov 16  }
  0x11   :  { %21 = dma.hbm_to_vmem [thread:$0]  %s2738_s0, 4096, %s16_s13, [#allocation3], %s2091_s22, %s2091_s22, %s2092_s23  }
  0x12   :  { %s2093_s26 = smov [#allocation4]   ;;  %s2064_s30 = scalar_lea.hbm %s2739_s1, 12288 }
  0x13   :  { %s27_s27 = sshll.u32 %s2093_s26, 4  ;;  %p2065_p8 = scmp.ne.s32.totalorder %s2739_s1, %s2064_s30  ;;  %s28_s27 = int_to_ptr.vmem [resolvable:$true] %s27_s27 }
  0x14   :  { %p2068_p9 = scmp.lt.u32.totalorder %s2064_s30, %s2739_s1 }
  0x16   :  { %p2070_p10 = pnand %p2068_p9, %p2065_p8 }
  0x18   :  { %2073 = shalt.err (!%p2070_p10)
}
  0x19   :  { %s2074_s8 = scalar_lea.vmem %s28_s27, 12288  ;;  %p2079_p12 = scmp.lt.s32.totalorder %s28_s27, %s28_s27 }
  0x1a   :  { %p2075_p11 = scmp.ne.s32.totalorder %s28_s27, %s2074_s8  ;;  %p2080_p13 = scmp.lt.s32.totalorder %s2074_s8, %s2074_s8 }
  0x1c   :  { %p2081_p0 = por %p2080_p13, %p2079_p12 }
  0x1e   :  { %p2082_p1 = pnand %p2081_p0, %p2075_p11 }
  0x20   :  { %2085 = shalt.err (!%p2082_p1)
}
  0x21   :  { %s2094_s0 = smov 384   ;;  %s2095_s9 = smov 24  }
  0x22   :  { %33 = dma.hbm_to_vmem [thread:$0]  %s2739_s1, 12288, %s28_s27, [#allocation5], %s2094_s0, %s2094_s0, %s2095_s9  }
  0x23   :  { %2086 = dma.done.wait [#allocation3], 4096  }
  0x24   :  { %2087 = vsyncadd [#allocation3], 4294963200 }
  0x25   :  { %2088 = dma.done.wait [#allocation5], 12288  }
  0x26   :  { %2089 = vsyncadd [#allocation5], 4294955008  ;;  %v2140_v0 = vld [vmem:[#allocation2] sm:$0xff]  ;;  %v2142_v1 = vld [vmem:[#allocation2 + $0x8] sm:$0xff] }
  0x27   :  { %v2144_v2 = vld [vmem:[#allocation2 + $0x20] sm:$0xff]  ;;  %v74_v3 = vadd.f32 %v2142_v1, %v2140_v0  ;;  %v2148_v4 = vld [vmem:[#allocation2 + $0x28] sm:$0xff]  ;;  %v2150_v5 = vld [vmem:[#allocation2 + $0x10] sm:$0xff] }
  0x28   :  { %v2152_v6 = vld [vmem:[#allocation2 + $0x18] sm:$0xff]  ;;  %v80_v7 = vadd.f32 %v2148_v4, %v2144_v2  ;;  %v2156_v8 = vld [vmem:[#allocation2 + $0x30] sm:$0xff]  ;;  %v2164_v12 = vld [vmem:[#allocation2 + $0x40] sm:$0xff] }
  0x29   :  { %v2158_v9 = vld [vmem:[#allocation2 + $0x38] sm:$0xff]  ;;  %75 = vadd.xlane.f32.xlu0 %v74_v3  ;;  %v77_v10 = vadd.f32 %v2152_v6, %v2150_v5  ;;  %v2166_v13 = vld [vmem:[#allocation2 + $0x48] sm:$0xff]  ;;  %v2168_v14 = vld [vmem:[#allocation2 + $0x50] sm:$0xff] }
  0x2a   :  { %81 = vadd.xlane.f32.xlu1 %v80_v7  ;;  %v83_v11 = vadd.f32 %v2158_v9, %v2156_v8  ;;  %v2170_v15 = vld [vmem:[#allocation2 + $0x58] sm:$0xff]  ;;  %v86_v16 = vadd.f32 %v2166_v13, %v2164_v12  ;;  %v2176_v18 = vld [vmem:[#allocation2 + $0x60] sm:$0xff]  ;;  %v2178_v19 = vld [vmem:[#allocation2 + $0x68] sm:$0xff] }
  0x2b   :  { %v89_v17 = vadd.f32 %v2170_v15, %v2168_v14  ;;  %v2180_v20 = vld [vmem:[#allocation2 + $0x70] sm:$0xff]  ;;  %v2182_v21 = vld [vmem:[#allocation2 + $0x78] sm:$0xff]  ;;  %v2184_v22 = vld [vmem:[#allocation2 + $0x80] sm:$0xff]  ;;  %v92_v24 = vadd.f32 %v2178_v19, %v2176_v18 }
  0x2c   :  { %v2186_v23 = vld [vmem:[#allocation2 + $0x88] sm:$0xff]  ;;  %v2190_v25 = vld [vmem:[#allocation2 + $0x90] sm:$0xff]  ;;  %v2192_v26 = vld [vmem:[#allocation2 + $0x98] sm:$0xff]  ;;  %v95_v27 = vadd.f32 %v2182_v21, %v2180_v20 }
  0x2d   :  { %78 = vadd.xlane.f32.xlu0 %v77_v10  ;;  %v2196_v28 = vld [vmem:[#allocation2 + $0xa0] sm:$0xff]  ;;  %v2198_v29 = vld [vmem:[#allocation2 + $0xa8] sm:$0xff]  ;;  %v98_v30 = vadd.f32 %v2186_v23, %v2184_v22  ;;  %v2202_v31 = vld [vmem:[#allocation2 + $0xb0] sm:$0xff]  ;;  %v101_v33 = vadd.f32 %v2192_v26, %v2190_v25 }
  0x2e   :  { %84 = vadd.xlane.f32.xlu1 %v83_v11  ;;  %v2204_v32 = vld [vmem:[#allocation2 + $0xb8] sm:$0xff]  ;;  %v2208_v34 = vld [vmem:[#allocation2 + $0xc0] sm:$0xff]  ;;  %v2210_v35 = vld [vmem:[#allocation2 + $0xc8] sm:$0xff]  ;;  %v104_v36 = vadd.f32 %v2198_v29, %v2196_v28 }
  0x2f   :  { %v2214_v37 = vld [vmem:[#allocation2 + $0xd0] sm:$0xff]  ;;  %v2216_v38 = vld [vmem:[#allocation2 + $0xd8] sm:$0xff]  ;;  %v107_v39 = vadd.f32 %v2204_v32, %v2202_v31  ;;  %v2220_v40 = vld [vmem:[#allocation2 + $0xe0] sm:$0xff]  ;;  %v110_v42 = vadd.f32 %v2210_v35, %v2208_v34 }
  0x30   :  { %v2222_v41 = vld [vmem:[#allocation2 + $0xe8] sm:$0xff]  ;;  %v2226_v43 = vld [vmem:[#allocation2 + $0xf0] sm:$0xff]  ;;  %v2228_v44 = vld [vmem:[#allocation2 + $0xf8] sm:$0xff]  ;;  %v113_v45 = vadd.f32 %v2216_v38, %v2214_v37 }
  0x31   :  { %87 = vadd.xlane.f32.xlu0 %v86_v16  ;;  %v116_v46 = vadd.f32 %v2222_v41, %v2220_v40  ;;  %v119_v47 = vadd.f32 %v2228_v44, %v2226_v43  ;;  %v1866_v48 = vld [vmem:[#allocation4 + $0x4] ss:$24 sps:$4 sm:$0xff]   ;;  %v1870_v50 = vld [vmem:[#allocation4] ss:$24 sps:$4 sm:$0xff]   ;;  %v1872_v52 = vld [vmem:[#allocation4 + $0x34] ss:$24 sps:$4 sm:$0xff]  }
  0x32   :  { %90 = vadd.xlane.f32.xlu1 %v89_v17  ;;  %v1868_v49 = vld [vmem:[#allocation4 + $0xc] ss:$24 sps:$4 sm:$0xff]   ;;  %v1871_v51 = vld [vmem:[#allocation4 + $0x8] ss:$24 sps:$4 sm:$0xff]   ;;  %v1874_v53 = vld [vmem:[#allocation4 + $0x3c] ss:$24 sps:$4 sm:$0xff]   ;;  %955 = vmatprep.subr.bf16.mxu0 %v1866_v48 }
  0x33   :  { %1068 = vmatprep.subr.bf16.mxu1 %v1868_v49  ;;  %956 = vmatpush1.bf16.msra.mxu0 %v1870_v50  ;;  %v1876_v54 = vld [vmem:[#allocation4 + $0x30] ss:$24 sps:$4 sm:$0xff]   ;;  %v1878_v56 = vld [vmem:[#allocation4 + $0x64] ss:$24 sps:$4 sm:$0xff]   ;;  %v1882_v58 = vld [vmem:[#allocation4 + $0x60] ss:$24 sps:$4 sm:$0xff]  }
  0x34   :  { %1069 = vmatpush1.bf16.msra.mxu1 %v1871_v51  ;;  %v1877_v55 = vld [vmem:[#allocation4 + $0x38] ss:$24 sps:$4 sm:$0xff]   ;;  %957 = vmatprep.subr.bf16.mxu0 %v1872_v52  ;;  %v1880_v57 = vld [vmem:[#allocation4 + $0x6c] ss:$24 sps:$4 sm:$0xff]   ;;  %v1883_v59 = vld [vmem:[#allocation4 + $0x68] ss:$24 sps:$4 sm:$0xff]  }
  0x35   :  { %93 = vadd.xlane.f32.xlu0 %v92_v24  ;;  %1070 = vmatprep.subr.bf16.mxu1 %v1874_v53  ;;  %v1884_v60 = vld [vmem:[#allocation4 + $0x94] ss:$24 sps:$4 sm:$0xff]   ;;  %v1888_v62 = vld [vmem:[#allocation4 + $0x90] ss:$24 sps:$4 sm:$0xff]   ;;  %v1890_v3 = vld [vmem:[#allocation4 + $0xc4] ss:$24 sps:$4 sm:$0xff]  }
  0x36   :  { %96 = vadd.xlane.f32.xlu1 %v95_v27  ;;  %v1886_v61 = vld [vmem:[#allocation4 + $0x9c] ss:$24 sps:$4 sm:$0xff]   ;;  %v1889_v63 = vld [vmem:[#allocation4 + $0x98] ss:$24 sps:$4 sm:$0xff]   ;;  %v1892_v7 = vld [vmem:[#allocation4 + $0xcc] ss:$24 sps:$4 sm:$0xff]  }
  0x37   :  { %958 = vmatpush1.bf16.msra.mxu0 %v1876_v54  ;;  %v1894_v10 = vld [vmem:[#allocation4 + $0xc0] ss:$24 sps:$4 sm:$0xff]   ;;  %v1896_v16 = vld [vmem:[#allocation4 + $0xf4] ss:$24 sps:$4 sm:$0xff]   ;;  %v1900_v24 = vld [vmem:[#allocation4 + $0xf0] ss:$24 sps:$4 sm:$0xff]  }
  0x38   :  { %1071 = vmatpush1.bf16.msra.mxu1 %v1877_v55  ;;  %959 = vmatprep.subr.bf16.mxu0 %v1878_v56  ;;  %v1895_v11 = vld [vmem:[#allocation4 + $0xc8] ss:$24 sps:$4 sm:$0xff]   ;;  %v1898_v17 = vld [vmem:[#allocation4 + $0xfc] ss:$24 sps:$4 sm:$0xff]   ;;  %v1901_v27 = vld [vmem:[#allocation4 + $0xf8] ss:$24 sps:$4 sm:$0xff]  }
  0x39   :  { %99 = vadd.xlane.f32.xlu0 %v98_v30  ;;  %1072 = vmatprep.subr.bf16.mxu1 %v1880_v57  ;;  %v1902_v30 = vld [vmem:[#allocation4 + $0x124] ss:$24 sps:$4 sm:$0xff]   ;;  %v1918_v50 = vld [vmem:[#allocation4 + $0x180] ss:$24 sps:$4 sm:$0xff]   ;;  %v1920_v52 = vld [vmem:[#allocation4 + $0x1b4] ss:$24 sps:$4 sm:$0xff]  }
  0x3a   :  { %102 = vadd.xlane.f32.xlu1 %v101_v33  ;;  %v1904_v33 = vld [vmem:[#allocation4 + $0x12c] ss:$24 sps:$4 sm:$0xff]   ;;  %v1919_v51 = vld [vmem:[#allocation4 + $0x188] ss:$24 sps:$4 sm:$0xff]   ;;  %v1922_v53 = vld [vmem:[#allocation4 + $0x1bc] ss:$24 sps:$4 sm:$0xff]  }
  0x3b   :  { %960 = vmatpush1.bf16.msra.mxu0 %v1882_v58  ;;  %v1914_v48 = vld [vmem:[#allocation4 + $0x184] ss:$24 sps:$4 sm:$0xff]   ;;  %v1924_v54 = vld [vmem:[#allocation4 + $0x1b0] ss:$24 sps:$4 sm:$0xff]  }
  0x3c   :  { %1073 = vmatpush1.bf16.msra.mxu1 %v1883_v59  ;;  %961 = vmatprep.subr.bf16.mxu0 %v1884_v60  ;;  %v1916_v49 = vld [vmem:[#allocation4 + $0x18c] ss:$24 sps:$4 sm:$0xff]   ;;  %v1925_v55 = vld [vmem:[#allocation4 + $0x1b8] ss:$24 sps:$4 sm:$0xff]  }
  0x3d   :  { %105 = vadd.xlane.f32.xlu0 %v104_v36  ;;  %1074 = vmatprep.subr.bf16.mxu1 %v1886_v61  ;;  %v1906_v36 = vld [vmem:[#allocation4 + $0x120] ss:$24 sps:$4 sm:$0xff]   ;;  %v1926_v56 = vld [vmem:[#allocation4 + $0x1e4] ss:$24 sps:$4 sm:$0xff]  }
  0x3e   :  { %108 = vadd.xlane.f32.xlu1 %v107_v39  ;;  %v1907_v39 = vld [vmem:[#allocation4 + $0x128] ss:$24 sps:$4 sm:$0xff]   ;;  %v1928_v57 = vld [vmem:[#allocation4 + $0x1ec] ss:$24 sps:$4 sm:$0xff]  }
  0x3f   :  { %962 = vmatpush1.bf16.msra.mxu0 %v1888_v62 }
  0x40   :  { %1075 = vmatpush1.bf16.msra.mxu1 %v1889_v63  ;;  %963 = vmatprep.subr.bf16.mxu0 %v1890_v3 }
  0x41   :  { %111 = vadd.xlane.f32.xlu0 %v110_v42  ;;  %1076 = vmatprep.subr.bf16.mxu1 %v1892_v7  ;;  %v1908_v42 = vld [vmem:[#allocation4 + $0x154] ss:$24 sps:$4 sm:$0xff]  }
  0x42   :  { %114 = vadd.xlane.f32.xlu1 %v113_v45  ;;  %v1910_v45 = vld [vmem:[#allocation4 + $0x15c] ss:$24 sps:$4 sm:$0xff]  }
  0x43   :  { %964 = vmatpush1.bf16.msra.mxu0 %v1894_v10 }
  0x44   :  { %1077 = vmatpush1.bf16.msra.mxu1 %v1895_v11  ;;  %965 = vmatprep.subr.bf16.mxu0 %v1896_v16 }
  0x45   :  { %117 = vadd.xlane.f32.xlu0 %v116_v46  ;;  %1078 = vmatprep.subr.bf16.mxu1 %v1898_v17  ;;  %v1912_v46 = vld [vmem:[#allocation4 + $0x150] ss:$24 sps:$4 sm:$0xff]  }
  0x46   :  { %120 = vadd.xlane.f32.xlu1 %v119_v47  ;;  %v1913_v47 = vld [vmem:[#allocation4 + $0x158] ss:$24 sps:$4 sm:$0xff]  }
  0x47   :  { %966 = vmatpush1.bf16.msra.mxu0 %v1900_v24 }
  0x48   :  { %1079 = vmatpush1.bf16.msra.mxu1 %v1901_v27  ;;  %967 = vmatprep.subr.bf16.mxu0 %v1902_v30 }
  0x49   :  { %1080 = vmatprep.subr.bf16.mxu1 %v1904_v33 }
  0x4b   :  { %968 = vmatpush1.bf16.msra.mxu0 %v1906_v36 }
  0x4c   :  { %1081 = vmatpush1.bf16.msra.mxu1 %v1907_v39  ;;  %969 = vmatprep.subr.bf16.mxu0 %v1908_v42 }
  0x4d   :  { %1082 = vmatprep.subr.bf16.mxu1 %v1910_v45 }
  0x4f   :  { %970 = vmatpush1.bf16.msra.mxu0 %v1912_v46 }
  0x50   :  { %1083 = vmatpush1.bf16.msra.mxu1 %v1913_v47  ;;  %971 = vmatprep.subr.bf16.mxu0 %v1914_v48 }
  0x51   :  { %1084 = vmatprep.subr.bf16.mxu1 %v1916_v49 }
  0x53   :  { %972 = vmatpush1.bf16.msra.mxu0 %v1918_v50 }
  0x54   :  { %1085 = vmatpush1.bf16.msra.mxu1 %v1919_v51  ;;  %973 = vmatprep.subr.bf16.mxu0 %v1920_v52 }
  0x55   :  { %1086 = vmatprep.subr.bf16.mxu1 %v1922_v53 }
  0x57   :  { %974 = vmatpush1.bf16.msra.mxu0 %v1924_v54 }
  0x58   :  { %1087 = vmatpush1.bf16.msra.mxu1 %v1925_v55  ;;  %975 = vmatprep.subr.bf16.mxu0 %v1926_v56 }
  0x59   :  { %1088 = vmatprep.subr.bf16.mxu1 %v1928_v57 }
  0xb6   :  { %v76_v58 = vpop.xlane.xlu0 %75 }
  0xb7   :  { %v123_v59 = vmul.f32 0.00390625, %v76_v58  ;;  %v82_v60 = vpop.xlane.xlu1 %81 }
  0xb8   :  { %v125_v61 = vmul.f32 0.00390625, %v82_v60 }
  0xb9   :  { %v2237_v62 = vsub.f32 %v2140_v0, %v123_v59  ;;  %v2240_v63 = vsub.f32 %v2142_v1, %v123_v59 }
  0xba   :  { %v2243_v3 = vsub.f32 %v2144_v2, %v125_v61  ;;  %v2246_v7 = vsub.f32 %v2148_v4, %v125_v61  ;;  %v79_v10 = vpop.xlane.xlu0 %78 }
  0xbb   :  { %v124_v11 = vmul.f32 0.00390625, %v79_v10  ;;  %v85_v16 = vpop.xlane.xlu1 %84  ;;  %v171_v17 = vmul.f32 %v2237_v62, %v2237_v62  ;;  %v172_v24 = vmul.f32 %v2240_v63, %v2240_v63 }
  0xbc   :  { %v126_v0 = vmul.f32 0.00390625, %v85_v16  ;;  %v175_v1 = vmul.f32 %v2243_v3, %v2243_v3  ;;  %v176_v2 = vmul.f32 %v2246_v7, %v2246_v7 }
  0xbd   :  { %v2257_v27 = vsub.f32 %v2150_v5, %v124_v11  ;;  %v2260_v4 = vsub.f32 %v2152_v6, %v124_v11  ;;  %v203_v30 = vadd.f32 %v172_v24, %v171_v17 }
  0xbe   :  { %v2263_v33 = vsub.f32 %v2156_v8, %v126_v0  ;;  %v2266_v36 = vsub.f32 %v2158_v9, %v126_v0  ;;  %v88_v39 = vpop.xlane.xlu0 %87  ;;  %v209_v46 = vadd.f32 %v176_v2, %v175_v1 }
  0xbf   :  { %v127_v42 = vmul.f32 0.00390625, %v88_v39  ;;  %204 = vadd.xlane.f32.xlu0 %v203_v30  ;;  %v91_v45 = vpop.xlane.xlu1 %90  ;;  %v173_v47 = vmul.f32 %v2257_v27, %v2257_v27  ;;  %v174_v5 = vmul.f32 %v2260_v4, %v2260_v4 }
  0xc0   :  { %v128_v6 = vmul.f32 0.00390625, %v91_v45  ;;  %v177_v48 = vmul.f32 %v2263_v33, %v2263_v33  ;;  %v178_v8 = vmul.f32 %v2266_v36, %v2266_v36 }
  0xc1   :  { %v2277_v9 = vsub.f32 %v2164_v12, %v127_v42  ;;  %v2280_v49 = vsub.f32 %v2166_v13, %v127_v42  ;;  %v206_v50 = vadd.f32 %v174_v5, %v173_v47 }
  0xc2   :  { %v2283_v51 = vsub.f32 %v2168_v14, %v128_v6  ;;  %v2286_v52 = vsub.f32 %v2170_v15, %v128_v6  ;;  %v94_v53 = vpop.xlane.xlu0 %93  ;;  %v212_v56 = vadd.f32 %v178_v8, %v177_v48  ;;  %v1930_v48 = vld [vmem:[#allocation4 + $0x1e0] ss:$24 sps:$4 sm:$0xff]  }
  0xc3   :  { %v129_v54 = vmul.f32 0.00390625, %v94_v53  ;;  %210 = vadd.xlane.f32.xlu0 %v209_v46  ;;  %207 = vadd.xlane.f32.xlu1 %v206_v50  ;;  %v97_v55 = vpop.xlane.xlu1 %96  ;;  %v179_v12 = vmul.f32 %v2277_v9, %v2277_v9  ;;  %v180_v13 = vmul.f32 %v2280_v49, %v2280_v49  ;;  %v1931_v8 = vld [vmem:[#allocation4 + $0x1e8] ss:$24 sps:$4 sm:$0xff]  }
  0xc4   :  { %v130_v57 = vmul.f32 0.00390625, %v97_v55  ;;  %v181_v14 = vmul.f32 %v2283_v51, %v2283_v51  ;;  %v182_v15 = vmul.f32 %v2286_v52, %v2286_v52  ;;  %976 = vmatpush1.bf16.msra.mxu0 %v1930_v48  ;;  %1089 = vmatpush1.bf16.msra.mxu1 %v1931_v8  ;;  %v1943_v48 = vld [vmem:[#allocation4 + $0x248] ss:$24 sps:$4 sm:$0xff]  }
  0xc5   :  { %v2297_v58 = vsub.f32 %v2176_v18, %v129_v54  ;;  %v2300_v59 = vsub.f32 %v2178_v19, %v129_v54  ;;  %v215_v60 = vadd.f32 %v180_v13, %v179_v12 }
  0xc6   :  { %v2303_v61 = vsub.f32 %v2180_v20, %v130_v57  ;;  %v2306_v10 = vsub.f32 %v2182_v21, %v130_v57  ;;  %v100_v11 = vpop.xlane.xlu0 %99  ;;  %v218_v24 = vadd.f32 %v182_v15, %v181_v14  ;;  %v1932_v15 = vld [vmem:[#allocation4 + $0x214] ss:$24 sps:$4 sm:$0xff]  }
  0xc7   :  { %v131_v16 = vmul.f32 0.00390625, %v100_v11  ;;  %213 = vadd.xlane.f32.xlu1 %v212_v56  ;;  %216 = vadd.xlane.f32.xlu0 %v215_v60  ;;  %v103_v17 = vpop.xlane.xlu1 %102  ;;  %v183_v18 = vmul.f32 %v2297_v58, %v2297_v58  ;;  %v184_v19 = vmul.f32 %v2300_v59, %v2300_v59 }
  0xc8   :  { %v132_v0 = vmul.f32 0.00390625, %v103_v17  ;;  %v185_v20 = vmul.f32 %v2303_v61, %v2303_v61  ;;  %v186_v21 = vmul.f32 %v2306_v10, %v2306_v10  ;;  %977 = vmatprep.subr.bf16.mxu0 %v1932_v15 }
  0xc9   :  { %v2317_v1 = vsub.f32 %v2184_v22, %v131_v16  ;;  %v2320_v2 = vsub.f32 %v2186_v23, %v131_v16  ;;  %v221_v30 = vadd.f32 %v184_v19, %v183_v18  ;;  %v1936_v18 = vld [vmem:[#allocation4 + $0x210] ss:$24 sps:$4 sm:$0xff]  }
  0xca   :  { %v2323_v39 = vsub.f32 %v2190_v25, %v132_v0  ;;  %v2326_v42 = vsub.f32 %v2192_v26, %v132_v0  ;;  %v106_v45 = vpop.xlane.xlu0 %105  ;;  %v224_v5 = vadd.f32 %v186_v21, %v185_v20  ;;  %v1937_v19 = vld [vmem:[#allocation4 + $0x218] ss:$24 sps:$4 sm:$0xff]   ;;  %978 = vmatpush1.bf16.msra.mxu0 %v1936_v18  ;;  %v1958_v18 = vld [vmem:[#allocation4 + $0x2dc] ss:$24 sps:$4 sm:$0xff]  }
  0xcb   :  { %v133_v46 = vmul.f32 0.00390625, %v106_v45  ;;  %219 = vadd.xlane.f32.xlu1 %v218_v24  ;;  %222 = vadd.xlane.f32.xlu0 %v221_v30  ;;  %v109_v47 = vpop.xlane.xlu1 %108  ;;  %v187_v22 = vmul.f32 %v2317_v1, %v2317_v1  ;;  %v188_v23 = vmul.f32 %v2320_v2, %v2320_v2 }
  0xcc   :  { %v134_v6 = vmul.f32 0.00390625, %v109_v47  ;;  %v189_v25 = vmul.f32 %v2323_v39, %v2323_v39  ;;  %v190_v26 = vmul.f32 %v2326_v42, %v2326_v42 }
  0xcd   :  { %v2337_v50 = vsub.f32 %v2196_v28, %v133_v46  ;;  %v2340_v53 = vsub.f32 %v2198_v29, %v133_v46  ;;  %v227_v54 = vadd.f32 %v188_v23, %v187_v22  ;;  %v1940_v22 = vld [vmem:[#allocation4 + $0x24c] ss:$24 sps:$4 sm:$0xff]  }
  0xce   :  { %v2343_v55 = vsub.f32 %v2202_v31, %v134_v6  ;;  %v2346_v56 = vsub.f32 %v2204_v32, %v134_v6  ;;  %v112_v12 = vpop.xlane.xlu0 %111  ;;  %v230_v14 = vadd.f32 %v190_v26, %v189_v25  ;;  %v1934_v31 = vld [vmem:[#allocation4 + $0x21c] ss:$24 sps:$4 sm:$0xff]   ;;  %v1942_v26 = vld [vmem:[#allocation4 + $0x240] ss:$24 sps:$4 sm:$0xff]  }
  0xcf   :  { %v135_v13 = vmul.f32 0.00390625, %v112_v12  ;;  %225 = vadd.xlane.f32.xlu1 %v224_v5  ;;  %228 = vadd.xlane.f32.xlu0 %v227_v54  ;;  %v115_v57 = vpop.xlane.xlu1 %114  ;;  %v191_v28 = vmul.f32 %v2337_v50, %v2337_v50  ;;  %v192_v29 = vmul.f32 %v2340_v53, %v2340_v53  ;;  %v1938_v5 = vld [vmem:[#allocation4 + $0x244] ss:$24 sps:$4 sm:$0xff]  }
  0xd0   :  { %v136_v60 = vmul.f32 0.00390625, %v115_v57  ;;  %v193_v32 = vmul.f32 %v2343_v55, %v2343_v55  ;;  %v194_v11 = vmul.f32 %v2346_v56, %v2346_v56  ;;  %1090 = vmatprep.subr.bf16.mxu1 %v1934_v31  ;;  %979 = vmatprep.subr.bf16.mxu0 %v1938_v5  ;;  %v1946_v57 = vld [vmem:[#allocation4 + $0x27c] ss:$24 sps:$4 sm:$0xff]  }
  0xd1   :  { %v2357_v16 = vsub.f32 %v2208_v34, %v135_v13  ;;  %v2360_v17 = vsub.f32 %v2210_v35, %v135_v13  ;;  %v233_v24 = vadd.f32 %v192_v29, %v191_v28  ;;  %1091 = vmatpush1.bf16.msra.mxu1 %v1937_v19  ;;  %980 = vmatpush1.bf16.msra.mxu0 %v1942_v26  ;;  %v1948_v28 = vld [vmem:[#allocation4 + $0x270] ss:$24 sps:$4 sm:$0xff]   ;;  %v1950_v31 = vld [vmem:[#allocation4 + $0x2a4] ss:$24 sps:$4 sm:$0xff]  }
  0xd2   :  { %v2363_v0 = vsub.f32 %v2214_v37, %v136_v60  ;;  %v2366_v20 = vsub.f32 %v2216_v38, %v136_v60  ;;  %v118_v21 = vpop.xlane.xlu0 %117  ;;  %v236_v45 = vadd.f32 %v194_v11, %v193_v32  ;;  %1092 = vmatprep.subr.bf16.mxu1 %v1940_v22  ;;  %v1949_v29 = vld [vmem:[#allocation4 + $0x278] ss:$24 sps:$4 sm:$0xff]   ;;  %v1952_v60 = vld [vmem:[#allocation4 + $0x2ac] ss:$24 sps:$4 sm:$0xff]   ;;  %v1955_v11 = vld [vmem:[#allocation4 + $0x2a8] ss:$24 sps:$4 sm:$0xff]  }
  0xd3   :  { %v137_v30 = vmul.f32 0.00390625, %v118_v21  ;;  %231 = vadd.xlane.f32.xlu1 %v230_v14  ;;  %234 = vadd.xlane.f32.xlu0 %v233_v24  ;;  %v121_v34 = vpop.xlane.xlu1 %120  ;;  %v195_v35 = vmul.f32 %v2357_v16, %v2357_v16  ;;  %v196_v46 = vmul.f32 %v2360_v17, %v2360_v17  ;;  %v1954_v32 = vld [vmem:[#allocation4 + $0x2a0] ss:$24 sps:$4 sm:$0xff]   ;;  %v1956_v24 = vld [vmem:[#allocation4 + $0x2d4] ss:$24 sps:$4 sm:$0xff]  }
  0xd4   :  { %v138_v47 = vmul.f32 0.00390625, %v121_v34  ;;  %v197_v37 = vmul.f32 %v2363_v0, %v2363_v0  ;;  %v198_v38 = vmul.f32 %v2366_v20, %v2366_v20  ;;  %v1960_v19 = vld [vmem:[#allocation4 + $0x2d0] ss:$24 sps:$4 sm:$0xff]  }
  0xd5   :  { %v2377_v23 = vsub.f32 %v2220_v40, %v137_v30  ;;  %v2380_v6 = vsub.f32 %v2222_v41, %v137_v30  ;;  %v239_v25 = vadd.f32 %v196_v46, %v195_v35  ;;  %1093 = vmatpush1.bf16.msra.mxu1 %v1943_v48  ;;  %v1961_v21 = vld [vmem:[#allocation4 + $0x2d8] ss:$24 sps:$4 sm:$0xff]   ;;  %v1964_v30 = vld [vmem:[#allocation4 + $0x14] ss:$24 sps:$4 sm:$0xff]  }
  0xd6   :  { %v2383_v8 = vsub.f32 %v2226_v43, %v138_v47  ;;  %v2386_v54 = vsub.f32 %v2228_v44, %v138_v47  ;;  %v242_v12 = vadd.f32 %v198_v38, %v197_v37  ;;  %v1944_v44 = vld [vmem:[#allocation4 + $0x274] ss:$24 sps:$4 sm:$0xff]   ;;  %1094 = vmatprep.subr.bf16.mxu1 %v1946_v57 }
  0xd7   :  { %237 = vadd.xlane.f32.xlu1 %v236_v45  ;;  %240 = vadd.xlane.f32.xlu0 %v239_v25  ;;  %v199_v40 = vmul.f32 %v2377_v23, %v2377_v23  ;;  %v200_v41 = vmul.f32 %v2380_v6, %v2380_v6 }
  0xd8   :  { %v201_v13 = vmul.f32 %v2383_v8, %v2383_v8  ;;  %v202_v43 = vmul.f32 %v2386_v54, %v2386_v54  ;;  %981 = vmatprep.subr.bf16.mxu0 %v1944_v44 }
  0xd9   :  { %v245_v14 = vadd.f32 %v200_v41, %v199_v40  ;;  %982 = vmatpush1.bf16.msra.mxu0 %v1948_v28  ;;  %1095 = vmatpush1.bf16.msra.mxu1 %v1949_v29 }
  0xda   :  { %v248_v15 = vadd.f32 %v202_v43, %v201_v13  ;;  %983 = vmatprep.subr.bf16.mxu0 %v1950_v31  ;;  %1096 = vmatprep.subr.bf16.mxu1 %v1952_v60 }
  0xdb   :  { %243 = vadd.xlane.f32.xlu1 %v242_v12  ;;  %246 = vadd.xlane.f32.xlu0 %v245_v14 }
  0xdd   :  { %984 = vmatpush1.bf16.msra.mxu0 %v1954_v32  ;;  %1097 = vmatpush1.bf16.msra.mxu1 %v1955_v11 }
  0xde   :  { %985 = vmatprep.subr.bf16.mxu0 %v1956_v24  ;;  %1098 = vmatprep.subr.bf16.mxu1 %v1958_v18 }
  0xdf   :  { %249 = vadd.xlane.f32.xlu1 %v248_v15 }
  0xe1   :  { %986 = vmatpush1.bf16.msra.mxu0 %v1960_v19  ;;  %1099 = vmatpush1.bf16.msra.mxu1 %v1961_v21 }
  0xe2   :  { %1181 = vmatprep.subr.bf16.mxu0 %v1964_v30  ;;  %1828 = vmatprep.subr.bf16.mxu1 %v1964_v30 }
 0x14c   :  { %v205_v34 = vpop.xlane.xlu0 %204 }
 0x14d   :  { %v251_v45 = vmul.f32 0.00390625, %v205_v34  ;;  %v1962_v34 = vld [vmem:[#allocation4 + $0x10] ss:$24 sps:$4 sm:$0xff]  }
 0x14f   :  { %v267_v35 = vadd.f32 1e-05, %v251_v45 }
 0x150   :  { %v208_v46 = vpop.xlane.xlu1 %207  ;;  %v211_v47 = vpop.xlane.xlu0 %210 }
 0x151   :  { %v252_v37 = vmul.f32 0.00390625, %v208_v46  ;;  %v253_v38 = vmul.f32 0.00390625, %v211_v47  ;;  %2010 = vrsqrt.f32 %v267_v35 }
 0x153   :  { %v268_v5 = vadd.f32 1e-05, %v252_v37  ;;  %v269_v22 = vadd.f32 1e-05, %v253_v38  ;;  %v1967_v37 = vld [vmem:[#allocation4 + $0x44] ss:$24 sps:$4 sm:$0xff]  }
 0x154   :  { %v214_v25 = vpop.xlane.xlu1 %213  ;;  %v217_v26 = vpop.xlane.xlu0 %216 }
 0x155   :  { %2012 = vrsqrt.f32 %v268_v5  ;;  %v254_v48 = vmul.f32 0.00390625, %v214_v25  ;;  %v255_v12 = vmul.f32 0.00390625, %v217_v26  ;;  %v1965_v5 = vld [vmem:[#allocation4 + $0x40] ss:$24 sps:$4 sm:$0xff]   ;;  %v1970_v25 = vld [vmem:[#allocation4 + $0x74] ss:$24 sps:$4 sm:$0xff]  }
 0x156   :  { %2014 = vrsqrt.f32 %v269_v22 }
 0x157   :  { %v270_v40 = vadd.f32 1e-05, %v254_v48  ;;  %v271_v43 = vadd.f32 1e-05, %v255_v12 }
 0x158   :  { %v220_v41 = vpop.xlane.xlu1 %219  ;;  %v223_v57 = vpop.xlane.xlu0 %222 }
 0x159   :  { %2016 = vrsqrt.f32 %v270_v40  ;;  %v256_v13 = vmul.f32 0.00390625, %v220_v41  ;;  %v257_v15 = vmul.f32 0.00390625, %v223_v57 }
 0x15b   :  { %v272_v44 = vadd.f32 1e-05, %v256_v13  ;;  %v2011_v14 = vpop.eup %2010  ;;  %v273_v30 = vadd.f32 1e-05, %v257_v15  ;;  %v1968_v13 = vld [vmem:[#allocation4 + $0x70] ss:$24 sps:$4 sm:$0xff]  }
 0x15c   :  { %v226_v28 = vpop.xlane.xlu1 %225  ;;  %v300_v60 = vmul.f32 %v2011_v14, %v2240_v63  ;;  %v299_v24 = vmul.f32 %v2011_v14, %v2237_v62  ;;  %v229_v47 = vpop.xlane.xlu0 %228  ;;  %v1973_v14 = vld [vmem:[#allocation4 + $0xa4] ss:$24 sps:$4 sm:$0xff]  }
 0x15d   :  { %2018 = vrsqrt.f32 %v272_v44  ;;  %v258_v29 = vmul.f32 0.00390625, %v226_v28 }
 0x15e   :  { %2020 = vrsqrt.f32 %v271_v43 }
 0x15f   :  { %v2013_v31 = vpop.eup %2012  ;;  %v274_v32 = vadd.f32 1e-05, %v258_v29  ;;  %v1971_v29 = vld [vmem:[#allocation4 + $0xa0] ss:$24 sps:$4 sm:$0xff]  }
 0x160   :  { %v302_v11 = vmul.f32 %v2013_v31, %v2260_v4  ;;  %v301_v18 = vmul.f32 %v2013_v31, %v2257_v27  ;;  %v2015_v19 = vpop.eup %2014  ;;  %v232_v21 = vpop.xlane.xlu1 %231  ;;  %v259_v4 = vmul.f32 0.00390625, %v229_v47 }
 0x161   :  { %2022 = vrsqrt.f32 %v274_v32  ;;  %v260_v63 = vmul.f32 0.00390625, %v232_v21  ;;  %v304_v62 = vmul.f32 %v2015_v19, %v2246_v7  ;;  %v303_v12 = vmul.f32 %v2015_v19, %v2243_v3  ;;  %v235_v43 = vpop.xlane.xlu0 %234  ;;  %v1974_v19 = vld [vmem:[#allocation4 + $0xd0] ss:$24 sps:$4 sm:$0xff]  }
 0x162   :  { %v2400_v45 = vpack.c.bf16 %v302_v11, %v300_v60  ;;  %v2402_v35 = vpack.c.bf16 %v301_v18, %v299_v24  ;;  %2024 = vrsqrt.f32 %v273_v30  ;;  %v275_v41 = vadd.f32 1e-05, %v259_v4 }
 0x163   :  { %v2017_v46 = vpop.eup %2016  ;;  %v276_v48 = vadd.f32 1e-05, %v260_v63  ;;  %v261_v28 = vmul.f32 0.00390625, %v235_v43 }
 0x164   :  { %987 = vmatprep.mubr.bf16.mxu0 %v2400_v45  ;;  %1100 = vmatprep.mubr.bf16.mxu1 %v2400_v45  ;;  %v306_v27 = vmul.f32 %v2017_v46, %v2266_v36  ;;  %v305_v26 = vmul.f32 %v2017_v46, %v2263_v33  ;;  %v238_v36 = vpop.xlane.xlu1 %237  ;;  %v1979_v46 = vld [vmem:[#allocation4 + $0x104] ss:$24 sps:$4 sm:$0xff]  }
 0x165   :  { %988 = vmatmul.mubr.bf16.vlgmr.msra.gmra.mrb[0].mxu0 %v2402_v35  ;;  %1101 = vmatmul.mubr.bf16.vlgmr.msra.gmra.mrb[0].mxu1 %v2402_v35  ;;  %2026 = vrsqrt.f32 %v276_v48  ;;  %v262_v57 = vmul.f32 0.00390625, %v238_v36  ;;  %v277_v18 = vadd.f32 1e-05, %v261_v28  ;;  %v241_v21 = vpop.xlane.xlu0 %240  ;;  %v1986_v28 = vld [vmem:[#allocation4 + $0x190] ss:$24 sps:$4 sm:$0xff]  }
 0x166   :  { %1182 = vmatpush1.bf16.msra.mxu0 %v1962_v34  ;;  %1844 = vmatpush1.bf16.msra.mxu1 %v1962_v34  ;;  %v2410_v38 = vpack.c.bf16 %v306_v27, %v304_v62  ;;  %v2417_v44 = vpack.c.bf16 %v305_v26, %v303_v12  ;;  %2028 = vrsqrt.f32 %v275_v41  ;;  %v263_v47 = vmul.f32 0.00390625, %v241_v21  ;;  %v1980_v26 = vld [vmem:[#allocation4 + $0x130] ss:$24 sps:$4 sm:$0xff]   ;;  %v1985_v12 = vld [vmem:[#allocation4 + $0x164] ss:$24 sps:$4 sm:$0xff]  }
 0x167   :  { %v2019_v22 = vpop.eup %2018  ;;  %1183 = vmatprep.subr.bf16.mxu0 %v1967_v37  ;;  %1829 = vmatprep.subr.bf16.mxu1 %v1967_v37  ;;  %v278_v60 = vadd.f32 1e-05, %v262_v57  ;;  %v1977_v37 = vld [vmem:[#allocation4 + $0x100] ss:$24 sps:$4 sm:$0xff]   ;;  %v1997_v21 = vld [vmem:[#allocation4 + $0x224] ss:$24 sps:$4 sm:$0xff]  }
 0x168   :  { %v2021_v7 = vpop.eup %2020  ;;  %997 = vmatprep.mubr.bf16.mxu0 %v2410_v38  ;;  %1110 = vmatprep.mubr.bf16.mxu1 %v2410_v38  ;;  %v310_v40 = vmul.f32 %v2019_v22, %v2286_v52  ;;  %v309_v15 = vmul.f32 %v2019_v22, %v2283_v51  ;;  %v244_v32 = vpop.xlane.xlu1 %243  ;;  %v1983_v41 = vld [vmem:[#allocation4 + $0x160] ss:$24 sps:$4 sm:$0xff]  }
 0x169   :  { %v308_v33 = vmul.f32 %v2021_v7, %v2280_v49  ;;  %v1976_v49 = vld [vmem:[#allocation4 + $0xd4] ss:$24 sps:$4 sm:$0xff]   ;;  %v307_v11 = vmul.f32 %v2021_v7, %v2277_v9  ;;  %2030 = vrsqrt.f32 %v278_v60  ;;  %v264_v34 = vmul.f32 0.00390625, %v244_v32  ;;  %v247_v7 = vpop.xlane.xlu0 %246 }
 0x16a   :  { %1184 = vmatpush1.bf16.msra.mxu0 %v1965_v5  ;;  %1845 = vmatpush1.bf16.msra.mxu1 %v1965_v5  ;;  %2032 = vrsqrt.f32 %v277_v18 }
 0x16b   :  { %1185 = vmatprep.subr.bf16.mxu0 %v1970_v25  ;;  %1830 = vmatprep.subr.bf16.mxu1 %v1970_v25  ;;  %v2422_v3 = vpack.c.bf16 %v310_v40, %v308_v33  ;;  %v2023_v52 = vpop.eup %2022  ;;  %v2429_v30 = vpack.c.bf16 %v309_v15, %v307_v11  ;;  %v280_v27 = vadd.f32 1e-05, %v264_v34  ;;  %v279_v25 = vadd.f32 1e-05, %v263_v47  ;;  %v1995_v34 = vld [vmem:[#allocation4 + $0x220] ss:$24 sps:$4 sm:$0xff]  }
 0x16c   :  { %v2025_v31 = vpop.eup %2024  ;;  %v314_v24 = vmul.f32 %v2023_v52, %v2306_v10  ;;  %v313_v63 = vmul.f32 %v2023_v52, %v2303_v61  ;;  %v250_v4 = vpop.xlane.xlu1 %249  ;;  %v265_v40 = vmul.f32 0.00390625, %v247_v7  ;;  %v1998_v47 = vld [vmem:[#allocation4 + $0x250] ss:$24 sps:$4 sm:$0xff]  }
 0x16d   :  { %998 = vmatmul.mubr.bf16.gmra.mrb[4].mxu0 %v2417_v44  ;;  %1111 = vmatmul.mubr.bf16.gmra.mrb[4].mxu1 %v2417_v44  ;;  %v312_v51 = vmul.f32 %v2025_v31, %v2300_v59  ;;  %v1982_v59 = vld [vmem:[#allocation4 + $0x134] ss:$24 sps:$4 sm:$0xff]   ;;  %v311_v5 = vmul.f32 %v2025_v31, %v2297_v58  ;;  %2034 = vrsqrt.f32 %v280_v27  ;;  %v266_v36 = vmul.f32 0.00390625, %v250_v4  ;;  %v2004_v4 = vld [vmem:[#allocation4 + $0x2b0] ss:$24 sps:$4 sm:$0xff]  }
 0x16e   :  { %1186 = vmatpush1.bf16.msra.mxu0 %v1968_v13  ;;  %1846 = vmatpush1.bf16.msra.mxu1 %v1968_v13  ;;  %2036 = vrsqrt.f32 %v279_v25  ;;  %v281_v52 = vadd.f32 1e-05, %v265_v40  ;;  %v1994_v31 = vld [vmem:[#allocation4 + $0x1f4] ss:$24 sps:$4 sm:$0xff]  }
 0x16f   :  { %1007 = vmatprep.mubr.bf16.mxu0 %v2422_v3  ;;  %1120 = vmatprep.mubr.bf16.mxu1 %v2422_v3  ;;  %v2434_v9 = vpack.c.bf16 %v314_v24, %v312_v51  ;;  %v2027_v10 = vpop.eup %2026  ;;  %v2441_v48 = vpack.c.bf16 %v313_v63, %v311_v5  ;;  %v282_v33 = vadd.f32 1e-05, %v266_v36  ;;  %v1992_v24 = vld [vmem:[#allocation4 + $0x1f0] ss:$24 sps:$4 sm:$0xff]   ;;  %v2003_v63 = vld [vmem:[#allocation4 + $0x284] ss:$24 sps:$4 sm:$0xff]  }
 0x170   :  { %1187 = vmatprep.subr.bf16.mxu0 %v1973_v14  ;;  %1831 = vmatprep.subr.bf16.mxu1 %v1973_v14  ;;  %v2029_v62 = vpop.eup %2028  ;;  %v318_v22 = vmul.f32 %v2027_v10, %v2326_v42  ;;  %v317_v13 = vmul.f32 %v2027_v10, %v2323_v39  ;;  %v1991_v39 = vld [vmem:[#allocation4 + $0x1c4] ss:$24 sps:$4 sm:$0xff]  }
 0x171   :  { %v316_v61 = vmul.f32 %v2029_v62, %v2320_v2  ;;  %v1988_v2 = vld [vmem:[#allocation4 + $0x194] ss:$24 sps:$4 sm:$0xff]   ;;  %v315_v57 = vmul.f32 %v2029_v62, %v2317_v1  ;;  %2038 = vrsqrt.f32 %v282_v33  ;;  %v2009_v5 = vld [vmem:[#allocation4 + $0x2e4] ss:$24 sps:$4 sm:$0xff]  }
 0x172   :  { %1188 = vmatpush1.bf16.msra.mxu0 %v1971_v29  ;;  %1847 = vmatpush1.bf16.msra.mxu1 %v1971_v29  ;;  %2040 = vrsqrt.f32 %v281_v52 }
 0x173   :  { %1189 = vmatprep.subr.bf16.mxu0 %v1976_v49  ;;  %1832 = vmatprep.subr.bf16.mxu1 %v1976_v49  ;;  %v2446_v58 = vpack.c.bf16 %v318_v22, %v316_v61  ;;  %v2031_v42 = vpop.eup %2030  ;;  %v2453_v29 = vpack.c.bf16 %v317_v13, %v315_v57  ;;  %v2007_v22 = vld [vmem:[#allocation4 + $0x2e0] ss:$24 sps:$4 sm:$0xff]  }
 0x174   :  { %v2033_v43 = vpop.eup %2032  ;;  %v322_v14 = vmul.f32 %v2031_v42, %v2346_v56  ;;  %v1989_v56 = vld [vmem:[#allocation4 + $0x1c0] ss:$24 sps:$4 sm:$0xff]  }
 0x175   :  { %1008 = vmatmul.mubr.bf16.gmra.mrb[8].mxu0 %v2429_v30  ;;  %1121 = vmatmul.mubr.bf16.gmra.mrb[8].mxu1 %v2429_v30  ;;  %v320_v49 = vmul.f32 %v2033_v43, %v2340_v53  ;;  %v321_v53 = vmul.f32 %v2031_v42, %v2343_v55  ;;  %v319_v32 = vmul.f32 %v2033_v43, %v2337_v50  ;;  %v2000_v50 = vld [vmem:[#allocation4 + $0x254] ss:$24 sps:$4 sm:$0xff]  }
 0x176   :  { %1190 = vmatpush1.bf16.msra.mxu0 %v1974_v19  ;;  %1848 = vmatpush1.bf16.msra.mxu1 %v1974_v19 }
 0x177   :  { %1017 = vmatprep.mubr.bf16.mxu0 %v2434_v9  ;;  %1130 = vmatprep.mubr.bf16.mxu1 %v2434_v9  ;;  %v2458_v15 = vpack.c.bf16 %v322_v14, %v320_v49  ;;  %v2035_v1 = vpop.eup %2034  ;;  %v341_v18 = vpack.c.bf16 %v321_v53, %v319_v32 }
 0x178   :  { %1191 = vmatprep.subr.bf16.mxu0 %v1979_v46  ;;  %1833 = vmatprep.subr.bf16.mxu1 %v1979_v46  ;;  %v2037_v60 = vpop.eup %2036  ;;  %v326_v11 = vmul.f32 %v2035_v1, %v2366_v20  ;;  %v325_v20 = vmul.f32 %v2035_v1, %v2363_v0  ;;  %v2001_v0 = vld [vmem:[#allocation4 + $0x280] ss:$24 sps:$4 sm:$0xff]  }
 0x179   :  { %v324_v19 = vmul.f32 %v2037_v60, %v2360_v17  ;;  %v323_v10 = vmul.f32 %v2037_v60, %v2357_v16  ;;  %v2006_v16 = vld [vmem:[#allocation4 + $0x2b4] ss:$24 sps:$4 sm:$0xff]  }
 0x17a   :  { %1192 = vmatpush1.bf16.msra.mxu0 %v1977_v37  ;;  %1849 = vmatpush1.bf16.msra.mxu1 %v1977_v37 }
 0x17b   :  { %1193 = vmatprep.subr.bf16.mxu0 %v1982_v59  ;;  %1834 = vmatprep.subr.bf16.mxu1 %v1982_v59  ;;  %v344_v51 = vpack.c.bf16 %v326_v11, %v324_v19  ;;  %v2039_v55 = vpop.eup %2038  ;;  %v343_v37 = vpack.c.bf16 %v325_v20, %v323_v10 }
 0x17c   :  { %v2041_v46 = vpop.eup %2040  ;;  %v330_v17 = vmul.f32 %v2039_v55, %v2386_v54  ;;  %v329_v54 = vmul.f32 %v2039_v55, %v2383_v8 }
 0x17d   :  { %1018 = vmatmul.mubr.bf16.gmra.mrb[12].mxu0 %v2441_v48  ;;  %1131 = vmatmul.mubr.bf16.gmra.mrb[12].mxu1 %v2441_v48  ;;  %v328_v59 = vmul.f32 %v2041_v46, %v2380_v6  ;;  %v327_v27 = vmul.f32 %v2041_v46, %v2377_v23  ;;  %v445_v23 = vlaneseq }
 0x17e   :  { %1194 = vmatpush1.bf16.msra.mxu0 %v1980_v26  ;;  %1850 = vmatpush1.bf16.msra.mxu1 %v1980_v26 }
 0x17f   :  { %1027 = vmatprep.mubr.bf16.mxu0 %v2446_v58  ;;  %1140 = vmatprep.mubr.bf16.mxu1 %v2446_v58  ;;  %v346_v62 = vpack.c.bf16 %v330_v17, %v328_v59  ;;  %v345_v6 = vpack.c.bf16 %v329_v54, %v327_v27  ;;  %v446_v8 = vshrl.u32 %v445_v23, 7 }
 0x180   :  { %1195 = vmatprep.subr.bf16.mxu0 %v1985_v12  ;;  %1835 = vmatprep.subr.bf16.mxu1 %v1985_v12 }
 0x181   :  { %v455_v25 = vsub.s32 2, %v446_v8  ;;  %v451_v26 = vsub.s32 1, %v446_v8 }
 0x182   :  { %1196 = vmatpush1.bf16.msra.mxu0 %v1983_v41  ;;  %1851 = vmatpush1.bf16.msra.mxu1 %v1983_v41 }
 0x183   :  { %1197 = vmatprep.subr.bf16.mxu0 %v1988_v2  ;;  %1836 = vmatprep.subr.bf16.mxu1 %v1988_v2 }
 0x185   :  { %1028 = vmatmul.mubr.bf16.gmra.mrb[16].mxu0 %v2453_v29  ;;  %1141 = vmatmul.mubr.bf16.gmra.mrb[16].mxu1 %v2453_v29 }
 0x186   :  { %1198 = vmatpush1.bf16.msra.mxu0 %v1986_v28  ;;  %1852 = vmatpush1.bf16.msra.mxu1 %v1986_v28 }
 0x187   :  { %1037 = vmatprep.mubr.bf16.mxu0 %v2458_v15  ;;  %1150 = vmatprep.mubr.bf16.mxu1 %v2458_v15 }
 0x188   :  { %1199 = vmatprep.subr.bf16.mxu0 %v1991_v39  ;;  %1837 = vmatprep.subr.bf16.mxu1 %v1991_v39 }
 0x18a   :  { %1200 = vmatpush1.bf16.msra.mxu0 %v1989_v56  ;;  %1853 = vmatpush1.bf16.msra.mxu1 %v1989_v56 }
 0x18b   :  { %1201 = vmatprep.subr.bf16.mxu0 %v1994_v31  ;;  %1838 = vmatprep.subr.bf16.mxu1 %v1994_v31 }
 0x18d   :  { %1038 = vmatmul.mubr.bf16.gmra.mrb[20].mxu0 %v341_v18  ;;  %1151 = vmatmul.mubr.bf16.gmra.mrb[20].mxu1 %v341_v18 }
 0x18e   :  { %1202 = vmatpush1.bf16.msra.mxu0 %v1992_v24  ;;  %1854 = vmatpush1.bf16.msra.mxu1 %v1992_v24 }
 0x18f   :  { %1047 = vmatprep.mubr.bf16.mxu0 %v344_v51  ;;  %1160 = vmatprep.mubr.bf16.mxu1 %v344_v51 }
 0x190   :  { %1203 = vmatprep.subr.bf16.mxu0 %v1997_v21  ;;  %1839 = vmatprep.subr.bf16.mxu1 %v1997_v21 }
 0x192   :  { %1204 = vmatpush1.bf16.msra.mxu0 %v1995_v34  ;;  %1855 = vmatpush1.bf16.msra.mxu1 %v1995_v34 }
 0x193   :  { %1205 = vmatprep.subr.bf16.mxu0 %v2000_v50  ;;  %1840 = vmatprep.subr.bf16.mxu1 %v2000_v50 }
 0x195   :  { %1048 = vmatmul.mubr.bf16.gmra.mrb[24].mxu0 %v343_v37  ;;  %1161 = vmatmul.mubr.bf16.gmra.mrb[24].mxu1 %v343_v37 }
 0x196   :  { %1206 = vmatpush1.bf16.msra.mxu0 %v1998_v47  ;;  %1856 = vmatpush1.bf16.msra.mxu1 %v1998_v47 }
 0x197   :  { %1057 = vmatprep.mubr.bf16.mxu0 %v346_v62  ;;  %1170 = vmatprep.mubr.bf16.mxu1 %v346_v62 }
 0x198   :  { %1207 = vmatprep.subr.bf16.mxu0 %v2003_v63  ;;  %1841 = vmatprep.subr.bf16.mxu1 %v2003_v63 }
 0x19a   :  { %1208 = vmatpush1.bf16.msra.mxu0 %v2001_v0  ;;  %1857 = vmatpush1.bf16.msra.mxu1 %v2001_v0 }
 0x19b   :  { %1209 = vmatprep.subr.bf16.mxu0 %v2006_v16  ;;  %1842 = vmatprep.subr.bf16.mxu1 %v2006_v16 }
 0x19d   :  { %1058 = vmatmul.mubr.bf16.gmra.mrb[28].mxu0 %v345_v6  ;;  %1171 = vmatmul.mubr.bf16.gmra.mrb[28].mxu1 %v345_v6 }
 0x19e   :  { %1210 = vmatpush1.bf16.msra.mxu0 %v2004_v4  ;;  %1858 = vmatpush1.bf16.msra.mxu1 %v2004_v4 }
 0x19f   :  { %1213 = vmatprep.mubr.bf16.mxu0 %v2400_v45  ;;  %1253 = vmatprep.mubr.bf16.mxu1 %v2446_v58  ;;  %v463_v45 = vsub.s32 4, %v446_v8 }
 0x1a0   :  { %1211 = vmatprep.subr.bf16.mxu0 %v2009_v5  ;;  %1843 = vmatprep.subr.bf16.mxu1 %v2009_v5 }
 0x1a2   :  { %1212 = vmatpush1.bf16.msra.mxu0 %v2007_v22  ;;  %1859 = vmatpush1.bf16.msra.mxu1 %v2007_v22 }
 0x1a5   :  { %1214 = vmatmul.mubr.bf16.vlgmr.msra.gmra.mrb[32].mxu0 %v2402_v35  ;;  %1254 = vmatmul.mubr.bf16.vlgmr.msra.gmra.mrb[32].mxu1 %v2453_v29  ;;  %v443_v35 = vld [vmem:[%s2740_s2] sm:$0x3f] }
 0x1a6   :  { %1223 = vmatprep.mubr.bf16.mxu0 %v2410_v38  ;;  %1263 = vmatprep.mubr.bf16.mxu1 %v2458_v15  ;;  %v467_v38 = vsub.s32 5, %v446_v8  ;;  %v2494_v61 = vrot.slane %v443_v35, %v451_v26 }
 0x1ad   :  { %1224 = vmatmul.mubr.bf16.gmra.mrb[36].mxu0 %v2417_v44  ;;  %1264 = vmatmul.mubr.bf16.gmra.mrb[36].mxu1 %v341_v18  ;;  %v2486_v44 = vrot.slane %v443_v35, %v463_v45 }
 0x1ae   :  { %1233 = vmatprep.mubr.bf16.mxu0 %v2422_v3  ;;  %1273 = vmatprep.mubr.bf16.mxu1 %v344_v51  ;;  %v2488_v3 = vrot.slane %v443_v35, %v467_v38 }
 0x1b5   :  { %1234 = vmatmul.mubr.bf16.gmra.mrb[40].mxu0 %v2429_v30  ;;  %1274 = vmatmul.mubr.bf16.gmra.mrb[40].mxu1 %v343_v37  ;;  %v447_v30 = vsub.s32 0, %v446_v8 }
 0x1b6   :  { %1243 = vmatprep.mubr.bf16.mxu0 %v2434_v9  ;;  %1283 = vmatprep.mubr.bf16.mxu1 %v346_v62  ;;  %v459_v9 = vsub.s32 3, %v446_v8 }
 0x1b7   :  { %v2490_v7 = vrot.slane %v443_v35, %v447_v30 }
 0x1b8   :  { %v2496_v36 = vrot.slane %v443_v35, %v459_v9 }
 0x1bd   :  { %1244 = vmatmul.mubr.bf16.gmra.mrb[44].mxu0 %v2441_v48  ;;  %1284 = vmatmul.mubr.bf16.gmra.mrb[44].mxu1 %v345_v6  ;;  %v2492_v48 = vrot.slane %v443_v35, %v455_v25 }
 0x238   :  { %v989_v12 = vpop.f32.mrb[0].mxu0  ;;  %v1102_v58 = vpop.f32.mrb[0].mxu1 }
 0x239   :  { %v990_v42 = vadd.f32 %v989_v12, %v2490_v7  ;;  %v1103_v40 = vadd.f32 %v1102_v58, %v2492_v48  ;;  %v991_v41 = vpop.f32.mrb[1].mxu0  ;;  %v1104_v2 = vpop.f32.mrb[1].mxu1 }
 0x23a   :  { %v992_v13 = vadd.f32 %v991_v41, %v2494_v61  ;;  %v1105_v43 = vadd.f32 %v1104_v2, %v2496_v36  ;;  %v993_v33 = vpop.f32.mrb[2].mxu0  ;;  %v1106_v57 = vpop.f32.mrb[2].mxu1 }
 0x23b   :  { %v994_v14 = vadd.f32 %v993_v33, %v2490_v7  ;;  %v1107_v52 = vadd.f32 %v1106_v57, %v2492_v48  ;;  %v995_v28 = vpop.f32.mrb[3].mxu0  ;;  %v1108_v29 = vpop.f32.mrb[3].mxu1 }
 0x23c   :  { %v1780_v49 = vpack.c.bf16 %v992_v13, %v990_v42  ;;  %v1781_v39 = vpack.c.bf16 %v1105_v43, %v1103_v40  ;;  %v996_v15 = vadd.f32 %v995_v28, %v2494_v61  ;;  %v1109_v1 = vadd.f32 %v1108_v29, %v2496_v36 }
 0x23e   :  { %1582 = vst [vmem:[%s2741_s3] sm:$0xff] %v1780_v49  ;;  %1583 = vst [vmem:[%s2741_s3 + $0x8] sm:$0xff] %v1781_v39  ;;  %v1783_v56 = vpack.c.bf16 %v996_v15, %v994_v14  ;;  %v1784_v31 = vpack.c.bf16 %v1109_v1, %v1107_v52 }
 0x240   :  { %1585 = vst [vmem:[%s2741_s3 + $0x18] sm:$0xff] %v1783_v56  ;;  %1586 = vst [vmem:[%s2741_s3 + $0x20] sm:$0xff] %v1784_v31  ;;  %v999_v53 = vpop.f32.mrb[4].mxu0  ;;  %v1112_v60 = vpop.f32.mrb[4].mxu1 }
 0x241   :  { %v1000_v32 = vadd.f32 %v999_v53, %v2490_v7  ;;  %v1113_v11 = vadd.f32 %v1112_v60, %v2492_v48  ;;  %v1001_v24 = vpop.f32.mrb[5].mxu0  ;;  %v1114_v18 = vpop.f32.mrb[5].mxu1 }
 0x242   :  { %v1002_v19 = vadd.f32 %v1001_v24, %v2494_v61  ;;  %v1115_v21 = vadd.f32 %v1114_v18, %v2496_v36  ;;  %v1003_v51 = vpop.f32.mrb[6].mxu0  ;;  %v1116_v55 = vpop.f32.mrb[6].mxu1 }
 0x243   :  { %v1004_v34 = vadd.f32 %v1003_v51, %v2490_v7  ;;  %v1117_v50 = vadd.f32 %v1116_v55, %v2492_v48  ;;  %v1005_v20 = vpop.f32.mrb[7].mxu0  ;;  %v1118_v46 = vpop.f32.mrb[7].mxu1 }
 0x244   :  { %v1786_v10 = vpack.c.bf16 %v1002_v19, %v1000_v32  ;;  %v1787_v17 = vpack.c.bf16 %v1115_v21, %v1113_v11  ;;  %v1006_v47 = vadd.f32 %v1005_v20, %v2494_v61  ;;  %v1119_v37 = vadd.f32 %v1118_v46, %v2496_v36 }
 0x246   :  { %1588 = vst [vmem:[%s2741_s3 + $0x30] sm:$0xff] %v1786_v10  ;;  %1589 = vst [vmem:[%s2741_s3 + $0x38] sm:$0xff] %v1787_v17  ;;  %v1789_v59 = vpack.c.bf16 %v1006_v47, %v1004_v34  ;;  %v1790_v63 = vpack.c.bf16 %v1119_v37, %v1117_v50 }
 0x248   :  { %1591 = vst [vmem:[%s2741_s3 + $0x48] sm:$0xff] %v1789_v59  ;;  %1592 = vst [vmem:[%s2741_s3 + $0x50] sm:$0xff] %v1790_v63  ;;  %v1009_v62 = vpop.f32.mrb[8].mxu0  ;;  %v1122_v0 = vpop.f32.mrb[8].mxu1 }
 0x249   :  { %v1010_v16 = vadd.f32 %v1009_v62, %v2490_v7  ;;  %v1123_v54 = vadd.f32 %v1122_v0, %v2492_v48  ;;  %v1011_v27 = vpop.f32.mrb[9].mxu0  ;;  %v1124_v4 = vpop.f32.mrb[9].mxu1 }
 0x24a   :  { %v1012_v6 = vadd.f32 %v1011_v27, %v2494_v61  ;;  %v1125_v5 = vadd.f32 %v1124_v4, %v2496_v36  ;;  %v1013_v22 = vpop.f32.mrb[10].mxu0  ;;  %v1126_v23 = vpop.f32.mrb[10].mxu1 }
 0x24b   :  { %v1014_v8 = vadd.f32 %v1013_v22, %v2490_v7  ;;  %v1127_v45 = vadd.f32 %v1126_v23, %v2492_v48  ;;  %v1015_v35 = vpop.f32.mrb[11].mxu0  ;;  %v1128_v38 = vpop.f32.mrb[11].mxu1 }
 0x24c   :  { %v1792_v30 = vpack.c.bf16 %v1012_v6, %v1010_v16  ;;  %v1793_v25 = vpack.c.bf16 %v1125_v5, %v1123_v54  ;;  %v1016_v26 = vadd.f32 %v1015_v35, %v2494_v61  ;;  %v1129_v9 = vadd.f32 %v1128_v38, %v2496_v36 }
 0x24e   :  { %1594 = vst [vmem:[%s2741_s3 + $0x60] sm:$0xff] %v1792_v30  ;;  %1595 = vst [vmem:[%s2741_s3 + $0x68] sm:$0xff] %v1793_v25  ;;  %v1795_v12 = vpack.c.bf16 %v1016_v26, %v1014_v8  ;;  %v1796_v58 = vpack.c.bf16 %v1129_v9, %v1127_v45 }
 0x250   :  { %1597 = vst [vmem:[%s2741_s3 + $0x78] sm:$0xff] %v1795_v12  ;;  %1598 = vst [vmem:[%s2741_s3 + $0x80] sm:$0xff] %v1796_v58  ;;  %v1019_v42 = vpop.f32.mrb[12].mxu0  ;;  %v1132_v40 = vpop.f32.mrb[12].mxu1 }
 0x251   :  { %v1020_v41 = vadd.f32 %v1019_v42, %v2490_v7  ;;  %v1133_v2 = vadd.f32 %v1132_v40, %v2492_v48  ;;  %v1021_v13 = vpop.f32.mrb[13].mxu0  ;;  %v1134_v43 = vpop.f32.mrb[13].mxu1 }
 0x252   :  { %v1022_v33 = vadd.f32 %v1021_v13, %v2494_v61  ;;  %v1135_v57 = vadd.f32 %v1134_v43, %v2496_v36  ;;  %v1023_v14 = vpop.f32.mrb[14].mxu0  ;;  %v1136_v52 = vpop.f32.mrb[14].mxu1 }
 0x253   :  { %v1024_v28 = vadd.f32 %v1023_v14, %v2490_v7  ;;  %v1137_v29 = vadd.f32 %v1136_v52, %v2492_v48  ;;  %v1025_v49 = vpop.f32.mrb[15].mxu0  ;;  %v1138_v39 = vpop.f32.mrb[15].mxu1 }
 0x254   :  { %v1798_v15 = vpack.c.bf16 %v1022_v33, %v1020_v41  ;;  %v1799_v1 = vpack.c.bf16 %v1135_v57, %v1133_v2  ;;  %v1026_v56 = vadd.f32 %v1025_v49, %v2494_v61  ;;  %v1139_v31 = vadd.f32 %v1138_v39, %v2496_v36 }
 0x256   :  { %1600 = vst [vmem:[%s2741_s3 + $0x90] sm:$0xff] %v1798_v15  ;;  %1601 = vst [vmem:[%s2741_s3 + $0x98] sm:$0xff] %v1799_v1  ;;  %v1801_v53 = vpack.c.bf16 %v1026_v56, %v1024_v28  ;;  %v1802_v60 = vpack.c.bf16 %v1139_v31, %v1137_v29 }
 0x258   :  { %1603 = vst [vmem:[%s2741_s3 + $0xa8] sm:$0xff] %v1801_v53  ;;  %1604 = vst [vmem:[%s2741_s3 + $0xb0] sm:$0xff] %v1802_v60  ;;  %v1029_v32 = vpop.f32.mrb[16].mxu0  ;;  %v1142_v11 = vpop.f32.mrb[16].mxu1 }
 0x259   :  { %v1030_v24 = vadd.f32 %v1029_v32, %v2490_v7  ;;  %v1143_v18 = vadd.f32 %v1142_v11, %v2492_v48  ;;  %v1031_v19 = vpop.f32.mrb[17].mxu0  ;;  %v1144_v21 = vpop.f32.mrb[17].mxu1 }
 0x25a   :  { %v1032_v51 = vadd.f32 %v1031_v19, %v2494_v61  ;;  %v1145_v55 = vadd.f32 %v1144_v21, %v2496_v36  ;;  %v1033_v34 = vpop.f32.mrb[18].mxu0  ;;  %v1146_v50 = vpop.f32.mrb[18].mxu1 }
 0x25b   :  { %v1034_v20 = vadd.f32 %v1033_v34, %v2490_v7  ;;  %v1147_v46 = vadd.f32 %v1146_v50, %v2492_v48  ;;  %v1035_v10 = vpop.f32.mrb[19].mxu0  ;;  %v1148_v17 = vpop.f32.mrb[19].mxu1 }
 0x25c   :  { %v1804_v47 = vpack.c.bf16 %v1032_v51, %v1030_v24  ;;  %v1805_v37 = vpack.c.bf16 %v1145_v55, %v1143_v18  ;;  %v1036_v59 = vadd.f32 %v1035_v10, %v2494_v61  ;;  %v1149_v63 = vadd.f32 %v1148_v17, %v2496_v36 }
 0x25e   :  { %1606 = vst [vmem:[%s2741_s3 + $0xc0] sm:$0xff] %v1804_v47  ;;  %1607 = vst [vmem:[%s2741_s3 + $0xc8] sm:$0xff] %v1805_v37  ;;  %v1807_v62 = vpack.c.bf16 %v1036_v59, %v1034_v20  ;;  %v1808_v0 = vpack.c.bf16 %v1149_v63, %v1147_v46 }
 0x260   :  { %1609 = vst [vmem:[%s2741_s3 + $0xd8] sm:$0xff] %v1807_v62  ;;  %1610 = vst [vmem:[%s2741_s3 + $0xe0] sm:$0xff] %v1808_v0  ;;  %v1039_v16 = vpop.f32.mrb[20].mxu0  ;;  %v1152_v54 = vpop.f32.mrb[20].mxu1 }
 0x261   :  { %v1040_v27 = vadd.f32 %v1039_v16, %v2490_v7  ;;  %v1153_v4 = vadd.f32 %v1152_v54, %v2492_v48  ;;  %v1041_v6 = vpop.f32.mrb[21].mxu0  ;;  %v1154_v5 = vpop.f32.mrb[21].mxu1 }
 0x262   :  { %v1042_v22 = vadd.f32 %v1041_v6, %v2494_v61  ;;  %v1155_v23 = vadd.f32 %v1154_v5, %v2496_v36  ;;  %v1043_v8 = vpop.f32.mrb[22].mxu0  ;;  %v1156_v45 = vpop.f32.mrb[22].mxu1 }
 0x263   :  { %v1044_v35 = vadd.f32 %v1043_v8, %v2490_v7  ;;  %v1157_v38 = vadd.f32 %v1156_v45, %v2492_v48  ;;  %v1045_v30 = vpop.f32.mrb[23].mxu0  ;;  %v1158_v25 = vpop.f32.mrb[23].mxu1 }
 0x264   :  { %v1810_v26 = vpack.c.bf16 %v1042_v22, %v1040_v27  ;;  %v1811_v9 = vpack.c.bf16 %v1155_v23, %v1153_v4  ;;  %v1046_v12 = vadd.f32 %v1045_v30, %v2494_v61  ;;  %v1159_v58 = vadd.f32 %v1158_v25, %v2496_v36 }
 0x266   :  { %1612 = vst [vmem:[%s2741_s3 + $0xf0] sm:$0xff] %v1810_v26  ;;  %1613 = vst [vmem:[%s2741_s3 + $0xf8] sm:$0xff] %v1811_v9  ;;  %v1813_v42 = vpack.c.bf16 %v1046_v12, %v1044_v35  ;;  %v1814_v40 = vpack.c.bf16 %v1159_v58, %v1157_v38 }
 0x268   :  { %1615 = vst [vmem:[%s2741_s3 + $0x108] sm:$0xff] %v1813_v42  ;;  %1616 = vst [vmem:[%s2741_s3 + $0x110] sm:$0xff] %v1814_v40  ;;  %v1049_v41 = vpop.f32.mrb[24].mxu0  ;;  %v1162_v2 = vpop.f32.mrb[24].mxu1 }
 0x269   :  { %v1050_v13 = vadd.f32 %v1049_v41, %v2490_v7  ;;  %v1163_v43 = vadd.f32 %v1162_v2, %v2492_v48  ;;  %v1051_v33 = vpop.f32.mrb[25].mxu0  ;;  %v1164_v57 = vpop.f32.mrb[25].mxu1 }
 0x26a   :  { %v1052_v14 = vadd.f32 %v1051_v33, %v2494_v61  ;;  %v1165_v52 = vadd.f32 %v1164_v57, %v2496_v36  ;;  %v1053_v28 = vpop.f32.mrb[26].mxu0  ;;  %v1166_v29 = vpop.f32.mrb[26].mxu1 }
 0x26b   :  { %v1054_v49 = vadd.f32 %v1053_v28, %v2490_v7  ;;  %v1167_v39 = vadd.f32 %v1166_v29, %v2492_v48  ;;  %v1055_v15 = vpop.f32.mrb[27].mxu0  ;;  %v1168_v1 = vpop.f32.mrb[27].mxu1 }
 0x26c   :  { %v1816_v56 = vpack.c.bf16 %v1052_v14, %v1050_v13  ;;  %v1817_v31 = vpack.c.bf16 %v1165_v52, %v1163_v43  ;;  %v1056_v53 = vadd.f32 %v1055_v15, %v2494_v61  ;;  %v1169_v60 = vadd.f32 %v1168_v1, %v2496_v36 }
 0x26e   :  { %1618 = vst [vmem:[%s2741_s3 + $0x120] sm:$0xff] %v1816_v56  ;;  %1619 = vst [vmem:[%s2741_s3 + $0x128] sm:$0xff] %v1817_v31  ;;  %v1819_v32 = vpack.c.bf16 %v1056_v53, %v1054_v49  ;;  %v1820_v11 = vpack.c.bf16 %v1169_v60, %v1167_v39 }
 0x270   :  { %1621 = vst [vmem:[%s2741_s3 + $0x138] sm:$0xff] %v1819_v32  ;;  %1622 = vst [vmem:[%s2741_s3 + $0x140] sm:$0xff] %v1820_v11  ;;  %v1059_v24 = vpop.f32.mrb[28].mxu0  ;;  %v1172_v18 = vpop.f32.mrb[28].mxu1 }
 0x271   :  { %v1060_v19 = vadd.f32 %v1059_v24, %v2490_v7  ;;  %v1173_v21 = vadd.f32 %v1172_v18, %v2492_v48  ;;  %v1061_v51 = vpop.f32.mrb[29].mxu0  ;;  %v1174_v55 = vpop.f32.mrb[29].mxu1 }
 0x272   :  { %v1062_v34 = vadd.f32 %v1061_v51, %v2494_v61  ;;  %v1175_v50 = vadd.f32 %v1174_v55, %v2496_v36  ;;  %v1063_v20 = vpop.f32.mrb[30].mxu0  ;;  %v1176_v46 = vpop.f32.mrb[30].mxu1 }
 0x273   :  { %v1064_v10 = vadd.f32 %v1063_v20, %v2490_v7  ;;  %v1177_v17 = vadd.f32 %v1176_v46, %v2492_v48  ;;  %v1065_v47 = vpop.f32.mrb[31].mxu0  ;;  %v1178_v37 = vpop.f32.mrb[31].mxu1 }
 0x274   :  { %v1822_v59 = vpack.c.bf16 %v1062_v34, %v1060_v19  ;;  %v1823_v63 = vpack.c.bf16 %v1175_v50, %v1173_v21  ;;  %v1066_v62 = vadd.f32 %v1065_v47, %v2494_v61  ;;  %v1179_v0 = vadd.f32 %v1178_v37, %v2496_v36 }
 0x276   :  { %1624 = vst [vmem:[%s2741_s3 + $0x150] sm:$0xff] %v1822_v59  ;;  %1625 = vst [vmem:[%s2741_s3 + $0x158] sm:$0xff] %v1823_v63  ;;  %v1825_v16 = vpack.c.bf16 %v1066_v62, %v1064_v10  ;;  %v1826_v7 = vpack.c.bf16 %v1179_v0, %v1177_v17 }
 0x278   :  { %1627 = vst [vmem:[%s2741_s3 + $0x168] sm:$0xff] %v1825_v16  ;;  %1628 = vst [vmem:[%s2741_s3 + $0x170] sm:$0xff] %v1826_v7  ;;  %v1215_v48 = vpop.f32.mrb[32].mxu0  ;;  %v1255_v61 = vpop.f32.mrb[32].mxu1 }
 0x279   :  { %v1216_v36 = vadd.f32 %v1215_v48, %v2486_v44  ;;  %v1256_v54 = vadd.f32 %v1255_v61, %v2486_v44  ;;  %v1217_v27 = vpop.f32.mrb[33].mxu0  ;;  %v1257_v4 = vpop.f32.mrb[33].mxu1 }
 0x27a   :  { %v1218_v6 = vadd.f32 %v1217_v27, %v2488_v3  ;;  %v1258_v5 = vadd.f32 %v1257_v4, %v2488_v3  ;;  %v1219_v22 = vpop.f32.mrb[34].mxu0  ;;  %v1259_v23 = vpop.f32.mrb[34].mxu1 }
 0x27b   :  { %v1220_v8 = vadd.f32 %v1219_v22, %v2486_v44  ;;  %v1260_v45 = vadd.f32 %v1259_v23, %v2486_v44  ;;  %v1221_v35 = vpop.f32.mrb[35].mxu0  ;;  %v1261_v38 = vpop.f32.mrb[35].mxu1 }
 0x27c   :  { %v1782_v30 = vpack.c.bf16 %v1218_v6, %v1216_v36  ;;  %v1806_v25 = vpack.c.bf16 %v1258_v5, %v1256_v54  ;;  %v1222_v26 = vadd.f32 %v1221_v35, %v2488_v3  ;;  %v1262_v9 = vadd.f32 %v1261_v38, %v2488_v3 }
 0x27e   :  { %1584 = vst [vmem:[%s2741_s3 + $0x10] sm:$0xff] %v1782_v30  ;;  %1608 = vst [vmem:[%s2741_s3 + $0xd0] sm:$0xff] %v1806_v25  ;;  %v1785_v12 = vpack.c.bf16 %v1222_v26, %v1220_v8  ;;  %v1809_v58 = vpack.c.bf16 %v1262_v9, %v1260_v45 }
 0x280   :  { %1587 = vst [vmem:[%s2741_s3 + $0x28] sm:$0xff] %v1785_v12  ;;  %1611 = vst [vmem:[%s2741_s3 + $0xe8] sm:$0xff] %v1809_v58  ;;  %v1225_v42 = vpop.f32.mrb[36].mxu0  ;;  %v1265_v40 = vpop.f32.mrb[36].mxu1 }
 0x281   :  { %v1226_v41 = vadd.f32 %v1225_v42, %v2486_v44  ;;  %v1266_v2 = vadd.f32 %v1265_v40, %v2486_v44  ;;  %v1227_v13 = vpop.f32.mrb[37].mxu0  ;;  %v1267_v43 = vpop.f32.mrb[37].mxu1 }
 0x282   :  { %v1228_v33 = vadd.f32 %v1227_v13, %v2488_v3  ;;  %v1268_v57 = vadd.f32 %v1267_v43, %v2488_v3  ;;  %v1229_v14 = vpop.f32.mrb[38].mxu0  ;;  %v1269_v52 = vpop.f32.mrb[38].mxu1 }
 0x283   :  { %v1230_v28 = vadd.f32 %v1229_v14, %v2486_v44  ;;  %v1270_v29 = vadd.f32 %v1269_v52, %v2486_v44  ;;  %v1231_v49 = vpop.f32.mrb[39].mxu0  ;;  %v1271_v39 = vpop.f32.mrb[39].mxu1 }
 0x284   :  { %v1788_v15 = vpack.c.bf16 %v1228_v33, %v1226_v41  ;;  %v1812_v1 = vpack.c.bf16 %v1268_v57, %v1266_v2  ;;  %v1232_v56 = vadd.f32 %v1231_v49, %v2488_v3  ;;  %v1272_v31 = vadd.f32 %v1271_v39, %v2488_v3 }
 0x286   :  { %1590 = vst [vmem:[%s2741_s3 + $0x40] sm:$0xff] %v1788_v15  ;;  %1614 = vst [vmem:[%s2741_s3 + $0x100] sm:$0xff] %v1812_v1  ;;  %v1791_v53 = vpack.c.bf16 %v1232_v56, %v1230_v28  ;;  %v1815_v60 = vpack.c.bf16 %v1272_v31, %v1270_v29 }
 0x288   :  { %1593 = vst [vmem:[%s2741_s3 + $0x58] sm:$0xff] %v1791_v53  ;;  %1617 = vst [vmem:[%s2741_s3 + $0x118] sm:$0xff] %v1815_v60  ;;  %v1235_v32 = vpop.f32.mrb[40].mxu0  ;;  %v1275_v11 = vpop.f32.mrb[40].mxu1 }
 0x289   :  { %v1236_v24 = vadd.f32 %v1235_v32, %v2486_v44  ;;  %v1276_v18 = vadd.f32 %v1275_v11, %v2486_v44  ;;  %v1237_v19 = vpop.f32.mrb[41].mxu0  ;;  %v1277_v21 = vpop.f32.mrb[41].mxu1 }
 0x28a   :  { %v1238_v51 = vadd.f32 %v1237_v19, %v2488_v3  ;;  %v1278_v55 = vadd.f32 %v1277_v21, %v2488_v3  ;;  %v1239_v34 = vpop.f32.mrb[42].mxu0  ;;  %v1279_v50 = vpop.f32.mrb[42].mxu1 }
 0x28b   :  { %v1240_v20 = vadd.f32 %v1239_v34, %v2486_v44  ;;  %v1280_v46 = vadd.f32 %v1279_v50, %v2486_v44  ;;  %v1241_v10 = vpop.f32.mrb[43].mxu0  ;;  %v1281_v17 = vpop.f32.mrb[43].mxu1 }
 0x28c   :  { %v1794_v47 = vpack.c.bf16 %v1238_v51, %v1236_v24  ;;  %v1818_v37 = vpack.c.bf16 %v1278_v55, %v1276_v18  ;;  %v1242_v59 = vadd.f32 %v1241_v10, %v2488_v3  ;;  %v1282_v63 = vadd.f32 %v1281_v17, %v2488_v3 }
 0x28e   :  { %1596 = vst [vmem:[%s2741_s3 + $0x70] sm:$0xff] %v1794_v47  ;;  %1620 = vst [vmem:[%s2741_s3 + $0x130] sm:$0xff] %v1818_v37  ;;  %v1797_v62 = vpack.c.bf16 %v1242_v59, %v1240_v20  ;;  %v1821_v0 = vpack.c.bf16 %v1282_v63, %v1280_v46 }
 0x290   :  { %1599 = vst [vmem:[%s2741_s3 + $0x88] sm:$0xff] %v1797_v62  ;;  %1623 = vst [vmem:[%s2741_s3 + $0x148] sm:$0xff] %v1821_v0  ;;  %v1245_v16 = vpop.f32.mrb[44].mxu0  ;;  %v1285_v7 = vpop.f32.mrb[44].mxu1 }
 0x291   :  { %v1246_v48 = vadd.f32 %v1245_v16, %v2486_v44  ;;  %v1286_v61 = vadd.f32 %v1285_v7, %v2486_v44  ;;  %v1247_v36 = vpop.f32.mrb[45].mxu0  ;;  %v1287_v54 = vpop.f32.mrb[45].mxu1 }
 0x292   :  { %v1248_v27 = vadd.f32 %v1247_v36, %v2488_v3  ;;  %v1288_v4 = vadd.f32 %v1287_v54, %v2488_v3  ;;  %v1249_v6 = vpop.f32.mrb[46].mxu0  ;;  %v1289_v5 = vpop.f32.mrb[46].mxu1 }
 0x293   :  { %v1250_v22 = vadd.f32 %v1249_v6, %v2486_v44  ;;  %v1290_v23 = vadd.f32 %v1289_v5, %v2486_v44  ;;  %v1251_v8 = vpop.f32.mrb[47].mxu0  ;;  %v1291_v45 = vpop.f32.mrb[47].mxu1 }
 0x294   :  { %v1800_v35 = vpack.c.bf16 %v1248_v27, %v1246_v48  ;;  %v1824_v38 = vpack.c.bf16 %v1288_v4, %v1286_v61  ;;  %v1252_v30 = vadd.f32 %v1251_v8, %v2488_v3  ;;  %v1292_v25 = vadd.f32 %v1291_v45, %v2488_v3 }
 0x296   :  { %1602 = vst [vmem:[%s2741_s3 + $0xa0] sm:$0xff] %v1800_v35  ;;  %1626 = vst [vmem:[%s2741_s3 + $0x160] sm:$0xff] %v1824_v38  ;;  %v1803_v26 = vpack.c.bf16 %v1252_v30, %v1250_v22  ;;  %v1827_v9 = vpack.c.bf16 %v1292_v25, %v1290_v23 }
 0x298   :  { %1605 = vst [vmem:[%s2741_s3 + $0xb8] sm:$0xff] %v1803_v26  ;;  %1629 = vst [vmem:[%s2741_s3 + $0x178] sm:$0xff] %v1827_v9 }
 0x299   :  { %1634 = vsyncpa [#allocation3], 1 }
 0x29a   :  { %1635 = vsyncpa [#allocation5], 1 }

// kernel: transformer_forward.5
= control target key start
LH: loop header
LB: loop body
LE: loop exit
PB: predicated region body
PF: predicated region fallthrough
CT: control target
= control target key end

     0   :  { %s9122_s0 = inlined_call_operand.vmem [shape: f32[128,256], index: 0, kind: input, shape index: {}]   ;;  %s9123_s1 = inlined_call_operand.vmem [shape: bf16[128,256], index: 1, kind: input, shape index: {}]   ;;  %s9124_s2 = inlined_call_operand.vmem [shape: bf16[256,256], index: 2, kind: input, shape index: {}]   ;;  %s9125_s3 = inlined_call_operand.vmem [shape: f32[1,256], index: 3, kind: input, shape index: {}]   ;;  %s9126_s4 = inlined_call_operand.vmem [shape: bf16[256,1024], index: 4, kind: input, shape index: {}]   ;;  %s9127_s5 = inlined_call_operand.vmem [shape: f32[1,1024], index: 5, kind: input, shape index: {}]   ;;  %s9128_s6 = inlined_call_operand.vmem [shape: bf16[1024,256], index: 6, kind: input, shape index: {}]   ;;  %s9129_s7 = inlined_call_operand.vmem [shape: f32[1,256], index: 7, kind: input, shape index: {}]   ;;  %s9130_s8 = inlined_call_operand.hbm [shape: f32[128,256], index: 8, kind: output, shape index: {}]  }
   0x1   :  { %v5037_v0 = vld [vmem:[%s9124_s2 + $0x4] ss:$8 sps:$4 sm:$0xff]   ;;  %v5039_v1 = vld [vmem:[%s9124_s2] ss:$8 sps:$4 sm:$0xff]   ;;  %v5040_v2 = vld [vmem:[%s9124_s2 + $0x14] ss:$8 sps:$4 sm:$0xff]  }
   0x2   :  { %362 = vmatprep.subr.bf16.mxu0 %v5037_v0  ;;  %v5042_v3 = vld [vmem:[%s9124_s2 + $0x10] ss:$8 sps:$4 sm:$0xff]   ;;  %v5043_v4 = vld [vmem:[%s9124_s2 + $0x24] ss:$8 sps:$4 sm:$0xff]   ;;  %v5045_v5 = vld [vmem:[%s9124_s2 + $0x20] ss:$8 sps:$4 sm:$0xff]  }
   0x3   :  { %363 = vmatpush1.bf16.msra.mxu0 %v5039_v1  ;;  %v5046_v6 = vld [vmem:[%s9124_s2 + $0x34] ss:$8 sps:$4 sm:$0xff]   ;;  %v5048_v7 = vld [vmem:[%s9124_s2 + $0x30] ss:$8 sps:$4 sm:$0xff]   ;;  %v5049_v8 = vld [vmem:[%s9124_s2 + $0x44] ss:$8 sps:$4 sm:$0xff]  }
   0x4   :  { %364 = vmatprep.subr.bf16.mxu0 %v5040_v2  ;;  %v5051_v9 = vld [vmem:[%s9124_s2 + $0x40] ss:$8 sps:$4 sm:$0xff]   ;;  %v5052_v10 = vld [vmem:[%s9124_s2 + $0x54] ss:$8 sps:$4 sm:$0xff]   ;;  %v5054_v11 = vld [vmem:[%s9124_s2 + $0x50] ss:$8 sps:$4 sm:$0xff]  }
   0x5   :  { %v5055_v12 = vld [vmem:[%s9124_s2 + $0x64] ss:$8 sps:$4 sm:$0xff]   ;;  %v5057_v14 = vld [vmem:[%s9124_s2 + $0x60] ss:$8 sps:$4 sm:$0xff]   ;;  %v5058_v15 = vld [vmem:[%s9124_s2 + $0x74] ss:$8 sps:$4 sm:$0xff]  }
   0x6   :  { %v5087_v13 = vld [vmem:[%s9123_s1 + $0x4] ss:$8 sps:$4 sm:$0xff]   ;;  %v5060_v16 = vld [vmem:[%s9124_s2 + $0x70] ss:$8 sps:$4 sm:$0xff]   ;;  %v5063_v18 = vld [vmem:[%s9124_s2 + $0x80] ss:$8 sps:$4 sm:$0xff]  }
   0x7   :  { %365 = vmatpush1.bf16.msra.mxu0 %v5042_v3  ;;  %394 = vmatprep.mubr.bf16.mxu0 %v5087_v13  ;;  %v5061_v17 = vld [vmem:[%s9124_s2 + $0x84] ss:$8 sps:$4 sm:$0xff]   ;;  %v5064_v19 = vld [vmem:[%s9124_s2 + $0x94] ss:$8 sps:$4 sm:$0xff]   ;;  %v5066_v20 = vld [vmem:[%s9124_s2 + $0x90] ss:$8 sps:$4 sm:$0xff]  }
   0x8   :  { %366 = vmatprep.subr.bf16.mxu0 %v5043_v4  ;;  %v5067_v21 = vld [vmem:[%s9124_s2 + $0xa4] ss:$8 sps:$4 sm:$0xff]   ;;  %v5069_v22 = vld [vmem:[%s9124_s2 + $0xa0] ss:$8 sps:$4 sm:$0xff]   ;;  %v5070_v23 = vld [vmem:[%s9124_s2 + $0xb4] ss:$8 sps:$4 sm:$0xff]  }
   0x9   :  { %v5072_v24 = vld [vmem:[%s9124_s2 + $0xb0] ss:$8 sps:$4 sm:$0xff]   ;;  %v5073_v25 = vld [vmem:[%s9124_s2 + $0xc4] ss:$8 sps:$4 sm:$0xff]   ;;  %v5075_v26 = vld [vmem:[%s9124_s2 + $0xc0] ss:$8 sps:$4 sm:$0xff]  }
   0xa   :  { %v5076_v27 = vld [vmem:[%s9124_s2 + $0xd4] ss:$8 sps:$4 sm:$0xff]   ;;  %v5078_v28 = vld [vmem:[%s9124_s2 + $0xd0] ss:$8 sps:$4 sm:$0xff]   ;;  %v5079_v29 = vld [vmem:[%s9124_s2 + $0xe4] ss:$8 sps:$4 sm:$0xff]  }
   0xb   :  { %367 = vmatpush1.bf16.msra.mxu0 %v5045_v5  ;;  %v5081_v30 = vld [vmem:[%s9124_s2 + $0xe0] ss:$8 sps:$4 sm:$0xff]   ;;  %v5082_v31 = vld [vmem:[%s9124_s2 + $0xf4] ss:$8 sps:$4 sm:$0xff]   ;;  %v5084_v32 = vld [vmem:[%s9124_s2 + $0xf0] ss:$8 sps:$4 sm:$0xff]  }
   0xc   :  { %368 = vmatprep.subr.bf16.mxu0 %v5046_v6  ;;  %v5085_v33 = vld [vmem:[%s9123_s1] ss:$8 sps:$4 sm:$0xff]   ;;  %v5088_v34 = vld [vmem:[%s9123_s1 + $0x14] ss:$8 sps:$4 sm:$0xff]   ;;  %v5090_v35 = vld [vmem:[%s9123_s1 + $0x10] ss:$8 sps:$4 sm:$0xff]  }
   0xd   :  { %v5091_v36 = vld [vmem:[%s9123_s1 + $0x24] ss:$8 sps:$4 sm:$0xff]  }
   0xf   :  { %369 = vmatpush1.bf16.msra.mxu0 %v5048_v7 }
  0x10   :  { %370 = vmatprep.subr.bf16.mxu0 %v5049_v8 }
  0x13   :  { %371 = vmatpush1.bf16.msra.mxu0 %v5051_v9 }
  0x14   :  { %372 = vmatprep.subr.bf16.mxu0 %v5052_v10 }
  0x17   :  { %373 = vmatpush1.bf16.msra.mxu0 %v5054_v11 }
  0x18   :  { %374 = vmatprep.subr.bf16.mxu0 %v5055_v12 }
  0x1b   :  { %375 = vmatpush1.bf16.msra.mxu0 %v5057_v14 }
  0x1c   :  { %376 = vmatprep.subr.bf16.mxu0 %v5058_v15 }
  0x1f   :  { %377 = vmatpush1.bf16.msra.mxu0 %v5060_v16 }
  0x20   :  { %378 = vmatprep.subr.bf16.mxu0 %v5061_v17 }
  0x23   :  { %379 = vmatpush1.bf16.msra.mxu0 %v5063_v18 }
  0x24   :  { %380 = vmatprep.subr.bf16.mxu0 %v5064_v19 }
  0x27   :  { %381 = vmatpush1.bf16.msra.mxu0 %v5066_v20 }
  0x28   :  { %382 = vmatprep.subr.bf16.mxu0 %v5067_v21 }
  0x2b   :  { %383 = vmatpush1.bf16.msra.mxu0 %v5069_v22 }
  0x2c   :  { %384 = vmatprep.subr.bf16.mxu0 %v5070_v23 }
  0x2f   :  { %385 = vmatpush1.bf16.msra.mxu0 %v5072_v24 }
  0x30   :  { %386 = vmatprep.subr.bf16.mxu0 %v5073_v25 }
  0x33   :  { %387 = vmatpush1.bf16.msra.mxu0 %v5075_v26 }
  0x34   :  { %388 = vmatprep.subr.bf16.mxu0 %v5076_v27 }
  0x37   :  { %389 = vmatpush1.bf16.msra.mxu0 %v5078_v28 }
  0x38   :  { %390 = vmatprep.subr.bf16.mxu0 %v5079_v29 }
  0x3b   :  { %391 = vmatpush1.bf16.msra.mxu0 %v5081_v30 }
  0x3c   :  { %392 = vmatprep.subr.bf16.mxu0 %v5082_v31 }
  0x3f   :  { %393 = vmatpush1.bf16.msra.mxu0 %v5084_v32 }
  0x42   :  { %395 = vmatmul.mubr.bf16.vlgmr.msra.gmra.mrb[0].mxu0 %v5085_v33 }
  0x43   :  { %404 = vmatprep.mubr.bf16.mxu0 %v5088_v34 }
  0x4a   :  { %405 = vmatmul.mubr.bf16.gmra.mrb[4].mxu0 %v5090_v35 }
  0x4b   :  { %414 = vmatprep.mubr.bf16.mxu0 %v5091_v36 }
  0x4c   :  { %13 = vsyncpa [#allocation3], 0  ;;  %v5093_v37 = vld [vmem:[%s9123_s1 + $0x20] ss:$8 sps:$4 sm:$0xff]   ;;  %v5094_v38 = vld [vmem:[%s9123_s1 + $0x34] ss:$8 sps:$4 sm:$0xff]   ;;  %v112_v48 = vlaneseq }
  0x4d   :  { %v5096_v39 = vld [vmem:[%s9123_s1 + $0x30] ss:$8 sps:$4 sm:$0xff]   ;;  %v5097_v40 = vld [vmem:[%s9123_s1 + $0x44] ss:$8 sps:$4 sm:$0xff]   ;;  %v5099_v41 = vld [vmem:[%s9123_s1 + $0x40] ss:$8 sps:$4 sm:$0xff]  }
  0x4e   :  { %v5100_v42 = vld [vmem:[%s9123_s1 + $0x54] ss:$8 sps:$4 sm:$0xff]   ;;  %v5102_v43 = vld [vmem:[%s9123_s1 + $0x50] ss:$8 sps:$4 sm:$0xff]   ;;  %v5103_v44 = vld [vmem:[%s9123_s1 + $0x64] ss:$8 sps:$4 sm:$0xff]  }
  0x4f   :  { %v5105_v45 = vld [vmem:[%s9123_s1 + $0x60] ss:$8 sps:$4 sm:$0xff]   ;;  %v5106_v46 = vld [vmem:[%s9123_s1 + $0x74] ss:$8 sps:$4 sm:$0xff]   ;;  %v5108_v47 = vld [vmem:[%s9123_s1 + $0x70] ss:$8 sps:$4 sm:$0xff]  }
  0x50   :  { %v5838_v49 = vshrl.u32 %v112_v48, 7  ;;  %v110_v51 = vld [vmem:[%s9125_s3] sm:$0x3]  ;;  %v31_v58 = vld [vmem:[%s9122_s0 + $0x8] sm:$0xff]  ;;  %v32_v63 = vld [vmem:[%s9122_s0 + $0x10] sm:$0xff] }
  0x51   :  { %v30_v55 = vld [vmem:[%s9122_s0] sm:$0xff]  ;;  %v33_v1 = vld [vmem:[%s9122_s0 + $0x18] sm:$0xff]  ;;  %v35_v11 = vld [vmem:[%s9122_s0 + $0x28] sm:$0xff] }
  0x52   :  { %415 = vmatmul.mubr.bf16.gmra.mrb[8].mxu0 %v5093_v37  ;;  %9214 = vst [vmem:[#allocation5_spill] sm:$0xff] %v5838_v49  ;;  %v5841_v50 = vsub.s32 0, %v5838_v49  ;;  %v5847_v52 = vsub.s32 1, %v5838_v49  ;;  %v34_v8 = vld [vmem:[%s9122_s0 + $0x20] sm:$0xff]  ;;  %v36_v17 = vld [vmem:[%s9122_s0 + $0x30] sm:$0xff]  ;;  %v37_v19 = vld [vmem:[%s9122_s0 + $0x38] sm:$0xff] }
  0x53   :  { %424 = vmatprep.mubr.bf16.mxu0 %v5094_v38  ;;  %v38_v26 = vld [vmem:[%s9122_s0 + $0x40] sm:$0xff]  ;;  %v39_v29 = vld [vmem:[%s9122_s0 + $0x48] sm:$0xff]  ;;  %v40_v32 = vld [vmem:[%s9122_s0 + $0x50] sm:$0xff] }
  0x54   :  { %9215 = vst [vmem:[#allocation6_spill] sm:$0xff] %v5841_v50  ;;  %9216 = vst [vmem:[#allocation7_spill] sm:$0xff] %v5847_v52  ;;  %v5850_v53 = vrot.slane %v110_v51, %v5841_v50  ;;  %v5853_v54 = vrot.slane %v110_v51, %v5847_v52  ;;  %v41_v37 = vld [vmem:[%s9122_s0 + $0x58] sm:$0xff]  ;;  %v43_v48 = vld [vmem:[%s9122_s0 + $0x68] sm:$0xff] }
  0x5a   :  { %425 = vmatmul.mubr.bf16.gmra.mrb[12].mxu0 %v5096_v39 }
  0x5b   :  { %434 = vmatprep.mubr.bf16.mxu0 %v5097_v40 }
  0x62   :  { %435 = vmatmul.mubr.bf16.gmra.mrb[16].mxu0 %v5099_v41 }
  0x63   :  { %444 = vmatprep.mubr.bf16.mxu0 %v5100_v42 }
  0x6a   :  { %445 = vmatmul.mubr.bf16.gmra.mrb[20].mxu0 %v5102_v43 }
  0x6b   :  { %454 = vmatprep.mubr.bf16.mxu0 %v5103_v44  ;;  %v42_v44 = vld [vmem:[%s9122_s0 + $0x60] sm:$0xff] }
  0x72   :  { %455 = vmatmul.mubr.bf16.gmra.mrb[24].mxu0 %v5105_v45 }
  0x73   :  { %464 = vmatprep.mubr.bf16.mxu0 %v5106_v46 }
  0x7a   :  { %465 = vmatmul.mubr.bf16.gmra.mrb[28].mxu0 %v5108_v47 }
 0x115   :  { %v396_v56 = vpop.f32.mrb[0].mxu0 }
 0x116   :  { %v397_v57 = vadd.f32 %v396_v56, %v5850_v53  ;;  %v398_v59 = vpop.f32.mrb[1].mxu0  ;;  %v44_v56 = vld [vmem:[%s9122_s0 + $0x70] sm:$0xff] }
 0x117   :  { %v399_v60 = vadd.f32 %v398_v59, %v5853_v54  ;;  %v400_v61 = vpop.f32.mrb[2].mxu0 }
 0x118   :  { %v5863_v62 = vadd.f32 %v397_v57, %v30_v55  ;;  %v401_v0 = vadd.f32 %v400_v61, %v5850_v53  ;;  %v402_v2 = vpop.f32.mrb[3].mxu0 }
 0x119   :  { %v5872_v3 = vadd.f32 %v399_v60, %v31_v58  ;;  %v403_v4 = vadd.f32 %v402_v2, %v5853_v54  ;;  %v45_v60 = vld [vmem:[%s9122_s0 + $0x78] sm:$0xff] }
 0x11a   :  { %9217 = vst [vmem:[#allocation8_spill] sm:$0xff] %v5863_v62  ;;  %v5875_v5 = vadd.f32 %v401_v0, %v32_v63 }
 0x11b   :  { %9218 = vst [vmem:[#allocation9_spill] sm:$0xff] %v5872_v3  ;;  %v5877_v6 = vadd.f32 %v403_v4, %v33_v1  ;;  %v507_v7 = vadd.f32 %v5872_v3, %v5863_v62 }
 0x11c   :  { %9219 = vst [vmem:[#allocation10_spill] sm:$0xff] %v5875_v5 }
 0x11d   :  { %9220 = vst [vmem:[#allocation11_spill] sm:$0xff] %v5877_v6  ;;  %v406_v9 = vpop.f32.mrb[4].mxu0  ;;  %508 = vadd.xlane.f32.xlu0 %v507_v7  ;;  %v510_v15 = vadd.f32 %v5877_v6, %v5875_v5  ;;  %v46_v7 = vld [vmem:[%s9122_s0 + $0x80] sm:$0xff] }
 0x11e   :  { %v407_v10 = vadd.f32 %v406_v9, %v5850_v53  ;;  %v408_v12 = vpop.f32.mrb[5].mxu0 }
 0x11f   :  { %v409_v13 = vadd.f32 %v408_v12, %v5853_v54  ;;  %v410_v14 = vpop.f32.mrb[6].mxu0 }
 0x120   :  { %v5891_v16 = vadd.f32 %v407_v10, %v34_v8  ;;  %v411_v18 = vadd.f32 %v410_v14, %v5850_v53  ;;  %v412_v20 = vpop.f32.mrb[7].mxu0  ;;  %v48_v14 = vld [vmem:[%s9122_s0 + $0x90] sm:$0xff] }
 0x121   :  { %v5900_v21 = vadd.f32 %v409_v13, %v35_v11  ;;  %v413_v22 = vadd.f32 %v412_v20, %v5853_v54  ;;  %511 = vadd.xlane.f32.xlu0 %v510_v15  ;;  %v47_v11 = vld [vmem:[%s9122_s0 + $0x88] sm:$0xff] }
 0x122   :  { %9221 = vst [vmem:[#allocation12_spill] sm:$0xff] %v5891_v16  ;;  %v5903_v23 = vadd.f32 %v411_v18, %v36_v17 }
 0x123   :  { %9222 = vst [vmem:[#allocation13_spill] sm:$0xff] %v5900_v21  ;;  %v5905_v24 = vadd.f32 %v413_v22, %v37_v19  ;;  %v513_v25 = vadd.f32 %v5900_v21, %v5891_v16  ;;  %v49_v19 = vld [vmem:[%s9122_s0 + $0x98] sm:$0xff] }
 0x124   :  { %9223 = vst [vmem:[#allocation14_spill] sm:$0xff] %v5903_v23 }
 0x125   :  { %9224 = vst [vmem:[#allocation15_spill] sm:$0xff] %v5905_v24  ;;  %v416_v27 = vpop.f32.mrb[8].mxu0  ;;  %514 = vadd.xlane.f32.xlu1 %v513_v25  ;;  %v516_v34 = vadd.f32 %v5905_v24, %v5903_v23 }
 0x126   :  { %v417_v28 = vadd.f32 %v416_v27, %v5850_v53  ;;  %v418_v30 = vpop.f32.mrb[9].mxu0 }
 0x127   :  { %v419_v31 = vadd.f32 %v418_v30, %v5853_v54  ;;  %v420_v33 = vpop.f32.mrb[10].mxu0 }
 0x128   :  { %v5922_v35 = vadd.f32 %v417_v28, %v38_v26  ;;  %v421_v36 = vadd.f32 %v420_v33, %v5850_v53  ;;  %v422_v38 = vpop.f32.mrb[11].mxu0  ;;  %v51_v33 = vld [vmem:[%s9122_s0 + $0xa8] sm:$0xff] }
 0x129   :  { %v5928_v39 = vadd.f32 %v419_v31, %v39_v29  ;;  %v423_v40 = vadd.f32 %v422_v38, %v5853_v54  ;;  %517 = vadd.xlane.f32.xlu1 %v516_v34  ;;  %v50_v29 = vld [vmem:[%s9122_s0 + $0xa0] sm:$0xff] }
 0x12a   :  { %9225 = vst [vmem:[#allocation16_spill] sm:$0xff] %v5922_v35  ;;  %v5931_v41 = vadd.f32 %v421_v36, %v40_v32 }
 0x12b   :  { %9226 = vst [vmem:[#allocation17_spill] sm:$0xff] %v5928_v39  ;;  %v5933_v42 = vadd.f32 %v423_v40, %v41_v37  ;;  %v519_v43 = vadd.f32 %v5928_v39, %v5922_v35  ;;  %v52_v37 = vld [vmem:[%s9122_s0 + $0xb0] sm:$0xff] }
 0x12c   :  { %9227 = vst [vmem:[#allocation18_spill] sm:$0xff] %v5931_v41 }
 0x12d   :  { %9228 = vst [vmem:[#allocation19_spill] sm:$0xff] %v5933_v42  ;;  %v426_v45 = vpop.f32.mrb[12].mxu0  ;;  %520 = vadd.xlane.f32.xlu0 %v519_v43  ;;  %v522_v46 = vadd.f32 %v5933_v42, %v5931_v41 }
 0x12e   :  { %v427_v47 = vadd.f32 %v426_v45, %v5850_v53  ;;  %v428_v51 = vpop.f32.mrb[13].mxu0 }
 0x12f   :  { %v429_v55 = vadd.f32 %v428_v51, %v5853_v54  ;;  %v430_v57 = vpop.f32.mrb[14].mxu0  ;;  %523 = vadd.xlane.f32.xlu1 %v522_v46 }
 0x130   :  { %v5950_v58 = vadd.f32 %v427_v47, %v42_v44  ;;  %v431_v59 = vadd.f32 %v430_v57, %v5850_v53  ;;  %v432_v61 = vpop.f32.mrb[15].mxu0  ;;  %v53_v44 = vld [vmem:[%s9122_s0 + $0xb8] sm:$0xff] }
 0x131   :  { %v5956_v63 = vadd.f32 %v429_v55, %v43_v48  ;;  %v433_v0 = vadd.f32 %v432_v61, %v5853_v54  ;;  %v55_v61 = vld [vmem:[%s9122_s0 + $0xc8] sm:$0xff] }
 0x132   :  { %9229 = vst [vmem:[#allocation20_spill] sm:$0xff] %v5950_v58  ;;  %v5959_v1 = vadd.f32 %v431_v59, %v44_v56  ;;  %v54_v56 = vld [vmem:[%s9122_s0 + $0xc0] sm:$0xff] }
 0x133   :  { %9230 = vst [vmem:[#allocation21_spill] sm:$0xff] %v5956_v63  ;;  %v5961_v2 = vadd.f32 %v433_v0, %v45_v60  ;;  %v525_v4 = vadd.f32 %v5956_v63, %v5950_v58 }
 0x134   :  { %9231 = vst [vmem:[#allocation22_spill] sm:$0xff] %v5959_v1 }
 0x135   :  { %9232 = vst [vmem:[#allocation23_spill] sm:$0xff] %v5961_v2  ;;  %v436_v8 = vpop.f32.mrb[16].mxu0  ;;  %526 = vadd.xlane.f32.xlu0 %v525_v4  ;;  %v528_v9 = vadd.f32 %v5961_v2, %v5959_v1 }
 0x136   :  { %v437_v10 = vadd.f32 %v436_v8, %v5850_v53  ;;  %v438_v12 = vpop.f32.mrb[17].mxu0 }
 0x137   :  { %v439_v13 = vadd.f32 %v438_v12, %v5853_v54  ;;  %v440_v15 = vpop.f32.mrb[18].mxu0  ;;  %529 = vadd.xlane.f32.xlu1 %v528_v9 }
 0x138   :  { %v5978_v17 = vadd.f32 %v437_v10, %v46_v7  ;;  %v441_v18 = vadd.f32 %v440_v15, %v5850_v53  ;;  %v442_v20 = vpop.f32.mrb[19].mxu0  ;;  %v56_v7 = vld [vmem:[%s9122_s0 + $0xd0] sm:$0xff] }
 0x139   :  { %v5984_v22 = vadd.f32 %v439_v13, %v47_v11  ;;  %v443_v25 = vadd.f32 %v442_v20, %v5853_v54  ;;  %v57_v11 = vld [vmem:[%s9122_s0 + $0xd8] sm:$0xff]  ;;  %v58_v20 = vld [vmem:[%s9122_s0 + $0xe0] sm:$0xff] }
 0x13a   :  { %9233 = vst [vmem:[#allocation24_spill] sm:$0xff] %v5978_v17  ;;  %v5987_v26 = vadd.f32 %v441_v18, %v48_v14 }
 0x13b   :  { %9234 = vst [vmem:[#allocation25_spill] sm:$0xff] %v5984_v22  ;;  %v5989_v27 = vadd.f32 %v443_v25, %v49_v19  ;;  %v531_v28 = vadd.f32 %v5984_v22, %v5978_v17 }
 0x13c   :  { %9235 = vst [vmem:[#allocation26_spill] sm:$0xff] %v5987_v26 }
 0x13d   :  { %9236 = vst [vmem:[#allocation27_spill] sm:$0xff] %v5989_v27  ;;  %v446_v30 = vpop.f32.mrb[20].mxu0  ;;  %532 = vadd.xlane.f32.xlu0 %v531_v28  ;;  %v534_v31 = vadd.f32 %v5989_v27, %v5987_v26 }
 0x13e   :  { %v447_v32 = vadd.f32 %v446_v30, %v5850_v53  ;;  %v448_v34 = vpop.f32.mrb[21].mxu0  ;;  %v59_v30 = vld [vmem:[%s9122_s0 + $0xe8] sm:$0xff] }
 0x13f   :  { %v449_v36 = vadd.f32 %v448_v34, %v5853_v54  ;;  %v450_v38 = vpop.f32.mrb[22].mxu0  ;;  %535 = vadd.xlane.f32.xlu1 %v534_v31 }
 0x140   :  { %v6006_v40 = vadd.f32 %v447_v32, %v50_v29  ;;  %v451_v43 = vadd.f32 %v450_v38, %v5850_v53  ;;  %v452_v45 = vpop.f32.mrb[23].mxu0  ;;  %v61_v38 = vld [vmem:[%s9122_s0 + $0xf8] sm:$0xff] }
 0x141   :  { %v6012_v46 = vadd.f32 %v449_v36, %v51_v33  ;;  %v453_v47 = vadd.f32 %v452_v45, %v5853_v54  ;;  %v60_v33 = vld [vmem:[%s9122_s0 + $0xf0] sm:$0xff] }
 0x142   :  { %9237 = vst [vmem:[#allocation28_spill] sm:$0xff] %v6006_v40  ;;  %v6015_v48 = vadd.f32 %v451_v43, %v52_v37 }
 0x143   :  { %9238 = vst [vmem:[#allocation29_spill] sm:$0xff] %v6012_v46  ;;  %v6017_v51 = vadd.f32 %v453_v47, %v53_v44  ;;  %v537_v55 = vadd.f32 %v6012_v46, %v6006_v40 }
 0x144   :  { %9239 = vst [vmem:[#allocation30_spill] sm:$0xff] %v6015_v48 }
 0x145   :  { %9240 = vst [vmem:[#allocation31_spill] sm:$0xff] %v6017_v51  ;;  %v456_v57 = vpop.f32.mrb[24].mxu0  ;;  %538 = vadd.xlane.f32.xlu0 %v537_v55  ;;  %v540_v59 = vadd.f32 %v6017_v51, %v6015_v48 }
 0x146   :  { %v457_v60 = vadd.f32 %v456_v57, %v5850_v53  ;;  %v458_v0 = vpop.f32.mrb[25].mxu0  ;;  %v780_v57 = vld [vmem:[%s9126_s4] sm:$0xff] }
 0x147   :  { %v459_v4 = vadd.f32 %v458_v0, %v5853_v54  ;;  %v460_v8 = vpop.f32.mrb[26].mxu0  ;;  %541 = vadd.xlane.f32.xlu1 %v540_v59  ;;  %v782_v59 = vld [vmem:[%s9126_s4 + $0x10] sm:$0xff] }
 0x148   :  { %v6034_v9 = vadd.f32 %v457_v60, %v54_v56  ;;  %v461_v10 = vadd.f32 %v460_v8, %v5850_v53  ;;  %v462_v12 = vpop.f32.mrb[27].mxu0  ;;  %v786_v0 = vld [vmem:[%s9126_s4 + $0x30] sm:$0xff] }
 0x149   :  { %v6040_v13 = vadd.f32 %v459_v4, %v55_v61  ;;  %v463_v14 = vadd.f32 %v462_v12, %v5853_v54  ;;  %v788_v4 = vld [vmem:[%s9126_s4 + $0x40] sm:$0xff]  ;;  %v4623_v8 = vcombine.high %v782_v59, %v786_v0  ;;  %v790_v12 = vld [vmem:[%s9126_s4 + $0x50] sm:$0xff] }
 0x14a   :  { %9241 = vst [vmem:[#allocation32_spill] sm:$0xff] %v6034_v9  ;;  %v6043_v15 = vadd.f32 %v461_v10, %v56_v7  ;;  %v792_v7 = vld [vmem:[%s9126_s4 + $0x60] sm:$0xff]  ;;  %v4622_v10 = vcombine.low %v782_v59, %v786_v0 }
 0x14b   :  { %9242 = vst [vmem:[#allocation33_spill] sm:$0xff] %v6040_v13  ;;  %v6045_v18 = vadd.f32 %v463_v14, %v57_v11  ;;  %v543_v19 = vadd.f32 %v6040_v13, %v6034_v9  ;;  %v4627_v11 = vcombine.high %v788_v4, %v792_v7  ;;  %v794_v14 = vld [vmem:[%s9126_s4 + $0x70] sm:$0xff]  ;;  %1816 = vmatprep.subr.bf16.mxu1 %v4623_v8  ;;  %v816_v59 = vld [vmem:[%s9126_s4 + $0x120] sm:$0xff] }
 0x14c   :  { %9243 = vst [vmem:[#allocation34_spill] sm:$0xff] %v6043_v15  ;;  %1817 = vmatpush1.bf16.msra.mxu1 %v4622_v10  ;;  %v820_v10 = vld [vmem:[%s9126_s4 + $0x140] sm:$0xff] }
 0x14d   :  { %9244 = vst [vmem:[#allocation35_spill] sm:$0xff] %v6045_v18  ;;  %v466_v25 = vpop.f32.mrb[28].mxu0  ;;  %544 = vadd.xlane.f32.xlu0 %v543_v19  ;;  %v546_v28 = vadd.f32 %v6045_v18, %v6043_v15  ;;  %v796_v19 = vld [vmem:[%s9126_s4 + $0x80] sm:$0xff] }
 0x14e   :  { %v467_v29 = vadd.f32 %v466_v25, %v5850_v53  ;;  %v468_v31 = vpop.f32.mrb[29].mxu0  ;;  %v800_v25 = vld [vmem:[%s9126_s4 + $0xa0] sm:$0xff] }
 0x14f   :  { %v469_v32 = vadd.f32 %v468_v31, %v5853_v54  ;;  %v470_v34 = vpop.f32.mrb[30].mxu0  ;;  %547 = vadd.xlane.f32.xlu1 %v546_v28  ;;  %v798_v28 = vld [vmem:[%s9126_s4 + $0x90] sm:$0xff]  ;;  %v4630_v31 = vcombine.low %v790_v12, %v794_v14 }
 0x150   :  { %v6062_v36 = vadd.f32 %v467_v29, %v58_v20  ;;  %v471_v37 = vadd.f32 %v470_v34, %v5850_v53  ;;  %v472_v43 = vpop.f32.mrb[31].mxu0  ;;  %v4631_v20 = vcombine.high %v790_v12, %v794_v14  ;;  %v802_v29 = vld [vmem:[%s9126_s4 + $0xb0] sm:$0xff]  ;;  %v804_v34 = vld [vmem:[%s9126_s4 + $0xc0] sm:$0xff] }
 0x151   :  { %v6068_v44 = vadd.f32 %v469_v32, %v59_v30  ;;  %v473_v45 = vadd.f32 %v472_v43, %v5853_v54  ;;  %v784_v54 = vld [vmem:[%s9126_s4 + $0x20] sm:$0xff]  ;;  %v4626_v30 = vcombine.low %v788_v4, %v792_v7  ;;  %v4635_v32 = vcombine.high %v796_v19, %v800_v25  ;;  %v810_v43 = vld [vmem:[%s9126_s4 + $0xf0] sm:$0xff] }
 0x152   :  { %9245 = vst [vmem:[#allocation36_spill] sm:$0xff] %v6062_v36  ;;  %v6071_v47 = vadd.f32 %v471_v37, %v60_v33  ;;  %v4618_v60 = vcombine.low %v780_v57, %v784_v54  ;;  %v4619_v61 = vcombine.high %v780_v57, %v784_v54  ;;  %1818 = vmatprep.subr.bf16.mxu1 %v4631_v20  ;;  %v808_v37 = vld [vmem:[%s9126_s4 + $0xe0] sm:$0xff]  ;;  %v822_v12 = vld [vmem:[%s9126_s4 + $0x150] sm:$0xff] }
 0x153   :  { %9246 = vst [vmem:[#allocation37_spill] sm:$0xff] %v6068_v44  ;;  %v6073_v55 = vadd.f32 %v473_v45, %v61_v38  ;;  %v549_v56 = vadd.f32 %v6068_v44, %v6062_v36  ;;  %v4639_v33 = vcombine.high %v798_v28, %v802_v29  ;;  %v806_v38 = vld [vmem:[%s9126_s4 + $0xd0] sm:$0xff]  ;;  %v4634_v45 = vcombine.low %v796_v19, %v800_v25  ;;  %v812_v54 = vld [vmem:[%s9126_s4 + $0x100] sm:$0xff] }
 0x154   :  { %9247 = vst [vmem:[#allocation38_spill] sm:$0xff] %v6071_v47  ;;  %1590 = vmatprep.subr.bf16.mxu0 %v4619_v61  ;;  %1819 = vmatpush1.bf16.msra.mxu1 %v4630_v31  ;;  %v4647_v57 = vcombine.high %v806_v38, %v810_v43  ;;  %v818_v61 = vld [vmem:[%s9126_s4 + $0x130] sm:$0xff]  ;;  %v4642_v0 = vcombine.low %v804_v34, %v808_v37 }
 0x155   :  { %9248 = vst [vmem:[#allocation39_spill] sm:$0xff] %v6073_v55  ;;  %550 = vadd.xlane.f32.xlu0 %v549_v56  ;;  %v552_v53 = vadd.f32 %v6073_v55, %v6071_v47  ;;  %1591 = vmatpush1.bf16.msra.mxu0 %v4618_v60  ;;  %v4638_v56 = vcombine.low %v798_v28, %v802_v29  ;;  %v814_v60 = vld [vmem:[%s9126_s4 + $0x110] sm:$0xff]  ;;  %v828_v29 = vld [vmem:[%s9126_s4 + $0x180] sm:$0xff] }
 0x156   :  { %1592 = vmatprep.subr.bf16.mxu0 %v4627_v11  ;;  %1820 = vmatprep.subr.bf16.mxu1 %v4639_v33  ;;  %v4646_v4 = vcombine.low %v806_v38, %v810_v43  ;;  %v4651_v7 = vcombine.high %v812_v54, %v816_v59  ;;  %v4655_v8 = vcombine.high %v814_v60, %v818_v61  ;;  %v824_v11 = vld [vmem:[%s9126_s4 + $0x160] sm:$0xff]  ;;  %v826_v14 = vld [vmem:[%s9126_s4 + $0x170] sm:$0xff] }
 0x157   :  { %553 = vadd.xlane.f32.xlu1 %v552_v53  ;;  %v4643_v53 = vcombine.high %v804_v34, %v808_v37  ;;  %v4650_v19 = vcombine.low %v812_v54, %v816_v59  ;;  %v4654_v20 = vcombine.low %v814_v60, %v818_v61  ;;  %v4659_v25 = vcombine.high %v820_v10, %v824_v11  ;;  %v830_v31 = vld [vmem:[%s9126_s4 + $0x190] sm:$0xff]  ;;  %v836_v43 = vld [vmem:[%s9126_s4 + $0x1c0] sm:$0xff] }
 0x158   :  { %1821 = vmatpush1.bf16.msra.mxu1 %v4638_v56  ;;  %v4663_v28 = vcombine.high %v822_v12, %v826_v14  ;;  %v4658_v33 = vcombine.low %v820_v10, %v824_v11  ;;  %v4662_v34 = vcombine.low %v822_v12, %v826_v14  ;;  %v838_v56 = vld [vmem:[%s9126_s4 + $0x1d0] sm:$0xff]  ;;  %v844_v61 = vld [vmem:[%s9126_s4 + $0x200] sm:$0xff] }
 0x159   :  { %1593 = vmatpush1.bf16.msra.mxu0 %v4626_v30  ;;  %1822 = vmatprep.subr.bf16.mxu1 %v4647_v57  ;;  %v832_v30 = vld [vmem:[%s9126_s4 + $0x1a0] sm:$0xff] }
 0x15a   :  { %1594 = vmatprep.subr.bf16.mxu0 %v4635_v32  ;;  %v834_v32 = vld [vmem:[%s9126_s4 + $0x1b0] sm:$0xff]  ;;  %v4667_v37 = vcombine.high %v828_v29, %v832_v30  ;;  %v4666_v57 = vcombine.low %v828_v29, %v832_v30  ;;  %v852_v14 = vld [vmem:[%s9126_s4 + $0x240] sm:$0xff] }
 0x15b   :  { %v4671_v38 = vcombine.high %v830_v31, %v834_v32  ;;  %v4670_v54 = vcombine.low %v830_v31, %v834_v32  ;;  %v860_v32 = vld [vmem:[%s9126_s4 + $0x280] sm:$0xff] }
 0x15c   :  { %1823 = vmatpush1.bf16.msra.mxu1 %v4646_v4  ;;  %v846_v4 = vld [vmem:[%s9126_s4 + $0x210] sm:$0xff] }
 0x15d   :  { %1595 = vmatpush1.bf16.msra.mxu0 %v4634_v45  ;;  %1824 = vmatprep.subr.bf16.mxu1 %v4655_v8  ;;  %v840_v45 = vld [vmem:[%s9126_s4 + $0x1e0] sm:$0xff] }
 0x15e   :  { %1596 = vmatprep.subr.bf16.mxu0 %v4643_v53  ;;  %v842_v53 = vld [vmem:[%s9126_s4 + $0x1f0] sm:$0xff]  ;;  %v4675_v59 = vcombine.high %v836_v43, %v840_v45  ;;  %v4674_v8 = vcombine.low %v836_v43, %v840_v45 }
 0x15f   :  { %v4679_v60 = vcombine.high %v838_v56, %v842_v53  ;;  %v4678_v10 = vcombine.low %v838_v56, %v842_v53 }
 0x160   :  { %1825 = vmatpush1.bf16.msra.mxu1 %v4654_v20  ;;  %v854_v20 = vld [vmem:[%s9126_s4 + $0x250] sm:$0xff] }
 0x161   :  { %1597 = vmatpush1.bf16.msra.mxu0 %v4642_v0  ;;  %1826 = vmatprep.subr.bf16.mxu1 %v4663_v28  ;;  %v848_v0 = vld [vmem:[%s9126_s4 + $0x220] sm:$0xff] }
 0x162   :  { %1598 = vmatprep.subr.bf16.mxu0 %v4651_v7  ;;  %v850_v7 = vld [vmem:[%s9126_s4 + $0x230] sm:$0xff]  ;;  %v4683_v11 = vcombine.high %v844_v61, %v848_v0  ;;  %v4682_v28 = vcombine.low %v844_v61, %v848_v0 }
 0x163   :  { %v4687_v12 = vcombine.high %v846_v4, %v850_v7  ;;  %v4686_v29 = vcombine.low %v846_v4, %v850_v7 }
 0x164   :  { %1827 = vmatpush1.bf16.msra.mxu1 %v4662_v34 }
 0x165   :  { %1599 = vmatpush1.bf16.msra.mxu0 %v4650_v19  ;;  %1828 = vmatprep.subr.bf16.mxu1 %v4671_v38  ;;  %v856_v19 = vld [vmem:[%s9126_s4 + $0x260] sm:$0xff] }
 0x166   :  { %1600 = vmatprep.subr.bf16.mxu0 %v4659_v25  ;;  %v858_v25 = vld [vmem:[%s9126_s4 + $0x270] sm:$0xff]  ;;  %v4691_v30 = vcombine.high %v852_v14, %v856_v19  ;;  %v4690_v34 = vcombine.low %v852_v14, %v856_v19 }
 0x167   :  { %v4695_v31 = vcombine.high %v854_v20, %v858_v25 }
 0x168   :  { %1829 = vmatpush1.bf16.msra.mxu1 %v4670_v54 }
 0x169   :  { %1601 = vmatpush1.bf16.msra.mxu0 %v4658_v33  ;;  %1830 = vmatprep.subr.bf16.mxu1 %v4679_v60  ;;  %v864_v33 = vld [vmem:[%s9126_s4 + $0x2a0] sm:$0xff] }
 0x16a   :  { %1602 = vmatprep.subr.bf16.mxu0 %v4667_v37  ;;  %v4694_v37 = vcombine.low %v854_v20, %v858_v25  ;;  %v4699_v38 = vcombine.high %v860_v32, %v864_v33  ;;  %v4698_v43 = vcombine.low %v860_v32, %v864_v33 }
 0x16c   :  { %1831 = vmatpush1.bf16.msra.mxu1 %v4678_v10 }
 0x16d   :  { %1603 = vmatpush1.bf16.msra.mxu0 %v4666_v57  ;;  %1832 = vmatprep.subr.bf16.mxu1 %v4687_v12 }
 0x16e   :  { %1604 = vmatprep.subr.bf16.mxu0 %v4675_v59 }
 0x170   :  { %1833 = vmatpush1.bf16.msra.mxu1 %v4686_v29 }
 0x171   :  { %1605 = vmatpush1.bf16.msra.mxu0 %v4674_v8  ;;  %1834 = vmatprep.subr.bf16.mxu1 %v4695_v31 }
 0x172   :  { %1606 = vmatprep.subr.bf16.mxu0 %v4683_v11 }
 0x174   :  { %1835 = vmatpush1.bf16.msra.mxu1 %v4694_v37 }
 0x175   :  { %1607 = vmatpush1.bf16.msra.mxu0 %v4682_v28 }
 0x176   :  { %1608 = vmatprep.subr.bf16.mxu0 %v4691_v30 }
 0x179   :  { %1609 = vmatpush1.bf16.msra.mxu0 %v4690_v34 }
 0x17a   :  { %1610 = vmatprep.subr.bf16.mxu0 %v4699_v38 }
 0x17d   :  { %1611 = vmatpush1.bf16.msra.mxu0 %v4698_v43 }
 0x1aa   :  { %v509_v45 = vpop.xlane.xlu0 %508 }
 0x1ab   :  { %v556_v56 = vmul.f32 0.00390625, %v509_v45 }
 0x1ad   :  { %v6206_v53 = vsub.f32 %v5863_v62, %v556_v56  ;;  %v6209_v57 = vsub.f32 %v5872_v3, %v556_v56 }
 0x1ae   :  { %v512_v54 = vpop.xlane.xlu0 %511 }
 0x1af   :  { %v557_v59 = vmul.f32 0.00390625, %v512_v54  ;;  %v604_v60 = vmul.f32 %v6206_v53, %v6206_v53  ;;  %v605_v61 = vmul.f32 %v6209_v57, %v6209_v57 }
 0x1b1   :  { %v6216_v0 = vsub.f32 %v5875_v5, %v557_v59  ;;  %v6219_v4 = vsub.f32 %v5877_v6, %v557_v59  ;;  %v636_v7 = vadd.f32 %v605_v61, %v604_v60  ;;  %v862_v61 = vld [vmem:[%s9126_s4 + $0x290] sm:$0xff] }
 0x1b2   :  { %v515_v8 = vpop.xlane.xlu1 %514 }
 0x1b3   :  { %v558_v10 = vmul.f32 0.00390625, %v515_v8  ;;  %637 = vadd.xlane.f32.xlu0 %v636_v7  ;;  %v606_v11 = vmul.f32 %v6216_v0, %v6216_v0  ;;  %v607_v12 = vmul.f32 %v6219_v4, %v6219_v4  ;;  %v866_v7 = vld [vmem:[%s9126_s4 + $0x2b0] sm:$0xff] }
 0x1b5   :  { %v6226_v14 = vsub.f32 %v5891_v16, %v558_v10  ;;  %v6229_v19 = vsub.f32 %v5900_v21, %v558_v10  ;;  %v639_v20 = vadd.f32 %v607_v12, %v606_v11 }
 0x1b6   :  { %v518_v25 = vpop.xlane.xlu1 %517 }
 0x1b7   :  { %v559_v28 = vmul.f32 0.00390625, %v518_v25  ;;  %640 = vadd.xlane.f32.xlu1 %v639_v20  ;;  %v608_v29 = vmul.f32 %v6226_v14, %v6226_v14  ;;  %v609_v30 = vmul.f32 %v6229_v19, %v6229_v19  ;;  %v4703_v20 = vcombine.high %v862_v61, %v866_v7 }
 0x1b8   :  { %v4702_v25 = vcombine.low %v862_v61, %v866_v7 }
 0x1b9   :  { %v6236_v31 = vsub.f32 %v5903_v23, %v559_v28  ;;  %v6239_v32 = vsub.f32 %v5905_v24, %v559_v28  ;;  %v642_v33 = vadd.f32 %v609_v30, %v608_v29  ;;  %1836 = vmatprep.subr.bf16.mxu1 %v4703_v20 }
 0x1ba   :  { %v521_v34 = vpop.xlane.xlu0 %520  ;;  %1837 = vmatpush1.bf16.msra.mxu1 %v4702_v25  ;;  %v876_v25 = vld [vmem:[%s9126_s4 + $0x300] sm:$0xff] }
 0x1bb   :  { %v560_v37 = vmul.f32 0.00390625, %v521_v34  ;;  %643 = vadd.xlane.f32.xlu0 %v642_v33  ;;  %v610_v38 = vmul.f32 %v6236_v31, %v6236_v31  ;;  %v611_v43 = vmul.f32 %v6239_v32, %v6239_v32  ;;  %v868_v34 = vld [vmem:[%s9126_s4 + $0x2c0] sm:$0xff] }
 0x1bc   :  { %v524_v45 = vpop.xlane.xlu1 %523 }
 0x1bd   :  { %v6246_v56 = vsub.f32 %v5922_v35, %v560_v37  ;;  %v6249_v54 = vsub.f32 %v5928_v39, %v560_v37  ;;  %v561_v59 = vmul.f32 0.00390625, %v524_v45  ;;  %v645_v60 = vadd.f32 %v611_v43, %v610_v38  ;;  %v872_v37 = vld [vmem:[%s9126_s4 + $0x2e0] sm:$0xff]  ;;  %v870_v38 = vld [vmem:[%s9126_s4 + $0x2d0] sm:$0xff] }
 0x1be   :  { %v4706_v7 = vcombine.low %v868_v34, %v872_v37 }
 0x1bf   :  { %v6258_v8 = vsub.f32 %v5931_v41, %v561_v59  ;;  %v6261_v10 = vsub.f32 %v5933_v42, %v561_v59  ;;  %646 = vadd.xlane.f32.xlu1 %v645_v60  ;;  %v612_v11 = vmul.f32 %v6246_v56, %v6246_v56  ;;  %v613_v12 = vmul.f32 %v6249_v54, %v6249_v54  ;;  %v874_v60 = vld [vmem:[%s9126_s4 + $0x2f0] sm:$0xff] }
 0x1c0   :  { %v4707_v59 = vcombine.high %v868_v34, %v872_v37 }
 0x1c1   :  { %v648_v28 = vadd.f32 %v613_v12, %v612_v11  ;;  %v614_v29 = vmul.f32 %v6258_v8, %v6258_v8  ;;  %v615_v30 = vmul.f32 %v6261_v10, %v6261_v10  ;;  %v4711_v11 = vcombine.high %v870_v38, %v874_v60 }
 0x1c2   :  { %v527_v33 = vpop.xlane.xlu0 %526  ;;  %v4710_v12 = vcombine.low %v870_v38, %v874_v60  ;;  %1612 = vmatprep.subr.bf16.mxu0 %v4707_v59  ;;  %v882_v38 = vld [vmem:[%s9126_s4 + $0x330] sm:$0xff] }
 0x1c3   :  { %v562_v43 = vmul.f32 0.00390625, %v527_v33  ;;  %649 = vadd.xlane.f32.xlu0 %v648_v28  ;;  %v651_v45 = vadd.f32 %v615_v30, %v614_v29  ;;  %1613 = vmatpush1.bf16.msra.mxu0 %v4706_v7  ;;  %v880_v28 = vld [vmem:[%s9126_s4 + $0x320] sm:$0xff]  ;;  %v878_v29 = vld [vmem:[%s9126_s4 + $0x310] sm:$0xff] }
 0x1c4   :  { %v530_v61 = vpop.xlane.xlu1 %529  ;;  %1838 = vmatprep.subr.bf16.mxu1 %v4711_v11  ;;  %v4719_v59 = vcombine.high %v878_v29, %v882_v38  ;;  %v4718_v60 = vcombine.low %v878_v29, %v882_v38  ;;  %v890_v38 = vld [vmem:[%s9126_s4 + $0x370] sm:$0xff] }
 0x1c5   :  { %v6284_v20 = vsub.f32 %v5950_v58, %v562_v43  ;;  %v6287_v42 = vsub.f32 %v5956_v63, %v562_v43  ;;  %v563_v41 = vmul.f32 0.00390625, %v530_v61  ;;  %652 = vadd.xlane.f32.xlu1 %v651_v45  ;;  %1839 = vmatpush1.bf16.msra.mxu1 %v4710_v12  ;;  %v4714_v43 = vcombine.low %v876_v25, %v880_v28  ;;  %v884_v12 = vld [vmem:[%s9126_s4 + $0x340] sm:$0xff] }
 0x1c6   :  { %v4715_v45 = vcombine.high %v876_v25, %v880_v28  ;;  %1840 = vmatprep.subr.bf16.mxu1 %v4719_v59  ;;  %v888_v25 = vld [vmem:[%s9126_s4 + $0x360] sm:$0xff]  ;;  %v886_v28 = vld [vmem:[%s9126_s4 + $0x350] sm:$0xff] }
 0x1c7   :  { %v6299_v30 = vsub.f32 %v5959_v1, %v563_v41  ;;  %v6302_v33 = vsub.f32 %v5961_v2, %v563_v41  ;;  %v616_v34 = vmul.f32 %v6284_v20, %v6284_v20  ;;  %v617_v37 = vmul.f32 %v6287_v42, %v6287_v42 }
 0x1c8   :  { %1614 = vmatprep.subr.bf16.mxu0 %v4715_v45  ;;  %v4722_v59 = vcombine.low %v884_v12, %v888_v25  ;;  %v4727_v2 = vcombine.high %v886_v28, %v890_v38  ;;  %v4726_v1 = vcombine.low %v886_v28, %v890_v38 }
 0x1c9   :  { %v654_v61 = vadd.f32 %v617_v37, %v616_v34  ;;  %v618_v41 = vmul.f32 %v6299_v30, %v6299_v30  ;;  %v619_v7 = vmul.f32 %v6302_v33, %v6302_v33  ;;  %1615 = vmatpush1.bf16.msra.mxu0 %v4714_v43  ;;  %v4723_v37 = vcombine.high %v884_v12, %v888_v25  ;;  %v892_v43 = vld [vmem:[%s9126_s4 + $0x380] sm:$0xff]  ;;  %v898_v25 = vld [vmem:[%s9126_s4 + $0x3b0] sm:$0xff] }
 0x1ca   :  { %v533_v11 = vpop.xlane.xlu0 %532  ;;  %1841 = vmatpush1.bf16.msra.mxu1 %v4718_v60  ;;  %v896_v60 = vld [vmem:[%s9126_s4 + $0x3a0] sm:$0xff] }
 0x1cb   :  { %v564_v29 = vmul.f32 0.00390625, %v533_v11  ;;  %655 = vadd.xlane.f32.xlu0 %v654_v61  ;;  %v657_v34 = vadd.f32 %v619_v7, %v618_v41  ;;  %1616 = vmatprep.subr.bf16.mxu0 %v4723_v37  ;;  %v894_v61 = vld [vmem:[%s9126_s4 + $0x390] sm:$0xff]  ;;  %v4730_v28 = vcombine.low %v892_v43, %v896_v60 }
 0x1cc   :  { %v536_v45 = vpop.xlane.xlu1 %535  ;;  %1842 = vmatprep.subr.bf16.mxu1 %v4727_v2  ;;  %v4734_v37 = vcombine.low %v894_v61, %v898_v25 }
 0x1cd   :  { %v6328_v63 = vsub.f32 %v5978_v17, %v564_v29  ;;  %v6331_v58 = vsub.f32 %v5984_v22, %v564_v29  ;;  %v565_v11 = vmul.f32 0.00390625, %v536_v45  ;;  %658 = vadd.xlane.f32.xlu1 %v657_v34  ;;  %1617 = vmatpush1.bf16.msra.mxu0 %v4722_v59  ;;  %v4731_v29 = vcombine.high %v892_v43, %v896_v60  ;;  %v900_v59 = vld [vmem:[%s9126_s4 + $0x3c0] sm:$0xff]  ;;  %v902_v43 = vld [vmem:[%s9126_s4 + $0x3d0] sm:$0xff] }
 0x1ce   :  { %1843 = vmatpush1.bf16.msra.mxu1 %v4726_v1  ;;  %v4735_v34 = vcombine.high %v894_v61, %v898_v25  ;;  %v904_v1 = vld [vmem:[%s9126_s4 + $0x3e0] sm:$0xff] }
 0x1cf   :  { %v6343_v41 = vsub.f32 %v5987_v26, %v565_v11  ;;  %v6346_v7 = vsub.f32 %v5989_v27, %v565_v11  ;;  %v620_v2 = vmul.f32 %v6328_v63, %v6328_v63  ;;  %v621_v12 = vmul.f32 %v6331_v58, %v6331_v58  ;;  %1618 = vmatprep.subr.bf16.mxu0 %v4731_v29 }
 0x1d0   :  { %1844 = vmatprep.subr.bf16.mxu1 %v4735_v34  ;;  %v4738_v29 = vcombine.low %v900_v59, %v904_v1 }
 0x1d1   :  { %v660_v38 = vadd.f32 %v621_v12, %v620_v2  ;;  %v622_v45 = vmul.f32 %v6343_v41, %v6343_v41  ;;  %v623_v11 = vmul.f32 %v6346_v7, %v6346_v7  ;;  %1619 = vmatpush1.bf16.msra.mxu0 %v4730_v28  ;;  %v4739_v2 = vcombine.high %v900_v59, %v904_v1  ;;  %v906_v12 = vld [vmem:[%s9126_s4 + $0x3f0] sm:$0xff]  ;;  %v6380_v28 = vld [vmem:[%s9126_s4 + $0x8] sm:$0xff] }
 0x1d2   :  { %v539_v27 = vpop.xlane.xlu0 %538  ;;  %1845 = vmatpush1.bf16.msra.mxu1 %v4734_v37  ;;  %v4743_v34 = vcombine.high %v902_v43, %v906_v12  ;;  %v4742_v26 = vcombine.low %v902_v43, %v906_v12  ;;  %v6385_v37 = vld [vmem:[%s9126_s4 + $0x28] sm:$0xff] }
 0x1d3   :  { %v566_v60 = vmul.f32 0.00390625, %v539_v27  ;;  %661 = vadd.xlane.f32.xlu0 %v660_v38  ;;  %v663_v61 = vadd.f32 %v623_v11, %v622_v45  ;;  %1620 = vmatprep.subr.bf16.mxu0 %v4739_v2  ;;  %v4621_v43 = vcombine.high %v6380_v28, %v6385_v37 }
 0x1d4   :  { %v542_v25 = vpop.xlane.xlu1 %541  ;;  %1846 = vmatprep.subr.bf16.mxu1 %v4743_v34 }
 0x1d5   :  { %v6372_v22 = vsub.f32 %v6006_v40, %v566_v60  ;;  %v6375_v17 = vsub.f32 %v6012_v46, %v566_v60  ;;  %v567_v27 = vmul.f32 0.00390625, %v542_v25  ;;  %664 = vadd.xlane.f32.xlu1 %v663_v61  ;;  %1621 = vmatpush1.bf16.msra.mxu0 %v4738_v29 }
 0x1d6   :  { %1847 = vmatpush1.bf16.msra.mxu1 %v4742_v26  ;;  %1703 = vmatprep.subr.bf16.mxu0 %v4621_v43 }
 0x1d7   :  { %v6388_v38 = vsub.f32 %v6015_v48, %v567_v27  ;;  %v6391_v45 = vsub.f32 %v6017_v51, %v567_v27  ;;  %v624_v11 = vmul.f32 %v6372_v22, %v6372_v22  ;;  %v625_v59 = vmul.f32 %v6375_v17, %v6375_v17 }
 0x1d9   :  { %v666_v60 = vadd.f32 %v625_v59, %v624_v11  ;;  %v626_v61 = vmul.f32 %v6388_v38, %v6388_v38  ;;  %v627_v2 = vmul.f32 %v6391_v45, %v6391_v45 }
 0x1da   :  { %v545_v12 = vpop.xlane.xlu0 %544 }
 0x1db   :  { %v568_v25 = vmul.f32 0.00390625, %v545_v12  ;;  %667 = vadd.xlane.f32.xlu0 %v666_v60  ;;  %v669_v34 = vadd.f32 %v627_v2, %v626_v61 }
 0x1dc   :  { %v548_v29 = vpop.xlane.xlu1 %547 }
 0x1dd   :  { %v6406_v26 = vsub.f32 %v6034_v9, %v568_v25  ;;  %v6409_v27 = vsub.f32 %v6040_v13, %v568_v25  ;;  %v569_v1 = vmul.f32 0.00390625, %v548_v29  ;;  %670 = vadd.xlane.f32.xlu1 %v669_v34 }
 0x1df   :  { %v6412_v11 = vsub.f32 %v6043_v15, %v569_v1  ;;  %v6415_v59 = vsub.f32 %v6045_v18, %v569_v1  ;;  %v628_v43 = vmul.f32 %v6406_v26, %v6406_v26  ;;  %v629_v60 = vmul.f32 %v6409_v27, %v6409_v27 }
 0x1e1   :  { %v672_v61 = vadd.f32 %v629_v60, %v628_v43  ;;  %v630_v2 = vmul.f32 %v6412_v11, %v6412_v11  ;;  %v631_v12 = vmul.f32 %v6415_v59, %v6415_v59 }
 0x1e2   :  { %v551_v25 = vpop.xlane.xlu0 %550 }
 0x1e3   :  { %v570_v34 = vmul.f32 0.00390625, %v551_v25  ;;  %673 = vadd.xlane.f32.xlu0 %v672_v61  ;;  %v675_v29 = vadd.f32 %v631_v12, %v630_v2 }
 0x1e4   :  { %v554_v15 = vpop.xlane.xlu1 %553 }
 0x1e5   :  { %v6426_v1 = vsub.f32 %v6062_v36, %v570_v34  ;;  %v6429_v18 = vsub.f32 %v6068_v44, %v570_v34  ;;  %v571_v13 = vmul.f32 0.00390625, %v554_v15  ;;  %676 = vadd.xlane.f32.xlu1 %v675_v29 }
 0x1e7   :  { %v6432_v43 = vsub.f32 %v6071_v47, %v571_v13  ;;  %v6435_v60 = vsub.f32 %v6073_v55, %v571_v13  ;;  %v632_v25 = vmul.f32 %v6426_v1, %v6426_v1  ;;  %v633_v61 = vmul.f32 %v6429_v18, %v6429_v18 }
 0x1e9   :  { %v678_v2 = vadd.f32 %v633_v61, %v632_v25  ;;  %v634_v12 = vmul.f32 %v6432_v43, %v6432_v43  ;;  %v635_v15 = vmul.f32 %v6435_v60, %v6435_v60 }
 0x1eb   :  { %679 = vadd.xlane.f32.xlu0 %v678_v2  ;;  %v681_v34 = vadd.f32 %v635_v15, %v634_v12 }
 0x1ed   :  { %682 = vadd.xlane.f32.xlu1 %v681_v34 }
 0x240   :  { %v638_v29 = vpop.xlane.xlu0 %637 }
 0x241   :  { %v684_v47 = vmul.f32 0.00390625, %v638_v29 }
 0x243   :  { %v700_v13 = vadd.f32 1e-05, %v684_v47 }
 0x244   :  { %v641_v55 = vpop.xlane.xlu1 %640 }
 0x245   :  { %v685_v44 = vmul.f32 0.00390625, %v641_v55  ;;  %5301 = vrsqrt.f32 %v700_v13 }
 0x247   :  { %v701_v36 = vadd.f32 1e-05, %v685_v44 }
 0x248   :  { %v644_v9 = vpop.xlane.xlu0 %643 }
 0x249   :  { %5303 = vrsqrt.f32 %v701_v36  ;;  %v686_v51 = vmul.f32 0.00390625, %v644_v9 }
 0x24b   :  { %v702_v25 = vadd.f32 1e-05, %v686_v51 }
 0x24c   :  { %v647_v61 = vpop.xlane.xlu1 %646 }
 0x24d   :  { %v687_v48 = vmul.f32 0.00390625, %v647_v61  ;;  %5305 = vrsqrt.f32 %v702_v25  ;;  %v9249_v25 = vcombine.low %v6380_v28, %v6385_v37  ;;  %v805_v28 = vld [vmem:[%s9126_s4 + $0xc8] sm:$0xff] }
 0x24e   :  { %v809_v37 = vld [vmem:[%s9126_s4 + $0xe8] sm:$0xff] }
 0x24f   :  { %v703_v46 = vadd.f32 1e-05, %v687_v48  ;;  %v5302_v39 = vpop.eup %5301  ;;  %v789_v48 = vld [vmem:[%s9126_s4 + $0x48] sm:$0xff] }
 0x250   :  { %v650_v40 = vpop.xlane.xlu0 %649  ;;  %v732_v55 = vmul.f32 %v5302_v39, %v6206_v53  ;;  %v733_v36 = vmul.f32 %v5302_v39, %v6209_v57  ;;  %v797_v57 = vld [vmem:[%s9126_s4 + $0x88] sm:$0xff] }
 0x251   :  { %5307 = vrsqrt.f32 %v703_v46  ;;  %v688_v2 = vmul.f32 0.00390625, %v650_v40  ;;  %v793_v40 = vld [vmem:[%s9126_s4 + $0x68] sm:$0xff] }
 0x252   :  { %v653_v12 = vpop.xlane.xlu1 %652  ;;  %v4629_v53 = vcombine.high %v789_v48, %v793_v40 }
 0x253   :  { %v5304_v15 = vpop.eup %5303  ;;  %v704_v34 = vadd.f32 1e-05, %v688_v2  ;;  %v689_v47 = vmul.f32 0.00390625, %v653_v12  ;;  %v4628_v2 = vcombine.low %v789_v48, %v793_v40 }
 0x254   :  { %v734_v44 = vmul.f32 %v5304_v15, %v6216_v0  ;;  %v735_v51 = vmul.f32 %v5304_v15, %v6219_v4  ;;  %v801_v0 = vld [vmem:[%s9126_s4 + $0xa8] sm:$0xff] }
 0x255   :  { %5309 = vrsqrt.f32 %v704_v34  ;;  %v705_v46 = vadd.f32 1e-05, %v689_v47  ;;  %v4637_v47 = vcombine.high %v797_v57, %v801_v0 }
 0x256   :  { %v6455_v9 = vpack.c.bf16 %v735_v51, %v733_v36  ;;  %v6457_v29 = vpack.c.bf16 %v734_v44, %v732_v55 }
 0x257   :  { %5311 = vrsqrt.f32 %v705_v46  ;;  %v5306_v4 = vpop.eup %5305 }
 0x258   :  { %1622 = vmatprep.mubr.bf16.mxu0 %v6455_v9  ;;  %1848 = vmatprep.mubr.bf16.mxu1 %v6455_v9  ;;  %v656_v39 = vpop.xlane.xlu0 %655  ;;  %v737_v55 = vmul.f32 %v5306_v4, %v6229_v19  ;;  %v736_v36 = vmul.f32 %v5306_v4, %v6226_v14  ;;  %v4636_v19 = vcombine.low %v797_v57, %v801_v0 }
 0x259   :  { %v690_v13 = vmul.f32 0.00390625, %v656_v39  ;;  %1623 = vmatmul.mubr.bf16.vlgmr.msra.gmra.mrb[32].mxu0 %v6457_v29  ;;  %1849 = vmatmul.mubr.bf16.vlgmr.msra.gmra.mrb[0].mxu1 %v6457_v29  ;;  %v4645_v14 = vcombine.high %v805_v28, %v809_v37  ;;  %v817_v39 = vld [vmem:[%s9126_s4 + $0x128] sm:$0xff] }
 0x25a   :  { %1704 = vmatpush1.bf16.msra.mxu0 %v9249_v25  ;;  %v659_v61 = vpop.xlane.xlu1 %658 }
 0x25b   :  { %v5308_v12 = vpop.eup %5307  ;;  %v706_v15 = vadd.f32 1e-05, %v690_v13  ;;  %v691_v34 = vmul.f32 0.00390625, %v659_v61  ;;  %1705 = vmatprep.subr.bf16.mxu0 %v4629_v53  ;;  %v813_v53 = vld [vmem:[%s9126_s4 + $0x108] sm:$0xff]  ;;  %v4644_v13 = vcombine.low %v805_v28, %v809_v37 }
 0x25c   :  { %v739_v44 = vmul.f32 %v5308_v12, %v6239_v32  ;;  %v738_v51 = vmul.f32 %v5308_v12, %v6236_v31 }
 0x25d   :  { %5313 = vrsqrt.f32 %v706_v15  ;;  %v707_v48 = vadd.f32 1e-05, %v691_v34  ;;  %v4653_v15 = vcombine.high %v813_v53, %v817_v39 }
 0x25e   :  { %1706 = vmatpush1.bf16.msra.mxu0 %v4628_v2  ;;  %v6482_v40 = vpack.c.bf16 %v739_v44, %v737_v55  ;;  %v6484_v46 = vpack.c.bf16 %v738_v51, %v736_v36  ;;  %v821_v55 = vld [vmem:[%s9126_s4 + $0x148] sm:$0xff]  ;;  %v4652_v36 = vcombine.low %v813_v53, %v817_v39 }
 0x25f   :  { %v5310_v32 = vpop.eup %5309  ;;  %5315 = vrsqrt.f32 %v707_v48  ;;  %1707 = vmatprep.subr.bf16.mxu0 %v4637_v47  ;;  %v825_v44 = vld [vmem:[%s9126_s4 + $0x168] sm:$0xff] }
 0x260   :  { %1632 = vmatprep.mubr.bf16.mxu0 %v6482_v40  ;;  %1858 = vmatprep.mubr.bf16.mxu1 %v6482_v40  ;;  %v662_v31 = vpop.xlane.xlu0 %661  ;;  %v741_v25 = vmul.f32 %v5310_v32, %v6249_v54  ;;  %v4661_v28 = vcombine.high %v821_v55, %v825_v44  ;;  %v829_v48 = vld [vmem:[%s9126_s4 + $0x188] sm:$0xff] }
 0x261   :  { %v5312_v57 = vpop.eup %5311  ;;  %v692_v0 = vmul.f32 0.00390625, %v662_v31  ;;  %1633 = vmatmul.mubr.bf16.gmra.mrb[36].mxu0 %v6484_v46  ;;  %1859 = vmatmul.mubr.bf16.gmra.mrb[4].mxu1 %v6484_v46  ;;  %v4660_v31 = vcombine.low %v821_v55, %v825_v44  ;;  %v845_v44 = vld [vmem:[%s9126_s4 + $0x208] sm:$0xff] }
 0x262   :  { %1708 = vmatpush1.bf16.msra.mxu0 %v4636_v19  ;;  %v665_v4 = vpop.xlane.xlu1 %664  ;;  %v743_v61 = vmul.f32 %v5312_v57, %v6261_v10  ;;  %v742_v34 = vmul.f32 %v5312_v57, %v6258_v8  ;;  %v740_v10 = vmul.f32 %v5310_v32, %v6246_v56  ;;  %v833_v56 = vld [vmem:[%s9126_s4 + $0x1a8] sm:$0xff] }
 0x263   :  { %v708_v2 = vadd.f32 1e-05, %v692_v0  ;;  %v693_v12 = vmul.f32 0.00390625, %v665_v4  ;;  %1709 = vmatprep.subr.bf16.mxu0 %v4645_v14  ;;  %v4669_v4 = vcombine.high %v829_v48, %v833_v56 }
 0x264   :  { %v6499_v47 = vpack.c.bf16 %v743_v61, %v741_v25  ;;  %v6510_v8 = vpack.c.bf16 %v742_v34, %v740_v10  ;;  %v837_v61 = vld [vmem:[%s9126_s4 + $0x1c8] sm:$0xff] }
 0x265   :  { %5317 = vrsqrt.f32 %v708_v2  ;;  %v709_v54 = vadd.f32 1e-05, %v693_v12  ;;  %v841_v2 = vld [vmem:[%s9126_s4 + $0x1e8] sm:$0xff]  ;;  %v4668_v12 = vcombine.low %v829_v48, %v833_v56 }
 0x266   :  { %1710 = vmatpush1.bf16.msra.mxu0 %v4644_v13  ;;  %1642 = vmatprep.mubr.bf16.mxu0 %v6499_v47  ;;  %v4677_v34 = vcombine.high %v837_v61, %v841_v2 }
 0x267   :  { %v5314_v51 = vpop.eup %5313  ;;  %5319 = vrsqrt.f32 %v709_v54  ;;  %1868 = vmatprep.mubr.bf16.mxu1 %v6499_v47  ;;  %1711 = vmatprep.subr.bf16.mxu0 %v4653_v15 }
 0x268   :  { %v668_v37 = vpop.xlane.xlu0 %667  ;;  %v745_v53 = vmul.f32 %v5314_v51, %v6287_v42 }
 0x269   :  { %v5316_v19 = vpop.eup %5315  ;;  %v694_v32 = vmul.f32 0.00390625, %v668_v37  ;;  %1643 = vmatmul.mubr.bf16.gmra.mrb[40].mxu0 %v6510_v8  ;;  %1869 = vmatmul.mubr.bf16.gmra.mrb[8].mxu1 %v6510_v8 }
 0x26a   :  { %1712 = vmatpush1.bf16.msra.mxu0 %v4652_v36  ;;  %v671_v14 = vpop.xlane.xlu1 %670  ;;  %v747_v39 = vmul.f32 %v5316_v19, %v6302_v33  ;;  %v746_v13 = vmul.f32 %v5316_v19, %v6299_v30  ;;  %v744_v33 = vmul.f32 %v5314_v51, %v6284_v20  ;;  %v849_v20 = vld [vmem:[%s9126_s4 + $0x228] sm:$0xff]  ;;  %v4676_v51 = vcombine.low %v837_v61, %v841_v2 }
 0x26b   :  { %v710_v57 = vadd.f32 1e-05, %v694_v32  ;;  %v695_v0 = vmul.f32 0.00390625, %v671_v14  ;;  %1713 = vmatprep.subr.bf16.mxu0 %v4661_v28  ;;  %v4685_v19 = vcombine.high %v845_v44, %v849_v20 }
 0x26c   :  { %v6523_v25 = vpack.c.bf16 %v747_v39, %v745_v53  ;;  %v6534_v30 = vpack.c.bf16 %v746_v13, %v744_v33  ;;  %v857_v53 = vld [vmem:[%s9126_s4 + $0x268] sm:$0xff]  ;;  %v4684_v39 = vcombine.low %v845_v44, %v849_v20 }
 0x26d   :  { %5321 = vrsqrt.f32 %v710_v57  ;;  %v711_v42 = vadd.f32 1e-05, %v695_v0  ;;  %v861_v13 = vld [vmem:[%s9126_s4 + $0x288] sm:$0xff] }
 0x26e   :  { %1714 = vmatpush1.bf16.msra.mxu0 %v4660_v31  ;;  %1652 = vmatprep.mubr.bf16.mxu0 %v6523_v25  ;;  %v853_v31 = vld [vmem:[%s9126_s4 + $0x248] sm:$0xff] }
 0x26f   :  { %v5318_v15 = vpop.eup %5317  ;;  %5323 = vrsqrt.f32 %v711_v42  ;;  %1878 = vmatprep.mubr.bf16.mxu1 %v6523_v25  ;;  %1715 = vmatprep.subr.bf16.mxu0 %v4669_v4  ;;  %v4693_v0 = vcombine.high %v853_v31, %v857_v53  ;;  %v4692_v33 = vcombine.low %v853_v31, %v857_v53 }
 0x270   :  { %v674_v55 = vpop.xlane.xlu0 %673  ;;  %v749_v28 = vmul.f32 %v5318_v15, %v6331_v58 }
 0x271   :  { %v5320_v54 = vpop.eup %5319  ;;  %v696_v10 = vmul.f32 0.00390625, %v674_v55  ;;  %1653 = vmatmul.mubr.bf16.gmra.mrb[44].mxu0 %v6534_v30  ;;  %1879 = vmatmul.mubr.bf16.gmra.mrb[12].mxu1 %v6534_v30 }
 0x272   :  { %1716 = vmatpush1.bf16.msra.mxu0 %v4668_v12  ;;  %v677_v36 = vpop.xlane.xlu1 %676  ;;  %v751_v37 = vmul.f32 %v5320_v54, %v6346_v7  ;;  %v750_v32 = vmul.f32 %v5320_v54, %v6343_v41  ;;  %v748_v7 = vmul.f32 %v5318_v15, %v6328_v63  ;;  %v865_v63 = vld [vmem:[%s9126_s4 + $0x2a8] sm:$0xff] }
 0x273   :  { %v712_v48 = vadd.f32 1e-05, %v696_v10  ;;  %v697_v56 = vmul.f32 0.00390625, %v677_v36  ;;  %1717 = vmatprep.subr.bf16.mxu0 %v4677_v34  ;;  %v4701_v44 = vcombine.high %v861_v13, %v865_v63  ;;  %v869_v10 = vld [vmem:[%s9126_s4 + $0x2c8] sm:$0xff] }
 0x274   :  { %v6547_v14 = vpack.c.bf16 %v751_v37, %v749_v28  ;;  %v6558_v41 = vpack.c.bf16 %v750_v32, %v748_v7  ;;  %v873_v36 = vld [vmem:[%s9126_s4 + $0x2e8] sm:$0xff] }
 0x275   :  { %5325 = vrsqrt.f32 %v712_v48  ;;  %v713_v58 = vadd.f32 1e-05, %v697_v56  ;;  %v4709_v37 = vcombine.high %v869_v10, %v873_v36  ;;  %v877_v48 = vld [vmem:[%s9126_s4 + $0x308] sm:$0xff] }
 0x276   :  { %1718 = vmatpush1.bf16.msra.mxu0 %v4676_v51  ;;  %1662 = vmatprep.mubr.bf16.mxu0 %v6547_v14  ;;  %v4700_v51 = vcombine.low %v861_v13, %v865_v63  ;;  %v893_v13 = vld [vmem:[%s9126_s4 + $0x388] sm:$0xff] }
 0x277   :  { %v5322_v57 = vpop.eup %5321  ;;  %5327 = vrsqrt.f32 %v713_v58  ;;  %1888 = vmatprep.mubr.bf16.mxu1 %v6547_v14  ;;  %1719 = vmatprep.subr.bf16.mxu0 %v4685_v19  ;;  %v4708_v19 = vcombine.low %v869_v10, %v873_v36  ;;  %v897_v63 = vld [vmem:[%s9126_s4 + $0x3a8] sm:$0xff]  ;;  %v783_v36 = vld [vmem:[%s9126_s4 + $0x18] sm:$0xff] }
 0x278   :  { %v680_v4 = vpop.xlane.xlu0 %679  ;;  %v753_v12 = vmul.f32 %v5322_v57, %v6375_v17 }
 0x279   :  { %v5324_v61 = vpop.eup %5323  ;;  %v698_v2 = vmul.f32 0.00390625, %v680_v4  ;;  %1663 = vmatmul.mubr.bf16.gmra.mrb[48].mxu0 %v6558_v41  ;;  %1889 = vmatmul.mubr.bf16.gmra.mrb[16].mxu1 %v6558_v41 }
 0x27a   :  { %1720 = vmatpush1.bf16.msra.mxu0 %v4684_v39  ;;  %v683_v42 = vpop.xlane.xlu1 %682  ;;  %v755_v15 = vmul.f32 %v5324_v61, %v6391_v45  ;;  %v754_v20 = vmul.f32 %v5324_v61, %v6388_v38  ;;  %v752_v45 = vmul.f32 %v5322_v57, %v6372_v22  ;;  %v881_v22 = vld [vmem:[%s9126_s4 + $0x328] sm:$0xff] }
 0x27b   :  { %v714_v34 = vadd.f32 1e-05, %v698_v2  ;;  %v699_v55 = vmul.f32 0.00390625, %v683_v42  ;;  %1721 = vmatprep.subr.bf16.mxu0 %v4693_v0  ;;  %v4717_v53 = vcombine.high %v877_v48, %v881_v22  ;;  %v885_v39 = vld [vmem:[%s9126_s4 + $0x348] sm:$0xff] }
 0x27c   :  { %v6571_v54 = vpack.c.bf16 %v755_v15, %v753_v12  ;;  %v6582_v38 = vpack.c.bf16 %v754_v20, %v752_v45  ;;  %v889_v57 = vld [vmem:[%s9126_s4 + $0x368] sm:$0xff]  ;;  %v4733_v15 = vcombine.high %v893_v13, %v897_v63  ;;  %v4732_v20 = vcombine.low %v893_v13, %v897_v63  ;;  %v5114_v45 = vld [vmem:[%s9128_s6 + $0x14] ss:$8 sps:$4 sm:$0xff]  }
 0x27d   :  { %5329 = vrsqrt.f32 %v714_v34  ;;  %v715_v17 = vadd.f32 1e-05, %v699_v55  ;;  %v4725_v4 = vcombine.high %v885_v39, %v889_v57  ;;  %v4724_v61 = vcombine.low %v885_v39, %v889_v57  ;;  %v5111_v12 = vld [vmem:[%s9128_s6 + $0x4] ss:$8 sps:$4 sm:$0xff]   ;;  %v5118_v39 = vld [vmem:[%s9128_s6 + $0x30] ss:$8 sps:$4 sm:$0xff]  }
 0x27e   :  { %1722 = vmatpush1.bf16.msra.mxu0 %v4692_v33  ;;  %1672 = vmatprep.mubr.bf16.mxu0 %v6571_v54  ;;  %v5109_v33 = vld [vmem:[%s9128_s6] ss:$8 sps:$4 sm:$0xff]   ;;  %v5123_v57 = vld [vmem:[%s9128_s6 + $0x44] ss:$8 sps:$4 sm:$0xff]   ;;  %v5126_v63 = vld [vmem:[%s9128_s6 + $0x54] ss:$8 sps:$4 sm:$0xff]  }
 0x27f   :  { %v5326_v28 = vpop.eup %5325  ;;  %5331 = vrsqrt.f32 %v715_v17  ;;  %1898 = vmatprep.mubr.bf16.mxu1 %v6571_v54  ;;  %1723 = vmatprep.subr.bf16.mxu0 %v4701_v44  ;;  %v787_v17 = vld [vmem:[%s9126_s4 + $0x38] sm:$0xff]  ;;  %v5121_v13 = vld [vmem:[%s9128_s6 + $0x40] ss:$8 sps:$4 sm:$0xff]  }
 0x280   :  { %v757_v32 = vmul.f32 %v5326_v28, %v6409_v27  ;;  %v756_v0 = vmul.f32 %v5326_v28, %v6406_v26  ;;  %v4716_v27 = vcombine.low %v877_v48, %v881_v22  ;;  %4038 = vmatprep.subr.bf16.mxu1 %v5111_v12  ;;  %v5117_v28 = vld [vmem:[%s9128_s6 + $0x24] ss:$8 sps:$4 sm:$0xff]   ;;  %v791_v48 = vld [vmem:[%s9126_s4 + $0x58] sm:$0xff] }
 0x281   :  { %v5328_v56 = vpop.eup %5327  ;;  %1673 = vmatmul.mubr.bf16.gmra.mrb[52].mxu0 %v6582_v38  ;;  %1899 = vmatmul.mubr.bf16.gmra.mrb[20].mxu1 %v6582_v38  ;;  %v795_v22 = vld [vmem:[%s9126_s4 + $0x78] sm:$0xff]  ;;  %v5129_v12 = vld [vmem:[%s9128_s6 + $0x64] ss:$8 sps:$4 sm:$0xff]  }
 0x282   :  { %1724 = vmatpush1.bf16.msra.mxu0 %v4700_v51  ;;  %v759_v31 = vmul.f32 %v5328_v56, %v6415_v59  ;;  %v758_v58 = vmul.f32 %v5328_v56, %v6412_v11  ;;  %4039 = vmatpush1.bf16.msra.mxu1 %v5109_v33  ;;  %v5115_v56 = vld [vmem:[%s9128_s6 + $0x20] ss:$8 sps:$4 sm:$0xff]   ;;  %v5124_v33 = vld [vmem:[%s9128_s6 + $0x50] ss:$8 sps:$4 sm:$0xff]  }
 0x283   :  { %1725 = vmatprep.subr.bf16.mxu0 %v4709_v37  ;;  %v4625_v37 = vcombine.high %v783_v36, %v787_v17  ;;  %4040 = vmatprep.subr.bf16.mxu1 %v5114_v45  ;;  %v5130_v45 = vld [vmem:[%s9128_s6 + $0x70] ss:$8 sps:$4 sm:$0xff]  }
 0x284   :  { %v6595_v7 = vpack.c.bf16 %v759_v31, %v757_v32  ;;  %v6606_v11 = vpack.c.bf16 %v758_v58, %v756_v0  ;;  %v4624_v32 = vcombine.low %v783_v36, %v787_v17  ;;  %v4633_v31 = vcombine.high %v791_v48, %v795_v22  ;;  %v803_v58 = vld [vmem:[%s9126_s4 + $0xb8] sm:$0xff] }
 0x285   :  { %v4632_v0 = vcombine.low %v791_v48, %v795_v22  ;;  %v831_v17 = vld [vmem:[%s9126_s4 + $0x198] sm:$0xff] }
 0x286   :  { %1726 = vmatpush1.bf16.msra.mxu0 %v4708_v19  ;;  %1682 = vmatprep.mubr.bf16.mxu0 %v6595_v7  ;;  %v5120_v19 = vld [vmem:[%s9128_s6 + $0x34] ss:$8 sps:$4 sm:$0xff]  }
 0x287   :  { %v5330_v59 = vpop.eup %5329  ;;  %1908 = vmatprep.mubr.bf16.mxu1 %v6595_v7  ;;  %1727 = vmatprep.subr.bf16.mxu0 %v4717_v53  ;;  %v799_v53 = vld [vmem:[%s9126_s4 + $0x98] sm:$0xff] }
 0x288   :  { %v761_v2 = vmul.f32 %v5330_v59, %v6429_v18  ;;  %v901_v18 = vld [vmem:[%s9126_s4 + $0x3c8] sm:$0xff]  ;;  %v760_v44 = vmul.f32 %v5330_v59, %v6426_v1  ;;  %v5112_v1 = vld [vmem:[%s9128_s6 + $0x10] ss:$8 sps:$4 sm:$0xff]  }
 0x289   :  { %v5332_v26 = vpop.eup %5331  ;;  %1683 = vmatmul.mubr.bf16.gmra.mrb[56].mxu0 %v6606_v11  ;;  %1909 = vmatmul.mubr.bf16.gmra.mrb[24].mxu1 %v6606_v11  ;;  %v807_v59 = vld [vmem:[%s9126_s4 + $0xd8] sm:$0xff] }
 0x28a   :  { %1728 = vmatpush1.bf16.msra.mxu0 %v4716_v27  ;;  %v763_v42 = vmul.f32 %v5332_v26, %v6435_v60  ;;  %v762_v34 = vmul.f32 %v5332_v26, %v6432_v43  ;;  %v905_v60 = vld [vmem:[%s9126_s4 + $0x3e8] sm:$0xff]  ;;  %4041 = vmatpush1.bf16.msra.mxu1 %v5112_v1  ;;  %v4641_v27 = vcombine.high %v799_v53, %v803_v58  ;;  %v835_v1 = vld [vmem:[%s9126_s4 + $0x1b8] sm:$0xff] }
 0x28b   :  { %1729 = vmatprep.subr.bf16.mxu0 %v4725_v4  ;;  %v4741_v10 = vcombine.high %v901_v18, %v905_v60  ;;  %v4740_v51 = vcombine.low %v901_v18, %v905_v60  ;;  %4042 = vmatprep.subr.bf16.mxu1 %v5117_v28  ;;  %v811_v4 = vld [vmem:[%s9126_s4 + $0xf8] sm:$0xff]  ;;  %v4640_v26 = vcombine.low %v799_v53, %v803_v58  ;;  %v5135_v53 = vld [vmem:[%s9128_s6 + $0x84] ss:$8 sps:$4 sm:$0xff]  }
 0x28c   :  { %v6625_v55 = vpack.c.bf16 %v763_v42, %v761_v2  ;;  %v6636_v43 = vpack.c.bf16 %v762_v34, %v760_v44  ;;  %v815_v2 = vld [vmem:[%s9126_s4 + $0x118] sm:$0xff]  ;;  %v5127_v44 = vld [vmem:[%s9128_s6 + $0x60] ss:$8 sps:$4 sm:$0xff]   ;;  %v4673_v28 = vcombine.high %v831_v17, %v835_v1  ;;  %v4672_v22 = vcombine.low %v831_v17, %v835_v1 }
 0x28d   :  { %v819_v42 = vld [vmem:[%s9126_s4 + $0x138] sm:$0xff]  ;;  %v5139_v17 = vld [vmem:[%s9128_s6 + $0xa0] ss:$8 sps:$4 sm:$0xff]  }
 0x28e   :  { %1730 = vmatpush1.bf16.msra.mxu0 %v4724_v61  ;;  %1692 = vmatprep.mubr.bf16.mxu0 %v6625_v55  ;;  %v4649_v61 = vcombine.high %v807_v59, %v811_v4  ;;  %v4657_v34 = vcombine.high %v815_v2, %v819_v42  ;;  %v823_v18 = vld [vmem:[%s9126_s4 + $0x158] sm:$0xff] }
 0x28f   :  { %1918 = vmatprep.mubr.bf16.mxu1 %v6625_v55  ;;  %1731 = vmatprep.subr.bf16.mxu0 %v4733_v15  ;;  %v4648_v15 = vcombine.low %v807_v59, %v811_v4  ;;  %v827_v60 = vld [vmem:[%s9126_s4 + $0x178] sm:$0xff] }
 0x290   :  { %4043 = vmatpush1.bf16.msra.mxu1 %v5115_v56  ;;  %v4665_v36 = vcombine.high %v823_v18, %v827_v60  ;;  %v843_v48 = vld [vmem:[%s9126_s4 + $0x1f8] sm:$0xff] }
 0x291   :  { %1693 = vmatmul.mubr.bf16.gmra.mrb[60].mxu0 %v6636_v43  ;;  %1919 = vmatmul.mubr.bf16.gmra.mrb[28].mxu1 %v6636_v43  ;;  %v5138_v59 = vld [vmem:[%s9128_s6 + $0x94] ss:$8 sps:$4 sm:$0xff]  }
 0x292   :  { %1732 = vmatpush1.bf16.msra.mxu0 %v4732_v20  ;;  %1735 = vmatprep.mubr.bf16.mxu0 %v6455_v9  ;;  %v5132_v20 = vld [vmem:[%s9128_s6 + $0x74] ss:$8 sps:$4 sm:$0xff]  }
 0x293   :  { %1733 = vmatprep.subr.bf16.mxu0 %v4741_v10  ;;  %4044 = vmatprep.subr.bf16.mxu1 %v5120_v19  ;;  %v4656_v10 = vcombine.low %v815_v2, %v819_v42  ;;  %v847_v19 = vld [vmem:[%s9126_s4 + $0x218] sm:$0xff] }
 0x294   :  { %4045 = vmatpush1.bf16.msra.mxu1 %v5118_v39  ;;  %v5133_v39 = vld [vmem:[%s9128_s6 + $0x80] ss:$8 sps:$4 sm:$0xff]   ;;  %v871_v42 = vld [vmem:[%s9126_s4 + $0x2d8] sm:$0xff] }
 0x295   :  { %4046 = vmatprep.subr.bf16.mxu1 %v5123_v57  ;;  %v855_v57 = vld [vmem:[%s9126_s4 + $0x258] sm:$0xff] }
 0x296   :  { %1734 = vmatpush1.bf16.msra.mxu0 %v4740_v51  ;;  %v4664_v51 = vcombine.low %v823_v18, %v827_v60  ;;  %v883_v18 = vld [vmem:[%s9126_s4 + $0x338] sm:$0xff] }
 0x297   :  { %1929 = vmatprep.subr.bf16.mxu0 %v4625_v37  ;;  %v839_v37 = vld [vmem:[%s9126_s4 + $0x1d8] sm:$0xff] }
 0x298   :  { %4047 = vmatpush1.bf16.msra.mxu1 %v5121_v13  ;;  %v4681_v56 = vcombine.high %v839_v37, %v843_v48  ;;  %v5136_v13 = vld [vmem:[%s9128_s6 + $0x90] ss:$8 sps:$4 sm:$0xff]  }
 0x299   :  { %1736 = vmatmul.mubr.bf16.vlgmr.msra.gmra.mrb[64].mxu0 %v6457_v29  ;;  %4048 = vmatprep.subr.bf16.mxu1 %v5126_v63  ;;  %v863_v63 = vld [vmem:[%s9126_s4 + $0x298] sm:$0xff] }
 0x29a   :  { %1745 = vmatprep.mubr.bf16.mxu0 %v6482_v40  ;;  %1930 = vmatpush1.bf16.msra.mxu0 %v4624_v32  ;;  %v851_v32 = vld [vmem:[%s9126_s4 + $0x238] sm:$0xff] }
 0x29b   :  { %1931 = vmatprep.subr.bf16.mxu0 %v4633_v31  ;;  %v4680_v31 = vcombine.low %v839_v37, %v843_v48  ;;  %v4689_v58 = vcombine.high %v847_v19, %v851_v32  ;;  %v5144_v37 = vld [vmem:[%s9128_s6 + $0xb4] ss:$8 sps:$4 sm:$0xff]   ;;  %v5142_v48 = vld [vmem:[%s9128_s6 + $0xb0] ss:$8 sps:$4 sm:$0xff]  }
 0x29c   :  { %4049 = vmatpush1.bf16.msra.mxu1 %v5124_v33  ;;  %v875_v33 = vld [vmem:[%s9126_s4 + $0x2f8] sm:$0xff] }
 0x29d   :  { %4050 = vmatprep.subr.bf16.mxu1 %v5129_v12  ;;  %v4712_v60 = vcombine.low %v871_v42, %v875_v33 }
 0x29e   :  { %1932 = vmatpush1.bf16.msra.mxu0 %v4632_v0  ;;  %v859_v0 = vld [vmem:[%s9126_s4 + $0x278] sm:$0xff] }
 0x29f   :  { %1933 = vmatprep.subr.bf16.mxu0 %v4641_v27  ;;  %v4688_v27 = vcombine.low %v847_v19, %v851_v32  ;;  %v4697_v4 = vcombine.high %v855_v57, %v859_v0  ;;  %v903_v19 = vld [vmem:[%s9126_s4 + $0x3d8] sm:$0xff] }
 0x2a0   :  { %4051 = vmatpush1.bf16.msra.mxu1 %v5127_v44  ;;  %v907_v32 = vld [vmem:[%s9126_s4 + $0x3f8] sm:$0xff] }
 0x2a1   :  { %1746 = vmatmul.mubr.bf16.gmra.mrb[68].mxu0 %v6484_v46  ;;  %4052 = vmatprep.subr.bf16.mxu1 %v5132_v20  ;;  %v887_v20 = vld [vmem:[%s9126_s4 + $0x358] sm:$0xff] }
 0x2a2   :  { %1755 = vmatprep.mubr.bf16.mxu0 %v6499_v47  ;;  %1934 = vmatpush1.bf16.msra.mxu0 %v4640_v26  ;;  %v867_v26 = vld [vmem:[%s9126_s4 + $0x2b8] sm:$0xff] }
 0x2a3   :  { %1935 = vmatprep.subr.bf16.mxu0 %v4649_v61  ;;  %v4696_v61 = vcombine.low %v855_v57, %v859_v0  ;;  %v4705_v2 = vcombine.high %v863_v63, %v867_v26  ;;  %v4704_v12 = vcombine.low %v863_v63, %v867_v26  ;;  %v5145_v57 = vld [vmem:[%s9128_s6 + $0xc0] ss:$8 sps:$4 sm:$0xff]   ;;  %v5150_v0 = vld [vmem:[%s9128_s6 + $0xd4] ss:$8 sps:$4 sm:$0xff]  }
 0x2a4   :  { %4053 = vmatpush1.bf16.msra.mxu1 %v5130_v45 }
 0x2a5   :  { %4054 = vmatprep.subr.bf16.mxu1 %v5135_v53  ;;  %v4745_v53 = vcombine.high %v903_v19, %v907_v32 }
 0x2a6   :  { %1936 = vmatpush1.bf16.msra.mxu0 %v4648_v15  ;;  %v4713_v15 = vcombine.high %v871_v42, %v875_v33 }
 0x2a7   :  { %1937 = vmatprep.subr.bf16.mxu0 %v4657_v34  ;;  %v879_v34 = vld [vmem:[%s9126_s4 + $0x318] sm:$0xff] }
 0x2a8   :  { %4055 = vmatpush1.bf16.msra.mxu1 %v5133_v39  ;;  %v4721_v44 = vcombine.high %v879_v34, %v883_v18  ;;  %v4720_v1 = vcombine.low %v879_v34, %v883_v18  ;;  %v5147_v39 = vld [vmem:[%s9128_s6 + $0xc4] ss:$8 sps:$4 sm:$0xff]  }
 0x2a9   :  { %1756 = vmatmul.mubr.bf16.gmra.mrb[72].mxu0 %v6510_v8  ;;  %4056 = vmatprep.subr.bf16.mxu1 %v5138_v59  ;;  %v5151_v59 = vld [vmem:[%s9128_s6 + $0xe0] ss:$8 sps:$4 sm:$0xff]  }
 0x2aa   :  { %1765 = vmatprep.mubr.bf16.mxu0 %v6523_v25  ;;  %1938 = vmatpush1.bf16.msra.mxu0 %v4656_v10  ;;  %v891_v10 = vld [vmem:[%s9126_s4 + $0x378] sm:$0xff] }
 0x2ab   :  { %1939 = vmatprep.subr.bf16.mxu0 %v4665_v36  ;;  %v5141_v36 = vld [vmem:[%s9128_s6 + $0xa4] ss:$8 sps:$4 sm:$0xff]   ;;  %v4729_v45 = vcombine.high %v887_v20, %v891_v10 }
 0x2ac   :  { %4057 = vmatpush1.bf16.msra.mxu1 %v5136_v13 }
 0x2ad   :  { %4058 = vmatprep.subr.bf16.mxu1 %v5141_v36 }
 0x2ae   :  { %1940 = vmatpush1.bf16.msra.mxu0 %v4664_v51  ;;  %v895_v51 = vld [vmem:[%s9126_s4 + $0x398] sm:$0xff] }
 0x2af   :  { %1941 = vmatprep.subr.bf16.mxu0 %v4673_v28  ;;  %v899_v28 = vld [vmem:[%s9126_s4 + $0x3b8] sm:$0xff] }
 0x2b0   :  { %4059 = vmatpush1.bf16.msra.mxu1 %v5139_v17 }
 0x2b1   :  { %1766 = vmatmul.mubr.bf16.gmra.mrb[76].mxu0 %v6534_v30  ;;  %4060 = vmatprep.subr.bf16.mxu1 %v5144_v37 }
 0x2b2   :  { %1775 = vmatprep.mubr.bf16.mxu0 %v6547_v14  ;;  %1942 = vmatpush1.bf16.msra.mxu0 %v4672_v22  ;;  %v4728_v22 = vcombine.low %v887_v20, %v891_v10 }
 0x2b3   :  { %1943 = vmatprep.subr.bf16.mxu0 %v4681_v56  ;;  %v4737_v56 = vcombine.high %v895_v51, %v899_v28 }
 0x2b4   :  { %4061 = vmatpush1.bf16.msra.mxu1 %v5142_v48 }
 0x2b5   :  { %4062 = vmatprep.subr.bf16.mxu1 %v5147_v39 }
 0x2b6   :  { %1944 = vmatpush1.bf16.msra.mxu0 %v4680_v31  ;;  %v4736_v31 = vcombine.low %v895_v51, %v899_v28 }
 0x2b7   :  { %1945 = vmatprep.subr.bf16.mxu0 %v4689_v58  ;;  %v4744_v58 = vcombine.low %v903_v19, %v907_v32 }
 0x2b8   :  { %4063 = vmatpush1.bf16.msra.mxu1 %v5145_v57 }
 0x2b9   :  { %1776 = vmatmul.mubr.bf16.gmra.mrb[80].mxu0 %v6558_v41  ;;  %4064 = vmatprep.subr.bf16.mxu1 %v5150_v0 }
 0x2ba   :  { %1785 = vmatprep.mubr.bf16.mxu0 %v6571_v54  ;;  %1946 = vmatpush1.bf16.msra.mxu0 %v4688_v27  ;;  %v5153_v27 = vld [vmem:[%s9128_s6 + $0xe4] ss:$8 sps:$4 sm:$0xff]  }
 0x2bb   :  { %1947 = vmatprep.subr.bf16.mxu0 %v4697_v4 }
 0x2be   :  { %1948 = vmatpush1.bf16.msra.mxu0 %v4696_v61 }
 0x2bf   :  { %1949 = vmatprep.subr.bf16.mxu0 %v4705_v2 }
 0x2c1   :  { %1786 = vmatmul.mubr.bf16.gmra.mrb[84].mxu0 %v6582_v38 }
 0x2c2   :  { %1795 = vmatprep.mubr.bf16.mxu0 %v6595_v7  ;;  %1950 = vmatpush1.bf16.msra.mxu0 %v4704_v12 }
 0x2c3   :  { %1951 = vmatprep.subr.bf16.mxu0 %v4713_v15 }
 0x2c6   :  { %1952 = vmatpush1.bf16.msra.mxu0 %v4712_v60 }
 0x2c7   :  { %1953 = vmatprep.subr.bf16.mxu0 %v4721_v44 }
 0x2c9   :  { %1796 = vmatmul.mubr.bf16.gmra.mrb[88].mxu0 %v6606_v11 }
 0x2ca   :  { %1805 = vmatprep.mubr.bf16.mxu0 %v6625_v55  ;;  %1954 = vmatpush1.bf16.msra.mxu0 %v4720_v1 }
 0x2cb   :  { %1955 = vmatprep.subr.bf16.mxu0 %v4729_v45 }
 0x2ce   :  { %1956 = vmatpush1.bf16.msra.mxu0 %v4728_v22 }
 0x2cf   :  { %1957 = vmatprep.subr.bf16.mxu0 %v4737_v56 }
 0x2d1   :  { %1806 = vmatmul.mubr.bf16.gmra.mrb[92].mxu0 %v6636_v43 }
 0x2d2   :  { %1958 = vmatpush1.bf16.msra.mxu0 %v4736_v31  ;;  %1961 = vmatprep.mubr.bf16.mxu0 %v6455_v9  ;;  %v5148_v9 = vld [vmem:[%s9128_s6 + $0xd0] ss:$8 sps:$4 sm:$0xff]  }
 0x2d3   :  { %1959 = vmatprep.subr.bf16.mxu0 %v4745_v53  ;;  %4065 = vmatpush1.bf16.msra.mxu1 %v5148_v9 }
 0x2d4   :  { %4066 = vmatprep.subr.bf16.mxu1 %v5153_v27 }
 0x2d6   :  { %1960 = vmatpush1.bf16.msra.mxu0 %v4744_v58 }
 0x2d7   :  { %4067 = vmatpush1.bf16.msra.mxu1 %v5151_v59 }
 0x2d9   :  { %1962 = vmatmul.mubr.bf16.vlgmr.msra.gmra.mrb[96].mxu0 %v6457_v29  ;;  %v5156_v29 = vld [vmem:[%s9128_s6 + $0xf4] ss:$8 sps:$4 sm:$0xff]  }
 0x2da   :  { %1971 = vmatprep.mubr.bf16.mxu0 %v6482_v40  ;;  %v5154_v40 = vld [vmem:[%s9128_s6 + $0xf0] ss:$8 sps:$4 sm:$0xff]   ;;  %4068 = vmatprep.subr.bf16.mxu1 %v5156_v29 }
 0x2db   :  { %4069 = vmatpush1.bf16.msra.mxu1 %v5154_v40 }
 0x2e1   :  { %1972 = vmatmul.mubr.bf16.gmra.mrb[100].mxu0 %v6484_v46  ;;  %v5159_v46 = vld [vmem:[%s9128_s6 + $0x104] ss:$8 sps:$4 sm:$0xff]  }
 0x2e2   :  { %1981 = vmatprep.mubr.bf16.mxu0 %v6499_v47  ;;  %4151 = vmatprep.subr.bf16.mxu1 %v5159_v46  ;;  %v928_v47 = vsub.s32 4, %v5838_v49 }
 0x2e9   :  { %1982 = vmatmul.mubr.bf16.gmra.mrb[104].mxu0 %v6510_v8  ;;  %v908_v8 = vld [vmem:[%s9127_s5] sm:$0xff] }
 0x2ea   :  { %1991 = vmatprep.mubr.bf16.mxu0 %v6523_v25  ;;  %v932_v25 = vsub.s32 5, %v5838_v49 }
 0x2f1   :  { %1992 = vmatmul.mubr.bf16.gmra.mrb[108].mxu0 %v6534_v30  ;;  %v6867_v30 = vrot.slane %v908_v8, %v5841_v50 }
 0x2f2   :  { %2001 = vmatprep.mubr.bf16.mxu0 %v6547_v14  ;;  %v6869_v14 = vrot.slane %v908_v8, %v928_v47 }
 0x2f9   :  { %2002 = vmatmul.mubr.bf16.gmra.mrb[112].mxu0 %v6558_v41  ;;  %v6872_v41 = vrot.slane %v908_v8, %v5847_v52 }
 0x2fa   :  { %2011 = vmatprep.mubr.bf16.mxu0 %v6571_v54  ;;  %v6874_v54 = vrot.slane %v908_v8, %v932_v25 }
 0x301   :  { %2012 = vmatmul.mubr.bf16.gmra.mrb[116].mxu0 %v6582_v38 }
 0x302   :  { %2021 = vmatprep.mubr.bf16.mxu0 %v6595_v7 }
 0x309   :  { %2022 = vmatmul.mubr.bf16.gmra.mrb[120].mxu0 %v6606_v11 }
 0x30a   :  { %2031 = vmatprep.mubr.bf16.mxu0 %v6625_v55 }
 0x311   :  { %2032 = vmatmul.mubr.bf16.gmra.mrb[124].mxu0 %v6636_v43 }
 0x32c   :  { %v1624_v38 = vpop.f32.mrb[32].mxu0  ;;  %v1850_v7 = vpop.f32.mrb[0].mxu1 }
 0x32d   :  { %v6877_v11 = vadd.f32 %v1624_v38, %v6867_v30  ;;  %v6880_v55 = vadd.f32 %v1850_v7, %v6869_v14  ;;  %v1626_v43 = vpop.f32.mrb[33].mxu0  ;;  %v1852_v4 = vpop.f32.mrb[1].mxu1 }
 0x32e   :  { %v6883_v13 = vadd.f32 %v1626_v43, %v6872_v41  ;;  %v6886_v63 = vadd.f32 %v1852_v4, %v6874_v54  ;;  %v1628_v26 = vpop.f32.mrb[34].mxu0  ;;  %v1854_v61 = vpop.f32.mrb[2].mxu1 }
 0x32f   :  { %v2042_v2 = vmul.f32 %v6877_v11, %v6877_v11  ;;  %v2046_v42 = vmul.f32 %v6880_v55, %v6880_v55  ;;  %v6893_v33 = vadd.f32 %v1628_v26, %v6867_v30  ;;  %v6896_v12 = vadd.f32 %v1854_v61, %v6869_v14  ;;  %v1630_v15 = vpop.f32.mrb[35].mxu0  ;;  %v1856_v34 = vpop.f32.mrb[3].mxu1 }
 0x330   :  { %9250 = vst [vmem:[#allocation40_spill] sm:$0xff] %v6886_v63  ;;  %v2043_v18 = vmul.f32 %v6883_v13, %v6883_v13  ;;  %v2047_v60 = vmul.f32 %v6886_v63, %v6886_v63  ;;  %v6903_v44 = vadd.f32 %v1630_v15, %v6872_v41  ;;  %v6906_v20 = vadd.f32 %v1856_v34, %v6874_v54 }
 0x331   :  { %v2170_v10 = vmul.f32 %v2042_v2, %v6877_v11  ;;  %v2174_v36 = vmul.f32 %v2046_v42, %v6880_v55  ;;  %v2050_v17 = vmul.f32 %v6893_v33, %v6893_v33  ;;  %v2054_v1 = vmul.f32 %v6896_v12, %v6896_v12 }
 0x332   :  { %9251 = vst [vmem:[#allocation41_spill] sm:$0xff] %v6906_v20  ;;  %v2171_v45 = vmul.f32 %v2043_v18, %v6883_v13  ;;  %v2175_v51 = vmul.f32 %v2047_v60, %v6886_v63  ;;  %v2051_v28 = vmul.f32 %v6903_v44, %v6903_v44  ;;  %v2055_v37 = vmul.f32 %v6906_v20, %v6906_v20 }
 0x333   :  { %v2298_v48 = vmul.f32 0.044715, %v2170_v10  ;;  %v2302_v22 = vmul.f32 0.044715, %v2174_v36  ;;  %v2178_v56 = vmul.f32 %v2050_v17, %v6893_v33  ;;  %v2182_v19 = vmul.f32 %v2054_v1, %v6896_v12 }
 0x334   :  { %v2299_v32 = vmul.f32 0.044715, %v2171_v45  ;;  %v2303_v31 = vmul.f32 0.044715, %v2175_v51  ;;  %v2179_v53 = vmul.f32 %v2051_v28, %v6903_v44  ;;  %v2183_v58 = vmul.f32 %v2055_v37, %v6906_v20  ;;  %v1634_v39 = vpop.f32.mrb[36].mxu0  ;;  %v1860_v57 = vpop.f32.mrb[4].mxu1 }
 0x335   :  { %v2426_v0 = vadd.f32 %v2298_v48, %v6877_v11  ;;  %v2430_v9 = vadd.f32 %v2302_v22, %v6880_v55  ;;  %v2306_v27 = vmul.f32 0.044715, %v2178_v56  ;;  %v2310_v59 = vmul.f32 0.044715, %v2182_v19  ;;  %v1636_v29 = vpop.f32.mrb[37].mxu0  ;;  %v1862_v40 = vpop.f32.mrb[5].mxu1 }
 0x336   :  { %v2427_v46 = vadd.f32 %v2299_v32, %v6883_v13  ;;  %v2431_v47 = vadd.f32 %v2303_v31, %v6886_v63  ;;  %v2307_v8 = vmul.f32 0.044715, %v2179_v53  ;;  %v2311_v25 = vmul.f32 0.044715, %v2183_v58  ;;  %v1638_v38 = vpop.f32.mrb[38].mxu0  ;;  %v1864_v7 = vpop.f32.mrb[6].mxu1 }
 0x337   :  { %v2554_v43 = vmul.f32 0.7978846, %v2426_v0  ;;  %v2558_v4 = vmul.f32 0.7978846, %v2430_v9  ;;  %v2434_v26 = vadd.f32 %v2306_v27, %v6893_v33  ;;  %v2438_v61 = vadd.f32 %v2310_v59, %v6896_v12  ;;  %v1640_v2 = vpop.f32.mrb[39].mxu0  ;;  %v1866_v42 = vpop.f32.mrb[7].mxu1 }
 0x338   :  { %v2555_v15 = vmul.f32 0.7978846, %v2427_v46  ;;  %v2559_v34 = vmul.f32 0.7978846, %v2431_v47  ;;  %v2435_v18 = vadd.f32 %v2307_v8, %v6903_v44  ;;  %v2439_v60 = vadd.f32 %v2311_v25, %v6906_v20 }
 0x339   :  { %5333 = vtanh.f32 %v2554_v43  ;;  %v2562_v10 = vmul.f32 0.7978846, %v2434_v26  ;;  %v2566_v36 = vmul.f32 0.7978846, %v2438_v61  ;;  %v6933_v17 = vadd.f32 %v1634_v39, %v6867_v30 }
 0x33a   :  { %5335 = vtanh.f32 %v2558_v4  ;;  %v2563_v1 = vmul.f32 0.7978846, %v2435_v18  ;;  %v2567_v45 = vmul.f32 0.7978846, %v2439_v60  ;;  %v6936_v51 = vadd.f32 %v1860_v57, %v6869_v14 }
 0x33b   :  { %5337 = vtanh.f32 %v2555_v15  ;;  %v2058_v28 = vmul.f32 %v6933_v17, %v6933_v17  ;;  %v6941_v37 = vadd.f32 %v1636_v29, %v6872_v41  ;;  %v6944_v48 = vadd.f32 %v1862_v40, %v6874_v54 }
 0x33c   :  { %9252 = vst [vmem:[#allocation42_spill] sm:$0xff] %v6936_v51  ;;  %5339 = vtanh.f32 %v2559_v34  ;;  %v2062_v22 = vmul.f32 %v6936_v51, %v6936_v51  ;;  %v6949_v56 = vadd.f32 %v1638_v38, %v6867_v30  ;;  %v6952_v19 = vadd.f32 %v1864_v7, %v6869_v14  ;;  %v6954_v32 = vpop.f32.mrb[40].mxu0  ;;  %v6956_v31 = vpop.f32.mrb[8].mxu1 }
 0x33d   :  { %9253 = vst [vmem:[#allocation43_spill] sm:$0xff] %v6944_v48  ;;  %5341 = vtanh.f32 %v2562_v10  ;;  %v2186_v53 = vmul.f32 %v2058_v28, %v6933_v17  ;;  %v2059_v58 = vmul.f32 %v6941_v37, %v6941_v37  ;;  %v2063_v39 = vmul.f32 %v6944_v48, %v6944_v48  ;;  %v6963_v57 = vpop.f32.mrb[41].mxu0  ;;  %v6965_v0 = vpop.f32.mrb[9].mxu1 }
 0x33e   :  { %9254 = vst [vmem:[#allocation44_spill] sm:$0xff] %v6952_v19  ;;  %5343 = vtanh.f32 %v2566_v36  ;;  %v2190_v9 = vmul.f32 %v2062_v22, %v6936_v51  ;;  %v2066_v27 = vmul.f32 %v6949_v56, %v6949_v56  ;;  %v2070_v59 = vmul.f32 %v6952_v19, %v6952_v19  ;;  %v6972_v29 = vpop.f32.mrb[42].mxu0  ;;  %v6974_v40 = vpop.f32.mrb[10].mxu1 }
 0x33f   :  { %5345 = vtanh.f32 %v2563_v1  ;;  %v2314_v46 = vmul.f32 0.044715, %v2186_v53  ;;  %v2187_v47 = vmul.f32 %v2059_v58, %v6941_v37  ;;  %v2191_v8 = vmul.f32 %v2063_v39, %v6944_v48  ;;  %v6978_v25 = vpop.f32.mrb[43].mxu0  ;;  %v6980_v38 = vpop.f32.mrb[11].mxu1 }
 0x340   :  { %5347 = vtanh.f32 %v2567_v45  ;;  %v2318_v7 = vmul.f32 0.044715, %v2190_v9  ;;  %v2194_v43 = vmul.f32 %v2066_v27, %v6949_v56  ;;  %v2198_v4 = vmul.f32 %v2070_v59, %v6952_v19 }
 0x341   :  { %v2442_v26 = vadd.f32 %v2314_v46, %v6933_v17  ;;  %v2315_v61 = vmul.f32 0.044715, %v2187_v47  ;;  %v2319_v15 = vmul.f32 0.044715, %v2191_v8  ;;  %v6986_v34 = vadd.f32 %v1640_v2, %v6872_v41 }
 0x342   :  { %v2446_v18 = vadd.f32 %v2318_v7, %v6936_v51  ;;  %v2322_v60 = vmul.f32 0.044715, %v2194_v43  ;;  %v2326_v10 = vmul.f32 0.044715, %v2198_v4  ;;  %v6990_v36 = vadd.f32 %v1866_v42, %v6874_v54 }
 0x343   :  { %v5334_v1 = vpop.eup %5333  ;;  %v2570_v45 = vmul.f32 0.7978846, %v2442_v26  ;;  %v2443_v28 = vadd.f32 %v2315_v61, %v6941_v37  ;;  %v2447_v22 = vadd.f32 %v2319_v15, %v6944_v48  ;;  %v2067_v53 = vmul.f32 %v6986_v34, %v6986_v34 }
 0x344   :  { %9255 = vst [vmem:[#allocation45_spill] sm:$0xff] %v6990_v36  ;;  %v5336_v58 = vpop.eup %5335  ;;  %v2810_v39 = vadd.f32 1.0, %v5334_v1  ;;  %v2574_v2 = vmul.f32 0.7978846, %v2446_v18  ;;  %v2450_v9 = vadd.f32 %v2322_v60, %v6949_v56  ;;  %v2454_v27 = vadd.f32 %v2326_v10, %v6952_v19  ;;  %v6998_v59 = vpop.f32.mrb[44].mxu0 }
 0x345   :  { %v7000_v42 = vpop.f32.mrb[12].mxu1  ;;  %v7002_v46 = vpop.eup %5337  ;;  %v2814_v47 = vadd.f32 1.0, %v5336_v58  ;;  %5349 = vtanh.f32 %v2570_v45  ;;  %v2571_v8 = vmul.f32 0.7978846, %v2443_v28  ;;  %v2575_v7 = vmul.f32 0.7978846, %v2447_v22 }
 0x346   :  { %v7004_v43 = vpop.f32.mrb[45].mxu0  ;;  %v7006_v4 = vpop.eup %5339  ;;  %v2938_v26 = vmul.f32 0.5, %v2810_v39  ;;  %5351 = vtanh.f32 %v2574_v2  ;;  %v2578_v61 = vmul.f32 0.7978846, %v2450_v9  ;;  %v2582_v15 = vmul.f32 0.7978846, %v2454_v27 }
 0x347   :  { %9256 = vst [vmem:[#allocation46_spill] sm:$0xff] %v7006_v4  ;;  %v7008_v18 = vpop.f32.mrb[13].mxu1  ;;  %v5342_v60 = vpop.eup %5341  ;;  %v2942_v10 = vmul.f32 0.5, %v2814_v47  ;;  %5353 = vtanh.f32 %v2571_v8  ;;  %v2195_v1 = vmul.f32 %v2067_v53, %v6986_v34  ;;  %v2071_v45 = vmul.f32 %v6990_v36, %v6990_v36 }
 0x348   :  { %v7013_v28 = vpop.f32.mrb[46].mxu0  ;;  %v7015_v22 = vpop.f32.mrb[14].mxu1  ;;  %v7018_v39 = vmul.f32 %v2938_v26, %v6877_v11  ;;  %v2818_v2 = vadd.f32 1.0, %v5342_v60  ;;  %5355 = vtanh.f32 %v2575_v7  ;;  %v7022_v9 = vadd.f32 %v6954_v32, %v6867_v30 }
 0x349   :  { %v5344_v58 = vpop.eup %5343  ;;  %v7024_v27 = vpop.f32.mrb[47].mxu0  ;;  %v7031_v8 = vmul.f32 %v2942_v10, %v6880_v55  ;;  %5357 = vtanh.f32 %v2578_v61  ;;  %v2323_v24 = vmul.f32 0.044715, %v2195_v1  ;;  %v2199_v7 = vmul.f32 %v2071_v45, %v6990_v36 }
 0x34a   :  { %9257 = vst [vmem:[#allocation47_spill] sm:$0xff] %v7022_v9  ;;  %v7026_v53 = vpop.f32.mrb[15].mxu1  ;;  %v7028_v47 = vpop.eup %5345  ;;  %v2822_v35 = vadd.f32 1.0, %v5344_v58  ;;  %v2946_v26 = vmul.f32 0.5, %v2818_v2  ;;  %5359 = vtanh.f32 %v2582_v15  ;;  %v2074_v32 = vmul.f32 %v7022_v9, %v7022_v9 }
 0x34b   :  { %9258 = vst [vmem:[#allocation48_spill] sm:$0xff] %v7031_v8  ;;  %v7033_v11 = vpop.eup %5347  ;;  %v2451_v23 = vadd.f32 %v2323_v24, %v6986_v34  ;;  %v7041_v21 = vadd.f32 %v6956_v31, %v6869_v14  ;;  %v7045_v55 = vadd.f32 %v6963_v57, %v6872_v41  ;;  %v2327_v15 = vmul.f32 0.044715, %v2199_v7 }
 0x34c   :  { %9259 = vst [vmem:[#allocation49_spill] sm:$0xff] %v7033_v11  ;;  %v2950_v60 = vmul.f32 0.5, %v2822_v35  ;;  %v7048_v61 = vmul.f32 %v2946_v26, %v6893_v33  ;;  %v2202_v10 = vmul.f32 %v2074_v32, %v7022_v9  ;;  %v7053_v1 = vadd.f32 %v6965_v0, %v6874_v54  ;;  %v7055_v35 = vpop.f32.mrb[48].mxu0  ;;  %v7057_v24 = vpop.f32.mrb[16].mxu1 }
 0x34d   :  { %9260 = vst [vmem:[#allocation50_spill] sm:$0xff] %v7041_v21  ;;  %9261 = vst [vmem:[#allocation51_spill] sm:$0xff] %v7045_v55  ;;  %v2579_v45 = vmul.f32 0.7978846, %v2451_v23  ;;  %v2078_v57 = vmul.f32 %v7041_v21, %v7041_v21  ;;  %v2075_v33 = vmul.f32 %v7045_v55, %v7045_v55  ;;  %v7066_v58 = vpop.f32.mrb[49].mxu0  ;;  %v7068_v2 = vpop.f32.mrb[17].mxu1  ;;  %v2455_v26 = vadd.f32 %v2327_v15, %v6990_v36 }
 0x34e   :  { %9262 = vst [vmem:[#allocation52_spill] sm:$0xff] %v7053_v1  ;;  %v7060_v31 = vmul.f32 %v2950_v60, %v6896_v12  ;;  %v2330_v7 = vmul.f32 0.044715, %v2202_v10  ;;  %v2079_v12 = vmul.f32 %v7053_v1, %v7053_v1  ;;  %v7075_v23 = vpop.f32.mrb[50].mxu0  ;;  %v7077_v32 = vpop.f32.mrb[18].mxu1  ;;  %v7095_v50 = vadd.f32 %v6972_v29, %v6867_v30 }
 0x34f   :  { %v7079_v60 = vpop.eup %5349  ;;  %5361 = vtanh.f32 %v2579_v45  ;;  %v2206_v6 = vmul.f32 %v2078_v57, %v7041_v21  ;;  %v2203_v0 = vmul.f32 %v2075_v33, %v7045_v55  ;;  %v7085_v5 = vpop.f32.mrb[51].mxu0  ;;  %v2583_v3 = vmul.f32 0.7978846, %v2455_v26 }
 0x350   :  { %9263 = vst [vmem:[#allocation53_spill] sm:$0xff] %v7060_v31  ;;  %v7087_v15 = vpop.f32.mrb[19].mxu1  ;;  %v7089_v10 = vpop.eup %5351  ;;  %v2458_v62 = vadd.f32 %v2330_v7, %v7022_v9  ;;  %v2207_v52 = vmul.f32 %v2079_v12, %v7053_v1  ;;  %9265 = vst [vmem:[#allocation55_spill] sm:$0xff] %v7095_v50  ;;  %v7101_v33 = vadd.f32 %v6974_v40, %v6869_v14 }
 0x351   :  { %9264 = vst [vmem:[#allocation54_spill] sm:$0xff] %v7089_v10  ;;  %v7097_v45 = vpop.eup %5353  ;;  %v2334_v57 = vmul.f32 0.044715, %v2206_v6  ;;  %v2331_v16 = vmul.f32 0.044715, %v2203_v0  ;;  %v7105_v19 = vadd.f32 %v6978_v25, %v6872_v41  ;;  %5363 = vtanh.f32 %v2583_v3 }
 0x352   :  { %9266 = vst [vmem:[#allocation56_spill] sm:$0xff] %v7101_v33  ;;  %v7107_v26 = vpop.eup %5355  ;;  %v2586_v7 = vmul.f32 0.7978846, %v2458_v62  ;;  %v2335_v12 = vmul.f32 0.044715, %v2207_v52  ;;  %v2082_v29 = vmul.f32 %v7095_v50, %v7095_v50  ;;  %v2086_v40 = vmul.f32 %v7101_v33, %v7101_v33 }
 0x353   :  { %9267 = vst [vmem:[#allocation57_spill] sm:$0xff] %v7105_v19  ;;  %9268 = vst [vmem:[#allocation58_spill] sm:$0xff] %v7107_v26  ;;  %v7111_v51 = vpop.eup %5357  ;;  %v2462_v6 = vadd.f32 %v2334_v57, %v7041_v21  ;;  %v2459_v0 = vadd.f32 %v2331_v16, %v7045_v55  ;;  %v2083_v25 = vmul.f32 %v7105_v19, %v7105_v19 }
 0x354   :  { %v7119_v10 = vpop.eup %5359  ;;  %5365 = vtanh.f32 %v2586_v7  ;;  %v2463_v52 = vadd.f32 %v2335_v12, %v7053_v1  ;;  %v2210_v62 = vmul.f32 %v2082_v29, %v7095_v50  ;;  %v7125_v3 = vadd.f32 %v6980_v38, %v6874_v54  ;;  %v7127_v57 = vpop.f32.mrb[52].mxu0 }
 0x355   :  { %9269 = vst [vmem:[#allocation59_spill] sm:$0xff] %v7119_v10  ;;  %v7129_v16 = vpop.f32.mrb[20].mxu1  ;;  %v2590_v21 = vmul.f32 0.7978846, %v2462_v6  ;;  %v2587_v36 = vmul.f32 0.7978846, %v2459_v0  ;;  %v2214_v8 = vmul.f32 %v2086_v40, %v7101_v33  ;;  %v2211_v31 = vmul.f32 %v2083_v25, %v7105_v19 }
 0x356   :  { %9270 = vst [vmem:[#allocation60_spill] sm:$0xff] %v7125_v3  ;;  %v7133_v10 = vpop.f32.mrb[53].mxu0  ;;  %v7135_v7 = vpop.f32.mrb[21].mxu1  ;;  %v2591_v12 = vmul.f32 0.7978846, %v2463_v52  ;;  %v2087_v38 = vmul.f32 %v7125_v3, %v7125_v3  ;;  %v7141_v1 = vadd.f32 %v6998_v59, %v6867_v30  ;;  %v7149_v25 = vadd.f32 %v7000_v42, %v6869_v14 }
 0x357   :  { %v2338_v29 = vmul.f32 0.044715, %v2210_v62  ;;  %v7143_v48 = vpop.f32.mrb[54].mxu0  ;;  %v7145_v6 = vpop.f32.mrb[22].mxu1  ;;  %5367 = vtanh.f32 %v2590_v21  ;;  %v2342_v0 = vmul.f32 0.044715, %v2214_v8  ;;  %v7208_v9 = vadd.f32 %v7015_v22, %v6869_v14 }
 0x358   :  { %9271 = vst [vmem:[#allocation61_spill] sm:$0xff] %v7141_v1  ;;  %v2339_v40 = vmul.f32 0.044715, %v2211_v31  ;;  %9272 = vst [vmem:[#allocation62_spill] sm:$0xff] %v7149_v25  ;;  %v7151_v52 = vpop.f32.mrb[55].mxu0  ;;  %v7153_v62 = vpop.f32.mrb[23].mxu1  ;;  %5369 = vtanh.f32 %v2587_v36  ;;  %v2215_v59 = vmul.f32 %v2087_v38, %v7125_v3  ;;  %v2090_v20 = vmul.f32 %v7141_v1, %v7141_v1 }
 0x359   :  { %v2466_v26 = vadd.f32 %v2338_v29, %v7095_v50  ;;  %v7159_v63 = vpop.eup %5361  ;;  %5371 = vtanh.f32 %v2591_v12  ;;  %v2470_v21 = vadd.f32 %v2342_v0, %v7101_v33  ;;  %v2094_v8 = vmul.f32 %v7149_v25, %v7149_v25  ;;  %9278 = vst [vmem:[#allocation68_spill] sm:$0xff] %v7208_v9 }
 0x35a   :  { %v2467_v42 = vadd.f32 %v2339_v40, %v7105_v19  ;;  %v2343_v11 = vmul.f32 0.044715, %v2215_v59  ;;  %v2218_v36 = vmul.f32 %v2090_v20, %v7141_v1  ;;  %v7168_v29 = vadd.f32 %v7004_v43, %v6872_v41 }
 0x35b   :  { %v2594_v31 = vmul.f32 0.7978846, %v2466_v26  ;;  %v2598_v38 = vmul.f32 0.7978846, %v2470_v21  ;;  %v2222_v49 = vmul.f32 %v2094_v8, %v7149_v25  ;;  %v7173_v12 = vadd.f32 %v7008_v18, %v6874_v54  ;;  %v7175_v0 = vpop.eup %5363 }
 0x35c   :  { %9273 = vst [vmem:[#allocation63_spill] sm:$0xff] %v7168_v29  ;;  %v2595_v4 = vmul.f32 0.7978846, %v2467_v42  ;;  %9275 = vst [vmem:[#allocation65_spill] sm:$0xff] %v7175_v0  ;;  %v2471_v26 = vadd.f32 %v2343_v11, %v7125_v3  ;;  %v2346_v40 = vmul.f32 0.044715, %v2218_v36  ;;  %v2091_v20 = vmul.f32 %v7168_v29, %v7168_v29 }
 0x35d   :  { %9274 = vst [vmem:[#allocation64_spill] sm:$0xff] %v7173_v12  ;;  %5373 = vtanh.f32 %v2594_v31  ;;  %v7180_v59 = vpop.f32.mrb[56].mxu0  ;;  %v7182_v43 = vpop.f32.mrb[24].mxu1  ;;  %v2350_v21 = vmul.f32 0.044715, %v2222_v49  ;;  %v2095_v42 = vmul.f32 %v7173_v12, %v7173_v12  ;;  %v7188_v18 = vadd.f32 %v7013_v28, %v6867_v30 }
 0x35e   :  { %5375 = vtanh.f32 %v2598_v38  ;;  %v7190_v8 = vpop.f32.mrb[57].mxu0  ;;  %v7192_v11 = vpop.f32.mrb[25].mxu1  ;;  %v2599_v36 = vmul.f32 0.7978846, %v2471_v26  ;;  %v2474_v33 = vadd.f32 %v2346_v40, %v7141_v1  ;;  %v2219_v38 = vmul.f32 %v2091_v20, %v7168_v29 }
 0x35f   :  { %9276 = vst [vmem:[#allocation66_spill] sm:$0xff] %v7188_v18  ;;  %v7194_v31 = vpop.eup %5365  ;;  %5377 = vtanh.f32 %v2595_v4  ;;  %v7198_v49 = vpop.f32.mrb[58].mxu0  ;;  %v2478_v0 = vadd.f32 %v2350_v21, %v7149_v25  ;;  %v2223_v28 = vmul.f32 %v2095_v42, %v7173_v12  ;;  %v2098_v50 = vmul.f32 %v7188_v18, %v7188_v18 }
 0x360   :  { %9277 = vst [vmem:[#allocation67_spill] sm:$0xff] %v7194_v31  ;;  %v7200_v3 = vpop.f32.mrb[26].mxu1  ;;  %v7210_v4 = vpop.f32.mrb[59].mxu0  ;;  %5379 = vtanh.f32 %v2599_v36  ;;  %v2602_v40 = vmul.f32 0.7978846, %v2474_v33  ;;  %v7216_v1 = vadd.f32 %v7024_v27, %v6872_v41  ;;  %v2102_v22 = vmul.f32 %v7208_v9, %v7208_v9 }
 0x361   :  { %v7212_v26 = vpop.f32.mrb[27].mxu1  ;;  %v2347_v20 = vmul.f32 0.044715, %v2219_v38  ;;  %v7218_v21 = vpop.eup %5367  ;;  %v2606_v42 = vmul.f32 0.7978846, %v2478_v0  ;;  %v2226_v19 = vmul.f32 %v2098_v50, %v7188_v18  ;;  %v7230_v27 = vadd.f32 %v7026_v53, %v6874_v54 }
 0x362   :  { %9279 = vst [vmem:[#allocation69_spill] sm:$0xff] %v7216_v1  ;;  %9280 = vst [vmem:[#allocation70_spill] sm:$0xff] %v7218_v21  ;;  %v2351_v25 = vmul.f32 0.044715, %v2223_v28  ;;  %v7223_v55 = vpop.eup %5369  ;;  %5381 = vtanh.f32 %v2602_v40  ;;  %v2099_v33 = vmul.f32 %v7216_v1, %v7216_v1  ;;  %v2230_v28 = vmul.f32 %v2102_v22, %v7208_v9 }
 0x363   :  { %v2475_v36 = vadd.f32 %v2347_v20, %v7168_v29  ;;  %9281 = vst [vmem:[#allocation71_spill] sm:$0xff] %v7230_v27  ;;  %v7232_v38 = vpop.eup %5371  ;;  %5383 = vtanh.f32 %v2606_v42  ;;  %v2354_v0 = vmul.f32 0.044715, %v2226_v19  ;;  %v2103_v20 = vmul.f32 %v7230_v27, %v7230_v27 }
 0x364   :  { %9282 = vst [vmem:[#allocation72_spill] sm:$0xff] %v7232_v38  ;;  %v2479_v50 = vadd.f32 %v2351_v25, %v7173_v12  ;;  %v2227_v40 = vmul.f32 %v2099_v33, %v7216_v1  ;;  %v7241_v29 = vadd.f32 %v7055_v35, %v6867_v30  ;;  %v7243_v53 = vpop.f32.mrb[60].mxu0  ;;  %v7245_v31 = vpop.f32.mrb[28].mxu1  ;;  %v2358_v19 = vmul.f32 0.044715, %v2230_v28 }
 0x365   :  { %v2603_v21 = vmul.f32 0.7978846, %v2475_v36  ;;  %9284 = vst [vmem:[#allocation74_spill] sm:$0xff] %v7245_v31  ;;  %v2482_v25 = vadd.f32 %v2354_v0, %v7188_v18  ;;  %v7250_v22 = vadd.f32 %v7057_v24, %v6869_v14  ;;  %v7252_v36 = vpop.f32.mrb[61].mxu0  ;;  %v7254_v33 = vpop.f32.mrb[29].mxu1  ;;  %v2231_v38 = vmul.f32 %v2103_v20, %v7230_v27 }
 0x366   :  { %9283 = vst [vmem:[#allocation73_spill] sm:$0xff] %v7241_v29  ;;  %v2607_v42 = vmul.f32 0.7978846, %v2479_v50  ;;  %9286 = vst [vmem:[#allocation76_spill] sm:$0xff] %v7252_v36  ;;  %v2355_v35 = vmul.f32 0.044715, %v2227_v40  ;;  %v2106_v50 = vmul.f32 %v7241_v29, %v7241_v29  ;;  %v2486_v18 = vadd.f32 %v2358_v19, %v7208_v9 }
 0x367   :  { %9285 = vst [vmem:[#allocation75_spill] sm:$0xff] %v7250_v22  ;;  %9287 = vst [vmem:[#allocation77_spill] sm:$0xff] %v7254_v33  ;;  %v7256_v12 = vpop.eup %5373  ;;  %5385 = vtanh.f32 %v2603_v21  ;;  %v7261_v31 = vpop.f32.mrb[62].mxu0  ;;  %v2610_v24 = vmul.f32 0.7978846, %v2482_v25  ;;  %v2110_v33 = vmul.f32 %v7250_v22, %v7250_v22 }
 0x368   :  { %9288 = vst [vmem:[#allocation78_spill] sm:$0xff] %v7261_v31  ;;  %v7263_v0 = vpop.f32.mrb[30].mxu1  ;;  %v7265_v28 = vpop.eup %5375  ;;  %5387 = vtanh.f32 %v2607_v42  ;;  %v2483_v36 = vadd.f32 %v2355_v35, %v7216_v1  ;;  %v2359_v31 = vmul.f32 0.044715, %v2231_v38  ;;  %v7280_v42 = vadd.f32 %v7066_v58, %v6872_v41  ;;  %v5208_v25 = vld [vmem:[%s9128_s6 + $0x300] ss:$8 sps:$4 sm:$0xff]  }
 0x369   :  { %9289 = vst [vmem:[#allocation79_spill] sm:$0xff] %v7263_v0  ;;  %9290 = vst [vmem:[#allocation80_spill] sm:$0xff] %v7265_v28  ;;  %v7270_v21 = vpop.f32.mrb[63].mxu0  ;;  %v7272_v40 = vpop.f32.mrb[31].mxu1  ;;  %v2234_v0 = vmul.f32 %v2106_v50, %v7241_v29  ;;  %v5210_v19 = vld [vmem:[%s9128_s6 + $0x304] ss:$8 sps:$4 sm:$0xff]   ;;  %5389 = vtanh.f32 %v2610_v24  ;;  %v2238_v28 = vmul.f32 %v2110_v33, %v7250_v22  ;;  %v7291_v38 = vadd.f32 %v7068_v2, %v6874_v54 }
 0x36a   :  { %9291 = vst [vmem:[#allocation81_spill] sm:$0xff] %v7270_v21  ;;  %9292 = vst [vmem:[#allocation82_spill] sm:$0xff] %v7272_v40  ;;  %v7274_v20 = vpop.eup %5377  ;;  %v2614_v9 = vmul.f32 0.7978846, %v2486_v18  ;;  %v2611_v58 = vmul.f32 0.7978846, %v2483_v36  ;;  %v2487_v50 = vadd.f32 %v2359_v31, %v7230_v27  ;;  %v2107_v40 = vmul.f32 %v7280_v42, %v7280_v42  ;;  %4377 = vmatprep.subr.bf16.mxu0 %v5210_v19 }
 0x36b   :  { %9293 = vst [vmem:[#allocation83_spill] sm:$0xff] %v7280_v42  ;;  %9294 = vst [vmem:[#allocation84_spill] sm:$0xff] %v7291_v38  ;;  %v7293_v35 = vpop.eup %5379  ;;  %v2362_v1 = vmul.f32 0.044715, %v2234_v0  ;;  %v2366_v21 = vmul.f32 0.044715, %v2238_v28  ;;  %v2111_v18 = vmul.f32 %v7291_v38, %v7291_v38  ;;  %v7302_v33 = vadd.f32 %v7075_v23, %v6867_v30  ;;  %4378 = vmatpush1.bf16.msra.mxu0 %v5208_v25 }
 0x36c   :  { %9295 = vst [vmem:[#allocation85_spill] sm:$0xff] %v7293_v35  ;;  %5391 = vtanh.f32 %v2614_v9  ;;  %v5214_v2 = vld [vmem:[%s9128_s6 + $0x310] ss:$8 sps:$4 sm:$0xff]   ;;  %v5216_v31 = vld [vmem:[%s9128_s6 + $0x314] ss:$8 sps:$4 sm:$0xff]   ;;  %v7310_v36 = vpop.eup %5381  ;;  %v2235_v28 = vmul.f32 %v2107_v40, %v7280_v42  ;;  %v7314_v24 = vpop.f32.mrb[64].mxu0  ;;  %v7324_v35 = vadd.f32 %v7077_v32, %v6869_v14 }
 0x36d   :  { %5393 = vtanh.f32 %v2611_v58  ;;  %v2615_v9 = vmul.f32 0.7978846, %v2487_v50  ;;  %v2490_v0 = vadd.f32 %v2362_v1, %v7241_v29  ;;  %9296 = vst [vmem:[#allocation86_spill] sm:$0xff] %v7314_v24  ;;  %v7316_v23 = vpop.eup %5383  ;;  %v2494_v25 = vadd.f32 %v2366_v21, %v7250_v22  ;;  %v7326_v58 = vpop.f32.mrb[65].mxu0  ;;  %4379 = vmatprep.subr.bf16.mxu0 %v5216_v31 }
 0x36e   :  { %9297 = vst [vmem:[#allocation87_spill] sm:$0xff] %v7316_v23  ;;  %v2239_v19 = vmul.f32 %v2111_v18, %v7291_v38  ;;  %v2114_v27 = vmul.f32 %v7302_v33, %v7302_v33  ;;  %9298 = vst [vmem:[#allocation88_spill] sm:$0xff] %v7324_v35  ;;  %v2363_v40 = vmul.f32 0.044715, %v2235_v28  ;;  %v7330_v50 = vadd.f32 %v7085_v5, %v6872_v41  ;;  %v7332_v21 = vpop.f32.mrb[66].mxu0 }
 0x36f   :  { %9299 = vst [vmem:[#allocation89_spill] sm:$0xff] %v7326_v58  ;;  %5395 = vtanh.f32 %v2615_v9  ;;  %v2618_v1 = vmul.f32 0.7978846, %v2490_v0  ;;  %9300 = vst [vmem:[#allocation90_spill] sm:$0xff] %v7332_v21  ;;  %v2622_v18 = vmul.f32 0.7978846, %v2494_v25  ;;  %v2118_v32 = vmul.f32 %v7324_v35, %v7324_v35  ;;  %4380 = vmatpush1.bf16.msra.mxu0 %v5214_v2 }
 0x370   :  { %v2367_v22 = vmul.f32 0.044715, %v2239_v19  ;;  %v2242_v23 = vmul.f32 %v2114_v27, %v7302_v33  ;;  %v7337_v29 = vpop.f32.mrb[67].mxu0  ;;  %v2491_v9 = vadd.f32 %v2363_v40, %v7280_v42  ;;  %v2115_v5 = vmul.f32 %v7330_v50, %v7330_v50  ;;  %v5220_v19 = vld [vmem:[%s9128_s6 + $0x320] ss:$8 sps:$4 sm:$0xff]  }
 0x371   :  { %9301 = vst [vmem:[#allocation91_spill] sm:$0xff] %v7337_v29  ;;  %v7339_v31 = vpop.eup %5385  ;;  %5397 = vtanh.f32 %v2618_v1  ;;  %v7346_v0 = vadd.f32 %v7087_v15, %v6874_v54  ;;  %v2246_v2 = vmul.f32 %v2118_v32, %v7324_v35  ;;  %v5222_v1 = vld [vmem:[%s9128_s6 + $0x324] ss:$8 sps:$4 sm:$0xff]   ;;  %v2819_v42 = vadd.f32 1.0, %v7028_v47 }
 0x372   :  { %v7348_v28 = vpop.eup %5387  ;;  %5399 = vtanh.f32 %v2622_v18  ;;  %v2495_v27 = vadd.f32 %v2367_v22, %v7291_v38  ;;  %v2370_v25 = vmul.f32 0.044715, %v2242_v23  ;;  %v2619_v40 = vmul.f32 0.7978846, %v2491_v9  ;;  %4381 = vmatprep.subr.bf16.mxu0 %v5222_v1 }
 0x373   :  { %9302 = vst [vmem:[#allocation92_spill] sm:$0xff] %v7346_v0  ;;  %9303 = vst [vmem:[#allocation93_spill] sm:$0xff] %v7348_v28  ;;  %v2243_v15 = vmul.f32 %v2115_v5, %v7330_v50  ;;  %v2119_v28 = vmul.f32 %v7346_v0, %v7346_v0  ;;  %v2811_v18 = vadd.f32 1.0, %v7002_v46  ;;  %v7362_v22 = vpop.eup %5389  ;;  %v2374_v38 = vmul.f32 0.044715, %v2246_v2  ;;  %4382 = vmatpush1.bf16.msra.mxu0 %v5220_v19 }
 0x374   :  { %v2623_v23 = vmul.f32 0.7978846, %v2495_v27  ;;  %v2498_v32 = vadd.f32 %v2370_v25, %v7302_v33  ;;  %5401 = vtanh.f32 %v2619_v40  ;;  %v7367_v5 = vpop.f32.mrb[68].mxu0  ;;  %v2947_v24 = vmul.f32 0.5, %v2819_v42 }
 0x375   :  { %v2371_v29 = vmul.f32 0.044715, %v2243_v15  ;;  %v2247_v9 = vmul.f32 %v2119_v28, %v7346_v0  ;;  %v2939_v58 = vmul.f32 0.5, %v2811_v18  ;;  %v2502_v27 = vadd.f32 %v2374_v38, %v7324_v35  ;;  %v7372_v25 = vpop.f32.mrb[69].mxu0  ;;  %v5228_v38 = vld [vmem:[%s9128_s6 + $0x334] ss:$8 sps:$4 sm:$0xff]  }
 0x376   :  { %v7369_v21 = vpop.eup %5391  ;;  %5403 = vtanh.f32 %v2623_v23  ;;  %v2626_v46 = vmul.f32 0.7978846, %v2498_v32  ;;  %v7380_v40 = vadd.f32 %v7127_v57, %v6867_v30  ;;  %v7382_v19 = vpop.f32.mrb[70].mxu0  ;;  %v3075_v15 = vmul.f32 %v2947_v24, %v6903_v44  ;;  %4383 = vmatprep.subr.bf16.mxu0 %v5228_v38  ;;  %v5157_v24 = vld [vmem:[%s9128_s6 + $0x100] ss:$8 sps:$4 sm:$0xff]  }
 0x377   :  { %9304 = vst [vmem:[#allocation94_spill] sm:$0xff] %v7369_v21  ;;  %v7374_v2 = vpop.eup %5393  ;;  %v2499_v47 = vadd.f32 %v2371_v29, %v7330_v50  ;;  %v2375_v1 = vmul.f32 0.044715, %v2247_v9  ;;  %v3067_v28 = vmul.f32 %v2939_v58, %v6883_v13  ;;  %v2630_v42 = vmul.f32 0.7978846, %v2502_v27  ;;  %v7392_v18 = vpop.f32.mrb[71].mxu0 }
 0x378   :  { %9305 = vst [vmem:[#allocation95_spill] sm:$0xff] %v7380_v40  ;;  %5405 = vtanh.f32 %v2626_v46  ;;  %v7390_v29 = vadd.f32 %v7129_v16, %v6869_v14  ;;  %v5226_v13 = vld [vmem:[%s9128_s6 + $0x330] ss:$8 sps:$4 sm:$0xff]   ;;  %v2122_v32 = vmul.f32 %v7380_v40, %v7380_v40  ;;  %v7404_v44 = vadd.f32 %v7133_v10, %v6872_v41 }
 0x379   :  { %v7397_v57 = vpop.eup %5395  ;;  %v2627_v58 = vmul.f32 0.7978846, %v2499_v47  ;;  %v2503_v23 = vadd.f32 %v2375_v1, %v7346_v0  ;;  %5407 = vtanh.f32 %v2630_v42  ;;  %v3195_v16 = vpack.c.bf16 %v3075_v15, %v3067_v28  ;;  %4384 = vmatpush1.bf16.msra.mxu0 %v5226_v13  ;;  %v5162_v47 = vld [vmem:[%s9128_s6 + $0x114] ss:$8 sps:$4 sm:$0xff]   ;;  %v5160_v35 = vld [vmem:[%s9128_s6 + $0x110] ss:$8 sps:$4 sm:$0xff]  }
 0x37a   :  { %9306 = vst [vmem:[#allocation96_spill] sm:$0xff] %v7390_v29  ;;  %9307 = vst [vmem:[#allocation97_spill] sm:$0xff] %v7397_v57  ;;  %v2126_v9 = vmul.f32 %v7390_v29, %v7390_v29  ;;  %v7413_v46 = vadd.f32 %v7135_v7, %v6874_v54  ;;  %v2250_v1 = vmul.f32 %v2122_v32, %v7380_v40 }
 0x37b   :  { %9308 = vst [vmem:[#allocation98_spill] sm:$0xff] %v7404_v44  ;;  %v7415_v27 = vpop.eup %5397  ;;  %5409 = vtanh.f32 %v2627_v58  ;;  %v2631_v10 = vmul.f32 0.7978846, %v2503_v23  ;;  %v2123_v28 = vmul.f32 %v7404_v44, %v7404_v44  ;;  %4070 = vmatprep.mubr.bf16.mxu1 %v3195_v16  ;;  %v7430_v15 = vadd.f32 %v7143_v48, %v6867_v30  ;;  %v5232_v58 = vld [vmem:[%s9128_s6 + $0x340] ss:$8 sps:$4 sm:$0xff]  }
 0x37c   :  { %9309 = vst [vmem:[#allocation99_spill] sm:$0xff] %v7413_v46  ;;  %v7423_v38 = vpop.eup %5399  ;;  %v2254_v7 = vmul.f32 %v2126_v9, %v7390_v29  ;;  %v2127_v42 = vmul.f32 %v7413_v46, %v7413_v46  ;;  %v7434_v13 = vadd.f32 %v7145_v6, %v6869_v14  ;;  %v5234_v23 = vld [vmem:[%s9128_s6 + $0x344] ss:$8 sps:$4 sm:$0xff]   ;;  %v9312_v32 = vpack.c.bf16 %v7048_v61, %v7018_v39  ;;  %v7450_v9 = vpop.f32.mrb[72].mxu0 }
 0x37d   :  { %9310 = vst [vmem:[#allocation100_spill] sm:$0xff] %v7423_v38  ;;  %5411 = vtanh.f32 %v2631_v10  ;;  %v2378_v16 = vmul.f32 0.044715, %v2250_v1  ;;  %v2251_v48 = vmul.f32 %v2123_v28, %v7404_v44  ;;  %v7448_v6 = vadd.f32 %v7151_v52, %v6872_v41  ;;  %9313 = vst [vmem:[#allocation102_spill] sm:$0xff] %v7450_v9  ;;  %v7460_v1 = vpop.f32.mrb[73].mxu0  ;;  %4385 = vmatprep.subr.bf16.mxu0 %v5234_v23 }
 0x37e   :  { %9311 = vst [vmem:[#allocation101_spill] sm:$0xff] %v7434_v13  ;;  %4071 = vmatmul.mubr.bf16.vlgmr.msra.gmra.mrb[32].mxu1 %v9312_v32  ;;  %v2382_v0 = vmul.f32 0.044715, %v2254_v7  ;;  %v2255_v10 = vmul.f32 %v2127_v42, %v7413_v46  ;;  %v2130_v39 = vmul.f32 %v7430_v15, %v7430_v15  ;;  %v2134_v61 = vmul.f32 %v7434_v13, %v7434_v13  ;;  %v7462_v52 = vpop.eup %5401  ;;  %v5165_v32 = vld [vmem:[%s9128_s6 + $0x124] ss:$8 sps:$4 sm:$0xff]   ;;  %v7474_v38 = vpop.f32.mrb[74].mxu0 }
 0x37f   :  { %4152 = vmatpush1.bf16.msra.mxu1 %v5157_v24  ;;  %9314 = vst [vmem:[#allocation103_spill] sm:$0xff] %v7460_v1  ;;  %v2506_v24 = vadd.f32 %v2378_v16, %v7380_v40  ;;  %v2379_v28 = vmul.f32 0.044715, %v2251_v48  ;;  %v2131_v7 = vmul.f32 %v7448_v6, %v7448_v6  ;;  %v7469_v42 = vadd.f32 %v7153_v62, %v6874_v54  ;;  %v7481_v57 = vpop.f32.mrb[75].mxu0  ;;  %v5240_v62 = vld [vmem:[%s9128_s6 + $0x354] ss:$8 sps:$4 sm:$0xff]  }
 0x380   :  { %4153 = vmatprep.subr.bf16.mxu1 %v5162_v47  ;;  %9316 = vst [vmem:[#allocation105_spill] sm:$0xff] %v7474_v38  ;;  %4386 = vmatpush1.bf16.msra.mxu0 %v5232_v58  ;;  %v7476_v23 = vpop.eup %5403  ;;  %v2510_v47 = vadd.f32 %v2382_v0, %v7390_v29  ;;  %v2383_v16 = vmul.f32 0.044715, %v2255_v10  ;;  %v2258_v48 = vmul.f32 %v2130_v39, %v7430_v15  ;;  %9318 = vst [vmem:[#allocation107_spill] sm:$0xff] %v7481_v57  ;;  %v5163_v0 = vld [vmem:[%s9128_s6 + $0x120] ss:$8 sps:$4 sm:$0xff]  }
 0x381   :  { %9315 = vst [vmem:[#allocation104_spill] sm:$0xff] %v7469_v42  ;;  %9317 = vst [vmem:[#allocation106_spill] sm:$0xff] %v7476_v23  ;;  %v2262_v21 = vmul.f32 %v2134_v61, %v7434_v13  ;;  %v2634_v40 = vmul.f32 0.7978846, %v2506_v24  ;;  %v2507_v1 = vadd.f32 %v2379_v28, %v7404_v44  ;;  %v2259_v58 = vmul.f32 %v2131_v7, %v7448_v6  ;;  %v5238_v10 = vld [vmem:[%s9128_s6 + $0x350] ss:$8 sps:$4 sm:$0xff]  }
 0x382   :  { %v2135_v23 = vmul.f32 %v7469_v42, %v7469_v42  ;;  %v7496_v39 = vpop.eup %5405  ;;  %v2638_v61 = vmul.f32 0.7978846, %v2510_v47  ;;  %v2511_v24 = vadd.f32 %v2383_v16, %v7413_v46  ;;  %v2386_v28 = vmul.f32 0.044715, %v2258_v48  ;;  %4387 = vmatprep.subr.bf16.mxu0 %v5240_v62  ;;  %v5168_v9 = vld [vmem:[%s9128_s6 + $0x134] ss:$8 sps:$4 sm:$0xff]  }
 0x383   :  { %4154 = vmatpush1.bf16.msra.mxu1 %v5160_v35  ;;  %v2390_v29 = vmul.f32 0.044715, %v2262_v21  ;;  %5413 = vtanh.f32 %v2634_v40  ;;  %v2635_v7 = vmul.f32 0.7978846, %v2507_v1  ;;  %v2387_v57 = vmul.f32 0.044715, %v2259_v58  ;;  %v7503_v44 = vpop.eup %5407 }
 0x384   :  { %v2263_v38 = vmul.f32 %v2135_v23, %v7469_v42  ;;  %4155 = vmatprep.subr.bf16.mxu1 %v5165_v32  ;;  %4388 = vmatpush1.bf16.msra.mxu0 %v5238_v10  ;;  %9319 = vst [vmem:[#allocation108_spill] sm:$0xff] %v7503_v44  ;;  %5415 = vtanh.f32 %v2638_v61  ;;  %v2639_v35 = vmul.f32 0.7978846, %v2511_v24  ;;  %v2514_v47 = vadd.f32 %v2386_v28, %v7430_v15  ;;  %v5166_v40 = vld [vmem:[%s9128_s6 + $0x130] ss:$8 sps:$4 sm:$0xff]   ;;  %v7517_v62 = vpop.f32.mrb[76].mxu0 }
 0x385   :  { %v2518_v21 = vadd.f32 %v2390_v29, %v7434_v13  ;;  %v7510_v1 = vpop.eup %5409  ;;  %5417 = vtanh.f32 %v2635_v7  ;;  %v2515_v32 = vadd.f32 %v2387_v57, %v7448_v6  ;;  %v2827_v16 = vadd.f32 1.0, %v7097_v45  ;;  %v5171_v48 = vld [vmem:[%s9128_s6 + $0x144] ss:$8 sps:$4 sm:$0xff]   ;;  %v7520_v61 = vpop.f32.mrb[77].mxu0 }
 0x386   :  { %v2391_v23 = vmul.f32 0.044715, %v2263_v38  ;;  %5419 = vtanh.f32 %v2639_v35  ;;  %v2642_v29 = vmul.f32 0.7978846, %v2514_v47  ;;  %v2835_v10 = vadd.f32 1.0, %v7159_v63  ;;  %v7526_v7 = vpop.f32.mrb[78].mxu0 }
 0x387   :  { %v2646_v58 = vmul.f32 0.7978846, %v2518_v21  ;;  %4156 = vmatpush1.bf16.msra.mxu1 %v5163_v0  ;;  %v7522_v24 = vpop.eup %5411  ;;  %v2643_v57 = vmul.f32 0.7978846, %v2515_v32  ;;  %v2955_v45 = vmul.f32 0.5, %v2827_v16  ;;  %v2826_v28 = vadd.f32 1.0, %v7079_v60 }
 0x388   :  { %9320 = vst [vmem:[#allocation109_spill] sm:$0xff] %v7522_v24  ;;  %v2519_v38 = vadd.f32 %v2391_v23, %v7469_v42  ;;  %4157 = vmatprep.subr.bf16.mxu1 %v5168_v9  ;;  %5421 = vtanh.f32 %v2642_v29  ;;  %v2963_v35 = vmul.f32 0.5, %v2835_v10  ;;  %v2834_v47 = vadd.f32 1.0, %v7111_v51  ;;  %v7533_v0 = vpop.f32.mrb[79].mxu0  ;;  %v5244_v21 = vld [vmem:[%s9128_s6 + $0x360] ss:$8 sps:$4 sm:$0xff]  }
 0x389   :  { %v7531_v63 = vadd.f32 %v7180_v59, %v6867_v30  ;;  %5423 = vtanh.f32 %v2646_v58  ;;  %v3083_v60 = vmul.f32 %v2955_v45, %v6941_v37  ;;  %v2954_v9 = vmul.f32 0.5, %v2826_v28  ;;  %v5246_v23 = vld [vmem:[%s9128_s6 + $0x364] ss:$8 sps:$4 sm:$0xff]   ;;  %v5169_v29 = vld [vmem:[%s9128_s6 + $0x140] ss:$8 sps:$4 sm:$0xff]  }
 0x38a   :  { %v2647_v32 = vmul.f32 0.7978846, %v2519_v38  ;;  %5425 = vtanh.f32 %v2643_v57  ;;  %v3091_v51 = vmul.f32 %v2963_v35, %v6986_v34  ;;  %v2962_v59 = vmul.f32 0.5, %v2834_v47  ;;  %v5174_v34 = vld [vmem:[%s9128_s6 + $0x154] ss:$8 sps:$4 sm:$0xff]   ;;  %4389 = vmatprep.subr.bf16.mxu0 %v5246_v23 }
 0x38b   :  { %v2138_v16 = vmul.f32 %v7531_v63, %v7531_v63  ;;  %4158 = vmatpush1.bf16.msra.mxu1 %v5166_v40  ;;  %v3082_v37 = vmul.f32 %v2954_v9, %v6933_v17  ;;  %v7551_v58 = vadd.f32 %v7182_v43, %v6869_v14  ;;  %v7555_v10 = vadd.f32 %v7190_v8, %v6872_v41  ;;  %v5252_v40 = vld [vmem:[%s9128_s6 + $0x374] ss:$8 sps:$4 sm:$0xff]  }
 0x38c   :  { %5427 = vtanh.f32 %v2647_v32  ;;  %4159 = vmatprep.subr.bf16.mxu1 %v5171_v48  ;;  %v3203_v57 = vpack.c.bf16 %v3091_v51, %v3083_v60  ;;  %v3090_v17 = vmul.f32 %v2962_v59, %v6949_v56  ;;  %v7567_v38 = vadd.f32 %v7192_v11, %v6874_v54  ;;  %4390 = vmatpush1.bf16.msra.mxu0 %v5244_v21  ;;  %v7583_v35 = vpop.f32.mrb[80].mxu0  ;;  %v5250_v11 = vld [vmem:[%s9128_s6 + $0x370] ss:$8 sps:$4 sm:$0xff]  }
 0x38d   :  { %9321 = vst [vmem:[#allocation110_spill] sm:$0xff] %v7551_v58  ;;  %v2266_v43 = vmul.f32 %v2138_v16, %v7531_v63  ;;  %v7569_v8 = vpop.eup %5413  ;;  %v2142_v48 = vmul.f32 %v7551_v58, %v7551_v58  ;;  %v2139_v45 = vmul.f32 %v7555_v10, %v7555_v10  ;;  %v7577_v28 = vadd.f32 %v7198_v49, %v6867_v30  ;;  %v7599_v9 = vpop.f32.mrb[81].mxu0 }
 0x38e   :  { %9322 = vst [vmem:[#allocation111_spill] sm:$0xff] %v7567_v38  ;;  %v7581_v56 = vadd.f32 %v7200_v3, %v6869_v14  ;;  %4391 = vmatprep.subr.bf16.mxu0 %v5252_v40  ;;  %v7588_v47 = vpop.eup %5415  ;;  %4080 = vmatprep.mubr.bf16.mxu1 %v3203_v57  ;;  %v3202_v21 = vpack.c.bf16 %v3090_v17, %v3082_v37  ;;  %v5172_v3 = vld [vmem:[%s9128_s6 + $0x150] ss:$8 sps:$4 sm:$0xff]   ;;  %v7612_v37 = vpop.f32.mrb[82].mxu0 }
 0x38f   :  { %9324 = vst [vmem:[#allocation113_spill] sm:$0xff] %v7588_v47  ;;  %v2394_v32 = vmul.f32 0.044715, %v2266_v43  ;;  %v2143_v49 = vmul.f32 %v7567_v38, %v7567_v38  ;;  %v7594_v60 = vadd.f32 %v7210_v4, %v6872_v41  ;;  %4160 = vmatpush1.bf16.msra.mxu1 %v5169_v29  ;;  %v7601_v23 = vpop.eup %5417  ;;  %v2270_v51 = vmul.f32 %v2142_v48, %v7551_v58  ;;  %v5177_v29 = vld [vmem:[%s9128_s6 + $0x164] ss:$8 sps:$4 sm:$0xff]  }
 0x390   :  { %9323 = vst [vmem:[#allocation112_spill] sm:$0xff] %v7581_v56  ;;  %v2267_v59 = vmul.f32 %v2139_v45, %v7555_v10  ;;  %v2146_v16 = vmul.f32 %v7577_v28, %v7577_v28  ;;  %v2150_v4 = vmul.f32 %v7581_v56, %v7581_v56  ;;  %4161 = vmatprep.subr.bf16.mxu1 %v5174_v34  ;;  %v7614_v40 = vpop.eup %5419  ;;  %v7624_v34 = vpop.f32.mrb[83].mxu0  ;;  %v5258_v45 = vld [vmem:[%s9128_s6 + $0x384] ss:$8 sps:$4 sm:$0xff]  }
 0x391   :  { %9325 = vst [vmem:[#allocation114_spill] sm:$0xff] %v7614_v40  ;;  %4081 = vmatmul.mubr.bf16.gmra.mrb[36].mxu1 %v3202_v21  ;;  %v2522_v57 = vadd.f32 %v2394_v32, %v7531_v63  ;;  %v2271_v17 = vmul.f32 %v2143_v49, %v7567_v38  ;;  %v2147_v43 = vmul.f32 %v7594_v60, %v7594_v60  ;;  %9327 = vst [vmem:[#allocation116_spill] sm:$0xff] %v7624_v34  ;;  %v5256_v49 = vld [vmem:[%s9128_s6 + $0x380] ss:$8 sps:$4 sm:$0xff]  }
 0x392   :  { %v7622_v48 = vadd.f32 %v7212_v26, %v6874_v54  ;;  %v2398_v13 = vmul.f32 0.044715, %v2270_v51  ;;  %v2395_v42 = vmul.f32 0.044715, %v2267_v59  ;;  %v2274_v21 = vmul.f32 %v2146_v16, %v7577_v28  ;;  %4392 = vmatpush1.bf16.msra.mxu0 %v5250_v11  ;;  %v7634_v46 = vpop.eup %5421  ;;  %v5175_v51 = vld [vmem:[%s9128_s6 + $0x160] ss:$8 sps:$4 sm:$0xff]  }
 0x393   :  { %v2278_v32 = vmul.f32 %v2150_v4, %v7581_v56  ;;  %v2650_v26 = vmul.f32 0.7978846, %v2522_v57  ;;  %v2399_v47 = vmul.f32 0.044715, %v2271_v17  ;;  %v2275_v40 = vmul.f32 %v2147_v43, %v7594_v60  ;;  %4162 = vmatpush1.bf16.msra.mxu1 %v5172_v3  ;;  %4393 = vmatprep.subr.bf16.mxu0 %v5258_v45  ;;  %v7642_v11 = vpop.eup %5423  ;;  %v5180_v17 = vld [vmem:[%s9128_s6 + $0x174] ss:$8 sps:$4 sm:$0xff]  }
 0x394   :  { %9326 = vst [vmem:[#allocation115_spill] sm:$0xff] %v7622_v48  ;;  %v2151_v44 = vmul.f32 %v7622_v48, %v7622_v48  ;;  %9328 = vst [vmem:[#allocation117_spill] sm:$0xff] %v7642_v11  ;;  %v2526_v59 = vadd.f32 %v2398_v13, %v7551_v58  ;;  %v2523_v16 = vadd.f32 %v2395_v42, %v7555_v10  ;;  %v2402_v4 = vmul.f32 0.044715, %v2274_v21  ;;  %v7649_v43 = vpop.eup %5425  ;;  %v5178_v13 = vld [vmem:[%s9128_s6 + $0x170] ss:$8 sps:$4 sm:$0xff]  }
 0x395   :  { %v2406_v57 = vmul.f32 0.044715, %v2278_v32  ;;  %4163 = vmatprep.subr.bf16.mxu1 %v5177_v29  ;;  %5429 = vtanh.f32 %v2650_v26  ;;  %v2527_v3 = vadd.f32 %v2399_v47, %v7567_v38  ;;  %v2403_v24 = vmul.f32 0.044715, %v2275_v40  ;;  %v5264_v42 = vld [vmem:[%s9128_s6 + $0x394] ss:$8 sps:$4 sm:$0xff]  }
 0x396   :  { %v2279_v45 = vmul.f32 %v2151_v44, %v7622_v48  ;;  %v7659_v29 = vpop.eup %5427  ;;  %v2654_v21 = vmul.f32 0.7978846, %v2526_v59  ;;  %v2651_v32 = vmul.f32 0.7978846, %v2523_v16  ;;  %v2530_v58 = vadd.f32 %v2402_v4, %v7577_v28  ;;  %v5183_v44 = vld [vmem:[%s9128_s6 + $0x184] ss:$8 sps:$4 sm:$0xff]   ;;  %4394 = vmatpush1.bf16.msra.mxu0 %v5256_v49 }
 0x397   :  { %9329 = vst [vmem:[#allocation118_spill] sm:$0xff] %v7659_v29  ;;  %v2534_v26 = vadd.f32 %v2406_v57, %v7581_v56  ;;  %v7666_v47 = vpop.f32.mrb[84].mxu0  ;;  %v2655_v40 = vmul.f32 0.7978846, %v2527_v3  ;;  %v2531_v38 = vadd.f32 %v2403_v24, %v7594_v60  ;;  %v2843_v34 = vadd.f32 1.0, %v7223_v55  ;;  %4164 = vmatpush1.bf16.msra.mxu1 %v5175_v51  ;;  %4395 = vmatprep.subr.bf16.mxu0 %v5264_v42  ;;  %v9334_v51 = vld [vmem:[#allocation67_spill] sm:$0xff] }
 0x398   :  { %9330 = vst [vmem:[#allocation119_spill] sm:$0xff] %v7666_v47  ;;  %v2407_v11 = vmul.f32 0.044715, %v2279_v45  ;;  %v7670_v59 = vpop.f32.mrb[85].mxu0  ;;  %5431 = vtanh.f32 %v2654_v21  ;;  %v2658_v16 = vmul.f32 0.7978846, %v2530_v58  ;;  %4165 = vmatprep.subr.bf16.mxu1 %v5180_v17 }
 0x399   :  { %9331 = vst [vmem:[#allocation120_spill] sm:$0xff] %v7670_v59  ;;  %v2662_v4 = vmul.f32 0.7978846, %v2534_v26  ;;  %v2851_v57 = vadd.f32 1.0, %v7274_v20  ;;  %v7673_v56 = vpop.f32.mrb[86].mxu0  ;;  %5433 = vtanh.f32 %v2651_v32  ;;  %v2971_v24 = vmul.f32 0.5, %v2843_v34 }
 0x39a   :  { %9332 = vst [vmem:[#allocation121_spill] sm:$0xff] %v7673_v56  ;;  %v2659_v49 = vmul.f32 0.7978846, %v2531_v38  ;;  %v2535_v3 = vadd.f32 %v2407_v11, %v7622_v48  ;;  %v7676_v45 = vpop.f32.mrb[87].mxu0  ;;  %5435 = vtanh.f32 %v2655_v40  ;;  %v2842_v29 = vadd.f32 1.0, %v9334_v51  ;;  %v9335_v17 = vld [vmem:[#allocation51_spill] sm:$0xff] }
 0x39b   :  { %9333 = vst [vmem:[#allocation122_spill] sm:$0xff] %v7676_v45  ;;  %v2979_v55 = vmul.f32 0.5, %v2851_v57  ;;  %v2850_v42 = vadd.f32 1.0, %v7256_v12  ;;  %v5262_v20 = vld [vmem:[%s9128_s6 + $0x390] ss:$8 sps:$4 sm:$0xff]   ;;  %5437 = vtanh.f32 %v2658_v16  ;;  %v3099_v21 = vmul.f32 %v2971_v24, %v9335_v17  ;;  %4166 = vmatpush1.bf16.msra.mxu1 %v5178_v13  ;;  %v9336_v11 = vld [vmem:[#allocation57_spill] sm:$0xff] }
 0x39c   :  { %v2663_v58 = vmul.f32 0.7978846, %v2535_v3  ;;  %v7686_v38 = vadd.f32 %v7243_v53, %v6867_v30  ;;  %v5181_v34 = vld [vmem:[%s9128_s6 + $0x180] ss:$8 sps:$4 sm:$0xff]   ;;  %5439 = vtanh.f32 %v2662_v4  ;;  %v2970_v32 = vmul.f32 0.5, %v2842_v29  ;;  %4167 = vmatprep.subr.bf16.mxu1 %v5183_v44  ;;  %4396 = vmatpush1.bf16.msra.mxu0 %v5262_v20  ;;  %v9339_v13 = vld [vmem:[#allocation76_spill] sm:$0xff] }
 0x39d   :  { %v3107_v12 = vmul.f32 %v2979_v55, %v9336_v11  ;;  %v2978_v26 = vmul.f32 0.5, %v2850_v42  ;;  %5441 = vtanh.f32 %v2659_v49  ;;  %v9337_v16 = vld [vmem:[#allocation74_spill] sm:$0xff]  ;;  %v7700_v57 = vadd.f32 %v9339_v13, %v6872_v41  ;;  %v5186_v4 = vld [vmem:[%s9128_s6 + $0x194] ss:$8 sps:$4 sm:$0xff]   ;;  %v7707_v55 = vpop.f32.mrb[88].mxu0  ;;  %v9343_v11 = vld [vmem:[#allocation77_spill] sm:$0xff] }
 0x39e   :  { %v2154_v40 = vmul.f32 %v7686_v38, %v7686_v38  ;;  %v7696_v53 = vadd.f32 %v9337_v16, %v6869_v14  ;;  %5443 = vtanh.f32 %v2663_v58  ;;  %v9340_v44 = vld [vmem:[#allocation47_spill] sm:$0xff]  ;;  %9342 = vst [vmem:[#allocation51_spill] sm:$0xff] %v7707_v55  ;;  %v7718_v58 = vadd.f32 %v9343_v11, %v6874_v54 }
 0x39f   :  { %v3211_v29 = vpack.c.bf16 %v3107_v12, %v3099_v21  ;;  %v3098_v3 = vmul.f32 %v2970_v32, %v9340_v44  ;;  %v9341_v49 = vld [vmem:[#allocation55_spill] sm:$0xff]  ;;  %v7709_v51 = vpop.eup %5429  ;;  %v2155_v17 = vmul.f32 %v7700_v57, %v7700_v57  ;;  %4168 = vmatpush1.bf16.msra.mxu1 %v5181_v34  ;;  %v7723_v12 = vpop.f32.mrb[89].mxu0  ;;  %v9349_v44 = vld [vmem:[#allocation81_spill] sm:$0xff] }
 0x3a0   :  { %9338 = vst [vmem:[#allocation67_spill] sm:$0xff] %v7696_v53  ;;  %v3106_v24 = vmul.f32 %v2978_v26, %v9341_v49  ;;  %v2282_v42 = vmul.f32 %v2154_v40, %v7686_v38  ;;  %v2158_v20 = vmul.f32 %v7696_v53, %v7696_v53  ;;  %9344 = vst [vmem:[#allocation57_spill] sm:$0xff] %v7718_v58  ;;  %v5184_v21 = vld [vmem:[%s9128_s6 + $0x190] ss:$8 sps:$4 sm:$0xff]   ;;  %v9346_v26 = vld [vmem:[#allocation78_spill] sm:$0xff]  ;;  %v7740_v11 = vpop.f32.mrb[90].mxu0  ;;  %4169 = vmatprep.subr.bf16.mxu1 %v5186_v4 }
 0x3a1   :  { %9345 = vst [vmem:[#allocation74_spill] sm:$0xff] %v7723_v12  ;;  %4090 = vmatprep.mubr.bf16.mxu1 %v3211_v29  ;;  %v7727_v40 = vadd.f32 %v9346_v26, %v6867_v30  ;;  %v9347_v16 = vld [vmem:[#allocation79_spill] sm:$0xff]  ;;  %v7735_v49 = vadd.f32 %v9349_v44, %v6872_v41  ;;  %v5189_v34 = vld [vmem:[%s9128_s6 + $0x1a4] ss:$8 sps:$4 sm:$0xff]   ;;  %9350 = vst [vmem:[#allocation47_spill] sm:$0xff] %v7740_v11  ;;  %v7749_v41 = vpop.f32.mrb[91].mxu0 }
 0x3a2   :  { %v3210_v32 = vpack.c.bf16 %v3106_v24, %v3098_v3  ;;  %v7731_v13 = vadd.f32 %v9347_v16, %v6869_v14  ;;  %v5270_v29 = vld [vmem:[%s9128_s6 + $0x3a4] ss:$8 sps:$4 sm:$0xff]   ;;  %v2410_v30 = vmul.f32 0.044715, %v2282_v42  ;;  %v2286_v3 = vmul.f32 %v2158_v20, %v7696_v53  ;;  %9351 = vst [vmem:[#allocation55_spill] sm:$0xff] %v7749_v41  ;;  %v7754_v16 = vpop.eup %5431 }
 0x3a3   :  { %v2283_v14 = vmul.f32 %v2155_v17, %v7700_v57  ;;  %v2159_v24 = vmul.f32 %v7718_v58, %v7718_v58  ;;  %v5268_v26 = vld [vmem:[%s9128_s6 + $0x3a0] ss:$8 sps:$4 sm:$0xff]   ;;  %9352 = vst [vmem:[#allocation77_spill] sm:$0xff] %v7754_v16  ;;  %v2162_v42 = vmul.f32 %v7727_v40, %v7727_v40  ;;  %v2163_v17 = vmul.f32 %v7735_v49, %v7735_v49  ;;  %v7766_v48 = vpop.eup %5433 }
 0x3a4   :  { %9348 = vst [vmem:[#allocation76_spill] sm:$0xff] %v7731_v13  ;;  %4091 = vmatmul.mubr.bf16.gmra.mrb[40].mxu1 %v3210_v32  ;;  %v2166_v20 = vmul.f32 %v7731_v13, %v7731_v13  ;;  %v9353_v4 = vld [vmem:[#allocation82_spill] sm:$0xff]  ;;  %v2538_v41 = vadd.f32 %v2410_v30, %v7686_v38  ;;  %v2414_v11 = vmul.f32 0.044715, %v2286_v3  ;;  %4397 = vmatprep.subr.bf16.mxu0 %v5270_v29  ;;  %v7773_v55 = vpop.eup %5435  ;;  %v5276_v29 = vld [vmem:[%s9128_s6 + $0x3b4] ss:$8 sps:$4 sm:$0xff]  }
 0x3a5   :  { %v7764_v44 = vadd.f32 %v9353_v4, %v6874_v54  ;;  %v2411_v16 = vmul.f32 0.044715, %v2283_v14  ;;  %v2287_v32 = vmul.f32 %v2159_v24, %v7718_v58  ;;  %4170 = vmatpush1.bf16.msra.mxu1 %v5184_v21  ;;  %v5187_v12 = vld [vmem:[%s9128_s6 + $0x1a0] ss:$8 sps:$4 sm:$0xff]   ;;  %9355 = vst [vmem:[#allocation79_spill] sm:$0xff] %v7773_v55  ;;  %v2290_v45 = vmul.f32 %v2162_v42, %v7727_v40  ;;  %v7786_v3 = vpop.eup %5437 }
 0x3a6   :  { %v2294_v54 = vmul.f32 %v2166_v20, %v7731_v13  ;;  %v2291_v4 = vmul.f32 %v2163_v17, %v7735_v49  ;;  %4171 = vmatprep.subr.bf16.mxu1 %v5189_v34  ;;  %v5192_v21 = vld [vmem:[%s9128_s6 + $0x1b4] ss:$8 sps:$4 sm:$0xff]   ;;  %v2666_v14 = vmul.f32 0.7978846, %v2538_v41  ;;  %v2542_v24 = vadd.f32 %v2414_v11, %v7696_v53  ;;  %v5190_v34 = vld [vmem:[%s9128_s6 + $0x1b0] ss:$8 sps:$4 sm:$0xff]   ;;  %4398 = vmatpush1.bf16.msra.mxu0 %v5268_v26  ;;  %v7793_v17 = vpop.eup %5439 }
 0x3a7   :  { %9354 = vst [vmem:[#allocation78_spill] sm:$0xff] %v7764_v44  ;;  %v2167_v30 = vmul.f32 %v7764_v44, %v7764_v44  ;;  %v2539_v42 = vadd.f32 %v2411_v16, %v7700_v57  ;;  %v2415_v20 = vmul.f32 0.044715, %v2287_v32  ;;  %9356 = vst [vmem:[#allocation81_spill] sm:$0xff] %v7793_v17  ;;  %v2418_v55 = vmul.f32 0.044715, %v2290_v45  ;;  %4399 = vmatprep.subr.bf16.mxu0 %v5276_v29  ;;  %v7799_v11 = vpop.eup %5441 }
 0x3a8   :  { %v2422_v56 = vmul.f32 0.044715, %v2294_v54  ;;  %v2419_v59 = vmul.f32 0.044715, %v2291_v4  ;;  %v5195_v41 = vld [vmem:[%s9128_s6 + $0x1c4] ss:$8 sps:$4 sm:$0xff]   ;;  %5445 = vtanh.f32 %v2666_v14  ;;  %v7804_v45 = vpop.eup %5443 }
 0x3a9   :  { %v2295_v47 = vmul.f32 %v2167_v30, %v7764_v44  ;;  %v2670_v16 = vmul.f32 0.7978846, %v2542_v24  ;;  %v2667_v32 = vmul.f32 0.7978846, %v2539_v42  ;;  %v2543_v53 = vadd.f32 %v2415_v20, %v7718_v58  ;;  %4172 = vmatpush1.bf16.msra.mxu1 %v5187_v12  ;;  %v7802_v26 = vpop.f32.mrb[92].mxu0  ;;  %9357 = vst [vmem:[#allocation82_spill] sm:$0xff] %v7804_v45 }
 0x3aa   :  { %v2546_v54 = vadd.f32 %v2418_v55, %v7727_v40  ;;  %v2550_v4 = vadd.f32 %v2422_v56, %v7731_v13  ;;  %v2547_v30 = vadd.f32 %v2419_v59, %v7735_v49  ;;  %4173 = vmatprep.subr.bf16.mxu1 %v5192_v21  ;;  %v7809_v29 = vpop.f32.mrb[93].mxu0  ;;  %v5274_v14 = vld [vmem:[%s9128_s6 + $0x3b0] ss:$8 sps:$4 sm:$0xff]   ;;  %v2859_v24 = vadd.f32 1.0, %v7339_v31 }
 0x3ab   :  { %v2423_v17 = vmul.f32 0.044715, %v2295_v47  ;;  %5447 = vtanh.f32 %v2670_v16  ;;  %v2671_v12 = vmul.f32 0.7978846, %v2543_v53  ;;  %v2867_v42 = vadd.f32 1.0, %v7374_v2  ;;  %v7816_v20 = vpop.f32.mrb[94].mxu0  ;;  %4400 = vmatpush1.bf16.msra.mxu0 %v5274_v14 }
 0x3ac   :  { %9358 = vst [vmem:[#allocation123_spill] sm:$0xff] %v7816_v20  ;;  %5449 = vtanh.f32 %v2667_v32  ;;  %v2674_v56 = vmul.f32 0.7978846, %v2546_v54  ;;  %v2678_v55 = vmul.f32 0.7978846, %v2550_v4  ;;  %v2987_v21 = vmul.f32 0.5, %v2859_v24 }
 0x3ad   :  { %v2675_v59 = vmul.f32 0.7978846, %v2547_v30  ;;  %5451 = vtanh.f32 %v2671_v12  ;;  %v2551_v47 = vadd.f32 %v2423_v17, %v7764_v44  ;;  %v2995_v13 = vmul.f32 0.5, %v2867_v42  ;;  %4174 = vmatpush1.bf16.msra.mxu1 %v5190_v34  ;;  %v5193_v53 = vld [vmem:[%s9128_s6 + $0x1c0] ss:$8 sps:$4 sm:$0xff]   ;;  %v7822_v31 = vpop.f32.mrb[95].mxu0 }
 0x3ae   :  { %9359 = vst [vmem:[#allocation124_spill] sm:$0xff] %v7822_v31  ;;  %5453 = vtanh.f32 %v2674_v56  ;;  %v2858_v2 = vadd.f32 1.0, %v7310_v36  ;;  %v2866_v16 = vadd.f32 1.0, %v7362_v22  ;;  %v9360_v32 = vld [vmem:[#allocation5_spill] sm:$0xff]  ;;  %4175 = vmatprep.subr.bf16.mxu1 %v5195_v41  ;;  %v5198_v17 = vld [vmem:[%s9128_s6 + $0x1d4] ss:$8 sps:$4 sm:$0xff]  }
 0x3af   :  { %v920_v54 = vsub.s32 2, %v9360_v32  ;;  %5455 = vtanh.f32 %v2678_v55  ;;  %v2679_v34 = vmul.f32 0.7978846, %v2551_v47  ;;  %v9361_v4 = vld [vmem:[#allocation63_spill] sm:$0xff]  ;;  %v9362_v14 = vld [vmem:[#allocation69_spill] sm:$0xff]  ;;  %v924_v47 = vsub.s32 3, %v9360_v32 }
 0x3b0   :  { %v3115_v30 = vmul.f32 %v2987_v21, %v9361_v4  ;;  %v3123_v12 = vmul.f32 %v2995_v13, %v9362_v14  ;;  %v5280_v24 = vld [vmem:[%s9128_s6 + $0x3c0] ss:$8 sps:$4 sm:$0xff]   ;;  %v5282_v36 = vld [vmem:[%s9128_s6 + $0x3c4] ss:$8 sps:$4 sm:$0xff]   ;;  %5457 = vtanh.f32 %v2675_v59  ;;  %v2986_v22 = vmul.f32 0.5, %v2858_v2  ;;  %v7846_v13 = vpop.f32.mrb[96].mxu0 }
 0x3b1   :  { %v2994_v41 = vmul.f32 0.5, %v2866_v16  ;;  %v7841_v42 = vld [vmem:[%s9127_s5] sm:$0xff]  ;;  %9364 = vst [vmem:[#allocation69_spill] sm:$0xff] %v7846_v13  ;;  %5459 = vtanh.f32 %v2679_v34  ;;  %v2875_v21 = vadd.f32 1.0, %v7462_v52  ;;  %4176 = vmatpush1.bf16.msra.mxu1 %v5193_v53  ;;  %v5196_v59 = vld [vmem:[%s9128_s6 + $0x1d0] ss:$8 sps:$4 sm:$0xff]   ;;  %4401 = vmatprep.subr.bf16.mxu0 %v5282_v36 }
 0x3b2   :  { %9363 = vst [vmem:[#allocation63_spill] sm:$0xff] %v7841_v42  ;;  %v7844_v56 = vrot.slane %v7841_v42, %v920_v54  ;;  %v3219_v55 = vpack.c.bf16 %v3123_v12, %v3115_v30  ;;  %v7853_v2 = vpop.f32.mrb[97].mxu0  ;;  %v9366_v16 = vld [vmem:[#allocation61_spill] sm:$0xff]  ;;  %v9367_v54 = vld [vmem:[#allocation66_spill] sm:$0xff]  ;;  %4177 = vmatprep.subr.bf16.mxu1 %v5198_v17  ;;  %v5288_v36 = vld [vmem:[%s9128_s6 + $0x3d4] ss:$8 sps:$4 sm:$0xff]   ;;  %4402 = vmatpush1.bf16.msra.mxu0 %v5280_v24 }
 0x3b3   :  { %9365 = vst [vmem:[#allocation125_spill] sm:$0xff] %v7853_v2  ;;  %v3114_v4 = vmul.f32 %v2986_v22, %v9366_v16  ;;  %v3122_v14 = vmul.f32 %v2994_v41, %v9367_v54  ;;  %v9368_v44 = vld [vmem:[#allocation86_spill] sm:$0xff]  ;;  %v7868_v53 = vpop.f32.mrb[98].mxu0  ;;  %v7873_v22 = vpop.eup %5445  ;;  %v2883_v41 = vadd.f32 1.0, %v7510_v1  ;;  %v3003_v16 = vmul.f32 0.5, %v2875_v21  ;;  %4403 = vmatprep.subr.bf16.mxu0 %v5288_v36  ;;  %v9374_v24 = vld [vmem:[#allocation91_spill] sm:$0xff] }
 0x3b4   :  { %v7859_v34 = vadd.f32 %v9368_v44, %v7844_v56  ;;  %v9369_v30 = vld [vmem:[#allocation90_spill] sm:$0xff]  ;;  %9370 = vst [vmem:[#allocation61_spill] sm:$0xff] %v7868_v53  ;;  %4100 = vmatprep.mubr.bf16.mxu1 %v3219_v55  ;;  %v7876_v44 = vrot.slane %v7841_v42, %v924_v47  ;;  %v2874_v17 = vadd.f32 1.0, %v7415_v27  ;;  %v7880_v54 = vpop.f32.mrb[99].mxu0  ;;  %v2882_v47 = vadd.f32 1.0, %v7496_v39  ;;  %v9373_v27 = vld [vmem:[#allocation89_spill] sm:$0xff] }
 0x3b5   :  { %v7863_v12 = vadd.f32 %v9369_v30, %v7844_v56  ;;  %v5201_v52 = vld [vmem:[%s9128_s6 + $0x1e4] ss:$8 sps:$4 sm:$0xff]   ;;  %9371 = vst [vmem:[#allocation66_spill] sm:$0xff] %v7880_v54  ;;  %v5286_v30 = vld [vmem:[%s9128_s6 + $0x3d0] ss:$8 sps:$4 sm:$0xff]   ;;  %v3218_v58 = vpack.c.bf16 %v3122_v14, %v3114_v4  ;;  %v7890_v1 = vpop.eup %5447  ;;  %v3011_v4 = vmul.f32 0.5, %v2883_v41  ;;  %4178 = vmatpush1.bf16.msra.mxu1 %v5196_v59 }
 0x3b6   :  { %v2044_v45 = vmul.f32 %v7859_v34, %v7859_v34  ;;  %9372 = vst [vmem:[#allocation86_spill] sm:$0xff] %v7890_v1  ;;  %v7894_v21 = vadd.f32 %v9373_v27, %v7876_v44  ;;  %v7898_v54 = vadd.f32 %v9374_v24, %v7876_v44  ;;  %v9375_v14 = vld [vmem:[#allocation83_spill] sm:$0xff]  ;;  %v5199_v53 = vld [vmem:[%s9128_s6 + $0x1e0] ss:$8 sps:$4 sm:$0xff]   ;;  %v7904_v39 = vpop.eup %5449  ;;  %v3002_v1 = vmul.f32 0.5, %v2874_v17  ;;  %4179 = vmatprep.subr.bf16.mxu1 %v5201_v52 }
 0x3b7   :  { %v2052_v55 = vmul.f32 %v7863_v12, %v7863_v12  ;;  %v3131_v2 = vmul.f32 %v3003_v16, %v9375_v14  ;;  %4101 = vmatmul.mubr.bf16.gmra.mrb[44].mxu1 %v3218_v58  ;;  %v3010_v13 = vmul.f32 0.5, %v2882_v47  ;;  %v5204_v41 = vld [vmem:[%s9128_s6 + $0x1f4] ss:$8 sps:$4 sm:$0xff]   ;;  %v7911_v16 = vpop.eup %5451  ;;  %v3139_v58 = vmul.f32 %v3011_v4, %v7330_v50  ;;  %4404 = vmatpush1.bf16.msra.mxu0 %v5286_v30  ;;  %v5292_v52 = vld [vmem:[%s9128_s6 + $0x3e0] ss:$8 sps:$4 sm:$0xff]   ;;  %v7932_v4 = vpop.f32.mrb[100].mxu0 }
 0x3b8   :  { %v2172_v36 = vmul.f32 %v2044_v45, %v7859_v34  ;;  %9376 = vst [vmem:[#allocation90_spill] sm:$0xff] %v7911_v16  ;;  %v2045_v59 = vmul.f32 %v7894_v21, %v7894_v21  ;;  %v2053_v24 = vmul.f32 %v7898_v54, %v7898_v54  ;;  %v7920_v45 = vadd.f32 %v7367_v5, %v7844_v56  ;;  %v5294_v17 = vld [vmem:[%s9128_s6 + $0x3e4] ss:$8 sps:$4 sm:$0xff]  }
 0x3b9   :  { %v2180_v27 = vmul.f32 %v2052_v55, %v7863_v12  ;;  %v7928_v55 = vpop.eup %5453  ;;  %v9377_v16 = vld [vmem:[#allocation73_spill] sm:$0xff]  ;;  %v3138_v50 = vmul.f32 %v3010_v13, %v7302_v33  ;;  %v3227_v31 = vpack.c.bf16 %v3139_v58, %v3131_v2  ;;  %4180 = vmatpush1.bf16.msra.mxu1 %v5199_v53  ;;  %v7951_v2 = vadd.f32 %v7372_v25, %v7876_v44 }
 0x3ba   :  { %v2300_v47 = vmul.f32 0.044715, %v2172_v36  ;;  %v3130_v42 = vmul.f32 %v3002_v1, %v9377_v16  ;;  %v7934_v5 = vpop.eup %5455  ;;  %v2173_v30 = vmul.f32 %v2045_v59, %v7894_v21  ;;  %v2181_v32 = vmul.f32 %v2053_v24, %v7898_v54  ;;  %v5202_v36 = vld [vmem:[%s9128_s6 + $0x1f0] ss:$8 sps:$4 sm:$0xff]   ;;  %v7943_v1 = vpop.f32.mrb[101].mxu0  ;;  %4181 = vmatprep.subr.bf16.mxu1 %v5204_v41  ;;  %4405 = vmatprep.subr.bf16.mxu0 %v5294_v17 }
 0x3bb   :  { %v2308_v14 = vmul.f32 0.044715, %v2180_v27  ;;  %9378 = vst [vmem:[#allocation89_spill] sm:$0xff] %v7934_v5  ;;  %v2060_v20 = vmul.f32 %v7920_v45, %v7920_v45  ;;  %v7945_v33 = vpop.eup %5457  ;;  %v5207_v53 = vld [vmem:[%s9128_s6 + $0x204] ss:$8 sps:$4 sm:$0xff]   ;;  %v7956_v59 = vpop.f32.mrb[102].mxu0  ;;  %4110 = vmatprep.mubr.bf16.mxu1 %v3227_v31  ;;  %4406 = vmatpush1.bf16.msra.mxu0 %v5292_v52 }
 0x3bc   :  { %v2428_v13 = vadd.f32 %v2300_v47, %v7859_v34  ;;  %v3226_v16 = vpack.c.bf16 %v3138_v50, %v3130_v42  ;;  %v7958_v24 = vpop.eup %5459  ;;  %v2301_v58 = vmul.f32 0.044715, %v2173_v30  ;;  %v2309_v5 = vmul.f32 0.044715, %v2181_v32  ;;  %v7965_v25 = vpop.f32.mrb[103].mxu0 }
 0x3bd   :  { %v2436_v27 = vadd.f32 %v2308_v14, %v7863_v12  ;;  %9379 = vst [vmem:[#allocation91_spill] sm:$0xff] %v7958_v24  ;;  %v2188_v47 = vmul.f32 %v2060_v20, %v7920_v45  ;;  %v7963_v42 = vadd.f32 %v7382_v19, %v7844_v56  ;;  %v2061_v50 = vmul.f32 %v7951_v2, %v7951_v2 }
 0x3be   :  { %v2556_v41 = vmul.f32 0.7978846, %v2428_v13  ;;  %v7971_v24 = vadd.f32 %v7392_v18, %v7876_v44  ;;  %v2429_v31 = vadd.f32 %v2301_v58, %v7894_v21  ;;  %v2437_v20 = vadd.f32 %v2309_v5, %v7898_v54  ;;  %4182 = vmatpush1.bf16.msra.mxu1 %v5202_v36 }
 0x3bf   :  { %v2564_v14 = vmul.f32 0.7978846, %v2436_v27  ;;  %v2316_v32 = vmul.f32 0.044715, %v2188_v47  ;;  %v2068_v19 = vmul.f32 %v7963_v42, %v7963_v42  ;;  %4111 = vmatmul.mubr.bf16.gmra.mrb[48].mxu1 %v3226_v16  ;;  %v2189_v17 = vmul.f32 %v2061_v50, %v7951_v2  ;;  %4264 = vmatprep.subr.bf16.mxu1 %v5207_v53  ;;  %v7985_v47 = vpop.f32.mrb[104].mxu0 }
 0x3c0   :  { %5461 = vtanh.f32 %v2556_v41  ;;  %v2069_v30 = vmul.f32 %v7971_v24, %v7971_v24  ;;  %v2891_v18 = vadd.f32 1.0, %v7601_v23  ;;  %v2557_v52 = vmul.f32 0.7978846, %v2429_v31  ;;  %v7988_v53 = vpop.f32.mrb[105].mxu0 }
 0x3c1   :  { %5463 = vtanh.f32 %v2564_v14  ;;  %v2565_v13 = vmul.f32 0.7978846, %v2437_v20  ;;  %v2444_v5 = vadd.f32 %v2316_v32, %v7920_v45  ;;  %v2317_v27 = vmul.f32 0.044715, %v2189_v17  ;;  %9380 = vst [vmem:[#allocation83_spill] sm:$0xff] %v7988_v53  ;;  %v7991_v32 = vpop.f32.mrb[106].mxu0 }
 0x3c2   :  { %v2196_v58 = vmul.f32 %v2068_v19, %v7963_v42  ;;  %v2197_v36 = vmul.f32 %v2069_v30, %v7971_v24  ;;  %v2899_v16 = vadd.f32 1.0, %v7649_v43  ;;  %5465 = vtanh.f32 %v2557_v52  ;;  %9381 = vst [vmem:[#allocation73_spill] sm:$0xff] %v7991_v32  ;;  %v9382_v17 = vld [vmem:[#allocation98_spill] sm:$0xff]  ;;  %v7995_v52 = vpop.f32.mrb[107].mxu0 }
 0x3c3   :  { %v2572_v41 = vmul.f32 0.7978846, %v2444_v5  ;;  %v3019_v50 = vmul.f32 0.5, %v2891_v18  ;;  %v2890_v23 = vadd.f32 1.0, %v7569_v8  ;;  %5467 = vtanh.f32 %v2565_v13  ;;  %9383 = vst [vmem:[#allocation98_spill] sm:$0xff] %v7995_v52 }
 0x3c4   :  { %v2445_v14 = vadd.f32 %v2317_v27, %v7951_v2  ;;  %v2324_v31 = vmul.f32 0.044715, %v2196_v58  ;;  %v2325_v20 = vmul.f32 0.044715, %v2197_v36  ;;  %v3027_v19 = vmul.f32 0.5, %v2899_v16  ;;  %v9384_v36 = vld [vmem:[#allocation102_spill] sm:$0xff] }
 0x3c5   :  { %5469 = vtanh.f32 %v2572_v41  ;;  %v3147_v43 = vmul.f32 %v3019_v50, %v9382_v17  ;;  %v2898_v30 = vadd.f32 1.0, %v7634_v46  ;;  %v3018_v13 = vmul.f32 0.5, %v2890_v23  ;;  %v9385_v16 = vld [vmem:[#allocation103_spill] sm:$0xff] }
 0x3c6   :  { %v2573_v18 = vmul.f32 0.7978846, %v2445_v14  ;;  %v2452_v8 = vadd.f32 %v2324_v31, %v7963_v42  ;;  %v2453_v5 = vadd.f32 %v2325_v20, %v7971_v24  ;;  %v3155_v27 = vmul.f32 %v3027_v19, %v7448_v6  ;;  %v9386_v14 = vld [vmem:[#allocation95_spill] sm:$0xff] }
 0x3c7   :  { %v3026_v58 = vmul.f32 0.5, %v2898_v30  ;;  %v8002_v32 = vadd.f32 %v9384_v36, %v7844_v56  ;;  %v8006_v41 = vadd.f32 %v9385_v16, %v7876_v44  ;;  %v3146_v17 = vmul.f32 %v3018_v13, %v9386_v14  ;;  %v9387_v30 = vld [vmem:[#allocation105_spill] sm:$0xff] }
 0x3c8   :  { %5471 = vtanh.f32 %v2573_v18  ;;  %v2580_v46 = vmul.f32 0.7978846, %v2452_v8  ;;  %v2581_v50 = vmul.f32 0.7978846, %v2453_v5  ;;  %v3235_v31 = vpack.c.bf16 %v3155_v27, %v3147_v43  ;;  %v9388_v18 = vld [vmem:[#allocation107_spill] sm:$0xff]  ;;  %v8023_v5 = vpop.f32.mrb[108].mxu0 }
 0x3c9   :  { %v3154_v20 = vmul.f32 %v3026_v58, %v7430_v15  ;;  %v2076_v6 = vmul.f32 %v8002_v32, %v8002_v32  ;;  %v2077_v23 = vmul.f32 %v8006_v41, %v8006_v41  ;;  %v8016_v36 = vadd.f32 %v9387_v30, %v7844_v56  ;;  %9389 = vst [vmem:[#allocation102_spill] sm:$0xff] %v8023_v5  ;;  %v8026_v16 = vpop.f32.mrb[109].mxu0 }
 0x3ca   :  { %v5462_v19 = vpop.eup %5461  ;;  %5473 = vtanh.f32 %v2580_v46  ;;  %v8020_v8 = vadd.f32 %v9388_v18, %v7876_v44  ;;  %v2907_v43 = vadd.f32 1.0, %v7766_v48  ;;  %4120 = vmatprep.mubr.bf16.mxu1 %v3235_v31  ;;  %9390 = vst [vmem:[#allocation103_spill] sm:$0xff] %v8026_v16  ;;  %v8033_v18 = vpop.f32.mrb[110].mxu0  ;;  %v2915_v31 = vadd.f32 1.0, %v7799_v11 }
 0x3cb   :  { %v5464_v15 = vpop.eup %5463  ;;  %v2812_v13 = vadd.f32 1.0, %v5462_v19  ;;  %5475 = vtanh.f32 %v2581_v50  ;;  %v3234_v27 = vpack.c.bf16 %v3154_v20, %v3146_v17  ;;  %v2204_v58 = vmul.f32 %v2076_v6, %v8002_v32  ;;  %9391 = vst [vmem:[#allocation95_spill] sm:$0xff] %v8033_v18  ;;  %v8038_v6 = vpop.f32.mrb[111].mxu0 }
 0x3cc   :  { %v2820_v46 = vadd.f32 1.0, %v5464_v15  ;;  %v2205_v14 = vmul.f32 %v2077_v23, %v8006_v41  ;;  %v2084_v30 = vmul.f32 %v8016_v36, %v8016_v36  ;;  %v2085_v48 = vmul.f32 %v8020_v8, %v8020_v8  ;;  %v8035_v5 = vpop.eup %5465  ;;  %9392 = vst [vmem:[#allocation105_spill] sm:$0xff] %v8038_v6 }
 0x3cd   :  { %v2940_v50 = vmul.f32 0.5, %v2812_v13  ;;  %4121 = vmatmul.mubr.bf16.gmra.mrb[52].mxu1 %v3234_v27  ;;  %v2332_v17 = vmul.f32 0.044715, %v2204_v58  ;;  %v3035_v20 = vmul.f32 0.5, %v2907_v43  ;;  %v8040_v19 = vpop.eup %5467  ;;  %v3043_v27 = vmul.f32 0.5, %v2915_v31 }
 0x3ce   :  { %v2948_v23 = vmul.f32 0.5, %v2820_v46  ;;  %v2333_v15 = vmul.f32 0.044715, %v2205_v14  ;;  %v2212_v16 = vmul.f32 %v2084_v30, %v8016_v36  ;;  %v2213_v52 = vmul.f32 %v2085_v48, %v8020_v8  ;;  %v5298_v43 = vld [vmem:[%s9128_s6 + $0x3f0] ss:$8 sps:$4 sm:$0xff]  }
 0x3cf   :  { %v8044_v53 = vpop.eup %5469  ;;  %v8047_v18 = vmul.f32 %v2940_v50, %v7859_v34  ;;  %v2460_v13 = vadd.f32 %v2332_v17, %v8002_v32  ;;  %v3163_v11 = vmul.f32 %v3035_v20, %v7555_v10  ;;  %v5300_v58 = vld [vmem:[%s9128_s6 + $0x3f4] ss:$8 sps:$4 sm:$0xff]   ;;  %v3171_v50 = vmul.f32 %v3043_v27, %v7594_v60 }
 0x3d0   :  { %v8058_v46 = vmul.f32 %v2948_v23, %v7863_v12  ;;  %v2461_v14 = vadd.f32 %v2333_v15, %v8006_v41  ;;  %v2340_v34 = vmul.f32 0.044715, %v2212_v16  ;;  %v2341_v30 = vmul.f32 0.044715, %v2213_v52  ;;  %4407 = vmatprep.subr.bf16.mxu0 %v5300_v58  ;;  %v8070_v16 = vpop.f32.mrb[112].mxu0 }
 0x3d1   :  { %v2588_v48 = vmul.f32 0.7978846, %v2460_v13  ;;  %v2906_v10 = vadd.f32 1.0, %v7709_v51  ;;  %v2914_v17 = vadd.f32 1.0, %v7786_v3  ;;  %4408 = vmatpush1.bf16.msra.mxu0 %v5298_v43  ;;  %v3243_v60 = vpack.c.bf16 %v3171_v50, %v3163_v11  ;;  %v8072_v15 = vpop.f32.mrb[113].mxu0 }
 0x3d2   :  { %v8064_v31 = vpop.eup %5471  ;;  %v2589_v6 = vmul.f32 0.7978846, %v2461_v14  ;;  %v2468_v12 = vadd.f32 %v2340_v34, %v8016_v36  ;;  %v2469_v23 = vadd.f32 %v2341_v30, %v8020_v8  ;;  %v8078_v58 = vadd.f32 %v7517_v62, %v7844_v56  ;;  %v8080_v14 = vpop.f32.mrb[114].mxu0 }
 0x3d3   :  { %5477 = vtanh.f32 %v2588_v48  ;;  %v3034_v52 = vmul.f32 0.5, %v2906_v10  ;;  %v3042_v51 = vmul.f32 0.5, %v2914_v17  ;;  %4130 = vmatprep.mubr.bf16.mxu1 %v3243_v60  ;;  %v8088_v30 = vadd.f32 %v7520_v61, %v7876_v44  ;;  %v8094_v48 = vpop.f32.mrb[115].mxu0 }
 0x3d4   :  { %v8074_v3 = vpop.eup %5473  ;;  %5479 = vtanh.f32 %v2589_v6  ;;  %v2596_v13 = vmul.f32 0.7978846, %v2468_v12  ;;  %v2597_v27 = vmul.f32 0.7978846, %v2469_v23  ;;  %v8092_v6 = vadd.f32 %v7526_v7, %v7844_v56 }
 0x3d5   :  { %v8082_v34 = vpop.eup %5475  ;;  %v3162_v11 = vmul.f32 %v3034_v52, %v7531_v63  ;;  %v3170_v43 = vmul.f32 %v3042_v51, %v7577_v28  ;;  %v2092_v62 = vmul.f32 %v8078_v58, %v8078_v58  ;;  %v8100_v50 = vadd.f32 %v7533_v0, %v7876_v44 }
 0x3d6   :  { %5481 = vtanh.f32 %v2596_v13  ;;  %v2923_v63 = vadd.f32 1.0, %v7904_v39  ;;  %v2093_v61 = vmul.f32 %v8088_v30, %v8088_v30  ;;  %v2100_v7 = vmul.f32 %v8092_v6, %v8092_v6 }
 0x3d7   :  { %5483 = vtanh.f32 %v2597_v27  ;;  %v3242_v28 = vpack.c.bf16 %v3170_v43, %v3162_v11  ;;  %v2220_v10 = vmul.f32 %v2092_v62, %v8078_v58  ;;  %v2101_v17 = vmul.f32 %v8100_v50, %v8100_v50  ;;  %v8117_v43 = vpop.f32.mrb[116].mxu0 }
 0x3d8   :  { %v2931_v12 = vadd.f32 1.0, %v7945_v33  ;;  %v3051_v23 = vmul.f32 0.5, %v2923_v63  ;;  %v2221_v0 = vmul.f32 %v2093_v61, %v8088_v30  ;;  %v2228_v39 = vmul.f32 %v2100_v7, %v8092_v6 }
 0x3d9   :  { %4131 = vmatmul.mubr.bf16.gmra.mrb[56].mxu1 %v3242_v28  ;;  %v2922_v60 = vadd.f32 1.0, %v7873_v22  ;;  %v2930_v52 = vadd.f32 1.0, %v7928_v55  ;;  %v2348_v51 = vmul.f32 0.044715, %v2220_v10  ;;  %v2229_v13 = vmul.f32 %v2101_v17, %v8100_v50  ;;  %v8125_v55 = vpop.f32.mrb[117].mxu0 }
 0x3da   :  { %v3059_v27 = vmul.f32 0.5, %v2931_v12  ;;  %v3179_v11 = vmul.f32 %v3051_v23, %v7700_v57  ;;  %v2349_v62 = vmul.f32 0.044715, %v2221_v0  ;;  %v2356_v33 = vmul.f32 0.044715, %v2228_v39  ;;  %v8133_v0 = vpop.f32.mrb[118].mxu0 }
 0x3db   :  { %v3050_v63 = vmul.f32 0.5, %v2922_v60  ;;  %v3058_v28 = vmul.f32 0.5, %v2930_v52  ;;  %v2476_v61 = vadd.f32 %v2348_v51, %v8078_v58  ;;  %v2357_v20 = vmul.f32 0.044715, %v2229_v13  ;;  %9393 = vst [vmem:[#allocation107_spill] sm:$0xff] %v8133_v0  ;;  %v8140_v51 = vpop.f32.mrb[119].mxu0 }
 0x3dc   :  { %v3187_v7 = vmul.f32 %v3059_v27, %v7735_v49  ;;  %v8123_v22 = vadd.f32 %v7583_v35, %v7844_v56  ;;  %v2477_v57 = vadd.f32 %v2349_v62, %v8088_v30  ;;  %v2484_v17 = vadd.f32 %v2356_v33, %v8092_v6  ;;  %9394 = vst [vmem:[#allocation126_spill] sm:$0xff] %v8140_v51 }
 0x3dd   :  { %v8127_v10 = vpop.eup %5477  ;;  %v3178_v12 = vmul.f32 %v3050_v63, %v7686_v38  ;;  %v3186_v23 = vmul.f32 %v3058_v28, %v7727_v40  ;;  %v2604_v49 = vmul.f32 0.7978846, %v2476_v61  ;;  %v2485_v35 = vadd.f32 %v2357_v20, %v8100_v50 }
 0x3de   :  { %v8135_v39 = vpop.eup %5479  ;;  %v3251_v60 = vpack.c.bf16 %v3187_v7, %v3179_v11  ;;  %v2108_v52 = vmul.f32 %v8123_v22, %v8123_v22  ;;  %v2605_v13 = vmul.f32 0.7978846, %v2477_v57  ;;  %v2612_v27 = vmul.f32 0.7978846, %v2484_v17 }
 0x3df   :  { %v3250_v62 = vpack.c.bf16 %v3186_v23, %v3178_v12  ;;  %v8144_v38 = vadd.f32 %v7599_v9, %v7876_v44  ;;  %5485 = vtanh.f32 %v2604_v49  ;;  %v2613_v33 = vmul.f32 0.7978846, %v2485_v35  ;;  %v9395_v9 = vld [vmem:[#allocation116_spill] sm:$0xff]  ;;  %v8165_v12 = vpop.f32.mrb[120].mxu0 }
 0x3e0   :  { %v8146_v40 = vpop.eup %5481  ;;  %4140 = vmatprep.mubr.bf16.mxu1 %v3251_v60  ;;  %v2236_v20 = vmul.f32 %v2108_v52, %v8123_v22  ;;  %v8151_v11 = vadd.f32 %v7612_v37, %v7844_v56  ;;  %5487 = vtanh.f32 %v2605_v13  ;;  %v8159_v61 = vadd.f32 %v9395_v9, %v7876_v44  ;;  %9396 = vst [vmem:[#allocation116_spill] sm:$0xff] %v8165_v12  ;;  %v8170_v60 = vpop.f32.mrb[121].mxu0  ;;  %v9400_v9 = vld [vmem:[#allocation120_spill] sm:$0xff] }
 0x3e1   :  { %v8153_v63 = vpop.eup %5483  ;;  %4141 = vmatmul.mubr.bf16.gmra.mrb[60].mxu1 %v3250_v62  ;;  %v2109_v28 = vmul.f32 %v8144_v38, %v8144_v38  ;;  %v2813_v7 = vadd.f32 1.0, %v8035_v5  ;;  %5489 = vtanh.f32 %v2612_v27  ;;  %v2821_v37 = vadd.f32 1.0, %v8040_v19  ;;  %9397 = vst [vmem:[#allocation127_spill] sm:$0xff] %v8170_v60  ;;  %v9398_v27 = vld [vmem:[#allocation119_spill] sm:$0xff]  ;;  %v8178_v19 = vpop.f32.mrb[122].mxu0 }
 0x3e2   :  { %v2364_v57 = vmul.f32 0.044715, %v2236_v20  ;;  %v2116_v17 = vmul.f32 %v8151_v11, %v8151_v11  ;;  %5491 = vtanh.f32 %v2613_v33  ;;  %v2117_v49 = vmul.f32 %v8159_v61, %v8159_v61  ;;  %9399 = vst [vmem:[#allocation119_spill] sm:$0xff] %v8178_v19  ;;  %v8186_v60 = vpop.f32.mrb[123].mxu0 }
 0x3e3   :  { %v2237_v23 = vmul.f32 %v2109_v28, %v8144_v38  ;;  %v2941_v35 = vmul.f32 0.5, %v2813_v7  ;;  %v2949_v13 = vmul.f32 0.5, %v2821_v37  ;;  %v8176_v62 = vadd.f32 %v9398_v27, %v7844_v56  ;;  %9401 = vst [vmem:[#allocation120_spill] sm:$0xff] %v8186_v60  ;;  %v9403_v60 = vld [vmem:[#allocation122_spill] sm:$0xff] }
 0x3e4   :  { %v2492_v5 = vadd.f32 %v2364_v57, %v8123_v22  ;;  %v2244_v52 = vmul.f32 %v2116_v17, %v8151_v11  ;;  %v2245_v20 = vmul.f32 %v2117_v49, %v8159_v61  ;;  %v8184_v7 = vadd.f32 %v9400_v9, %v7876_v44 }
 0x3e5   :  { %v2365_v33 = vmul.f32 0.044715, %v2237_v23  ;;  %v3069_v28 = vmul.f32 %v2941_v35, %v7894_v21  ;;  %v3077_v37 = vmul.f32 %v2949_v13, %v7898_v54  ;;  %v2124_v27 = vmul.f32 %v8176_v62, %v8176_v62  ;;  %v9402_v21 = vld [vmem:[#allocation121_spill] sm:$0xff] }
 0x3e6   :  { %v2620_v57 = vmul.f32 0.7978846, %v2492_v5  ;;  %v2372_v17 = vmul.f32 0.044715, %v2244_v52  ;;  %v2373_v23 = vmul.f32 0.044715, %v2245_v20  ;;  %v2125_v49 = vmul.f32 %v8184_v7, %v8184_v7 }
 0x3e7   :  { %v2493_v19 = vadd.f32 %v2365_v33, %v8144_v38  ;;  %v8196_v35 = vadd.f32 %v9402_v21, %v7844_v56  ;;  %v3197_v5 = vpack.c.bf16 %v3077_v37, %v3069_v28  ;;  %v5205_v54 = vld [vmem:[%s9128_s6 + $0x200] ss:$8 sps:$4 sm:$0xff]   ;;  %v2252_v52 = vmul.f32 %v2124_v27, %v8176_v62  ;;  %v5213_v20 = vld [vmem:[%s9128_s6 + $0x214] ss:$8 sps:$4 sm:$0xff]  }
 0x3e8   :  { %5493 = vtanh.f32 %v2620_v57  ;;  %v2500_v9 = vadd.f32 %v2372_v17, %v8151_v11  ;;  %v2501_v33 = vadd.f32 %v2373_v23, %v8159_v61  ;;  %v2253_v21 = vmul.f32 %v2125_v49, %v8184_v7  ;;  %v8217_v23 = vpop.f32.mrb[124].mxu0 }
 0x3e9   :  { %v2621_v13 = vmul.f32 0.7978846, %v2493_v19  ;;  %v2132_v57 = vmul.f32 %v8196_v35, %v8196_v35  ;;  %v8210_v17 = vpop.eup %5485  ;;  %4183 = vmatprep.mubr.bf16.mxu1 %v3197_v5  ;;  %v2380_v37 = vmul.f32 0.044715, %v2252_v52  ;;  %v8214_v27 = vadd.f32 %v9403_v60, %v7876_v44  ;;  %9404 = vst [vmem:[#allocation121_spill] sm:$0xff] %v8217_v23  ;;  %v8225_v5 = vpop.f32.mrb[125].mxu0 }
 0x3ea   :  { %v2628_v28 = vmul.f32 0.7978846, %v2500_v9  ;;  %v2829_v19 = vadd.f32 1.0, %v8064_v31  ;;  %v8219_v12 = vpop.eup %5487  ;;  %v2629_v49 = vmul.f32 0.7978846, %v2501_v33  ;;  %v9405_v51 = vpack.c.bf16 %v8058_v46, %v8047_v18  ;;  %9406 = vst [vmem:[#allocation122_spill] sm:$0xff] %v8225_v5 }
 0x3eb   :  { %5495 = vtanh.f32 %v2621_v13  ;;  %v2381_v0 = vmul.f32 0.044715, %v2253_v21  ;;  %v2260_v9 = vmul.f32 %v2132_v57, %v8196_v35  ;;  %v8227_v52 = vpop.eup %5489  ;;  %v5211_v31 = vld [vmem:[%s9128_s6 + $0x210] ss:$8 sps:$4 sm:$0xff]   ;;  %v2508_v60 = vadd.f32 %v2380_v37, %v8176_v62  ;;  %v8236_v46 = vpop.f32.mrb[126].mxu0 }
 0x3ec   :  { %4184 = vmatmul.mubr.bf16.vlgmr.msra.gmra.mrb[32].mxu1 %v9405_v51  ;;  %5497 = vtanh.f32 %v2628_v28  ;;  %v2133_v13 = vmul.f32 %v8214_v27, %v8214_v27  ;;  %v2837_v18 = vadd.f32 1.0, %v8082_v34  ;;  %9407 = vst [vmem:[#allocation128_spill] sm:$0xff] %v8236_v46  ;;  %v8238_v51 = vpop.eup %5491  ;;  %v2957_v21 = vmul.f32 0.5, %v2829_v19  ;;  %v5219_v57 = vld [vmem:[%s9128_s6 + $0x224] ss:$8 sps:$4 sm:$0xff]   ;;  %v8244_v28 = vpop.f32.mrb[127].mxu0 }
 0x3ed   :  { %4265 = vmatpush1.bf16.msra.mxu1 %v5205_v54  ;;  %5499 = vtanh.f32 %v2629_v49  ;;  %v2509_v33 = vadd.f32 %v2381_v0, %v8184_v7  ;;  %v2388_v54 = vmul.f32 0.044715, %v2260_v9  ;;  %9408 = vst [vmem:[#allocation129_spill] sm:$0xff] %v8244_v28  ;;  %v2636_v37 = vmul.f32 0.7978846, %v2508_v60 }
 0x3ee   :  { %4266 = vmatprep.subr.bf16.mxu1 %v5213_v20  ;;  %v2261_v5 = vmul.f32 %v2133_v13, %v8214_v27  ;;  %v2965_v34 = vmul.f32 0.5, %v2837_v18  ;;  %v2828_v46 = vadd.f32 1.0, %v8044_v53  ;;  %v3085_v20 = vmul.f32 %v2957_v21, %v7951_v2  ;;  %v5217_v60 = vld [vmem:[%s9128_s6 + $0x220] ss:$8 sps:$4 sm:$0xff]   ;;  %v5225_v2 = vld [vmem:[%s9128_s6 + $0x234] ss:$8 sps:$4 sm:$0xff]  }
 0x3ef   :  { %v2637_v23 = vmul.f32 0.7978846, %v2509_v33  ;;  %v2516_v49 = vadd.f32 %v2388_v54, %v8196_v35  ;;  %v2836_v0 = vadd.f32 1.0, %v8074_v3  ;;  %5501 = vtanh.f32 %v2636_v37  ;;  %v9409_v3 = vld [vmem:[#allocation51_spill] sm:$0xff] }
 0x3f0   :  { %v2389_v19 = vmul.f32 0.044715, %v2261_v5  ;;  %v3093_v9 = vmul.f32 %v2965_v34, %v7971_v24  ;;  %v2956_v13 = vmul.f32 0.5, %v2828_v46  ;;  %v8260_v33 = vadd.f32 %v9409_v3, %v7844_v56  ;;  %v9411_v37 = vld [vmem:[#allocation47_spill] sm:$0xff]  ;;  %v5231_v3 = vld [vmem:[%s9128_s6 + $0x244] ss:$8 sps:$4 sm:$0xff]  }
 0x3f1   :  { %4267 = vmatpush1.bf16.msra.mxu1 %v5211_v31  ;;  %5503 = vtanh.f32 %v2637_v23  ;;  %v2644_v18 = vmul.f32 0.7978846, %v2516_v49  ;;  %v2964_v53 = vmul.f32 0.5, %v2836_v0  ;;  %v9410_v23 = vld [vmem:[#allocation74_spill] sm:$0xff]  ;;  %v8275_v34 = vadd.f32 %v9411_v37, %v7844_v56  ;;  %v9412_v0 = vld [vmem:[#allocation55_spill] sm:$0xff] }
 0x3f2   :  { %4268 = vmatprep.subr.bf16.mxu1 %v5219_v57  ;;  %v8262_v5 = vpop.eup %5493  ;;  %v2517_v24 = vadd.f32 %v2389_v19, %v8214_v27  ;;  %v3205_v31 = vpack.c.bf16 %v3093_v9, %v3085_v20  ;;  %v3084_v54 = vmul.f32 %v2956_v13, %v7920_v45  ;;  %v8268_v46 = vadd.f32 %v9410_v23, %v7876_v44  ;;  %v5223_v45 = vld [vmem:[%s9128_s6 + $0x230] ss:$8 sps:$4 sm:$0xff]  }
 0x3f3   :  { %5505 = vtanh.f32 %v2644_v18  ;;  %v3092_v21 = vmul.f32 %v2964_v53, %v7963_v42  ;;  %v2140_v57 = vmul.f32 %v8260_v33, %v8260_v33  ;;  %v8284_v42 = vadd.f32 %v9412_v0, %v7876_v44 }
 0x3f4   :  { %v2645_v49 = vmul.f32 0.7978846, %v2517_v24  ;;  %4193 = vmatprep.mubr.bf16.mxu1 %v3205_v31  ;;  %v2141_v20 = vmul.f32 %v8268_v46, %v8268_v46  ;;  %v2845_v19 = vadd.f32 1.0, %v8135_v39  ;;  %v2853_v53 = vadd.f32 1.0, %v8153_v63 }
 0x3f5   :  { %4269 = vmatpush1.bf16.msra.mxu1 %v5217_v60  ;;  %v8287_v9 = vpop.eup %5495  ;;  %v3204_v13 = vpack.c.bf16 %v3092_v21, %v3084_v54  ;;  %v2268_v18 = vmul.f32 %v2140_v57, %v8260_v33  ;;  %v2148_v60 = vmul.f32 %v8275_v34, %v8275_v34  ;;  %v2149_v31 = vmul.f32 %v8284_v42, %v8284_v42 }
 0x3f6   :  { %4270 = vmatprep.subr.bf16.mxu1 %v5225_v2  ;;  %v8296_v24 = vpop.eup %5497  ;;  %5507 = vtanh.f32 %v2645_v49  ;;  %v2269_v39 = vmul.f32 %v2141_v20, %v8268_v46  ;;  %v2973_v2 = vmul.f32 0.5, %v2845_v19  ;;  %v2981_v63 = vmul.f32 0.5, %v2853_v53  ;;  %v5229_v20 = vld [vmem:[%s9128_s6 + $0x240] ss:$8 sps:$4 sm:$0xff]  }
 0x3f7   :  { %v8301_v54 = vpop.eup %5499  ;;  %4194 = vmatmul.mubr.bf16.gmra.mrb[36].mxu1 %v3204_v13  ;;  %v2396_v23 = vmul.f32 0.044715, %v2268_v18  ;;  %v2276_v21 = vmul.f32 %v2148_v60, %v8275_v34  ;;  %v2844_v57 = vadd.f32 1.0, %v8127_v10  ;;  %v2277_v0 = vmul.f32 %v2149_v31, %v8284_v42  ;;  %v5237_v10 = vld [vmem:[%s9128_s6 + $0x254] ss:$8 sps:$4 sm:$0xff]  }
 0x3f8   :  { %v2397_v37 = vmul.f32 0.044715, %v2269_v39  ;;  %v3101_v49 = vmul.f32 %v2973_v2, %v8006_v41  ;;  %v2852_v19 = vadd.f32 1.0, %v8146_v40  ;;  %v3109_v60 = vmul.f32 %v2981_v63, %v8020_v8 }
 0x3f9   :  { %4271 = vmatpush1.bf16.msra.mxu1 %v5223_v45  ;;  %v2524_v13 = vadd.f32 %v2396_v23, %v8260_v33  ;;  %v2404_v18 = vmul.f32 0.044715, %v2276_v21  ;;  %v2972_v53 = vmul.f32 0.5, %v2844_v57  ;;  %v8316_v45 = vpop.eup %5501  ;;  %v2405_v39 = vmul.f32 0.044715, %v2277_v0 }
 0x3fa   :  { %4272 = vmatprep.subr.bf16.mxu1 %v5231_v3  ;;  %v2525_v41 = vadd.f32 %v2397_v37, %v8268_v46  ;;  %v2980_v31 = vmul.f32 0.5, %v2852_v19  ;;  %v8321_v40 = vadd.f32 %v7802_v26, %v7844_v56  ;;  %v3213_v3 = vpack.c.bf16 %v3109_v60, %v3101_v49  ;;  %v5235_v49 = vld [vmem:[%s9128_s6 + $0x250] ss:$8 sps:$4 sm:$0xff]   ;;  %v5243_v60 = vld [vmem:[%s9128_s6 + $0x264] ss:$8 sps:$4 sm:$0xff]  }
 0x3fb   :  { %v8323_v2 = vpop.eup %5503  ;;  %v2652_v23 = vmul.f32 0.7978846, %v2524_v13  ;;  %v2532_v8 = vadd.f32 %v2404_v18, %v8275_v34  ;;  %v3100_v21 = vmul.f32 %v2972_v53, %v8002_v32  ;;  %v2533_v57 = vadd.f32 %v2405_v39, %v8284_v42 }
 0x3fc   :  { %v2653_v63 = vmul.f32 0.7978846, %v2525_v41  ;;  %v3108_v28 = vmul.f32 %v2980_v31, %v8016_v36  ;;  %v2156_v37 = vmul.f32 %v8321_v40, %v8321_v40  ;;  %4203 = vmatprep.mubr.bf16.mxu1 %v3213_v3  ;;  %v8338_v32 = vadd.f32 %v7809_v29, %v7876_v44  ;;  %v9413_v36 = vld [vmem:[#allocation123_spill] sm:$0xff] }
 0x3fd   :  { %4273 = vmatpush1.bf16.msra.mxu1 %v5229_v20  ;;  %v8331_v0 = vpop.eup %5505  ;;  %5509 = vtanh.f32 %v2652_v23  ;;  %v2660_v26 = vmul.f32 0.7978846, %v2532_v8  ;;  %v8342_v20 = vadd.f32 %v9413_v36, %v7844_v56  ;;  %v2661_v19 = vmul.f32 0.7978846, %v2533_v57 }
 0x3fe   :  { %4274 = vmatprep.subr.bf16.mxu1 %v5237_v10  ;;  %5511 = vtanh.f32 %v2653_v63  ;;  %v3212_v13 = vpack.c.bf16 %v3108_v28, %v3100_v21  ;;  %v2284_v18 = vmul.f32 %v2156_v37, %v8321_v40  ;;  %v2157_v53 = vmul.f32 %v8338_v32, %v8338_v32  ;;  %v9414_v10 = vld [vmem:[#allocation124_spill] sm:$0xff] }
 0x3ff   :  { %5513 = vtanh.f32 %v2660_v26  ;;  %v2164_v29 = vmul.f32 %v8342_v20, %v8342_v20  ;;  %v8354_v56 = vadd.f32 %v9414_v10, %v7876_v44  ;;  %v2861_v39 = vadd.f32 1.0, %v8219_v12  ;;  %v5241_v44 = vld [vmem:[%s9128_s6 + $0x260] ss:$8 sps:$4 sm:$0xff]   ;;  %v5249_v37 = vld [vmem:[%s9128_s6 + $0x274] ss:$8 sps:$4 sm:$0xff]  }
 0x400   :  { %v8356_v41 = vpop.eup %5507  ;;  %5515 = vtanh.f32 %v2661_v19  ;;  %4204 = vmatmul.mubr.bf16.gmra.mrb[40].mxu1 %v3212_v13  ;;  %v2412_v28 = vmul.f32 0.044715, %v2284_v18  ;;  %v2869_v31 = vadd.f32 1.0, %v8238_v51  ;;  %v2285_v23 = vmul.f32 %v2157_v53, %v8338_v32 }
 0x401   :  { %4275 = vmatpush1.bf16.msra.mxu1 %v5235_v49  ;;  %v2292_v8 = vmul.f32 %v2164_v29, %v8342_v20  ;;  %v2165_v3 = vmul.f32 %v8354_v56, %v8354_v56  ;;  %v2860_v21 = vadd.f32 1.0, %v8210_v17  ;;  %v2989_v57 = vmul.f32 0.5, %v2861_v39 }
 0x402   :  { %v2540_v63 = vadd.f32 %v2412_v28, %v8321_v40  ;;  %v2997_v12 = vmul.f32 0.5, %v2869_v31  ;;  %4276 = vmatprep.subr.bf16.mxu1 %v5243_v60  ;;  %v2868_v51 = vadd.f32 1.0, %v8227_v52  ;;  %v2413_v26 = vmul.f32 0.044715, %v2285_v23  ;;  %v5247_v28 = vld [vmem:[%s9128_s6 + $0x270] ss:$8 sps:$4 sm:$0xff]  }
 0x403   :  { %v2420_v49 = vmul.f32 0.044715, %v2292_v8  ;;  %v2293_v36 = vmul.f32 %v2165_v3, %v8354_v56  ;;  %v2988_v19 = vmul.f32 0.5, %v2860_v21  ;;  %v3117_v18 = vmul.f32 %v2989_v57, %v8088_v30  ;;  %v9415_v30 = vld [vmem:[#allocation5_spill] sm:$0xff] }
 0x404   :  { %v2668_v13 = vmul.f32 0.7978846, %v2540_v63  ;;  %v3125_v17 = vmul.f32 %v2997_v12, %v8100_v50  ;;  %v2996_v53 = vmul.f32 0.5, %v2868_v51  ;;  %v2541_v29 = vadd.f32 %v2413_v26, %v8338_v32  ;;  %v5255_v23 = vld [vmem:[%s9128_s6 + $0x284] ss:$8 sps:$4 sm:$0xff]  }
 0x405   :  { %v2548_v60 = vadd.f32 %v2420_v49, %v8342_v20  ;;  %v2421_v52 = vmul.f32 0.044715, %v2293_v36  ;;  %v3116_v10 = vmul.f32 %v2988_v19, %v8078_v58  ;;  %4277 = vmatpush1.bf16.msra.mxu1 %v5241_v44  ;;  %v936_v50 = vsub.s32 6, %v9415_v30  ;;  %v5253_v19 = vld [vmem:[%s9128_s6 + $0x280] ss:$8 sps:$4 sm:$0xff]  }
 0x406   :  { %5517 = vtanh.f32 %v2668_v13  ;;  %v3221_v39 = vpack.c.bf16 %v3125_v17, %v3117_v18  ;;  %v3124_v31 = vmul.f32 %v2996_v53, %v8092_v6  ;;  %4278 = vmatprep.subr.bf16.mxu1 %v5249_v37  ;;  %v2669_v3 = vmul.f32 0.7978846, %v2541_v29  ;;  %v9416_v6 = vld [vmem:[#allocation63_spill] sm:$0xff]  ;;  %v9418_v17 = vld [vmem:[#allocation61_spill] sm:$0xff] }
 0x407   :  { %v8387_v8 = vpop.eup %5509  ;;  %v2676_v58 = vmul.f32 0.7978846, %v2548_v60  ;;  %v2549_v44 = vadd.f32 %v2421_v52, %v8354_v56  ;;  %v940_v21 = vsub.s32 7, %v9415_v30  ;;  %v8394_v12 = vrot.slane %v9416_v6, %v936_v50  ;;  %v5261_v60 = vld [vmem:[%s9128_s6 + $0x294] ss:$8 sps:$4 sm:$0xff]  }
 0x408   :  { %v8391_v63 = vpop.eup %5511  ;;  %4213 = vmatprep.mubr.bf16.mxu1 %v3221_v39  ;;  %v3220_v57 = vpack.c.bf16 %v3124_v31, %v3116_v10  ;;  %v2877_v51 = vadd.f32 1.0, %v8287_v9  ;;  %v2885_v37 = vadd.f32 1.0, %v8301_v54  ;;  %5519 = vtanh.f32 %v2669_v3  ;;  %v9417_v9 = vld [vmem:[#allocation69_spill] sm:$0xff]  ;;  %v9420_v10 = vld [vmem:[#allocation66_spill] sm:$0xff] }
 0x409   :  { %v8398_v26 = vpop.eup %5513  ;;  %v2677_v49 = vmul.f32 0.7978846, %v2549_v44  ;;  %4279 = vmatpush1.bf16.msra.mxu1 %v5247_v28  ;;  %v8401_v36 = vrot.slane %v9416_v6, %v940_v21  ;;  %v2876_v13 = vadd.f32 1.0, %v8262_v5  ;;  %5521 = vtanh.f32 %v2676_v58  ;;  %v9419_v5 = vld [vmem:[#allocation125_spill] sm:$0xff] }
 0x40a   :  { %v8407_v18 = vpop.eup %5515  ;;  %4214 = vmatmul.mubr.bf16.gmra.mrb[44].mxu1 %v3220_v57  ;;  %v8411_v54 = vadd.f32 %v9417_v9, %v8394_v12  ;;  %v8415_v53 = vadd.f32 %v9418_v17, %v8394_v12  ;;  %v3005_v29 = vmul.f32 0.5, %v2877_v51  ;;  %4280 = vmatprep.subr.bf16.mxu1 %v5255_v23  ;;  %v3013_v39 = vmul.f32 0.5, %v2885_v37  ;;  %v5259_v57 = vld [vmem:[%s9128_s6 + $0x290] ss:$8 sps:$4 sm:$0xff]  }
 0x40b   :  { %5523 = vtanh.f32 %v2677_v49  ;;  %v8422_v52 = vadd.f32 %v9419_v5, %v8401_v36  ;;  %v8426_v28 = vadd.f32 %v9420_v10, %v8401_v36  ;;  %v2884_v23 = vadd.f32 1.0, %v8296_v24 }
 0x40c   :  { %v2048_v31 = vmul.f32 %v8411_v54, %v8411_v54  ;;  %v2056_v30 = vmul.f32 %v8415_v53, %v8415_v53  ;;  %v3133_v50 = vmul.f32 %v3005_v29, %v8144_v38  ;;  %v3141_v44 = vmul.f32 %v3013_v39, %v8159_v61  ;;  %v5267_v61 = vld [vmem:[%s9128_s6 + $0x2a4] ss:$8 sps:$4 sm:$0xff]  }
 0x40d   :  { %v2049_v3 = vmul.f32 %v8422_v52, %v8422_v52  ;;  %v2057_v58 = vmul.f32 %v8426_v28, %v8426_v28  ;;  %v3004_v21 = vmul.f32 0.5, %v2876_v13  ;;  %4281 = vmatpush1.bf16.msra.mxu1 %v5253_v19  ;;  %v3012_v51 = vmul.f32 0.5, %v2884_v23 }
 0x40e   :  { %v2176_v6 = vmul.f32 %v2048_v31, %v8411_v54  ;;  %v2184_v38 = vmul.f32 %v2056_v30, %v8415_v53  ;;  %4282 = vmatprep.subr.bf16.mxu1 %v5261_v60  ;;  %v8446_v24 = vadd.f32 %v7932_v4, %v8394_v12  ;;  %v3229_v19 = vpack.c.bf16 %v3141_v44, %v3133_v50  ;;  %v5265_v31 = vld [vmem:[%s9128_s6 + $0x2a0] ss:$8 sps:$4 sm:$0xff]  }
 0x40f   :  { %v2177_v37 = vmul.f32 %v2049_v3, %v8422_v52  ;;  %v2185_v49 = vmul.f32 %v2057_v58, %v8426_v28  ;;  %v3132_v13 = vmul.f32 %v3004_v21, %v8123_v22  ;;  %v3140_v60 = vmul.f32 %v3012_v51, %v8151_v11 }
 0x410   :  { %v8454_v9 = vpop.eup %5517  ;;  %v2304_v17 = vmul.f32 0.044715, %v2176_v6  ;;  %v2312_v29 = vmul.f32 0.044715, %v2184_v38  ;;  %v2064_v4 = vmul.f32 %v8446_v24, %v8446_v24  ;;  %4223 = vmatprep.mubr.bf16.mxu1 %v3229_v19  ;;  %v8461_v39 = vadd.f32 %v7943_v1, %v8401_v36  ;;  %v5273_v1 = vld [vmem:[%s9128_s6 + $0x2b4] ss:$8 sps:$4 sm:$0xff]  }
 0x411   :  { %v2305_v5 = vmul.f32 0.044715, %v2177_v37  ;;  %v2313_v10 = vmul.f32 0.044715, %v2185_v49  ;;  %4283 = vmatpush1.bf16.msra.mxu1 %v5259_v57  ;;  %v8465_v22 = vadd.f32 %v7956_v59, %v8394_v12  ;;  %v3228_v50 = vpack.c.bf16 %v3140_v60, %v3132_v13 }
 0x412   :  { %v2432_v11 = vadd.f32 %v2304_v17, %v8411_v54  ;;  %v2440_v30 = vadd.f32 %v2312_v29, %v8415_v53  ;;  %v2192_v23 = vmul.f32 %v2064_v4, %v8446_v24  ;;  %4284 = vmatprep.subr.bf16.mxu1 %v5267_v61  ;;  %v8476_v3 = vpop.eup %5519  ;;  %v2065_v44 = vmul.f32 %v8461_v39, %v8461_v39  ;;  %v5271_v29 = vld [vmem:[%s9128_s6 + $0x2b0] ss:$8 sps:$4 sm:$0xff]  }
 0x413   :  { %v2433_v59 = vadd.f32 %v2305_v5, %v8422_v52  ;;  %v2441_v58 = vadd.f32 %v2313_v10, %v8426_v28  ;;  %v2072_v21 = vmul.f32 %v8465_v22, %v8465_v22  ;;  %v8484_v57 = vpop.eup %5521  ;;  %4224 = vmatmul.mubr.bf16.gmra.mrb[48].mxu1 %v3228_v50  ;;  %v8488_v61 = vadd.f32 %v7965_v25, %v8401_v36  ;;  %v5279_v5 = vld [vmem:[%s9128_s6 + $0x2c4] ss:$8 sps:$4 sm:$0xff]  }
 0x414   :  { %v2560_v6 = vmul.f32 0.7978846, %v2432_v11  ;;  %v2568_v38 = vmul.f32 0.7978846, %v2440_v30  ;;  %v2320_v51 = vmul.f32 0.044715, %v2192_v23  ;;  %v2193_v13 = vmul.f32 %v2065_v44, %v8461_v39 }
 0x415   :  { %v8490_v37 = vpop.eup %5523  ;;  %v2561_v49 = vmul.f32 0.7978846, %v2433_v59  ;;  %v2569_v19 = vmul.f32 0.7978846, %v2441_v58  ;;  %v2200_v17 = vmul.f32 %v2072_v21, %v8465_v22  ;;  %4285 = vmatpush1.bf16.msra.mxu1 %v5265_v31  ;;  %v2073_v25 = vmul.f32 %v8488_v61, %v8488_v61  ;;  %v5277_v58 = vld [vmem:[%s9128_s6 + $0x2c0] ss:$8 sps:$4 sm:$0xff]  }
 0x416   :  { %5525 = vtanh.f32 %v2560_v6  ;;  %v2448_v60 = vadd.f32 %v2320_v51, %v8446_v24  ;;  %v2893_v4 = vadd.f32 1.0, %v8323_v2  ;;  %4286 = vmatprep.subr.bf16.mxu1 %v5273_v1  ;;  %v2321_v10 = vmul.f32 0.044715, %v2193_v13  ;;  %v5285_v6 = vld [vmem:[%s9128_s6 + $0x2d4] ss:$8 sps:$4 sm:$0xff]  }
 0x417   :  { %5527 = vtanh.f32 %v2561_v49  ;;  %v2328_v31 = vmul.f32 0.044715, %v2200_v17  ;;  %v2901_v11 = vadd.f32 1.0, %v8356_v41  ;;  %v2201_v50 = vmul.f32 %v2073_v25, %v8488_v61 }
 0x418   :  { %5529 = vtanh.f32 %v2568_v38  ;;  %v2576_v30 = vmul.f32 0.7978846, %v2448_v60  ;;  %v3021_v23 = vmul.f32 0.5, %v2893_v4  ;;  %v2449_v59 = vadd.f32 %v2321_v10, %v8461_v39  ;;  %v9422_v4 = vld [vmem:[#allocation73_spill] sm:$0xff] }
 0x419   :  { %5531 = vtanh.f32 %v2569_v19  ;;  %v2456_v2 = vadd.f32 %v2328_v31, %v8465_v22  ;;  %v3029_v1 = vmul.f32 0.5, %v2901_v11  ;;  %4287 = vmatpush1.bf16.msra.mxu1 %v5271_v29  ;;  %v2329_v44 = vmul.f32 0.044715, %v2201_v50  ;;  %v5291_v31 = vld [vmem:[%s9128_s6 + $0x2e4] ss:$8 sps:$4 sm:$0xff]  }
 0x41a   :  { %5533 = vtanh.f32 %v2576_v30  ;;  %v3149_v41 = vmul.f32 %v3021_v23, %v8184_v7  ;;  %v2892_v21 = vadd.f32 1.0, %v8316_v45  ;;  %4288 = vmatprep.subr.bf16.mxu1 %v5279_v5  ;;  %v2577_v38 = vmul.f32 0.7978846, %v2449_v59  ;;  %v9421_v7 = vld [vmem:[#allocation83_spill] sm:$0xff]  ;;  %v9423_v23 = vld [vmem:[#allocation98_spill] sm:$0xff] }
 0x41b   :  { %v2584_v51 = vmul.f32 0.7978846, %v2456_v2  ;;  %v3157_v49 = vmul.f32 %v3029_v1, %v8214_v27  ;;  %v2900_v19 = vadd.f32 1.0, %v8331_v0  ;;  %v2457_v13 = vadd.f32 %v2329_v44, %v8488_v61  ;;  %v5283_v27 = vld [vmem:[%s9128_s6 + $0x2d0] ss:$8 sps:$4 sm:$0xff]  }
 0x41c   :  { %v3020_v17 = vmul.f32 0.5, %v2892_v21  ;;  %v8521_v29 = vadd.f32 %v7985_v47, %v8394_v12  ;;  %v8525_v45 = vadd.f32 %v9421_v7, %v8401_v36  ;;  %5535 = vtanh.f32 %v2577_v38  ;;  %v5289_v38 = vld [vmem:[%s9128_s6 + $0x2e0] ss:$8 sps:$4 sm:$0xff]  }
 0x41d   :  { %v3237_v60 = vpack.c.bf16 %v3157_v49, %v3149_v41  ;;  %v3028_v25 = vmul.f32 0.5, %v2900_v19  ;;  %v8529_v5 = vadd.f32 %v9422_v4, %v8394_v12  ;;  %4289 = vmatpush1.bf16.msra.mxu1 %v5277_v58  ;;  %5537 = vtanh.f32 %v2584_v51 }
 0x41e   :  { %v2585_v0 = vmul.f32 0.7978846, %v2457_v13  ;;  %v3148_v47 = vmul.f32 %v3020_v17, %v8176_v62  ;;  %v2080_v10 = vmul.f32 %v8521_v29, %v8521_v29  ;;  %4290 = vmatprep.subr.bf16.mxu1 %v5285_v6  ;;  %v2081_v30 = vmul.f32 %v8525_v45, %v8525_v45  ;;  %v5297_v13 = vld [vmem:[%s9128_s6 + $0x2f4] ss:$8 sps:$4 sm:$0xff]  }
 0x41f   :  { %4233 = vmatprep.mubr.bf16.mxu1 %v3237_v60  ;;  %v3156_v11 = vmul.f32 %v3028_v25, %v8196_v35  ;;  %v2088_v50 = vmul.f32 %v8529_v5, %v8529_v5  ;;  %v8547_v62 = vadd.f32 %v9423_v23, %v8401_v36  ;;  %v2909_v1 = vadd.f32 1.0, %v8391_v63 }
 0x420   :  { %v5526_v59 = vpop.eup %5525  ;;  %5539 = vtanh.f32 %v2585_v0  ;;  %v2208_v2 = vmul.f32 %v2080_v10, %v8521_v29  ;;  %v2917_v58 = vadd.f32 1.0, %v8407_v18  ;;  %v2209_v21 = vmul.f32 %v2081_v30, %v8525_v45 }
 0x421   :  { %v8552_v44 = vpop.eup %5527  ;;  %v2816_v35 = vadd.f32 1.0, %v5526_v59  ;;  %v3236_v41 = vpack.c.bf16 %v3156_v11, %v3148_v47  ;;  %v2216_v6 = vmul.f32 %v2088_v50, %v8529_v5  ;;  %4291 = vmatpush1.bf16.msra.mxu1 %v5283_v27  ;;  %v2089_v63 = vmul.f32 %v8547_v62, %v8547_v62  ;;  %v5295_v59 = vld [vmem:[%s9128_s6 + $0x2f0] ss:$8 sps:$4 sm:$0xff]  }
 0x422   :  { %v5530_v51 = vpop.eup %5529  ;;  %v2336_v49 = vmul.f32 0.044715, %v2208_v2  ;;  %v3037_v19 = vmul.f32 0.5, %v2909_v1  ;;  %v3045_v18 = vmul.f32 0.5, %v2917_v58  ;;  %4292 = vmatprep.subr.bf16.mxu1 %v5291_v31  ;;  %v2337_v25 = vmul.f32 0.044715, %v2209_v21 }
 0x423   :  { %v8564_v17 = vpop.eup %5531  ;;  %v2944_v7 = vmul.f32 0.5, %v2816_v35  ;;  %v2824_v60 = vadd.f32 1.0, %v5530_v51  ;;  %4234 = vmatmul.mubr.bf16.gmra.mrb[52].mxu1 %v3236_v41  ;;  %v2344_v4 = vmul.f32 0.044715, %v2216_v6  ;;  %v2217_v47 = vmul.f32 %v2089_v63, %v8547_v62 }
 0x424   :  { %v8566_v27 = vpop.eup %5533  ;;  %v2464_v0 = vadd.f32 %v2336_v49, %v8521_v29  ;;  %v3165_v10 = vmul.f32 %v3037_v19, %v8268_v46  ;;  %v3173_v31 = vmul.f32 %v3045_v18, %v8284_v42  ;;  %v2465_v50 = vadd.f32 %v2337_v25, %v8525_v45  ;;  %v9424_v49 = vld [vmem:[#allocation102_spill] sm:$0xff]  ;;  %v9425_v19 = vld [vmem:[#allocation103_spill] sm:$0xff] }
 0x425   :  { %v8573_v11 = vmul.f32 %v2944_v7, %v8411_v54  ;;  %v2952_v30 = vmul.f32 0.5, %v2824_v60  ;;  %v2472_v23 = vadd.f32 %v2344_v4, %v8529_v5  ;;  %4293 = vmatpush1.bf16.msra.mxu1 %v5289_v38  ;;  %v2345_v1 = vmul.f32 0.044715, %v2217_v47  ;;  %v5590_v25 = vld [vmem:[%s9128_s6 + $0x304] ss:$8 sps:$4 sm:$0xff]   ;;  %v9426_v47 = vld [vmem:[#allocation95_spill] sm:$0xff] }
 0x426   :  { %v2592_v2 = vmul.f32 0.7978846, %v2464_v0  ;;  %v3245_v58 = vpack.c.bf16 %v3173_v31, %v3165_v10  ;;  %v2908_v46 = vadd.f32 1.0, %v8387_v8  ;;  %4294 = vmatprep.subr.bf16.mxu1 %v5297_v13  ;;  %v8581_v42 = vpop.eup %5535  ;;  %v2593_v35 = vmul.f32 0.7978846, %v2465_v50  ;;  %v9427_v31 = vld [vmem:[#allocation105_spill] sm:$0xff] }
 0x427   :  { %v8584_v54 = vmul.f32 %v2952_v30, %v8415_v53  ;;  %v2600_v41 = vmul.f32 0.7978846, %v2472_v23  ;;  %v2916_v21 = vadd.f32 1.0, %v8398_v26  ;;  %v8587_v6 = vpop.eup %5537  ;;  %v2473_v38 = vadd.f32 %v2345_v1, %v8547_v62 }
 0x428   :  { %5541 = vtanh.f32 %v2592_v2  ;;  %4243 = vmatprep.mubr.bf16.mxu1 %v3245_v58  ;;  %v3036_v51 = vmul.f32 0.5, %v2908_v46  ;;  %v8592_v8 = vadd.f32 %v9424_v49, %v8394_v12  ;;  %v8598_v18 = vadd.f32 %v9425_v19, %v8401_v36 }
 0x429   :  { %v3200_v63 = vpack.c.bf16 %v8584_v54, %v8573_v11  ;;  %5543 = vtanh.f32 %v2593_v35  ;;  %v3044_v53 = vmul.f32 0.5, %v2916_v21  ;;  %4295 = vmatpush1.bf16.msra.mxu1 %v5295_v59  ;;  %v2601_v13 = vmul.f32 0.7978846, %v2473_v38  ;;  %v5593_v11 = vld [vmem:[%s9128_s6 + $0x310] ss:$8 sps:$4 sm:$0xff]  }
 0x42a   :  { %v8600_v26 = vpop.eup %5539  ;;  %5545 = vtanh.f32 %v2600_v41  ;;  %v3164_v7 = vmul.f32 %v3036_v51, %v8260_v33  ;;  %v2096_v60 = vmul.f32 %v8592_v8, %v8592_v8  ;;  %4874 = vmatprep.subr.bf16.mxu1 %v5590_v25  ;;  %v2097_v0 = vmul.f32 %v8598_v18, %v8598_v18 }
 0x42b   :  { %v3172_v4 = vmul.f32 %v3044_v53, %v8275_v34  ;;  %v8613_v10 = vadd.f32 %v9426_v47, %v8394_v12  ;;  %v8617_v33 = vadd.f32 %v9427_v31, %v8401_v36  ;;  %5547 = vtanh.f32 %v2601_v13  ;;  %v9428_v31 = vld [vmem:[#allocation46_spill] sm:$0xff] }
 0x42c   :  { %v2224_v30 = vmul.f32 %v2096_v60, %v8592_v8  ;;  %v2925_v50 = vadd.f32 1.0, %v8476_v3  ;;  %v2933_v23 = vadd.f32 1.0, %v8490_v37  ;;  %v2225_v34 = vmul.f32 %v2097_v0, %v8598_v18 }
 0x42d   :  { %v3244_v59 = vpack.c.bf16 %v3172_v4, %v3164_v7  ;;  %v2104_v2 = vmul.f32 %v8613_v10, %v8613_v10  ;;  %v2105_v1 = vmul.f32 %v8617_v33, %v8617_v33  ;;  %v2924_v41 = vadd.f32 1.0, %v8454_v9 }
 0x42e   :  { %v2352_v58 = vmul.f32 0.044715, %v2224_v30  ;;  %v3053_v46 = vmul.f32 0.5, %v2925_v50  ;;  %v3061_v35 = vmul.f32 0.5, %v2933_v23  ;;  %v2353_v21 = vmul.f32 0.044715, %v2225_v34 }
 0x42f   :  { %4244 = vmatmul.mubr.bf16.gmra.mrb[56].mxu1 %v3244_v59  ;;  %v2232_v3 = vmul.f32 %v2104_v2, %v8613_v10  ;;  %v2233_v37 = vmul.f32 %v2105_v1, %v8617_v33  ;;  %v2932_v38 = vadd.f32 1.0, %v8484_v57  ;;  %v3052_v19 = vmul.f32 0.5, %v2924_v41  ;;  %v9429_v34 = vld [vmem:[#allocation49_spill] sm:$0xff] }
 0x430   :  { %v2480_v51 = vadd.f32 %v2352_v58, %v8592_v8  ;;  %v3181_v49 = vmul.f32 %v3053_v46, %v8338_v32  ;;  %v3189_v53 = vmul.f32 %v3061_v35, %v8354_v56  ;;  %v2481_v13 = vadd.f32 %v2353_v21, %v8598_v18 }
 0x431   :  { %v2360_v7 = vmul.f32 0.044715, %v2232_v3  ;;  %v2361_v60 = vmul.f32 0.044715, %v2233_v37  ;;  %v3060_v9 = vmul.f32 0.5, %v2932_v38  ;;  %v3180_v47 = vmul.f32 %v3052_v19, %v8321_v40  ;;  %v9430_v3 = vld [vmem:[#allocation40_spill] sm:$0xff] }
 0x432   :  { %v8635_v25 = vpop.eup %5541  ;;  %v2608_v4 = vmul.f32 0.7978846, %v2480_v51  ;;  %v3253_v0 = vpack.c.bf16 %v3189_v53, %v3181_v49  ;;  %v2815_v57 = vadd.f32 1.0, %v9428_v31  ;;  %v2609_v50 = vmul.f32 0.7978846, %v2481_v13  ;;  %v9431_v53 = vld [vmem:[#allocation41_spill] sm:$0xff] }
 0x433   :  { %v8639_v30 = vpop.eup %5543  ;;  %v2488_v32 = vadd.f32 %v2360_v7, %v8613_v10  ;;  %v2489_v56 = vadd.f32 %v2361_v60, %v8617_v33  ;;  %v3188_v23 = vmul.f32 %v3060_v9, %v8342_v20  ;;  %v2823_v2 = vadd.f32 1.0, %v9429_v34  ;;  %v9433_v34 = vld [vmem:[#allocation65_spill] sm:$0xff] }
 0x434   :  { %v8644_v59 = vpop.eup %5545  ;;  %5549 = vtanh.f32 %v2608_v4  ;;  %4253 = vmatprep.mubr.bf16.mxu1 %v3253_v0  ;;  %v2943_v1 = vmul.f32 0.5, %v2815_v57  ;;  %v8649_v40 = vadd.f32 %v8070_v16, %v8394_v12  ;;  %v8658_v38 = vadd.f32 %v8072_v15, %v8401_v36  ;;  %v9432_v0 = vld [vmem:[#allocation58_spill] sm:$0xff] }
 0x435   :  { %5551 = vtanh.f32 %v2609_v50  ;;  %v2616_v58 = vmul.f32 0.7978846, %v2488_v32  ;;  %v2617_v46 = vmul.f32 0.7978846, %v2489_v56  ;;  %v3252_v35 = vpack.c.bf16 %v3188_v23, %v3180_v47  ;;  %v8651_v41 = vpop.eup %5547 }
 0x436   :  { %v2951_v21 = vmul.f32 0.5, %v2823_v2  ;;  %v3071_v20 = vmul.f32 %v2943_v1, %v9430_v3  ;;  %v2112_v37 = vmul.f32 %v8649_v40, %v8649_v40  ;;  %v8662_v16 = vadd.f32 %v8080_v14, %v8394_v12 }
 0x437   :  { %5553 = vtanh.f32 %v2616_v58  ;;  %4254 = vmatmul.mubr.bf16.gmra.mrb[60].mxu1 %v3252_v35  ;;  %v8666_v51 = vadd.f32 %v8094_v48, %v8401_v36  ;;  %v2817_v49 = vadd.f32 1.0, %v8552_v44  ;;  %v2113_v15 = vmul.f32 %v8658_v38, %v8658_v38 }
 0x438   :  { %5555 = vtanh.f32 %v2617_v46  ;;  %v3079_v19 = vmul.f32 %v2951_v21, %v9431_v53  ;;  %v2240_v13 = vmul.f32 %v2112_v37, %v8649_v40  ;;  %v2120_v7 = vmul.f32 %v8662_v16, %v8662_v16  ;;  %v9434_v37 = vld [vmem:[#allocation43_spill] sm:$0xff] }
 0x439   :  { %v2121_v14 = vmul.f32 %v8666_v51, %v8666_v51  ;;  %v2825_v60 = vadd.f32 1.0, %v8564_v17  ;;  %v2945_v48 = vmul.f32 0.5, %v2817_v49  ;;  %v2241_v44 = vmul.f32 %v2113_v15, %v8658_v38 }
 0x43a   :  { %v3199_v9 = vpack.c.bf16 %v3079_v19, %v3071_v20  ;;  %v2368_v4 = vmul.f32 0.044715, %v2240_v13  ;;  %v2831_v47 = vadd.f32 1.0, %v9432_v0  ;;  %v2248_v31 = vmul.f32 %v2120_v7, %v8662_v16  ;;  %v9436_v7 = vld [vmem:[#allocation48_spill] sm:$0xff] }
 0x43b   :  { %v2249_v57 = vmul.f32 %v2121_v14, %v8666_v51  ;;  %v2953_v50 = vmul.f32 0.5, %v2825_v60  ;;  %v3073_v32 = vmul.f32 %v2945_v48, %v8422_v52  ;;  %v2369_v23 = vmul.f32 0.044715, %v2241_v44  ;;  %v5591_v48 = vld [vmem:[%s9128_s6 + $0x300] ss:$8 sps:$4 sm:$0xff]  }
 0x43c   :  { %4296 = vmatprep.mubr.bf16.mxu1 %v3199_v9  ;;  %v2496_v56 = vadd.f32 %v2368_v4, %v8649_v40  ;;  %v2839_v17 = vadd.f32 1.0, %v9433_v34  ;;  %v2959_v2 = vmul.f32 0.5, %v2831_v47  ;;  %v2376_v1 = vmul.f32 0.044715, %v2248_v31  ;;  %v9438_v9 = vld [vmem:[#allocation45_spill] sm:$0xff] }
 0x43d   :  { %v2377_v58 = vmul.f32 0.044715, %v2249_v57  ;;  %v3081_v46 = vmul.f32 %v2953_v50, %v8426_v28  ;;  %v8688_v35 = vadd.f32 %v8117_v43, %v8394_v12  ;;  %v2497_v52 = vadd.f32 %v2369_v23, %v8658_v38  ;;  %v9435_v28 = vld [vmem:[#allocation53_spill] sm:$0xff]  ;;  %v5592_v57 = vld [vmem:[%s9128_s6 + $0x314] ss:$8 sps:$4 sm:$0xff]  }
 0x43e   :  { %v8690_v21 = vpop.eup %5549  ;;  %v2624_v3 = vmul.f32 0.7978846, %v2496_v56  ;;  %v2967_v20 = vmul.f32 0.5, %v2839_v17  ;;  %v3087_v49 = vmul.f32 %v2959_v2, %v9434_v37  ;;  %v2504_v19 = vadd.f32 %v2376_v1, %v8662_v16  ;;  %v9440_v17 = vld [vmem:[#allocation126_spill] sm:$0xff] }
 0x43f   :  { %v8694_v53 = vpop.eup %5551  ;;  %v2505_v13 = vadd.f32 %v2377_v58, %v8666_v51  ;;  %v3201_v15 = vpack.c.bf16 %v3081_v46, %v3073_v32  ;;  %v9437_v14 = vpack.c.bf16 %v9435_v28, %v9436_v7  ;;  %v2128_v43 = vmul.f32 %v8688_v35, %v8688_v35  ;;  %v9439_v32 = vld [vmem:[#allocation107_spill] sm:$0xff] }
 0x440   :  { %5557 = vtanh.f32 %v2624_v3  ;;  %v2625_v60 = vmul.f32 0.7978846, %v2497_v52  ;;  %v3095_v4 = vmul.f32 %v2967_v20, %v9438_v9  ;;  %v8709_v44 = vadd.f32 %v8125_v55, %v8401_v36  ;;  %v9442_v7 = vld [vmem:[#allocation59_spill] sm:$0xff] }
 0x441   :  { %4297 = vmatmul.mubr.bf16.vlgmr.msra.gmra.mrb[32].mxu1 %v9437_v14  ;;  %v8711_v0 = vpop.eup %5553  ;;  %v2632_v47 = vmul.f32 0.7978846, %v2504_v19  ;;  %v2633_v31 = vmul.f32 0.7978846, %v2505_v13  ;;  %4409 = vmatprep.mubr.bf16.mxu0 %v3201_v15  ;;  %v2256_v50 = vmul.f32 %v2128_v43, %v8688_v35  ;;  %v8719_v56 = vadd.f32 %v9439_v32, %v8394_v12  ;;  %v9443_v32 = vld [vmem:[#allocation42_spill] sm:$0xff] }
 0x442   :  { %4890 = vmatpush1.bf16.msra.mxu1 %v5591_v48  ;;  %v8721_v23 = vpop.eup %5555  ;;  %5559 = vtanh.f32 %v2625_v60  ;;  %4410 = vmatmul.mubr.bf16.vlgmr.msra.gmra.mrb[128].mxu0 %v3200_v63  ;;  %v3207_v55 = vpack.c.bf16 %v3095_v4, %v3087_v49  ;;  %v2129_v34 = vmul.f32 %v8709_v44, %v8709_v44  ;;  %v8730_v2 = vadd.f32 %v9440_v17, %v8401_v36  ;;  %v9441_v49 = vld [vmem:[#allocation54_spill] sm:$0xff] }
 0x443   :  { %4875 = vmatprep.subr.bf16.mxu1 %v5592_v57  ;;  %5561 = vtanh.f32 %v2632_v47  ;;  %v2384_v1 = vmul.f32 0.044715, %v2256_v50  ;;  %v2136_v58 = vmul.f32 %v8719_v56, %v8719_v56  ;;  %v2833_v46 = vadd.f32 1.0, %v8581_v42  ;;  %v5594_v42 = vld [vmem:[%s9128_s6 + $0x324] ss:$8 sps:$4 sm:$0xff]  }
 0x444   :  { %5563 = vtanh.f32 %v2633_v31  ;;  %4306 = vmatprep.mubr.bf16.mxu1 %v3207_v55  ;;  %v2257_v54 = vmul.f32 %v2129_v34, %v8709_v44  ;;  %v2137_v63 = vmul.f32 %v8730_v2, %v8730_v2  ;;  %v2841_v3 = vadd.f32 1.0, %v8600_v26  ;;  %v5595_v57 = vld [vmem:[%s9128_s6 + $0x320] ss:$8 sps:$4 sm:$0xff]  }
 0x445   :  { %v2512_v52 = vadd.f32 %v2384_v1, %v8688_v35  ;;  %v2264_v20 = vmul.f32 %v2136_v58, %v8719_v56  ;;  %v2961_v37 = vmul.f32 0.5, %v2833_v46  ;;  %v2830_v19 = vadd.f32 1.0, %v9441_v49  ;;  %v9444_v46 = vld [vmem:[#allocation44_spill] sm:$0xff] }
 0x446   :  { %4891 = vmatpush1.bf16.msra.mxu1 %v5593_v11  ;;  %v2385_v13 = vmul.f32 0.044715, %v2257_v54  ;;  %v2265_v15 = vmul.f32 %v2137_v63, %v8730_v2  ;;  %v2969_v28 = vmul.f32 0.5, %v2841_v3  ;;  %v2838_v14 = vadd.f32 1.0, %v9442_v7  ;;  %v5598_v7 = vld [vmem:[%s9128_s6 + $0x344] ss:$8 sps:$4 sm:$0xff]  }
 0x447   :  { %4876 = vmatprep.subr.bf16.mxu1 %v5594_v42  ;;  %v2640_v43 = vmul.f32 0.7978846, %v2512_v52  ;;  %v2392_v26 = vmul.f32 0.044715, %v2264_v20  ;;  %v3089_v60 = vmul.f32 %v2961_v37, %v8461_v39  ;;  %v2958_v48 = vmul.f32 0.5, %v2830_v19  ;;  %v9445_v37 = vld [vmem:[#allocation72_spill] sm:$0xff] }
 0x448   :  { %v2513_v9 = vadd.f32 %v2385_v13, %v8709_v44  ;;  %v2393_v4 = vmul.f32 0.044715, %v2265_v15  ;;  %v3097_v47 = vmul.f32 %v2969_v28, %v8488_v61  ;;  %v2966_v31 = vmul.f32 0.5, %v2838_v14  ;;  %v5596_v39 = vld [vmem:[%s9128_s6 + $0x334] ss:$8 sps:$4 sm:$0xff]  }
 0x449   :  { %5565 = vtanh.f32 %v2640_v43  ;;  %v2520_v50 = vadd.f32 %v2392_v26, %v8719_v56  ;;  %v3086_v55 = vmul.f32 %v2958_v48, %v9443_v32  ;;  %v2832_v34 = vadd.f32 1.0, %v8566_v27  ;;  %v5597_v19 = vld [vmem:[%s9128_s6 + $0x330] ss:$8 sps:$4 sm:$0xff]   ;;  %v9446_v26 = vld [vmem:[#allocation85_spill] sm:$0xff] }
 0x44a   :  { %4892 = vmatpush1.bf16.msra.mxu1 %v5595_v57  ;;  %v5558_v17 = vpop.eup %5557  ;;  %v2641_v61 = vmul.f32 0.7978846, %v2513_v9  ;;  %v2521_v1 = vadd.f32 %v2393_v4, %v8730_v2  ;;  %v3209_v58 = vpack.c.bf16 %v3097_v47, %v3089_v60  ;;  %v3094_v11 = vmul.f32 %v2966_v31, %v9444_v46  ;;  %v9448_v31 = vld [vmem:[#allocation127_spill] sm:$0xff] }
 0x44b   :  { %4877 = vmatprep.subr.bf16.mxu1 %v5596_v39  ;;  %v2880_v54 = vadd.f32 1.0, %v5558_v17  ;;  %v2648_v63 = vmul.f32 0.7978846, %v2520_v50  ;;  %v2840_v3 = vadd.f32 1.0, %v8587_v6  ;;  %v2960_v52 = vmul.f32 0.5, %v2832_v34  ;;  %v9450_v39 = vld [vmem:[#allocation119_spill] sm:$0xff] }
 0x44c   :  { %v8765_v20 = vpop.eup %5559  ;;  %5567 = vtanh.f32 %v2641_v61  ;;  %v2649_v27 = vmul.f32 0.7978846, %v2521_v1  ;;  %4419 = vmatprep.mubr.bf16.mxu0 %v3209_v58  ;;  %v3206_v42 = vpack.c.bf16 %v3094_v11, %v3086_v55  ;;  %v2847_v49 = vadd.f32 1.0, %v9445_v37  ;;  %v9449_v55 = vld [vmem:[#allocation52_spill] sm:$0xff] }
 0x44d   :  { %v5562_v13 = vpop.eup %5561  ;;  %v3008_v15 = vmul.f32 0.5, %v2880_v54  ;;  %5569 = vtanh.f32 %v2648_v63  ;;  %v2968_v28 = vmul.f32 0.5, %v2840_v3  ;;  %v3088_v6 = vmul.f32 %v2960_v52, %v8446_v24  ;;  %v9447_v24 = vld [vmem:[#allocation116_spill] sm:$0xff] }
 0x44e   :  { %4893 = vmatpush1.bf16.msra.mxu1 %v5597_v19  ;;  %v8775_v14 = vpop.eup %5563  ;;  %v2888_v43 = vadd.f32 1.0, %v5562_v13  ;;  %5571 = vtanh.f32 %v2649_v27  ;;  %v2855_v60 = vadd.f32 1.0, %v9446_v26  ;;  %v2975_v48 = vmul.f32 0.5, %v2847_v49  ;;  %v9451_v58 = vld [vmem:[#allocation120_spill] sm:$0xff] }
 0x44f   :  { %4878 = vmatprep.subr.bf16.mxu1 %v5598_v7  ;;  %4307 = vmatmul.mubr.bf16.gmra.mrb[36].mxu1 %v3206_v42  ;;  %v8779_v9 = vmul.f32 %v3008_v15, %v8649_v40  ;;  %v3096_v4 = vmul.f32 %v2968_v28, %v8465_v22  ;;  %v8784_v47 = vadd.f32 %v9447_v24, %v8394_v12  ;;  %v5599_v22 = vld [vmem:[%s9128_s6 + $0x340] ss:$8 sps:$4 sm:$0xff]   ;;  %v5600_v11 = vld [vmem:[%s9128_s6 + $0x354] ss:$8 sps:$4 sm:$0xff]   ;;  %v2849_v27 = vadd.f32 1.0, %v8639_v30 }
 0x450   :  { %v8788_v57 = vadd.f32 %v9448_v31, %v8401_v36  ;;  %v3016_v50 = vmul.f32 0.5, %v2888_v43  ;;  %v2983_v32 = vmul.f32 0.5, %v2855_v60  ;;  %v3103_v34 = vmul.f32 %v2975_v48, %v9449_v55  ;;  %v9452_v63 = vld [vmem:[#allocation60_spill] sm:$0xff]  ;;  %v9453_v31 = vld [vmem:[#allocation70_spill] sm:$0xff] }
 0x451   :  { %v8793_v17 = vadd.f32 %v9450_v39, %v8394_v12  ;;  %v3208_v40 = vpack.c.bf16 %v3096_v4, %v3088_v6  ;;  %v2144_v61 = vmul.f32 %v8784_v47, %v8784_v47  ;;  %v8804_v46 = vadd.f32 %v9451_v58, %v8401_v36  ;;  %v5601_v30 = vld [vmem:[%s9128_s6 + $0x350] ss:$8 sps:$4 sm:$0xff]  }
 0x452   :  { %4894 = vmatpush1.bf16.msra.mxu1 %v5599_v22  ;;  %v2145_v1 = vmul.f32 %v8788_v57, %v8788_v57  ;;  %v8810_v54 = vmul.f32 %v3016_v50, %v8662_v16  ;;  %v3111_v3 = vmul.f32 %v2983_v32, %v9452_v63  ;;  %v2857_v16 = vadd.f32 1.0, %v8651_v41  ;;  %v5602_v41 = vld [vmem:[%s9128_s6 + $0x364] ss:$8 sps:$4 sm:$0xff]   ;;  %v9454_v32 = vld [vmem:[#allocation80_spill] sm:$0xff] }
 0x453   :  { %4879 = vmatprep.subr.bf16.mxu1 %v5600_v11  ;;  %v2152_v52 = vmul.f32 %v8793_v17, %v8793_v17  ;;  %v8816_v42 = vpop.eup %5565  ;;  %4420 = vmatmul.mubr.bf16.gmra.mrb[132].mxu0 %v3208_v40  ;;  %v2272_v37 = vmul.f32 %v2144_v61, %v8784_v47  ;;  %v2153_v19 = vmul.f32 %v8804_v46, %v8804_v46  ;;  %v2977_v6 = vmul.f32 0.5, %v2849_v27 }
 0x454   :  { %v2273_v49 = vmul.f32 %v2145_v1, %v8788_v57  ;;  %v3232_v13 = vpack.c.bf16 %v8810_v54, %v8779_v9  ;;  %v3215_v15 = vpack.c.bf16 %v3111_v3, %v3103_v34  ;;  %v2985_v60 = vmul.f32 0.5, %v2857_v16  ;;  %v5603_v3 = vld [vmem:[%s9128_s6 + $0x360] ss:$8 sps:$4 sm:$0xff]  }
 0x455   :  { %v2280_v28 = vmul.f32 %v2152_v52, %v8793_v17  ;;  %v2400_v7 = vmul.f32 0.044715, %v2272_v37  ;;  %v2281_v26 = vmul.f32 %v2153_v19, %v8804_v46  ;;  %v3105_v24 = vmul.f32 %v2977_v6, %v8525_v45  ;;  %v9455_v16 = vld [vmem:[#allocation50_spill] sm:$0xff] }
 0x456   :  { %4895 = vmatpush1.bf16.msra.mxu1 %v5601_v30  ;;  %v2401_v43 = vmul.f32 0.044715, %v2273_v49  ;;  %v8833_v48 = vpop.eup %5567  ;;  %4316 = vmatprep.mubr.bf16.mxu1 %v3215_v15  ;;  %v2846_v50 = vadd.f32 1.0, %v9453_v31  ;;  %v2854_v55 = vadd.f32 1.0, %v9454_v32  ;;  %v3113_v61 = vmul.f32 %v2985_v60, %v8547_v62  ;;  %v5604_v62 = vld [vmem:[%s9128_s6 + $0x374] ss:$8 sps:$4 sm:$0xff]  }
 0x457   :  { %4880 = vmatprep.subr.bf16.mxu1 %v5602_v41  ;;  %v2408_v4 = vmul.f32 0.044715, %v2280_v28  ;;  %v8838_v34 = vpop.eup %5569  ;;  %v2528_v39 = vadd.f32 %v2400_v7, %v8784_v47  ;;  %v2409_v40 = vmul.f32 0.044715, %v2281_v26  ;;  %v2848_v45 = vadd.f32 1.0, %v8635_v25  ;;  %v9456_v28 = vld [vmem:[#allocation56_spill] sm:$0xff] }
 0x458   :  { %v2529_v22 = vadd.f32 %v2401_v43, %v8788_v57  ;;  %v8843_v1 = vpop.eup %5571  ;;  %v2974_v11 = vmul.f32 0.5, %v2846_v50  ;;  %v2982_v63 = vmul.f32 0.5, %v2854_v55  ;;  %v3217_v49 = vpack.c.bf16 %v3113_v61, %v3105_v24  ;;  %v9457_v43 = vld [vmem:[#allocation93_spill] sm:$0xff]  ;;  %v5605_v31 = vld [vmem:[%s9128_s6 + $0x370] ss:$8 sps:$4 sm:$0xff]   ;;  %v9460_v61 = vld [vmem:[#allocation122_spill] sm:$0xff] }
 0x459   :  { %v2536_v58 = vadd.f32 %v2408_v4, %v8793_v17  ;;  %v2656_v52 = vmul.f32 0.7978846, %v2528_v39  ;;  %v2537_v37 = vadd.f32 %v2409_v40, %v8804_v46  ;;  %v2856_v6 = vadd.f32 1.0, %v8644_v59  ;;  %v9458_v4 = vld [vmem:[#allocation97_spill] sm:$0xff] }
 0x45a   :  { %4896 = vmatpush1.bf16.msra.mxu1 %v5603_v3  ;;  %v2657_v27 = vmul.f32 0.7978846, %v2529_v22  ;;  %v3102_v15 = vmul.f32 %v2974_v11, %v9455_v16  ;;  %v3110_v25 = vmul.f32 %v2982_v63, %v9456_v28  ;;  %4429 = vmatprep.mubr.bf16.mxu0 %v3217_v49  ;;  %v2976_v7 = vmul.f32 0.5, %v2848_v45  ;;  %v9459_v32 = vld [vmem:[#allocation121_spill] sm:$0xff]  ;;  %v9462_v45 = vld [vmem:[#allocation128_spill] sm:$0xff] }
 0x45b   :  { %4881 = vmatprep.subr.bf16.mxu1 %v5604_v62  ;;  %v2664_v19 = vmul.f32 0.7978846, %v2536_v58  ;;  %5573 = vtanh.f32 %v2656_v52  ;;  %v2665_v30 = vmul.f32 0.7978846, %v2537_v37  ;;  %v2863_v26 = vadd.f32 1.0, %v9457_v43  ;;  %v9463_v52 = vld [vmem:[#allocation129_spill] sm:$0xff] }
 0x45c   :  { %5575 = vtanh.f32 %v2657_v27  ;;  %v3214_v60 = vpack.c.bf16 %v3110_v25, %v3102_v15  ;;  %v2984_v41 = vmul.f32 0.5, %v2856_v6  ;;  %v2871_v24 = vadd.f32 1.0, %v9458_v4  ;;  %v5606_v39 = vld [vmem:[%s9128_s6 + $0x384] ss:$8 sps:$4 sm:$0xff]   ;;  %v5607_v16 = vld [vmem:[%s9128_s6 + $0x380] ss:$8 sps:$4 sm:$0xff]  }
 0x45d   :  { %5577 = vtanh.f32 %v2664_v19  ;;  %v3104_v50 = vmul.f32 %v2976_v7, %v8521_v29  ;;  %v2991_v59 = vmul.f32 0.5, %v2863_v26  ;;  %v8865_v55 = vadd.f32 %v9459_v32, %v8394_v12  ;;  %v9461_v29 = vld [vmem:[#allocation64_spill] sm:$0xff]  ;;  %v9465_v7 = vld [vmem:[#allocation87_spill] sm:$0xff] }
 0x45e   :  { %4897 = vmatpush1.bf16.msra.mxu1 %v5605_v31  ;;  %5579 = vtanh.f32 %v2665_v30  ;;  %v3112_v22 = vmul.f32 %v2984_v41, %v8529_v5  ;;  %v2999_v40 = vmul.f32 0.5, %v2871_v24  ;;  %v8873_v58 = vadd.f32 %v9460_v61, %v8401_v36  ;;  %v9464_v5 = vld [vmem:[#allocation71_spill] sm:$0xff]  ;;  %v9466_v31 = vld [vmem:[#allocation94_spill] sm:$0xff] }
 0x45f   :  { %4882 = vmatprep.subr.bf16.mxu1 %v5606_v39  ;;  %4317 = vmatmul.mubr.bf16.gmra.mrb[40].mxu1 %v3214_v60  ;;  %v3119_v11 = vmul.f32 %v2991_v59, %v9461_v29  ;;  %v2160_v63 = vmul.f32 %v8865_v55, %v8865_v55  ;;  %v8880_v3 = vadd.f32 %v9462_v45, %v8394_v12  ;;  %v2865_v19 = vadd.f32 1.0, %v8694_v53  ;;  %v5608_v25 = vld [vmem:[%s9128_s6 + $0x394] ss:$8 sps:$4 sm:$0xff]   ;;  %v5609_v32 = vld [vmem:[%s9128_s6 + $0x390] ss:$8 sps:$4 sm:$0xff]  }
 0x460   :  { %v8884_v27 = vadd.f32 %v9463_v52, %v8401_v36  ;;  %v3216_v37 = vpack.c.bf16 %v3112_v22, %v3104_v50  ;;  %v3127_v49 = vmul.f32 %v2999_v40, %v9464_v5  ;;  %v2161_v62 = vmul.f32 %v8873_v58, %v8873_v58  ;;  %v9467_v52 = vld [vmem:[#allocation62_spill] sm:$0xff] }
 0x461   :  { %v2288_v12 = vmul.f32 %v2160_v63, %v8865_v55  ;;  %v2168_v15 = vmul.f32 %v8880_v3, %v8880_v3  ;;  %v2873_v28 = vadd.f32 1.0, %v8721_v23  ;;  %v2993_v30 = vmul.f32 0.5, %v2865_v19 }
 0x462   :  { %4898 = vmatpush1.bf16.msra.mxu1 %v5607_v16  ;;  %v2169_v36 = vmul.f32 %v8884_v27, %v8884_v27  ;;  %4430 = vmatmul.mubr.bf16.gmra.mrb[136].mxu0 %v3216_v37  ;;  %v3223_v53 = vpack.c.bf16 %v3127_v49, %v3119_v11  ;;  %v2289_v6 = vmul.f32 %v2161_v62, %v8873_v58  ;;  %v2862_v43 = vadd.f32 1.0, %v9465_v7  ;;  %v9469_v7 = vld [vmem:[#allocation106_spill] sm:$0xff] }
 0x463   :  { %4883 = vmatprep.subr.bf16.mxu1 %v5608_v25  ;;  %v2416_v26 = vmul.f32 0.044715, %v2288_v12  ;;  %v2296_v60 = vmul.f32 %v2168_v15, %v8880_v3  ;;  %v3001_v4 = vmul.f32 0.5, %v2873_v28  ;;  %v3121_v24 = vmul.f32 %v2993_v30, %v8598_v18  ;;  %v5610_v18 = vld [vmem:[%s9128_s6 + $0x3a4] ss:$8 sps:$4 sm:$0xff]  }
 0x464   :  { %v2297_v41 = vmul.f32 %v2169_v36, %v8884_v27  ;;  %4326 = vmatprep.mubr.bf16.mxu1 %v3223_v53  ;;  %v2417_v23 = vmul.f32 0.044715, %v2289_v6  ;;  %v2870_v50 = vadd.f32 1.0, %v9466_v31  ;;  %v2990_v59 = vmul.f32 0.5, %v2862_v43  ;;  %v9468_v36 = vld [vmem:[#allocation68_spill] sm:$0xff] }
 0x465   :  { %v8911_v39 = vpop.eup %5573  ;;  %v2544_v22 = vadd.f32 %v2416_v26, %v8865_v55  ;;  %v2424_v40 = vmul.f32 0.044715, %v2296_v60  ;;  %v3129_v29 = vmul.f32 %v3001_v4, %v8617_v33  ;;  %v2864_v5 = vadd.f32 1.0, %v8690_v21  ;;  %v5611_v21 = vld [vmem:[%s9128_s6 + $0x3a0] ss:$8 sps:$4 sm:$0xff]   ;;  %v9471_v31 = vld [vmem:[#allocation100_spill] sm:$0xff] }
 0x466   :  { %4899 = vmatpush1.bf16.msra.mxu1 %v5609_v32  ;;  %v2425_v61 = vmul.f32 0.044715, %v2297_v41  ;;  %v8918_v11 = vpop.eup %5575  ;;  %v2545_v63 = vadd.f32 %v2417_v23, %v8873_v58  ;;  %v2998_v45 = vmul.f32 0.5, %v2870_v50  ;;  %v3118_v37 = vmul.f32 %v2990_v59, %v9467_v52  ;;  %v5612_v26 = vld [vmem:[%s9128_s6 + $0x3b4] ss:$8 sps:$4 sm:$0xff]   ;;  %v9470_v4 = vld [vmem:[#allocation109_spill] sm:$0xff] }
 0x467   :  { %4884 = vmatprep.subr.bf16.mxu1 %v5610_v18  ;;  %v8923_v49 = vpop.eup %5577  ;;  %v2672_v62 = vmul.f32 0.7978846, %v2544_v22  ;;  %v2552_v19 = vadd.f32 %v2424_v40, %v8880_v3  ;;  %v3225_v16 = vpack.c.bf16 %v3129_v29, %v3121_v24  ;;  %v2872_v25 = vadd.f32 1.0, %v8711_v0  ;;  %v9472_v32 = vld [vmem:[#allocation108_spill] sm:$0xff]  ;;  %v9473_v40 = vld [vmem:[#allocation114_spill] sm:$0xff] }
 0x468   :  { %v2553_v33 = vadd.f32 %v2425_v61, %v8884_v27  ;;  %v8927_v12 = vpop.eup %5579  ;;  %v2673_v15 = vmul.f32 0.7978846, %v2545_v63  ;;  %v3126_v28 = vmul.f32 %v2998_v45, %v9468_v36  ;;  %v2992_v53 = vmul.f32 0.5, %v2864_v5  ;;  %v9474_v18 = vld [vmem:[#allocation84_spill] sm:$0xff]  ;;  %v9475_v52 = vld [vmem:[#allocation118_spill] sm:$0xff] }
 0x469   :  { %5581 = vtanh.f32 %v2672_v62  ;;  %v2680_v6 = vmul.f32 0.7978846, %v2552_v19  ;;  %4439 = vmatprep.mubr.bf16.mxu0 %v3225_v16  ;;  %v2879_v43 = vadd.f32 1.0, %v9469_v7  ;;  %v3000_v0 = vmul.f32 0.5, %v2872_v25  ;;  %v5614_v16 = vld [vmem:[%s9128_s6 + $0x3c4] ss:$8 sps:$4 sm:$0xff]  }
 0x46a   :  { %4900 = vmatpush1.bf16.msra.mxu1 %v5611_v21  ;;  %v2681_v30 = vmul.f32 0.7978846, %v2553_v33  ;;  %5583 = vtanh.f32 %v2673_v15  ;;  %v3222_v60 = vpack.c.bf16 %v3126_v28, %v3118_v37  ;;  %v3120_v41 = vmul.f32 %v2992_v53, %v8592_v8  ;;  %v5613_v37 = vld [vmem:[%s9128_s6 + $0x3b0] ss:$8 sps:$4 sm:$0xff]   ;;  %v9476_v33 = vld [vmem:[#allocation113_spill] sm:$0xff] }
 0x46b   :  { %4885 = vmatprep.subr.bf16.mxu1 %v5612_v26  ;;  %5585 = vtanh.f32 %v2680_v6  ;;  %v2887_v23 = vadd.f32 1.0, %v9470_v4  ;;  %v3007_v24 = vmul.f32 0.5, %v2879_v43  ;;  %v2878_v50 = vadd.f32 1.0, %v9471_v31  ;;  %v9477_v15 = vld [vmem:[#allocation92_spill] sm:$0xff]  ;;  %v9478_v28 = vld [vmem:[#allocation75_spill] sm:$0xff]  ;;  %v9479_v21 = vld [vmem:[#allocation117_spill] sm:$0xff] }
 0x46c   :  { %5587 = vtanh.f32 %v2681_v30  ;;  %4327 = vmatmul.mubr.bf16.gmra.mrb[44].mxu1 %v3222_v60  ;;  %v3128_v59 = vmul.f32 %v3000_v0, %v8613_v10  ;;  %v2886_v22 = vadd.f32 1.0, %v9472_v32  ;;  %v2895_v61 = vadd.f32 1.0, %v9473_v40  ;;  %v9480_v30 = vld [vmem:[#allocation88_spill] sm:$0xff]  ;;  %v9481_v43 = vld [vmem:[#allocation99_spill] sm:$0xff]  ;;  %v5615_v32 = vld [vmem:[%s9128_s6 + $0x3c0] ss:$8 sps:$4 sm:$0xff]  }
 0x46d   :  { %v3015_v29 = vmul.f32 0.5, %v2887_v23  ;;  %v3135_v63 = vmul.f32 %v3007_v24, %v9474_v18  ;;  %v3006_v45 = vmul.f32 0.5, %v2878_v50  ;;  %v2903_v8 = vadd.f32 1.0, %v9475_v52  ;;  %v9482_v0 = vld [vmem:[#allocation79_spill] sm:$0xff]  ;;  %v9483_v23 = vld [vmem:[#allocation104_spill] sm:$0xff]  ;;  %v9484_v50 = vld [vmem:[#allocation82_spill] sm:$0xff] }
 0x46e   :  { %4901 = vmatpush1.bf16.msra.mxu1 %v5613_v37  ;;  %v3224_v5 = vpack.c.bf16 %v3128_v59, %v3120_v41  ;;  %v3014_v62 = vmul.f32 0.5, %v2886_v22  ;;  %v3023_v19 = vmul.f32 0.5, %v2895_v61  ;;  %v2894_v10 = vadd.f32 1.0, %v9476_v33  ;;  %v9485_v40 = vld [vmem:[#allocation96_spill] sm:$0xff]  ;;  %v9486_v18 = vld [vmem:[#allocation77_spill] sm:$0xff] }
 0x46f   :  { %4886 = vmatprep.subr.bf16.mxu1 %v5614_v16  ;;  %v3143_v36 = vmul.f32 %v3015_v29, %v9477_v15  ;;  %v3134_v25 = vmul.f32 %v3006_v45, %v9478_v28  ;;  %v3031_v53 = vmul.f32 0.5, %v2903_v8  ;;  %v2902_v6 = vadd.f32 1.0, %v9479_v21  ;;  %v9487_v37 = vld [vmem:[#allocation101_spill] sm:$0xff]  ;;  %v9489_v16 = vld [vmem:[#allocation111_spill] sm:$0xff]  ;;  %v9490_v28 = vld [vmem:[#allocation90_spill] sm:$0xff] }
 0x470   :  { %4440 = vmatmul.mubr.bf16.gmra.mrb[140].mxu0 %v3224_v5  ;;  %v3142_v7 = vmul.f32 %v3014_v62, %v9480_v30  ;;  %v3151_v26 = vmul.f32 %v3023_v19, %v9481_v43  ;;  %v3022_v60 = vmul.f32 0.5, %v2894_v10  ;;  %v2911_v41 = vadd.f32 1.0, %v9482_v0  ;;  %v9488_v19 = vld [vmem:[#allocation81_spill] sm:$0xff]  ;;  %v9493_v0 = vld [vmem:[#allocation86_spill] sm:$0xff] }
 0x471   :  { %v3231_v4 = vpack.c.bf16 %v3143_v36, %v3135_v63  ;;  %v3159_v24 = vmul.f32 %v3031_v53, %v9483_v23  ;;  %v3030_v31 = vmul.f32 0.5, %v2902_v6  ;;  %v2919_v59 = vadd.f32 1.0, %v9484_v50  ;;  %v5616_v63 = vld [vmem:[%s9128_s6 + $0x3d4] ss:$8 sps:$4 sm:$0xff]   ;;  %v9494_v23 = vld [vmem:[#allocation110_spill] sm:$0xff] }
 0x472   :  { %4902 = vmatpush1.bf16.msra.mxu1 %v5615_v32  ;;  %v3230_v22 = vpack.c.bf16 %v3142_v7, %v3134_v25  ;;  %v3150_v61 = vmul.f32 %v3022_v60, %v9485_v40  ;;  %v3039_v29 = vmul.f32 0.5, %v2911_v41  ;;  %v2910_v45 = vadd.f32 1.0, %v9486_v18  ;;  %v9491_v53 = vld [vmem:[#allocation91_spill] sm:$0xff]  ;;  %v9495_v32 = vld [vmem:[#allocation89_spill] sm:$0xff] }
 0x473   :  { %4887 = vmatprep.subr.bf16.mxu1 %v5616_v63  ;;  %v8969_v52 = vpop.eup %5581  ;;  %4336 = vmatprep.mubr.bf16.mxu1 %v3231_v4  ;;  %v3239_v8 = vpack.c.bf16 %v3159_v24, %v3151_v26  ;;  %v3158_v5 = vmul.f32 %v3030_v31, %v9487_v37  ;;  %v3047_v62 = vmul.f32 0.5, %v2919_v59  ;;  %v2918_v33 = vadd.f32 1.0, %v9488_v19  ;;  %v9492_v7 = vld [vmem:[#allocation115_spill] sm:$0xff]  ;;  %v5618_v59 = vld [vmem:[%s9128_s6 + $0x3e4] ss:$8 sps:$4 sm:$0xff]  }
 0x474   :  { %v8973_v10 = vpop.eup %5583  ;;  %4337 = vmatmul.mubr.bf16.gmra.mrb[48].mxu1 %v3230_v22  ;;  %v3167_v15 = vmul.f32 %v3039_v29, %v9489_v16  ;;  %v3038_v36 = vmul.f32 0.5, %v2910_v45  ;;  %v2927_v25 = vadd.f32 1.0, %v9490_v28  ;;  %v2935_v21 = vadd.f32 1.0, %v9491_v53  ;;  %v5617_v60 = vld [vmem:[%s9128_s6 + $0x3d0] ss:$8 sps:$4 sm:$0xff]   ;;  %v9497_v63 = vld [vmem:[#allocation57_spill] sm:$0xff] }
 0x475   :  { %v8978_v6 = vpop.eup %5585  ;;  %4346 = vmatprep.mubr.bf16.mxu1 %v3239_v8  ;;  %v3238_v30 = vpack.c.bf16 %v3158_v5, %v3150_v61  ;;  %v3175_v43 = vmul.f32 %v3047_v62, %v9492_v7  ;;  %v3046_v26 = vmul.f32 0.5, %v2918_v33  ;;  %v2926_v41 = vadd.f32 1.0, %v9493_v0  ;;  %v9496_v61 = vld [vmem:[#allocation112_spill] sm:$0xff]  ;;  %v9498_v37 = vld [vmem:[#allocation78_spill] sm:$0xff]  ;;  %v9499_v16 = vld [vmem:[#allocation67_spill] sm:$0xff] }
 0x476   :  { %4903 = vmatpush1.bf16.msra.mxu1 %v5617_v60  ;;  %v5588_v4 = vpop.eup %5587  ;;  %v8986_v24 = vmul.f32 %v3038_v36, %v9494_v23  ;;  %v3055_v31 = vmul.f32 0.5, %v2927_v25  ;;  %v3063_v50 = vmul.f32 0.5, %v2935_v21  ;;  %v2934_v22 = vadd.f32 1.0, %v9495_v32  ;;  %v9500_v53 = vld [vmem:[#allocation76_spill] sm:$0xff] }
 0x477   :  { %4888 = vmatprep.subr.bf16.mxu1 %v5618_v59  ;;  %v3247_v40 = vpack.c.bf16 %v3175_v43, %v3167_v15  ;;  %v3174_v29 = vmul.f32 %v3046_v26, %v9496_v61  ;;  %v3054_v18 = vmul.f32 0.5, %v2926_v41  ;;  %v2881_v45 = vadd.f32 1.0, %v8765_v20  ;;  %v5619_v15 = vld [vmem:[%s9128_s6 + $0x3e0] ss:$8 sps:$4 sm:$0xff]  }
 0x478   :  { %v3183_v8 = vmul.f32 %v3055_v31, %v9497_v63  ;;  %v3191_v5 = vmul.f32 %v3063_v50, %v9498_v37  ;;  %v3062_v62 = vmul.f32 0.5, %v2934_v22  ;;  %v2889_v19 = vadd.f32 1.0, %v8775_v14  ;;  %v5620_v14 = vld [vmem:[%s9128_s6 + $0x3f4] ss:$8 sps:$4 sm:$0xff]   ;;  %v5621_v50 = vld [vmem:[%s9128_s6 + $0x3f0] ss:$8 sps:$4 sm:$0xff]  }
 0x479   :  { %v3246_v33 = vpack.c.bf16 %v3174_v29, %v8986_v24  ;;  %v3182_v36 = vmul.f32 %v3054_v18, %v9499_v16  ;;  %v3009_v28 = vmul.f32 0.5, %v2881_v45  ;;  %v2897_v25 = vadd.f32 1.0, %v8833_v48 }
 0x47a   :  { %4904 = vmatpush1.bf16.msra.mxu1 %v5619_v15  ;;  %v3255_v20 = vpack.c.bf16 %v3191_v5, %v3183_v8  ;;  %v3190_v21 = vmul.f32 %v3062_v62, %v9500_v53  ;;  %v3017_v7 = vmul.f32 0.5, %v2889_v19  ;;  %v2905_v43 = vadd.f32 1.0, %v8843_v1 }
 0x47b   :  { %4889 = vmatprep.subr.bf16.mxu1 %v5620_v14  ;;  %v3137_v26 = vmul.f32 %v3009_v28, %v8658_v38  ;;  %v3025_v60 = vmul.f32 0.5, %v2897_v25  ;;  %v2896_v0 = vadd.f32 1.0, %v8816_v42  ;;  %v2904_v41 = vadd.f32 1.0, %v8838_v34 }
 0x47c   :  { %4347 = vmatmul.mubr.bf16.gmra.mrb[52].mxu1 %v3238_v30  ;;  %v3254_v48 = vpack.c.bf16 %v3190_v21, %v3182_v36  ;;  %v3145_v23 = vmul.f32 %v3017_v7, %v8666_v51  ;;  %v3033_v24 = vmul.f32 0.5, %v2905_v43  ;;  %v2913_v31 = vadd.f32 1.0, %v8918_v11  ;;  %v9503_v43 = vld [vmem:[#allocation8_spill] sm:$0xff] }
 0x47d   :  { %4356 = vmatprep.mubr.bf16.mxu1 %v3247_v40  ;;  %v3153_v38 = vmul.f32 %v3025_v60, %v8709_v44  ;;  %v3024_v1 = vmul.f32 0.5, %v2896_v0  ;;  %v3032_v59 = vmul.f32 0.5, %v2904_v41  ;;  %v2921_v42 = vadd.f32 1.0, %v8927_v12  ;;  %v9504_v41 = vld [vmem:[#allocation9_spill] sm:$0xff] }
 0x47e   :  { %4905 = vmatpush1.bf16.msra.mxu1 %v5621_v50  ;;  %v3233_v34 = vpack.c.bf16 %v3145_v23, %v3137_v26  ;;  %v3161_v30 = vmul.f32 %v3033_v24, %v8730_v2  ;;  %v3041_v32 = vmul.f32 0.5, %v2913_v31  ;;  %v2912_v51 = vadd.f32 1.0, %v8911_v39  ;;  %v9505_v24 = vld [vmem:[#allocation10_spill] sm:$0xff]  ;;  %v9506_v50 = vld [vmem:[#allocation11_spill] sm:$0xff] }
 0x47f   :  { %v3152_v11 = vmul.f32 %v3024_v1, %v8688_v35  ;;  %v3160_v22 = vmul.f32 %v3032_v59, %v8719_v56  ;;  %v3049_v40 = vmul.f32 0.5, %v2921_v42  ;;  %v2920_v61 = vadd.f32 1.0, %v8923_v49 }
 0x480   :  { %v3241_v29 = vpack.c.bf16 %v3161_v30, %v3153_v38  ;;  %v3169_v44 = vmul.f32 %v3041_v32, %v8788_v57  ;;  %v3040_v18 = vmul.f32 0.5, %v2912_v51  ;;  %v2929_v45 = vadd.f32 1.0, %v8973_v10 }
 0x481   :  { %v3240_v12 = vpack.c.bf16 %v3160_v22, %v3152_v11  ;;  %v3177_v63 = vmul.f32 %v3049_v40, %v8804_v46  ;;  %v3048_v2 = vmul.f32 0.5, %v2920_v61  ;;  %v2937_v8 = vadd.f32 1.0, %v5588_v4 }
 0x482   :  { %v3057_v37 = vmul.f32 0.5, %v2929_v45  ;;  %v2928_v39 = vadd.f32 1.0, %v8969_v52  ;;  %v2936_v35 = vadd.f32 1.0, %v8978_v6  ;;  %v3168_v5 = vmul.f32 %v3040_v18, %v8784_v47  ;;  %v3386_v47 = vld [vmem:[%s9129_s7] sm:$0x3]  ;;  %v9507_v18 = vld [vmem:[#allocation12_spill] sm:$0xff] }
 0x483   :  { %v3249_v56 = vpack.c.bf16 %v3177_v63, %v3169_v44  ;;  %v3176_v49 = vmul.f32 %v3048_v2, %v8793_v17  ;;  %v3065_v62 = vmul.f32 0.5, %v2937_v8  ;;  %v9501_v17 = vld [vmem:[#allocation6_spill] sm:$0xff]  ;;  %v9508_v2 = vld [vmem:[#allocation13_spill] sm:$0xff]  ;;  %s5646_s7 = smov [#allocation2]  }
 0x484   :  { %4357 = vmatmul.mubr.bf16.gmra.mrb[56].mxu1 %v3246_v33  ;;  %v3056_v57 = vmul.f32 0.5, %v2928_v39  ;;  %v3064_v19 = vmul.f32 0.5, %v2936_v35  ;;  %v3185_v46 = vmul.f32 %v3057_v37, %v8873_v58  ;;  %v9502_v58 = vld [vmem:[#allocation7_spill] sm:$0xff]  ;;  %v9509_v39 = vld [vmem:[#allocation14_spill] sm:$0xff]  ;;  %s4559_s18 = sshll.u32 %s5646_s7, 4  ;;  %s4560_s18 = int_to_ptr.vmem [resolvable:$true] %s4559_s18 }
 0x485   :  { %4366 = vmatprep.mubr.bf16.mxu1 %v3255_v20  ;;  %v3248_v10 = vpack.c.bf16 %v3176_v49, %v3168_v5  ;;  %v3193_v4 = vmul.f32 %v3065_v62, %v8884_v27  ;;  %s5622_s19 = scalar_lea.vmem %s4560_s18, 4096  ;;  %p5627_p1 = scmp.lt.s32.totalorder %s4560_s18, %s4560_s18 }
 0x486   :  { %v3184_v16 = vmul.f32 %v3056_v57, %v8865_v55  ;;  %v3192_v52 = vmul.f32 %v3064_v19, %v8880_v3  ;;  %v9041_v55 = vrot.slane %v3386_v47, %v9501_v17  ;;  %v9044_v3 = vrot.slane %v3386_v47, %v9502_v58  ;;  %v9511_v58 = vld [vmem:[#allocation16_spill] sm:$0xff]  ;;  %p5623_p0 = scmp.ne.s32.totalorder %s4560_s18, %s5622_s19  ;;  %p5628_p2 = scmp.lt.s32.totalorder %s5622_s19, %s5622_s19 }
 0x487   :  { %v3257_v6 = vpack.c.bf16 %v3193_v4, %v3185_v46 }
 0x488   :  { %v3256_v36 = vpack.c.bf16 %v3192_v52, %v3184_v16  ;;  %p5629_p3 = por %p5628_p2, %p5627_p1 }
 0x48a   :  { %p5630_p4 = pnand %p5629_p3, %p5623_p0 }
 0x48c   :  { %4367 = vmatmul.mubr.bf16.gmra.mrb[60].mxu1 %v3254_v48 }
 0x48d   :  { %4449 = vmatprep.mubr.bf16.mxu1 %v3233_v34 }
 0x494   :  { %4450 = vmatmul.mubr.bf16.vlgmr.msra.gmra.mrb[48].mxu1 %v3232_v13 }
 0x495   :  { %4459 = vmatprep.mubr.bf16.mxu1 %v3241_v29 }
 0x49c   :  { %4460 = vmatmul.mubr.bf16.gmra.mrb[52].mxu1 %v3240_v12 }
 0x49d   :  { %4469 = vmatprep.mubr.bf16.mxu1 %v3249_v56  ;;  %v9510_v56 = vld [vmem:[#allocation15_spill] sm:$0xff] }
 0x4a4   :  { %4470 = vmatmul.mubr.bf16.gmra.mrb[56].mxu1 %v3248_v10 }
 0x4a5   :  { %4479 = vmatprep.mubr.bf16.mxu1 %v3257_v6 }
 0x4ac   :  { %4480 = vmatmul.mubr.bf16.gmra.mrb[60].mxu1 %v3256_v36 }
 0x514   :  { %v4298_v27 = vpop.f32.mrb[32].mxu1 }
 0x515   :  { %v4906_v9 = vadd.f32 %v4298_v27, %v9041_v55  ;;  %v4300_v54 = vpop.f32.mrb[33].mxu1  ;;  %v4411_v15 = vpop.f32.mrb[128].mxu0 }
 0x516   :  { %v4908_v13 = vadd.f32 %v4300_v54, %v9044_v3  ;;  %v4302_v33 = vpop.f32.mrb[34].mxu1  ;;  %v4413_v53 = vpop.f32.mrb[129].mxu0 }
 0x517   :  { %v4910_v28 = vadd.f32 %v4302_v33, %v9041_v55  ;;  %v4304_v25 = vpop.f32.mrb[35].mxu1  ;;  %v4907_v20 = vadd.f32 %v4906_v9, %v4411_v15  ;;  %v4415_v14 = vpop.f32.mrb[130].mxu0 }
 0x518   :  { %v4912_v21 = vadd.f32 %v4304_v25, %v9044_v3  ;;  %v4909_v7 = vadd.f32 %v4908_v13, %v4413_v53  ;;  %v4417_v0 = vpop.f32.mrb[131].mxu0  ;;  %v9512_v13 = vld [vmem:[#allocation17_spill] sm:$0xff] }
 0x519   :  { %v4490_v26 = vadd.f32 %v4907_v20, %v9503_v43  ;;  %v4911_v60 = vadd.f32 %v4910_v28, %v4415_v14  ;;  %v9513_v28 = vld [vmem:[#allocation18_spill] sm:$0xff]  ;;  %v9514_v20 = vld [vmem:[#allocation19_spill] sm:$0xff] }
 0x51a   :  { %v4491_v48 = vadd.f32 %v4909_v7, %v9504_v41  ;;  %v4913_v23 = vadd.f32 %v4912_v21, %v4417_v0 }
 0x51b   :  { %4522 = vst [vmem:[#allocation2] sm:$0xff] %v4490_v26  ;;  %v4492_v31 = vadd.f32 %v4911_v60, %v9505_v24 }
 0x51c   :  { %4523 = vst [vmem:[#allocation2 + $0x8] sm:$0xff] %v4491_v48  ;;  %v4493_v38 = vadd.f32 %v4913_v23, %v9506_v50 }
 0x51d   :  { %4524 = vst [vmem:[#allocation2 + $0x10] sm:$0xff] %v4492_v31 }
 0x51e   :  { %4525 = vst [vmem:[#allocation2 + $0x18] sm:$0xff] %v4493_v38  ;;  %v9515_v38 = vld [vmem:[#allocation20_spill] sm:$0xff] }
 0x522   :  { %v4308_v1 = vpop.f32.mrb[36].mxu1 }
 0x523   :  { %v4310_v59 = vpop.f32.mrb[37].mxu1  ;;  %v4914_v42 = vadd.f32 %v4308_v1, %v9041_v55 }
 0x524   :  { %v4312_v34 = vpop.f32.mrb[38].mxu1  ;;  %v4916_v30 = vadd.f32 %v4310_v59, %v9044_v3 }
 0x525   :  { %v4314_v32 = vpop.f32.mrb[39].mxu1  ;;  %v4918_v51 = vadd.f32 %v4312_v34, %v9041_v55  ;;  %v9516_v34 = vld [vmem:[#allocation21_spill] sm:$0xff] }
 0x526   :  { %v4421_v11 = vpop.f32.mrb[132].mxu0  ;;  %v4920_v22 = vadd.f32 %v4314_v32, %v9044_v3 }
 0x527   :  { %v4915_v40 = vadd.f32 %v4914_v42, %v4421_v11  ;;  %v4423_v61 = vpop.f32.mrb[133].mxu0 }
 0x528   :  { %v4917_v29 = vadd.f32 %v4916_v30, %v4423_v61  ;;  %v4425_v44 = vpop.f32.mrb[134].mxu0 }
 0x529   :  { %v4494_v45 = vadd.f32 %v4915_v40, %v9507_v18  ;;  %v4919_v12 = vadd.f32 %v4918_v51, %v4425_v44  ;;  %v4427_v63 = vpop.f32.mrb[135].mxu0  ;;  %v9517_v51 = vld [vmem:[#allocation22_spill] sm:$0xff] }
 0x52a   :  { %v4495_v8 = vadd.f32 %v4917_v29, %v9508_v2  ;;  %v4921_v37 = vadd.f32 %v4920_v22, %v4427_v63  ;;  %v9518_v22 = vld [vmem:[#allocation23_spill] sm:$0xff] }
 0x52b   :  { %4526 = vst [vmem:[#allocation2 + $0x20] sm:$0xff] %v4494_v45  ;;  %v4496_v35 = vadd.f32 %v4919_v12, %v9509_v39  ;;  %v9519_v12 = vld [vmem:[#allocation24_spill] sm:$0xff] }
 0x52c   :  { %4527 = vst [vmem:[#allocation2 + $0x28] sm:$0xff] %v4495_v8  ;;  %v4497_v5 = vadd.f32 %v4921_v37, %v9510_v56  ;;  %v9520_v37 = vld [vmem:[#allocation25_spill] sm:$0xff]  ;;  %v9521_v56 = vld [vmem:[#allocation26_spill] sm:$0xff] }
 0x52d   :  { %4528 = vst [vmem:[#allocation2 + $0x30] sm:$0xff] %v4496_v35 }
 0x52e   :  { %4529 = vst [vmem:[#allocation2 + $0x38] sm:$0xff] %v4497_v5 }
 0x532   :  { %v4318_v49 = vpop.f32.mrb[40].mxu1 }
 0x533   :  { %v4922_v62 = vadd.f32 %v4318_v49, %v9041_v55  ;;  %v4320_v57 = vpop.f32.mrb[41].mxu1  ;;  %v9522_v49 = vld [vmem:[#allocation27_spill] sm:$0xff] }
 0x534   :  { %v4924_v19 = vadd.f32 %v4320_v57, %v9044_v3  ;;  %v4322_v10 = vpop.f32.mrb[42].mxu1 }
 0x535   :  { %v4926_v46 = vadd.f32 %v4322_v10, %v9041_v55  ;;  %v4324_v4 = vpop.f32.mrb[43].mxu1  ;;  %v4431_v16 = vpop.f32.mrb[136].mxu0 }
 0x536   :  { %v4928_v52 = vadd.f32 %v4324_v4, %v9044_v3  ;;  %v4923_v6 = vadd.f32 %v4922_v62, %v4431_v16  ;;  %v4433_v36 = vpop.f32.mrb[137].mxu0  ;;  %v9523_v16 = vld [vmem:[#allocation28_spill] sm:$0xff] }
 0x537   :  { %v4925_v47 = vadd.f32 %v4924_v19, %v4433_v36  ;;  %v4435_v17 = vpop.f32.mrb[138].mxu0 }
 0x538   :  { %v4498_v27 = vadd.f32 %v4923_v6, %v9511_v58  ;;  %v4927_v9 = vadd.f32 %v4926_v46, %v4435_v17  ;;  %v4437_v54 = vpop.f32.mrb[139].mxu0 }
 0x539   :  { %v4499_v33 = vadd.f32 %v4925_v47, %v9512_v13  ;;  %v4929_v15 = vadd.f32 %v4928_v52, %v4437_v54  ;;  %v9524_v47 = vld [vmem:[#allocation29_spill] sm:$0xff]  ;;  %v9526_v54 = vld [vmem:[#allocation31_spill] sm:$0xff] }
 0x53a   :  { %4530 = vst [vmem:[#allocation2 + $0x40] sm:$0xff] %v4498_v27  ;;  %v4500_v25 = vadd.f32 %v4927_v9, %v9513_v28  ;;  %v9525_v27 = vld [vmem:[#allocation30_spill] sm:$0xff] }
 0x53b   :  { %4531 = vst [vmem:[#allocation2 + $0x48] sm:$0xff] %v4499_v33  ;;  %v4501_v53 = vadd.f32 %v4929_v15, %v9514_v20 }
 0x53c   :  { %4532 = vst [vmem:[#allocation2 + $0x50] sm:$0xff] %v4500_v25 }
 0x53d   :  { %4533 = vst [vmem:[#allocation2 + $0x58] sm:$0xff] %v4501_v53  ;;  %v9527_v53 = vld [vmem:[#allocation32_spill] sm:$0xff] }
 0x53f   :  { %v4328_v21 = vpop.f32.mrb[44].mxu1 }
 0x540   :  { %v4930_v7 = vadd.f32 %v4328_v21, %v9041_v55  ;;  %v4330_v14 = vpop.f32.mrb[45].mxu1 }
 0x541   :  { %v4932_v43 = vadd.f32 %v4330_v14, %v9044_v3  ;;  %v4332_v26 = vpop.f32.mrb[46].mxu1 }
 0x542   :  { %v4934_v60 = vadd.f32 %v4332_v26, %v9041_v55  ;;  %v4334_v0 = vpop.f32.mrb[47].mxu1 }
 0x543   :  { %v4441_v41 = vpop.f32.mrb[140].mxu0  ;;  %v4936_v48 = vadd.f32 %v4334_v0, %v9044_v3  ;;  %v9529_v0 = vld [vmem:[#allocation34_spill] sm:$0xff] }
 0x544   :  { %v4931_v23 = vadd.f32 %v4930_v7, %v4441_v41  ;;  %v4443_v24 = vpop.f32.mrb[141].mxu0 }
 0x545   :  { %v4933_v31 = vadd.f32 %v4932_v43, %v4443_v24  ;;  %v4445_v50 = vpop.f32.mrb[142].mxu0  ;;  %v9528_v43 = vld [vmem:[#allocation33_spill] sm:$0xff] }
 0x546   :  { %v4502_v1 = vadd.f32 %v4931_v23, %v9515_v38  ;;  %v4935_v59 = vadd.f32 %v4934_v60, %v4445_v50  ;;  %v4447_v42 = vpop.f32.mrb[143].mxu0 }
 0x547   :  { %v4503_v30 = vadd.f32 %v4933_v31, %v9516_v34  ;;  %v4937_v32 = vadd.f32 %v4936_v48, %v4447_v42  ;;  %v9530_v48 = vld [vmem:[#allocation35_spill] sm:$0xff] }
 0x548   :  { %4534 = vst [vmem:[#allocation2 + $0x60] sm:$0xff] %v4502_v1  ;;  %v4504_v11 = vadd.f32 %v4935_v59, %v9517_v51  ;;  %v9531_v59 = vld [vmem:[#allocation36_spill] sm:$0xff] }
 0x549   :  { %4535 = vst [vmem:[#allocation2 + $0x68] sm:$0xff] %v4503_v30  ;;  %v4505_v40 = vadd.f32 %v4937_v32, %v9518_v22  ;;  %v9532_v32 = vld [vmem:[#allocation37_spill] sm:$0xff]  ;;  %v9533_v22 = vld [vmem:[#allocation38_spill] sm:$0xff] }
 0x54a   :  { %4536 = vst [vmem:[#allocation2 + $0x70] sm:$0xff] %v4504_v11 }
 0x54b   :  { %4537 = vst [vmem:[#allocation2 + $0x78] sm:$0xff] %v4505_v40 }
 0x567   :  { %v4451_v61 = vpop.f32.mrb[48].mxu1 }
 0x568   :  { %v4938_v29 = vadd.f32 %v4451_v61, %v9041_v55  ;;  %v4453_v44 = vpop.f32.mrb[49].mxu1  ;;  %v9534_v61 = vld [vmem:[#allocation39_spill] sm:$0xff] }
 0x569   :  { %v4939_v18 = vadd.f32 %v4453_v44, %v9044_v3  ;;  %v4455_v45 = vpop.f32.mrb[50].mxu1 }
 0x56a   :  { %v4506_v63 = vadd.f32 %v4938_v29, %v9519_v12  ;;  %v4940_v2 = vadd.f32 %v4455_v45, %v9041_v55  ;;  %v4457_v8 = vpop.f32.mrb[51].mxu1 }
 0x56b   :  { %v4507_v39 = vadd.f32 %v4939_v18, %v9520_v37  ;;  %v4941_v35 = vadd.f32 %v4457_v8, %v9044_v3 }
 0x56c   :  { %4538 = vst [vmem:[#allocation2 + $0x80] sm:$0xff] %v4506_v63  ;;  %v4508_v5 = vadd.f32 %v4940_v2, %v9521_v56 }
 0x56d   :  { %4539 = vst [vmem:[#allocation2 + $0x88] sm:$0xff] %v4507_v39  ;;  %v4509_v62 = vadd.f32 %v4941_v35, %v9522_v49 }
 0x56e   :  { %4540 = vst [vmem:[#allocation2 + $0x90] sm:$0xff] %v4508_v5 }
 0x56f   :  { %4541 = vst [vmem:[#allocation2 + $0x98] sm:$0xff] %v4509_v62  ;;  %v4461_v57 = vpop.f32.mrb[52].mxu1 }
 0x570   :  { %v4942_v19 = vadd.f32 %v4461_v57, %v9041_v55  ;;  %v4463_v10 = vpop.f32.mrb[53].mxu1 }
 0x571   :  { %v4943_v46 = vadd.f32 %v4463_v10, %v9044_v3  ;;  %v4465_v4 = vpop.f32.mrb[54].mxu1 }
 0x572   :  { %v4510_v52 = vadd.f32 %v4942_v19, %v9523_v16  ;;  %v4944_v6 = vadd.f32 %v4465_v4, %v9041_v55  ;;  %v4467_v36 = vpop.f32.mrb[55].mxu1 }
 0x573   :  { %v4511_v17 = vadd.f32 %v4943_v46, %v9524_v47  ;;  %v4945_v58 = vadd.f32 %v4467_v36, %v9044_v3 }
 0x574   :  { %4542 = vst [vmem:[#allocation2 + $0xa0] sm:$0xff] %v4510_v52  ;;  %v4512_v9 = vadd.f32 %v4944_v6, %v9525_v27 }
 0x575   :  { %4543 = vst [vmem:[#allocation2 + $0xa8] sm:$0xff] %v4511_v17  ;;  %v4513_v13 = vadd.f32 %v4945_v58, %v9526_v54 }
 0x576   :  { %4544 = vst [vmem:[#allocation2 + $0xb0] sm:$0xff] %v4512_v9 }
 0x577   :  { %4545 = vst [vmem:[#allocation2 + $0xb8] sm:$0xff] %v4513_v13  ;;  %v4471_v33 = vpop.f32.mrb[56].mxu1 }
 0x578   :  { %v4946_v15 = vadd.f32 %v4471_v33, %v9041_v55  ;;  %v4473_v28 = vpop.f32.mrb[57].mxu1 }
 0x579   :  { %v4947_v25 = vadd.f32 %v4473_v28, %v9044_v3  ;;  %v4475_v20 = vpop.f32.mrb[58].mxu1 }
 0x57a   :  { %v4514_v21 = vadd.f32 %v4946_v15, %v9527_v53  ;;  %v4948_v7 = vadd.f32 %v4475_v20, %v9041_v55  ;;  %v4477_v14 = vpop.f32.mrb[59].mxu1 }
 0x57b   :  { %v4515_v26 = vadd.f32 %v4947_v25, %v9528_v43  ;;  %v4949_v60 = vadd.f32 %v4477_v14, %v9044_v3 }
 0x57c   :  { %4546 = vst [vmem:[#allocation2 + $0xc0] sm:$0xff] %v4514_v21  ;;  %v4516_v41 = vadd.f32 %v4948_v7, %v9529_v0 }
 0x57d   :  { %4547 = vst [vmem:[#allocation2 + $0xc8] sm:$0xff] %v4515_v26  ;;  %v4517_v23 = vadd.f32 %v4949_v60, %v9530_v48 }
 0x57e   :  { %4548 = vst [vmem:[#allocation2 + $0xd0] sm:$0xff] %v4516_v41 }
 0x57f   :  { %4549 = vst [vmem:[#allocation2 + $0xd8] sm:$0xff] %v4517_v23  ;;  %v4481_v24 = vpop.f32.mrb[60].mxu1 }
 0x580   :  { %v4950_v31 = vadd.f32 %v4481_v24, %v9041_v55  ;;  %v4483_v50 = vpop.f32.mrb[61].mxu1 }
 0x581   :  { %v4951_v38 = vadd.f32 %v4483_v50, %v9044_v3  ;;  %v4485_v1 = vpop.f32.mrb[62].mxu1 }
 0x582   :  { %v4518_v42 = vadd.f32 %v4950_v31, %v9531_v59  ;;  %v4952_v34 = vadd.f32 %v4485_v1, %v9041_v55  ;;  %v4487_v30 = vpop.f32.mrb[63].mxu1 }
 0x583   :  { %v4519_v51 = vadd.f32 %v4951_v38, %v9532_v32  ;;  %v4953_v11 = vadd.f32 %v4487_v30, %v9044_v3 }
 0x584   :  { %4550 = vst [vmem:[#allocation2 + $0xe0] sm:$0xff] %v4518_v42  ;;  %v4520_v40 = vadd.f32 %v4952_v34, %v9533_v22 }
 0x585   :  { %4551 = vst [vmem:[#allocation2 + $0xe8] sm:$0xff] %v4519_v51  ;;  %v4521_v29 = vadd.f32 %v4953_v11, %v9534_v61 }
 0x586   :  { %4552 = vst [vmem:[#allocation2 + $0xf0] sm:$0xff] %v4520_v40 }
 0x587   :  { %4553 = vst [vmem:[#allocation2 + $0xf8] sm:$0xff] %v4521_v29 }
 0x588   :  { %5633 = shalt.err (!%p5630_p4)
}
 0x589   :  { %s5634_s21 = scalar_lea.hbm %s9130_s8, 4096 }
 0x58a   :  { %p5635_p5 = scmp.ne.s32.totalorder %s9130_s8, %s5634_s21  ;;  %p5638_p6 = scmp.lt.u32.totalorder %s5634_s21, %s9130_s8 }
 0x58c   :  { %p5640_p7 = pnand %p5638_p6, %p5635_p5 }
 0x58e   :  { %5643 = shalt.err (!%p5640_p7)
}
 0x58f   :  { %s5647_s26 = smov 256   ;;  %s5648_s0 = smov 16  }
 0x590   :  { %4565 = dma.vmem_to_hbm [thread:$0]  %s4560_s18, 4096, %s9130_s8, [#allocation3], %s5647_s26, %s5647_s26, %s5648_s0  }
 0x591   :  { %5644 = dma.done.wait [#allocation3], 4096  }
 0x592   :  { %5645 = vsyncadd [#allocation3], 4294963200 }
 0x593   :  { %4569 = vsyncpa [#allocation3], 1 }

</bundles_post_ra>
